<compile_context>
chip_gen: v6e
topology: v6e:2x2x1
jax: 0.10.0
libtpu: 0.0.40
codegen_flags: <defaults>
</compile_context>

<pallas_src>
import jax
import jax.numpy as jnp
from jax.experimental import pallas as pl
from jax.experimental.pallas import tpu as pltpu

# ----------------------------- static config --------------------------------
B = 2
IN_C = 1
IN_H = IN_W = 64
LATENT = 32
CHANNELS = [16, 32, 32, 64, 64]      # make_divisible(8)-compatible small config
STRIDES = [1, 2, 2, 2]
EXPANSION = 4
FINAL_C = CHANNELS[-1]
NUM_HEADS = 1                        # final_channels=64 -> 1 head (as in torch)
BN_EPS = 1e-5
LN_EPS = 1e-5

STEM_K = 7
STEM_HW = 32                         # (64 + 2*3 - 7)//2 + 1
POOL_HW = 16                         # after 3x3 s2 p1 maxpool


def _block_cfg():
    cfgs = []
    cin, hw = CHANNELS[0], POOL_HW
    for si in range(len(CHANNELS) - 1):
        cout, s = CHANNELS[si + 1], STRIDES[si]
        assert cout % EXPANSION == 0 and hw % s == 0 and hw % 2 == 0
        cb, ho = cout // EXPANSION, hw // s
        cfgs.append(dict(H=hw, W=hw, S=hw * hw, Ho=ho, Wo=ho, So=ho * ho,
                         Cin=cin, Cout=cout, Cb=cb, s=s,
                         se=max(1, cout // 16)))
        cin, hw = cout, ho
    return cfgs


BLOCK_CFG = _block_cfg()


# -------------------------- packed-weight layouts ----------------------------
def _round_up(x, m):
    return (x + m - 1) // m * m


def _build_w_layout():
    ents = [("stem_w", CHANNELS[0], STEM_K * STEM_K),
            ("pool_sel", STEM_HW * STEM_HW, POOL_HW * POOL_HW)]
    for i, c in enumerate(BLOCK_CFG):
        ents.append((f"b{i}_w1sk", c["Cb"] + c["Cout"], c["Cin"]))
        ents.append((f"b{i}_w2", c["Cb"], 9 * c["Cb"]))
        if c["s"] != 1:
            ents.append((f"b{i}_sel", c["S"], c["So"]))
        ents.append((f"b{i}_w3", c["Cout"], c["Cb"]))
        ents.append((f"b{i}_se1", c["se"], c["Cout"]))
        ents.append((f"b{i}_se2", c["Cout"], c["se"]))
    C = FINAL_C
    ents += [("attn_qkv", 3 * C, C), ("attn_out", C, C),
             ("head_w1", 2 * C, C), ("head_w2", 2 * LATENT, 2 * C),
             ("head_w3", LATENT, 2 * LATENT)]
    layout, off, maxc = {}, 0, 0
    for name, r, c in ents:
        layout[name] = (off, r, c)
        off = _round_up(off + r, 16)        # bf16 sublane-pair aligned chunk starts
        maxc = max(maxc, c)
    return layout, off, _round_up(maxc, 128)


def _build_b_layout():
    ents = [("stem_b", CHANNELS[0])]
    for i, c in enumerate(BLOCK_CFG):
        ents += [(f"b{i}_b1", c["Cb"]), (f"b{i}_bsk", c["Cout"]),
                 (f"b{i}_b2", c["Cb"]), (f"b{i}_b3", c["Cout"]),
                 (f"b{i}_bse1", c["se"]), (f"b{i}_bse2", c["Cout"])]
    C = FINAL_C
    ents += [("attn_bqkv", 3 * C), ("attn_bout", C), ("ln_g", C), ("ln_b", C),
             ("head_b1", 2 * C), ("head_b2", 2 * LATENT), ("head_b3", LATENT)]
    layout = {name: (col, r) for col, (name, r) in enumerate(ents)}
    return layout, max(r for _, r in ents), len(ents)


_W_LAYOUT, _W_ROWS, _W_COLS = _build_w_layout()
_B_LAYOUT, _B_ROWS, _B_COLS = _build_b_layout()


# ------------------------------ kernel helpers -------------------------------
def _silu(x):
    return x * jax.nn.sigmoid(x)


def _shift_cols(x, d, fill=0.0):
    """out[:, p] = x[:, p + d] if 0 <= p + d < S else `fill`; d is a static int."""
    S = x.shape[1]
    if d == 0:
        return x
    pad = jnp.full((x.shape[0], abs(d)), fill, x.dtype)
    if d > 0:
        return jnp.concatenate([x[:, d:], pad], axis=1)
    return jnp.concatenate([pad, x[:, :S + d]], axis=1)


def _col_edge_masks(S, W):
    """(1, S) lane masks: not-first-column / not-last-column of each image row."""
    c = jax.lax.broadcasted_iota(jnp.int32, (1, S), 1) % W
    return c > 0, c < (W - 1)


def _conv3x3_slab(u1, W, not_first, not_last):
    """(9*Cb, S) im2col slab for a 3x3 / pad-1 conv; taps ordered t = 3*di + dj."""
    pieces = []
    for di in range(3):
        for dj in range(3):
            p = _shift_cols(u1, (di - 1) * W + (dj - 1))
            if dj == 0:
                p = jnp.where(not_first, p, 0.0)
            elif dj == 2:
                p = jnp.where(not_last, p, 0.0)
            pieces.append(p)
    return jnp.concatenate(pieces, axis=0)


def _maxpool3x3(z, W, not_first, not_last):
    """Separable 3x3 / pad-1 max.  NEG is safe: inputs are post-SiLU (>= -0.279)."""
    NEG = -30.0
    m = jnp.maximum(z, jnp.where(not_first, _shift_cols(z, -1, NEG), NEG))
    m = jnp.maximum(m, jnp.where(not_last, _shift_cols(z, 1, NEG), NEG))
    return jnp.maximum(m, jnp.maximum(_shift_cols(m, -W, NEG),
                                      _shift_cols(m, W, NEG)))


# ------------------------------ fused kernel ---------------------------------
def _encoder_kernel(x_ref, w_ref, b_ref, o_ref):
    f32, bf16 = jnp.float32, jnp.bfloat16

    def W(name):                      # bf16 weight chunk (static slice of the pack)
        off, r, c = _W_LAYOUT[name]
        v = w_ref[pl.ds(off, r), :]
        return v if c == _W_COLS else v[:, :c]

    def Bv(name):                     # f32 (c, 1) bias/affine column
        col, r = _B_LAYOUT[name]
        return b_ref[pl.ds(0, r), :][:, col:col + 1]

    def mm(a, b):
        return jnp.dot(a, b, preferred_element_type=f32)

    # ---- stem: 7x7 s2 conv (BN folded) + SiLU, in (C, spatial) layout ----
    z = _silu(mm(W("stem_w"), x_ref[...]) + Bv("stem_b"))            # (16, 1024)

    # ---- maxpool 3x3 s2 p1: separable taps + 0/1 selection matmul ----
    nf, nl = _col_edge_masks(STEM_HW * STEM_HW, STEM_HW)
    mp = _maxpool3x3(z, STEM_HW, nf, nl)                             # (16, 1024)
    x_cur = mm(mp.astype(bf16), W("pool_sel"))                       # (16, 256)

    # ---- bottleneck residual blocks (expansion=4, SE, projected skip) ----
    for i, c in enumerate(BLOCK_CFG):
        Wd, S, Cb, s = c["W"], c["S"], c["Cb"], c["s"]
        x_bf = x_cur.astype(bf16)
        nf, nl = _col_edge_masks(S, Wd)

        # fused [1x1-reduce ; 1x1-skip] matmul (shared LHS)
        t = mm(W(f"b{i}_w1sk"), x_bf)                                # (Cb+Cout, S)
        u1 = _silu(t[:Cb] + Bv(f"b{i}_b1"))                          # (Cb, S)
        skip = t[Cb:]                                                # (Cout, S)

        # 3x3 conv: all 9 taps as ONE matmul over an in-register im2col slab
        slab = _conv3x3_slab(u1, Wd, nf, nl).astype(bf16)            # (9*Cb, S)
        z3 = mm(W(f"b{i}_w2"), slab)                                 # (Cb, S)

        if s != 1:   # stride-2: spatial decimation folded into one 0/1 matmul
            cat = jnp.concatenate([z3, skip], axis=0).astype(bf16)
            dec = mm(cat, W(f"b{i}_sel"))                            # (Cb+Cout, So)
            z3, skip = dec[:Cb], dec[Cb:]

        z3 = _silu(z3 + Bv(f"b{i}_b2"))
        # TODO(synk): Dropout in the conv path is identity (inference mode).
        u3 = mm(W(f"b{i}_w3"), z3.astype(bf16)) + Bv(f"b{i}_b3")     # (Cout, So)

        # squeeze-excite
        pooled = jnp.mean(u3, axis=1, keepdims=True)                 # (Cout, 1)
        se = _silu(mm(W(f"b{i}_se1"), pooled.astype(bf16)) + Bv(f"b{i}_bse1"))
        se = jax.nn.sigmoid(mm(W(f"b{i}_se2"), se.astype(bf16)) + Bv(f"b{i}_bse2"))

        x_cur = _silu(u3 * se + skip + Bv(f"b{i}_bsk"))              # (Cout, So)

    # ---- multi-head attention (1 head) + residual + LayerNorm, tokens on lanes
    C = FINAL_C
    xa = x_cur                                                       # (64, 4)
    qkv = mm(W("attn_qkv"), xa.astype(bf16)) + Bv("attn_bqkv")       # (192, 4)
    q, k, v = qkv[:C], qkv[C:2 * C], qkv[2 * C:]
    scale = 1.0 / float(C // NUM_HEADS) ** 0.5
    s_mat = jax.lax.dot_general(q.astype(bf16), k.astype(bf16),
                                (((0,), (0,)), ((), ())),
                                preferred_element_type=f32) * scale  # (4, 4)
    p = jnp.exp(s_mat - jnp.max(s_mat, axis=-1, keepdims=True))
    p = p / jnp.sum(p, axis=-1, keepdims=True)
    attn = jax.lax.dot_general(v.astype(bf16), p.astype(bf16),
                               (((1,), (1,)), ((), ())),
                               preferred_element_type=f32)           # (64, 4)
    attn = mm(W("attn_out"), attn.astype(bf16)) + Bv("attn_bout")
    y = xa + attn
    mu = jnp.mean(y, axis=0, keepdims=True)
    var = jnp.mean((y - mu) ** 2, axis=0, keepdims=True)
    y = (y - mu) * jax.lax.rsqrt(var + LN_EPS) * Bv("ln_g") + Bv("ln_b")

    # ---- global average pool over tokens + head (BN folded, SiLU, sigmoid) ----
    pooled = jnp.mean(y, axis=1, keepdims=True)                      # (64, 1)
    h = _silu(mm(W("head_w1"), pooled.astype(bf16)) + Bv("head_b1"))
    h = _silu(mm(W("head_w2"), h.astype(bf16)) + Bv("head_b2"))
    h = jax.nn.sigmoid(mm(W("head_w3"), h.astype(bf16)) + Bv("head_b3"))
    o_ref[...] = h                                                   # (32, 1)


# ------------------------------ JAX wrapper -----------------------------------
@jax.jit
def encoder_forward(x_nchw, wpack, bpack):
    xb = x_nchw.shape[0]
    # one-shot 7x7/s2 patch extraction for the stem (Cin=1): (B, 49, 32, 32)
    patches = jax.lax.conv_general_dilated_patches(
        x_nchw.astype(jnp.float32), filter_shape=(STEM_K, STEM_K),
        window_strides=(2, 2), padding=((3, 3), (3, 3)))
    patches = patches.reshape(xb, STEM_K * STEM_K,
                              STEM_HW * STEM_HW).astype(jnp.bfloat16)

    out = pl.pallas_call(
        _encoder_kernel,
        out_shape=jax.ShapeDtypeStruct((xb, LATENT, 1), jnp.float32),
        grid_spec=pltpu.PrefetchScalarGridSpec(
            num_scalar_prefetch=0,
            grid=(xb,),
            in_specs=[
                pl.BlockSpec((None, STEM_K * STEM_K, STEM_HW * STEM_HW),
                             lambda b: (b, 0, 0)),
                pl.BlockSpec((_W_ROWS, _W_COLS), lambda b: (0, 0)),
                pl.BlockSpec((_B_ROWS, _B_COLS), lambda b: (0, 0)),
            ],
            out_specs=pl.BlockSpec((None, LATENT, 1), lambda b: (b, 0, 0)),
        ),
        compiler_params=pltpu.CompilerParams(
            dimension_semantics=("parallel",)),    # v7x: one sample per TensorCore
    )(patches, wpack, bpack)
    return out[..., 0]


# --------------------------- parameter init & prep ----------------------------
def init_params(key):
    keys = iter(jax.random.split(key, 64))
    nk = lambda: next(keys)

    def conv_w(cout, cin, kh, kw):
        std = (2.0 / (cout * kh * kw)) ** 0.5          # kaiming_normal fan_out
        return jax.random.normal(nk(), (cout, cin, kh, kw), jnp.float32) * std

    def bn(c):
        return dict(gamma=jnp.ones((c,), jnp.float32), beta=jnp.zeros((c,), jnp.float32),
                    mean=jnp.zeros((c,), jnp.float32), var=jnp.ones((c,), jnp.float32))

    params = {"stem_w": conv_w(CHANNELS[0], IN_C, 7, 7), "stem_bn": bn(CHANNELS[0])}
    blocks = []
    for cfg in BLOCK_CFG:
        cin, cout, cb, sec = cfg["Cin"], cfg["Cout"], cfg["Cb"], cfg["se"]
        blocks.append(dict(
            w1=conv_w(cb, cin, 1, 1), bn1=bn(cb),
            w2=conv_w(cb, cb, 3, 3), bn2=bn(cb),
            w3=conv_w(cout, cb, 1, 1), bn3=bn(cout),
            skip_w=conv_w(cout, cin, 1, 1), skip_bn=bn(cout),
            se_w1=conv_w(sec, cout, 1, 1).reshape(sec, cout),
            se_b1=jnp.zeros((sec,), jnp.float32),
            se_w2=conv_w(cout, sec, 1, 1).reshape(cout, sec),
            se_b2=jnp.zeros((cout,), jnp.float32)))
    params["blocks"] = blocks
    C = FINAL_C
    params["attn"] = dict(
        in_proj_w=jax.random.normal(nk(), (3 * C, C), jnp.float32) * 0.02,
        in_proj_b=jnp.zeros((3 * C,), jnp.float32),
        out_proj_w=jax.random.normal(nk(), (C, C), jnp.float32) * 0.01,
        out_proj_b=jnp.zeros((C,), jnp.float32),
        ln_gamma=jnp.ones((C,), jnp.float32), ln_beta=jnp.zeros((C,), jnp.float32))
    hb = 2 * C
    params["head"] = dict(
        w1=jax.random.normal(nk(), (hb, C), jnp.float32) * 0.01,
        b1=jnp.zeros((hb,), jnp.float32), bn1=bn(hb),
        w2=jax.random.normal(nk(), (2 * LATENT, hb), jnp.float32) * 0.01,
        b2=jnp.zeros((2 * LATENT,), jnp.float32), bn2=bn(2 * LATENT),
        w3=jax.random.normal(nk(), (LATENT, 2 * LATENT), jnp.float32) * 0.01,
        b3=jnp.zeros((LATENT,), jnp.float32))
    return params


def _fold_bn(bn):
    s = bn["gamma"] / jnp.sqrt(bn["var"] + BN_EPS)
    return s, bn["beta"] - bn["mean"] * s


def _sel_matrix(H, W, s):
    """0/1 matrix (H*W, (H//s)*(W//s)) selecting the (s*ro, s*co) centers."""
    Ho, Wo = H // s, W // s
    src = ((s * jnp.arange(Ho))[:, None] * W + s * jnp.arange(Wo)[None, :]).reshape(-1)
    sel = jnp.zeros((H * W, Ho * Wo), jnp.float32)
    return sel.at[src, jnp.arange(Ho * Wo)].set(1.0)


def prepare_weights(params):
    """One-time static prep: BN folding, matmul layouts, bf16 cast, packing."""
    wpack = jnp.zeros((_W_ROWS, _W_COLS), jnp.float32)
    bpack = jnp.zeros((_B_ROWS, _B_COLS), jnp.float32)

    def putw(wp, name, arr):
        off, r, c = _W_LAYOUT[name]
        assert arr.shape == (r, c), (name, arr.shape, (r, c))
        return wp.at[off:off + r, :c].set(arr)

    def putb(bp, name, vec):
        col, r = _B_LAYOUT[name]
        assert vec.shape == (r,), (name, vec.shape, r)
        return bp.at[:r, col].set(vec)

    s, b = _fold_bn(params["stem_bn"])
    wpack = putw(wpack, "stem_w",
                 params["stem_w"].reshape(CHANNELS[0], STEM_K * STEM_K) * s[:, None])
    bpack = putb(bpack, "stem_b", b)
    wpack = putw(wpack, "pool_sel", _sel_matrix(STEM_HW, STEM_HW, 2))

    for i, (cfg, bw) in enumerate(zip(BLOCK_CFG, params["blocks"])):
        Cb, Cin, Cout = cfg["Cb"], cfg["Cin"], cfg["Cout"]
        s1, o1 = _fold_bn(bw["bn1"]); s2, o2 = _fold_bn(bw["bn2"])
        s3, o3 = _fold_bn(bw["bn3"]); ssk, osk = _fold_bn(bw["skip_bn"])
        w1 = bw["w1"].reshape(Cb, Cin) * s1[:, None]
        wsk = bw["skip_w"].reshape(Cout, Cin) * ssk[:, None]
        wpack = putw(wpack, f"b{i}_w1sk", jnp.concatenate([w1, wsk], axis=0))
        w2 = jnp.transpose(bw["w2"], (0, 2, 3, 1)).reshape(Cb, 9 * Cb) * s2[:, None]
        wpack = putw(wpack, f"b{i}_w2", w2)
        if cfg["s"] != 1:
            wpack = putw(wpack, f"b{i}_sel",
                         _sel_matrix(cfg["H"], cfg["W"], cfg["s"]))
        wpack = putw(wpack, f"b{i}_w3", bw["w3"].reshape(Cout, Cb) * s3[:, None])
        wpack = putw(wpack, f"b{i}_se1", bw["se_w1"])
        wpack = putw(wpack, f"b{i}_se2", bw["se_w2"])
        bpack = putb(bpack, f"b{i}_b1", o1)
        bpack = putb(bpack, f"b{i}_bsk", osk)
        bpack = putb(bpack, f"b{i}_b2", o2)
        bpack = putb(bpack, f"b{i}_b3", o3)
        bpack = putb(bpack, f"b{i}_bse1", bw["se_b1"])
        bpack = putb(bpack, f"b{i}_bse2", bw["se_b2"])

    ap = params["attn"]
    wpack = putw(wpack, "attn_qkv", ap["in_proj_w"])
    wpack = putw(wpack, "attn_out", ap["out_proj_w"])
    bpack = putb(bpack, "attn_bqkv", ap["in_proj_b"])
    bpack = putb(bpack, "attn_bout", ap["out_proj_b"])
    bpack = putb(bpack, "ln_g", ap["ln_gamma"])
    bpack = putb(bpack, "ln_b", ap["ln_beta"])

    hp = params["head"]
    sh1, _ = _fold_bn(hp["bn1"]); sh2, _ = _fold_bn(hp["bn2"])
    wpack = putw(wpack, "head_w1", hp["w1"] * sh1[:, None])
    wpack = putw(wpack, "head_w2", hp["w2"] * sh2[:, None])
    wpack = putw(wpack, "head_w3", hp["w3"])
    bpack = putb(bpack, "head_b1",
                 sh1 * (hp["b1"] - hp["bn1"]["mean"]) + hp["bn1"]["beta"])
    bpack = putb(bpack, "head_b2",
                 sh2 * (hp["b2"] - hp["bn2"]["mean"]) + hp["bn2"]["beta"])
    bpack = putb(bpack, "head_b3", hp["b3"])

    return wpack.astype(jnp.bfloat16), bpack


# ------------------------------------ main -----------------------------------
if __name__ == "__main__":
    key = jax.random.PRNGKey(0)
    pkey, xkey = jax.random.split(key)
    params = init_params(pkey)
    wpack, bpack = prepare_weights(params)       # hoisted static prep (done once)
    x = jax.random.normal(xkey, (B, IN_C, IN_H, IN_W), jnp.float32)

    out = jax.block_until_ready(encoder_forward(x, wpack, bpack))

    assert out.shape == (B, LATENT), out.shape
    assert bool(jnp.all(jnp.isfinite(out)))
    assert bool(jnp.all((out >= 0.0) & (out <= 1.0)))   # sigmoid head output
    # TODO(synk): training-mode BatchNorm (batch statistics) and Dropout RNG are
    # not reproduced; inference-mode semantics are implemented instead.
    print("KERNEL_OK")
</pallas_src>

<mosaic_0001>
module attributes {stable_mosaic.version = 11 : i64} {
  func.func @_encoder_kernel(%arg0: i32, %arg1: memref<1x49x1024xbf16, #tpu.memory_space<vmem>>, %arg2: memref<2624x256xbf16, #tpu.memory_space<vmem>>, %arg3: memref<192x32xf32, #tpu.memory_space<vmem>>, %arg4: memref<1x32x1xf32, #tpu.memory_space<vmem>>) attributes {dimension_semantics = [#tpu.dimension_semantics<parallel>], iteration_bounds = array<i64: 2>, scalar_prefetch = 0 : i64, scratch_operands = 0 : i64, tpu.core_type = #tpu.core_type<tc>, window_params = [{transform_indices = @transform_0, window_bounds = array<i64: 1, 49, 1024>}, {pipeline_mode = #tpu.pipeline_mode<synchronous>, transform_indices = @transform_1, window_bounds = array<i64: 2624, 256>}, {pipeline_mode = #tpu.pipeline_mode<synchronous>, transform_indices = @transform_2, window_bounds = array<i64: 192, 32>}, {transform_indices = @transform_3, window_bounds = array<i64: 1, 32, 1>}]} {
    %c0 = arith.constant 0 : index
    %c0_0 = arith.constant 0 : index
    %0 = vector.load %arg2[%c0, %c0_0] : memref<2624x256xbf16, #tpu.memory_space<vmem>>, vector<16x256xbf16>
    %1 = vector.extract_strided_slice %0 {offsets = [0, 0], sizes = [16, 49], strides = [1, 1]} : vector<16x256xbf16> to vector<16x49xbf16>
    %c0_1 = arith.constant 0 : index
    %c0_2 = arith.constant 0 : index
    %c0_3 = arith.constant 0 : index
    %2 = vector.load %arg1[%c0_1, %c0_2, %c0_3] : memref<1x49x1024xbf16, #tpu.memory_space<vmem>>, vector<1x49x1024xbf16>
    %3 = vector.shape_cast %2 : vector<1x49x1024xbf16> to vector<49x1024xbf16>
    %cst = arith.constant dense<0.000000e+00> : vector<16x1024xf32>
    %4 = tpu.matmul %1, %3, %cst {dimension_numbers = #tpu.dot_dimension_numbers<[1], [0], [0], [1], [0, 0, 1, 1], [], []>} : vector<16x49xbf16>, vector<49x1024xbf16>, vector<16x1024xf32> -> vector<16x1024xf32>
    %c0_4 = arith.constant 0 : index
    %c0_5 = arith.constant 0 : index
    %5 = vector.load %arg3[%c0_4, %c0_5] : memref<192x32xf32, #tpu.memory_space<vmem>>, vector<16x32xf32>
    %6 = vector.extract_strided_slice %5 {offsets = [0, 0], sizes = [16, 1], strides = [1, 1]} : vector<16x32xf32> to vector<16x1xf32>
    %7 = vector.broadcast %6 : vector<16x1xf32> to vector<16x1024xf32>
    %8 = arith.addf %4, %7 : vector<16x1024xf32>
    %9 = arith.negf %8 : vector<16x1024xf32>
    %10 = math.exp %9 : vector<16x1024xf32>
    %cst_6 = arith.constant 1.000000e+00 : f32
    %11 = vector.broadcast %cst_6 : f32 to vector<16x1024xf32>
    %12 = arith.addf %11, %10 : vector<16x1024xf32>
    %13 = arith.divf %11, %12 : vector<16x1024xf32>
    %14 = arith.mulf %8, %13 : vector<16x1024xf32>
    %15 = tpu.iota {dimensions = array<i32: 1>} : vector<1x1024xi32>
    %c32_i32 = arith.constant 32 : i32
    %c0_i32 = arith.constant 0 : i32
    %16 = arith.cmpi eq, %c32_i32, %c0_i32 : i32
    %c1_i32 = arith.constant 1 : i32
    %17 = arith.select %16, %c1_i32, %c32_i32 : i32
    %18 = vector.broadcast %17 : i32 to vector<1x1024xi32>
    %19 = arith.remsi %15, %18 : vector<1x1024xi32>
    %c0_i32_7 = arith.constant 0 : i32
    %20 = vector.broadcast %c0_i32_7 : i32 to vector<1x1024xi32>
    %21 = arith.cmpi ne, %19, %20 : vector<1x1024xi32>
    %c0_i32_8 = arith.constant 0 : i32
    %22 = vector.broadcast %c0_i32_8 : i32 to vector<1x1024xi32>
    %23 = arith.cmpi slt, %19, %22 : vector<1x1024xi32>
    %c0_i32_9 = arith.constant 0 : i32
    %24 = arith.cmpi slt, %17, %c0_i32_9 : i32
    %25 = vector.broadcast %24 : i1 to vector<1x1024xi1>
    %26 = vector.broadcast %25 : vector<1x1024xi1> to vector<1x1024xi1>
    %27 = arith.xori %23, %26 : vector<1x1024xi1>
    %28 = arith.andi %27, %21 : vector<1x1024xi1>
    %29 = vector.broadcast %17 : i32 to vector<1x1024xi32>
    %30 = arith.addi %19, %29 : vector<1x1024xi32>
    %31 = arith.select %28, %30, %19 : vector<1x1024xi1>, vector<1x1024xi32>
    %c0_i32_10 = arith.constant 0 : i32
    %32 = vector.broadcast %c0_i32_10 : i32 to vector<1x1024xi32>
    %33 = arith.cmpi sgt, %31, %32 : vector<1x1024xi32>
    %c31_i32 = arith.constant 31 : i32
    %34 = vector.broadcast %c31_i32 : i32 to vector<1x1024xi32>
    %35 = arith.cmpi slt, %31, %34 : vector<1x1024xi32>
    %cst_11 = arith.constant -3.000000e+01 : f32
    %36 = vector.broadcast %cst_11 : f32 to vector<16x1xf32>
    %37 = vector.extract_strided_slice %14 {offsets = [0, 0], sizes = [16, 1023], strides = [1, 1]} : vector<16x1024xf32> to vector<16x1023xf32>
    %38 = tpu.concatenate %36, %37 in 1 : vector<16x1xf32>, vector<16x1023xf32> -> vector<16x1024xf32>
    %cst_12 = arith.constant -3.000000e+01 : f32
    %39 = vector.shape_cast %33 : vector<1x1024xi1> to vector<1x1024xi1>
    %40 = vector.broadcast %39 : vector<1x1024xi1> to vector<16x1024xi1>
    %41 = vector.broadcast %cst_12 : f32 to vector<16x1024xf32>
    %42 = arith.select %40, %38, %41 : vector<16x1024xi1>, vector<16x1024xf32>
    %43 = arith.maximumf %14, %42 : vector<16x1024xf32>
    %cst_13 = arith.constant -3.000000e+01 : f32
    %44 = vector.broadcast %cst_13 : f32 to vector<16x1xf32>
    %45 = vector.extract_strided_slice %14 {offsets = [0, 1], sizes = [16, 1023], strides = [1, 1]} : vector<16x1024xf32> to vector<16x1023xf32>
    %46 = tpu.concatenate %45, %44 in 1 : vector<16x1023xf32>, vector<16x1xf32> -> vector<16x1024xf32>
    %cst_14 = arith.constant -3.000000e+01 : f32
    %47 = vector.shape_cast %35 : vector<1x1024xi1> to vector<1x1024xi1>
    %48 = vector.broadcast %47 : vector<1x1024xi1> to vector<16x1024xi1>
    %49 = vector.broadcast %cst_14 : f32 to vector<16x1024xf32>
    %50 = arith.select %48, %46, %49 : vector<16x1024xi1>, vector<16x1024xf32>
    %51 = arith.maximumf %43, %50 : vector<16x1024xf32>
    %cst_15 = arith.constant -3.000000e+01 : f32
    %52 = vector.broadcast %cst_15 : f32 to vector<16x32xf32>
    %53 = vector.extract_strided_slice %51 {offsets = [0, 0], sizes = [16, 992], strides = [1, 1]} : vector<16x1024xf32> to vector<16x992xf32>
    %54 = tpu.concatenate %52, %53 in 1 : vector<16x32xf32>, vector<16x992xf32> -> vector<16x1024xf32>
    %cst_16 = arith.constant -3.000000e+01 : f32
    %55 = vector.broadcast %cst_16 : f32 to vector<16x32xf32>
    %56 = vector.extract_strided_slice %51 {offsets = [0, 32], sizes = [16, 992], strides = [1, 1]} : vector<16x1024xf32> to vector<16x992xf32>
    %57 = tpu.concatenate %56, %55 in 1 : vector<16x992xf32>, vector<16x32xf32> -> vector<16x1024xf32>
    %58 = arith.maximumf %54, %57 : vector<16x1024xf32>
    %59 = arith.maximumf %51, %58 : vector<16x1024xf32>
    %60 = arith.truncf %59 : vector<16x1024xf32> to vector<16x1024xbf16>
    %c16 = arith.constant 16 : index
    %c0_17 = arith.constant 0 : index
    %61 = vector.load %arg2[%c16, %c0_17] : memref<2624x256xbf16, #tpu.memory_space<vmem>>, vector<1024x256xbf16>
    %cst_18 = arith.constant dense<0.000000e+00> : vector<16x256xf32>
    %62 = tpu.matmul %60, %61, %cst_18 {dimension_numbers = #tpu.dot_dimension_numbers<[1], [0], [0], [1], [0, 0, 1, 1], [], []>} : vector<16x1024xbf16>, vector<1024x256xbf16>, vector<16x256xf32> -> vector<16x256xf32>
    %63 = arith.truncf %62 : vector<16x256xf32> to vector<16x256xbf16>
    %64 = tpu.iota {dimensions = array<i32: 1>} : vector<1x256xi32>
    %c16_i32 = arith.constant 16 : i32
    %c0_i32_19 = arith.constant 0 : i32
    %65 = arith.cmpi eq, %c16_i32, %c0_i32_19 : i32
    %c1_i32_20 = arith.constant 1 : i32
    %66 = arith.select %65, %c1_i32_20, %c16_i32 : i32
    %67 = vector.broadcast %66 : i32 to vector<1x256xi32>
    %68 = arith.remsi %64, %67 : vector<1x256xi32>
    %c0_i32_21 = arith.constant 0 : i32
    %69 = vector.broadcast %c0_i32_21 : i32 to vector<1x256xi32>
    %70 = arith.cmpi ne, %68, %69 : vector<1x256xi32>
    %c0_i32_22 = arith.constant 0 : i32
    %71 = vector.broadcast %c0_i32_22 : i32 to vector<1x256xi32>
    %72 = arith.cmpi slt, %68, %71 : vector<1x256xi32>
    %c0_i32_23 = arith.constant 0 : i32
    %73 = arith.cmpi slt, %66, %c0_i32_23 : i32
    %74 = vector.broadcast %73 : i1 to vector<1x256xi1>
    %75 = vector.broadcast %74 : vector<1x256xi1> to vector<1x256xi1>
    %76 = arith.xori %72, %75 : vector<1x256xi1>
    %77 = arith.andi %76, %70 : vector<1x256xi1>
    %78 = vector.broadcast %66 : i32 to vector<1x256xi32>
    %79 = arith.addi %68, %78 : vector<1x256xi32>
    %80 = arith.select %77, %79, %68 : vector<1x256xi1>, vector<1x256xi32>
    %c0_i32_24 = arith.constant 0 : i32
    %81 = vector.broadcast %c0_i32_24 : i32 to vector<1x256xi32>
    %82 = arith.cmpi sgt, %80, %81 : vector<1x256xi32>
    %c15_i32 = arith.constant 15 : i32
    %83 = vector.broadcast %c15_i32 : i32 to vector<1x256xi32>
    %84 = arith.cmpi slt, %80, %83 : vector<1x256xi32>
    %c1040 = arith.constant 1040 : index
    %c0_25 = arith.constant 0 : index
    %85 = vector.load %arg2[%c1040, %c0_25] : memref<2624x256xbf16, #tpu.memory_space<vmem>>, vector<40x256xbf16>
    %86 = vector.extract_strided_slice %85 {offsets = [0, 0], sizes = [40, 16], strides = [1, 1]} : vector<40x256xbf16> to vector<40x16xbf16>
    %cst_26 = arith.constant dense<0.000000e+00> : vector<40x256xf32>
    %87 = tpu.matmul %86, %63, %cst_26 {dimension_numbers = #tpu.dot_dimension_numbers<[1], [0], [0], [1], [0, 0, 1, 1], [], []>} : vector<40x16xbf16>, vector<16x256xbf16>, vector<40x256xf32> -> vector<40x256xf32>
    %88 = vector.extract_strided_slice %87 {offsets = [0, 0], sizes = [8, 256], strides = [1, 1]} : vector<40x256xf32> to vector<8x256xf32>
    %c0_27 = arith.constant 0 : index
    %c0_28 = arith.constant 0 : index
    %89 = vector.load %arg3[%c0_27, %c0_28] : memref<192x32xf32, #tpu.memory_space<vmem>>, vector<8x32xf32>
    %90 = vector.extract_strided_slice %89 {offsets = [0, 1], sizes = [8, 1], strides = [1, 1]} : vector<8x32xf32> to vector<8x1xf32>
    %91 = vector.broadcast %90 : vector<8x1xf32> to vector<8x256xf32>
    %92 = arith.addf %88, %91 : vector<8x256xf32>
    %93 = arith.negf %92 : vector<8x256xf32>
    %94 = math.exp %93 : vector<8x256xf32>
    %cst_29 = arith.constant 1.000000e+00 : f32
    %95 = vector.broadcast %cst_29 : f32 to vector<8x256xf32>
    %96 = arith.addf %95, %94 : vector<8x256xf32>
    %97 = arith.divf %95, %96 : vector<8x256xf32>
    %98 = arith.mulf %92, %97 : vector<8x256xf32>
    %99 = vector.extract_strided_slice %87 {offsets = [8, 0], sizes = [32, 256], strides = [1, 1]} : vector<40x256xf32> to vector<32x256xf32>
    %cst_30 = arith.constant 0.000000e+00 : f32
    %100 = vector.broadcast %cst_30 : f32 to vector<8x17xf32>
    %101 = vector.extract_strided_slice %98 {offsets = [0, 0], sizes = [8, 239], strides = [1, 1]} : vector<8x256xf32> to vector<8x239xf32>
    %102 = tpu.concatenate %100, %101 in 1 : vector<8x17xf32>, vector<8x239xf32> -> vector<8x256xf32>
    %cst_31 = arith.constant 0.000000e+00 : f32
    %103 = vector.shape_cast %82 : vector<1x256xi1> to vector<1x256xi1>
    %104 = vector.broadcast %103 : vector<1x256xi1> to vector<8x256xi1>
    %105 = vector.broadcast %cst_31 : f32 to vector<8x256xf32>
    %106 = arith.select %104, %102, %105 : vector<8x256xi1>, vector<8x256xf32>
    %cst_32 = arith.constant 0.000000e+00 : f32
    %107 = vector.broadcast %cst_32 : f32 to vector<8x16xf32>
    %108 = vector.extract_strided_slice %98 {offsets = [0, 0], sizes = [8, 240], strides = [1, 1]} : vector<8x256xf32> to vector<8x240xf32>
    %109 = tpu.concatenate %107, %108 in 1 : vector<8x16xf32>, vector<8x240xf32> -> vector<8x256xf32>
    %cst_33 = arith.constant 0.000000e+00 : f32
    %110 = vector.broadcast %cst_33 : f32 to vector<8x15xf32>
    %111 = vector.extract_strided_slice %98 {offsets = [0, 0], sizes = [8, 241], strides = [1, 1]} : vector<8x256xf32> to vector<8x241xf32>
    %112 = tpu.concatenate %110, %111 in 1 : vector<8x15xf32>, vector<8x241xf32> -> vector<8x256xf32>
    %cst_34 = arith.constant 0.000000e+00 : f32
    %113 = vector.shape_cast %84 : vector<1x256xi1> to vector<1x256xi1>
    %114 = vector.broadcast %113 : vector<1x256xi1> to vector<8x256xi1>
    %115 = vector.broadcast %cst_34 : f32 to vector<8x256xf32>
    %116 = arith.select %114, %112, %115 : vector<8x256xi1>, vector<8x256xf32>
    %cst_35 = arith.constant 0.000000e+00 : f32
    %117 = vector.broadcast %cst_35 : f32 to vector<8x1xf32>
    %118 = vector.extract_strided_slice %98 {offsets = [0, 0], sizes = [8, 255], strides = [1, 1]} : vector<8x256xf32> to vector<8x255xf32>
    %119 = tpu.concatenate %117, %118 in 1 : vector<8x1xf32>, vector<8x255xf32> -> vector<8x256xf32>
    %cst_36 = arith.constant 0.000000e+00 : f32
    %120 = vector.shape_cast %82 : vector<1x256xi1> to vector<1x256xi1>
    %121 = vector.broadcast %120 : vector<1x256xi1> to vector<8x256xi1>
    %122 = vector.broadcast %cst_36 : f32 to vector<8x256xf32>
    %123 = arith.select %121, %119, %122 : vector<8x256xi1>, vector<8x256xf32>
    %cst_37 = arith.constant 0.000000e+00 : f32
    %124 = vector.broadcast %cst_37 : f32 to vector<8x1xf32>
    %125 = vector.extract_strided_slice %98 {offsets = [0, 1], sizes = [8, 255], strides = [1, 1]} : vector<8x256xf32> to vector<8x255xf32>
    %126 = tpu.concatenate %125, %124 in 1 : vector<8x255xf32>, vector<8x1xf32> -> vector<8x256xf32>
    %cst_38 = arith.constant 0.000000e+00 : f32
    %127 = vector.shape_cast %84 : vector<1x256xi1> to vector<1x256xi1>
    %128 = vector.broadcast %127 : vector<1x256xi1> to vector<8x256xi1>
    %129 = vector.broadcast %cst_38 : f32 to vector<8x256xf32>
    %130 = arith.select %128, %126, %129 : vector<8x256xi1>, vector<8x256xf32>
    %cst_39 = arith.constant 0.000000e+00 : f32
    %131 = vector.broadcast %cst_39 : f32 to vector<8x15xf32>
    %132 = vector.extract_strided_slice %98 {offsets = [0, 15], sizes = [8, 241], strides = [1, 1]} : vector<8x256xf32> to vector<8x241xf32>
    %133 = tpu.concatenate %132, %131 in 1 : vector<8x241xf32>, vector<8x15xf32> -> vector<8x256xf32>
    %cst_40 = arith.constant 0.000000e+00 : f32
    %134 = vector.shape_cast %82 : vector<1x256xi1> to vector<1x256xi1>
    %135 = vector.broadcast %134 : vector<1x256xi1> to vector<8x256xi1>
    %136 = vector.broadcast %cst_40 : f32 to vector<8x256xf32>
    %137 = arith.select %135, %133, %136 : vector<8x256xi1>, vector<8x256xf32>
    %cst_41 = arith.constant 0.000000e+00 : f32
    %138 = vector.broadcast %cst_41 : f32 to vector<8x16xf32>
    %139 = vector.extract_strided_slice %98 {offsets = [0, 16], sizes = [8, 240], strides = [1, 1]} : vector<8x256xf32> to vector<8x240xf32>
    %140 = tpu.concatenate %139, %138 in 1 : vector<8x240xf32>, vector<8x16xf32> -> vector<8x256xf32>
    %cst_42 = arith.constant 0.000000e+00 : f32
    %141 = vector.broadcast %cst_42 : f32 to vector<8x17xf32>
    %142 = vector.extract_strided_slice %98 {offsets = [0, 17], sizes = [8, 239], strides = [1, 1]} : vector<8x256xf32> to vector<8x239xf32>
    %143 = tpu.concatenate %142, %141 in 1 : vector<8x239xf32>, vector<8x17xf32> -> vector<8x256xf32>
    %cst_43 = arith.constant 0.000000e+00 : f32
    %144 = vector.shape_cast %84 : vector<1x256xi1> to vector<1x256xi1>
    %145 = vector.broadcast %144 : vector<1x256xi1> to vector<8x256xi1>
    %146 = vector.broadcast %cst_43 : f32 to vector<8x256xf32>
    %147 = arith.select %145, %143, %146 : vector<8x256xi1>, vector<8x256xf32>
    %148 = tpu.concatenate %106, %109, %116, %123, %98, %130, %137, %140, %147 in 0 : vector<8x256xf32>, vector<8x256xf32>, vector<8x256xf32>, vector<8x256xf32>, vector<8x256xf32>, vector<8x256xf32>, vector<8x256xf32>, vector<8x256xf32>, vector<8x256xf32> -> vector<72x256xf32>
    %149 = arith.truncf %148 : vector<72x256xf32> to vector<72x256xbf16>
    %c1088 = arith.constant 1088 : index
    %c0_44 = arith.constant 0 : index
    %150 = vector.load %arg2[%c1088, %c0_44] : memref<2624x256xbf16, #tpu.memory_space<vmem>>, vector<8x256xbf16>
    %151 = vector.extract_strided_slice %150 {offsets = [0, 0], sizes = [8, 72], strides = [1, 1]} : vector<8x256xbf16> to vector<8x72xbf16>
    %cst_45 = arith.constant dense<0.000000e+00> : vector<8x256xf32>
    %152 = tpu.matmul %151, %149, %cst_45 {dimension_numbers = #tpu.dot_dimension_numbers<[1], [0], [0], [1], [0, 0, 1, 1], [], []>} : vector<8x72xbf16>, vector<72x256xbf16>, vector<8x256xf32> -> vector<8x256xf32>
    %c0_46 = arith.constant 0 : index
    %c0_47 = arith.constant 0 : index
    %153 = vector.load %arg3[%c0_46, %c0_47] : memref<192x32xf32, #tpu.memory_space<vmem>>, vector<8x32xf32>
    %154 = vector.extract_strided_slice %153 {offsets = [0, 3], sizes = [8, 1], strides = [1, 1]} : vector<8x32xf32> to vector<8x1xf32>
    %155 = vector.broadcast %154 : vector<8x1xf32> to vector<8x256xf32>
    %156 = arith.addf %152, %155 : vector<8x256xf32>
    %157 = arith.negf %156 : vector<8x256xf32>
    %158 = math.exp %157 : vector<8x256xf32>
    %cst_48 = arith.constant 1.000000e+00 : f32
    %159 = vector.broadcast %cst_48 : f32 to vector<8x256xf32>
    %160 = arith.addf %159, %158 : vector<8x256xf32>
    %161 = arith.divf %159, %160 : vector<8x256xf32>
    %162 = arith.mulf %156, %161 : vector<8x256xf32>
    %c1104 = arith.constant 1104 : index
    %c0_49 = arith.constant 0 : index
    %163 = vector.load %arg2[%c1104, %c0_49] : memref<2624x256xbf16, #tpu.memory_space<vmem>>, vector<32x256xbf16>
    %164 = vector.extract_strided_slice %163 {offsets = [0, 0], sizes = [32, 8], strides = [1, 1]} : vector<32x256xbf16> to vector<32x8xbf16>
    %165 = arith.truncf %162 : vector<8x256xf32> to vector<8x256xbf16>
    %cst_50 = arith.constant dense<0.000000e+00> : vector<32x256xf32>
    %166 = tpu.matmul %164, %165, %cst_50 {dimension_numbers = #tpu.dot_dimension_numbers<[1], [0], [0], [1], [0, 0, 1, 1], [], []>} : vector<32x8xbf16>, vector<8x256xbf16>, vector<32x256xf32> -> vector<32x256xf32>
    %c0_51 = arith.constant 0 : index
    %c0_52 = arith.constant 0 : index
    %167 = vector.load %arg3[%c0_51, %c0_52] : memref<192x32xf32, #tpu.memory_space<vmem>>, vector<32x32xf32>
    %168 = vector.extract_strided_slice %167 {offsets = [0, 4], sizes = [32, 1], strides = [1, 1]} : vector<32x32xf32> to vector<32x1xf32>
    %169 = vector.broadcast %168 : vector<32x1xf32> to vector<32x256xf32>
    %170 = arith.addf %166, %169 : vector<32x256xf32>
    %cst_53 = arith.constant dense<0.000000e+00> : vector<32xf32>
    %171 = vector.multi_reduction <add>, %170, %cst_53 [1] : vector<32x256xf32> to vector<32xf32>
    %172 = vector.shape_cast %171 : vector<32xf32> to vector<32x1xf32>
    %cst_54 = arith.constant 2.560000e+02 : f32
    %173 = vector.broadcast %cst_54 : f32 to vector<32x1xf32>
    %174 = arith.divf %172, %173 : vector<32x1xf32>
    %c1136 = arith.constant 1136 : index
    %c0_55 = arith.constant 0 : index
    %175 = vector.load %arg2[%c1136, %c0_55] : memref<2624x256xbf16, #tpu.memory_space<vmem>>, vector<2x256xbf16>
    %176 = vector.extract_strided_slice %175 {offsets = [0, 0], sizes = [2, 32], strides = [1, 1]} : vector<2x256xbf16> to vector<2x32xbf16>
    %177 = arith.truncf %174 : vector<32x1xf32> to vector<32x1xbf16>
    %cst_56 = arith.constant dense<0.000000e+00> : vector<2x1xf32>
    %178 = tpu.matmul %176, %177, %cst_56 {dimension_numbers = #tpu.dot_dimension_numbers<[1], [0], [0], [1], [0, 0, 1, 1], [], []>} : vector<2x32xbf16>, vector<32x1xbf16>, vector<2x1xf32> -> vector<2x1xf32>
    %c0_57 = arith.constant 0 : index
    %c0_58 = arith.constant 0 : index
    %179 = vector.load %arg3[%c0_57, %c0_58] : memref<192x32xf32, #tpu.memory_space<vmem>>, vector<2x32xf32>
    %180 = vector.extract_strided_slice %179 {offsets = [0, 5], sizes = [2, 1], strides = [1, 1]} : vector<2x32xf32> to vector<2x1xf32>
    %181 = arith.addf %178, %180 : vector<2x1xf32>
    %182 = arith.negf %181 : vector<2x1xf32>
    %183 = math.exp %182 : vector<2x1xf32>
    %cst_59 = arith.constant 1.000000e+00 : f32
    %184 = vector.broadcast %cst_59 : f32 to vector<2x1xf32>
    %185 = arith.addf %184, %183 : vector<2x1xf32>
    %186 = arith.divf %184, %185 : vector<2x1xf32>
    %187 = arith.mulf %181, %186 : vector<2x1xf32>
    %c1152 = arith.constant 1152 : index
    %c0_60 = arith.constant 0 : index
    %188 = vector.load %arg2[%c1152, %c0_60] : memref<2624x256xbf16, #tpu.memory_space<vmem>>, vector<32x256xbf16>
    %189 = vector.extract_strided_slice %188 {offsets = [0, 0], sizes = [32, 2], strides = [1, 1]} : vector<32x256xbf16> to vector<32x2xbf16>
    %190 = arith.truncf %187 : vector<2x1xf32> to vector<2x1xbf16>
    %cst_61 = arith.constant dense<0.000000e+00> : vector<32x1xf32>
    %191 = tpu.matmul %189, %190, %cst_61 {dimension_numbers = #tpu.dot_dimension_numbers<[1], [0], [0], [1], [0, 0, 1, 1], [], []>} : vector<32x2xbf16>, vector<2x1xbf16>, vector<32x1xf32> -> vector<32x1xf32>
    %c0_62 = arith.constant 0 : index
    %c0_63 = arith.constant 0 : index
    %192 = vector.load %arg3[%c0_62, %c0_63] : memref<192x32xf32, #tpu.memory_space<vmem>>, vector<32x32xf32>
    %193 = vector.extract_strided_slice %192 {offsets = [0, 6], sizes = [32, 1], strides = [1, 1]} : vector<32x32xf32> to vector<32x1xf32>
    %194 = arith.addf %191, %193 : vector<32x1xf32>
    %195 = arith.negf %194 : vector<32x1xf32>
    %196 = math.exp %195 : vector<32x1xf32>
    %cst_64 = arith.constant 1.000000e+00 : f32
    %197 = vector.broadcast %cst_64 : f32 to vector<32x1xf32>
    %198 = arith.addf %197, %196 : vector<32x1xf32>
    %199 = arith.divf %197, %198 : vector<32x1xf32>
    %200 = vector.broadcast %199 : vector<32x1xf32> to vector<32x256xf32>
    %201 = arith.mulf %170, %200 : vector<32x256xf32>
    %202 = arith.addf %201, %99 : vector<32x256xf32>
    %c0_65 = arith.constant 0 : index
    %c0_66 = arith.constant 0 : index
    %203 = vector.load %arg3[%c0_65, %c0_66] : memref<192x32xf32, #tpu.memory_space<vmem>>, vector<32x32xf32>
    %204 = vector.extract_strided_slice %203 {offsets = [0, 2], sizes = [32, 1], strides = [1, 1]} : vector<32x32xf32> to vector<32x1xf32>
    %205 = vector.broadcast %204 : vector<32x1xf32> to vector<32x256xf32>
    %206 = arith.addf %202, %205 : vector<32x256xf32>
    %207 = arith.negf %206 : vector<32x256xf32>
    %208 = math.exp %207 : vector<32x256xf32>
    %cst_67 = arith.constant 1.000000e+00 : f32
    %209 = vector.broadcast %cst_67 : f32 to vector<32x256xf32>
    %210 = arith.addf %209, %208 : vector<32x256xf32>
    %211 = arith.divf %209, %210 : vector<32x256xf32>
    %212 = arith.mulf %206, %211 : vector<32x256xf32>
    %213 = arith.truncf %212 : vector<32x256xf32> to vector<32x256xbf16>
    %214 = tpu.iota {dimensions = array<i32: 1>} : vector<1x256xi32>
    %c16_i32_68 = arith.constant 16 : i32
    %c0_i32_69 = arith.constant 0 : i32
    %215 = arith.cmpi eq, %c16_i32_68, %c0_i32_69 : i32
    %c1_i32_70 = arith.constant 1 : i32
    %216 = arith.select %215, %c1_i32_70, %c16_i32_68 : i32
    %217 = vector.broadcast %216 : i32 to vector<1x256xi32>
    %218 = arith.remsi %214, %217 : vector<1x256xi32>
    %c0_i32_71 = arith.constant 0 : i32
    %219 = vector.broadcast %c0_i32_71 : i32 to vector<1x256xi32>
    %220 = arith.cmpi ne, %218, %219 : vector<1x256xi32>
    %c0_i32_72 = arith.constant 0 : i32
    %221 = vector.broadcast %c0_i32_72 : i32 to vector<1x256xi32>
    %222 = arith.cmpi slt, %218, %221 : vector<1x256xi32>
    %c0_i32_73 = arith.constant 0 : i32
    %223 = arith.cmpi slt, %216, %c0_i32_73 : i32
    %224 = vector.broadcast %223 : i1 to vector<1x256xi1>
    %225 = vector.broadcast %224 : vector<1x256xi1> to vector<1x256xi1>
    %226 = arith.xori %222, %225 : vector<1x256xi1>
    %227 = arith.andi %226, %220 : vector<1x256xi1>
    %228 = vector.broadcast %216 : i32 to vector<1x256xi32>
    %229 = arith.addi %218, %228 : vector<1x256xi32>
    %230 = arith.select %227, %229, %218 : vector<1x256xi1>, vector<1x256xi32>
    %c0_i32_74 = arith.constant 0 : i32
    %231 = vector.broadcast %c0_i32_74 : i32 to vector<1x256xi32>
    %232 = arith.cmpi sgt, %230, %231 : vector<1x256xi32>
    %c15_i32_75 = arith.constant 15 : i32
    %233 = vector.broadcast %c15_i32_75 : i32 to vector<1x256xi32>
    %234 = arith.cmpi slt, %230, %233 : vector<1x256xi32>
    %c1184 = arith.constant 1184 : index
    %c0_76 = arith.constant 0 : index
    %235 = vector.load %arg2[%c1184, %c0_76] : memref<2624x256xbf16, #tpu.memory_space<vmem>>, vector<40x256xbf16>
    %236 = vector.extract_strided_slice %235 {offsets = [0, 0], sizes = [40, 32], strides = [1, 1]} : vector<40x256xbf16> to vector<40x32xbf16>
    %cst_77 = arith.constant dense<0.000000e+00> : vector<40x256xf32>
    %237 = tpu.matmul %236, %213, %cst_77 {dimension_numbers = #tpu.dot_dimension_numbers<[1], [0], [0], [1], [0, 0, 1, 1], [], []>} : vector<40x32xbf16>, vector<32x256xbf16>, vector<40x256xf32> -> vector<40x256xf32>
    %238 = vector.extract_strided_slice %237 {offsets = [0, 0], sizes = [8, 256], strides = [1, 1]} : vector<40x256xf32> to vector<8x256xf32>
    %c0_78 = arith.constant 0 : index
    %c0_79 = arith.constant 0 : index
    %239 = vector.load %arg3[%c0_78, %c0_79] : memref<192x32xf32, #tpu.memory_space<vmem>>, vector<8x32xf32>
    %240 = vector.extract_strided_slice %239 {offsets = [0, 7], sizes = [8, 1], strides = [1, 1]} : vector<8x32xf32> to vector<8x1xf32>
    %241 = vector.broadcast %240 : vector<8x1xf32> to vector<8x256xf32>
    %242 = arith.addf %238, %241 : vector<8x256xf32>
    %243 = arith.negf %242 : vector<8x256xf32>
    %244 = math.exp %243 : vector<8x256xf32>
    %cst_80 = arith.constant 1.000000e+00 : f32
    %245 = vector.broadcast %cst_80 : f32 to vector<8x256xf32>
    %246 = arith.addf %245, %244 : vector<8x256xf32>
    %247 = arith.divf %245, %246 : vector<8x256xf32>
    %248 = arith.mulf %242, %247 : vector<8x256xf32>
    %249 = vector.extract_strided_slice %237 {offsets = [8, 0], sizes = [32, 256], strides = [1, 1]} : vector<40x256xf32> to vector<32x256xf32>
    %cst_81 = arith.constant 0.000000e+00 : f32
    %250 = vector.broadcast %cst_81 : f32 to vector<8x17xf32>
    %251 = vector.extract_strided_slice %248 {offsets = [0, 0], sizes = [8, 239], strides = [1, 1]} : vector<8x256xf32> to vector<8x239xf32>
    %252 = tpu.concatenate %250, %251 in 1 : vector<8x17xf32>, vector<8x239xf32> -> vector<8x256xf32>
    %cst_82 = arith.constant 0.000000e+00 : f32
    %253 = vector.shape_cast %232 : vector<1x256xi1> to vector<1x256xi1>
    %254 = vector.broadcast %253 : vector<1x256xi1> to vector<8x256xi1>
    %255 = vector.broadcast %cst_82 : f32 to vector<8x256xf32>
    %256 = arith.select %254, %252, %255 : vector<8x256xi1>, vector<8x256xf32>
    %cst_83 = arith.constant 0.000000e+00 : f32
    %257 = vector.broadcast %cst_83 : f32 to vector<8x16xf32>
    %258 = vector.extract_strided_slice %248 {offsets = [0, 0], sizes = [8, 240], strides = [1, 1]} : vector<8x256xf32> to vector<8x240xf32>
    %259 = tpu.concatenate %257, %258 in 1 : vector<8x16xf32>, vector<8x240xf32> -> vector<8x256xf32>
    %cst_84 = arith.constant 0.000000e+00 : f32
    %260 = vector.broadcast %cst_84 : f32 to vector<8x15xf32>
    %261 = vector.extract_strided_slice %248 {offsets = [0, 0], sizes = [8, 241], strides = [1, 1]} : vector<8x256xf32> to vector<8x241xf32>
    %262 = tpu.concatenate %260, %261 in 1 : vector<8x15xf32>, vector<8x241xf32> -> vector<8x256xf32>
    %cst_85 = arith.constant 0.000000e+00 : f32
    %263 = vector.shape_cast %234 : vector<1x256xi1> to vector<1x256xi1>
    %264 = vector.broadcast %263 : vector<1x256xi1> to vector<8x256xi1>
    %265 = vector.broadcast %cst_85 : f32 to vector<8x256xf32>
    %266 = arith.select %264, %262, %265 : vector<8x256xi1>, vector<8x256xf32>
    %cst_86 = arith.constant 0.000000e+00 : f32
    %267 = vector.broadcast %cst_86 : f32 to vector<8x1xf32>
    %268 = vector.extract_strided_slice %248 {offsets = [0, 0], sizes = [8, 255], strides = [1, 1]} : vector<8x256xf32> to vector<8x255xf32>
    %269 = tpu.concatenate %267, %268 in 1 : vector<8x1xf32>, vector<8x255xf32> -> vector<8x256xf32>
    %cst_87 = arith.constant 0.000000e+00 : f32
    %270 = vector.shape_cast %232 : vector<1x256xi1> to vector<1x256xi1>
    %271 = vector.broadcast %270 : vector<1x256xi1> to vector<8x256xi1>
    %272 = vector.broadcast %cst_87 : f32 to vector<8x256xf32>
    %273 = arith.select %271, %269, %272 : vector<8x256xi1>, vector<8x256xf32>
    %cst_88 = arith.constant 0.000000e+00 : f32
    %274 = vector.broadcast %cst_88 : f32 to vector<8x1xf32>
    %275 = vector.extract_strided_slice %248 {offsets = [0, 1], sizes = [8, 255], strides = [1, 1]} : vector<8x256xf32> to vector<8x255xf32>
    %276 = tpu.concatenate %275, %274 in 1 : vector<8x255xf32>, vector<8x1xf32> -> vector<8x256xf32>
    %cst_89 = arith.constant 0.000000e+00 : f32
    %277 = vector.shape_cast %234 : vector<1x256xi1> to vector<1x256xi1>
    %278 = vector.broadcast %277 : vector<1x256xi1> to vector<8x256xi1>
    %279 = vector.broadcast %cst_89 : f32 to vector<8x256xf32>
    %280 = arith.select %278, %276, %279 : vector<8x256xi1>, vector<8x256xf32>
    %cst_90 = arith.constant 0.000000e+00 : f32
    %281 = vector.broadcast %cst_90 : f32 to vector<8x15xf32>
    %282 = vector.extract_strided_slice %248 {offsets = [0, 15], sizes = [8, 241], strides = [1, 1]} : vector<8x256xf32> to vector<8x241xf32>
    %283 = tpu.concatenate %282, %281 in 1 : vector<8x241xf32>, vector<8x15xf32> -> vector<8x256xf32>
    %cst_91 = arith.constant 0.000000e+00 : f32
    %284 = vector.shape_cast %232 : vector<1x256xi1> to vector<1x256xi1>
    %285 = vector.broadcast %284 : vector<1x256xi1> to vector<8x256xi1>
    %286 = vector.broadcast %cst_91 : f32 to vector<8x256xf32>
    %287 = arith.select %285, %283, %286 : vector<8x256xi1>, vector<8x256xf32>
    %cst_92 = arith.constant 0.000000e+00 : f32
    %288 = vector.broadcast %cst_92 : f32 to vector<8x16xf32>
    %289 = vector.extract_strided_slice %248 {offsets = [0, 16], sizes = [8, 240], strides = [1, 1]} : vector<8x256xf32> to vector<8x240xf32>
    %290 = tpu.concatenate %289, %288 in 1 : vector<8x240xf32>, vector<8x16xf32> -> vector<8x256xf32>
    %cst_93 = arith.constant 0.000000e+00 : f32
    %291 = vector.broadcast %cst_93 : f32 to vector<8x17xf32>
    %292 = vector.extract_strided_slice %248 {offsets = [0, 17], sizes = [8, 239], strides = [1, 1]} : vector<8x256xf32> to vector<8x239xf32>
    %293 = tpu.concatenate %292, %291 in 1 : vector<8x239xf32>, vector<8x17xf32> -> vector<8x256xf32>
    %cst_94 = arith.constant 0.000000e+00 : f32
    %294 = vector.shape_cast %234 : vector<1x256xi1> to vector<1x256xi1>
    %295 = vector.broadcast %294 : vector<1x256xi1> to vector<8x256xi1>
    %296 = vector.broadcast %cst_94 : f32 to vector<8x256xf32>
    %297 = arith.select %295, %293, %296 : vector<8x256xi1>, vector<8x256xf32>
    %298 = tpu.concatenate %256, %259, %266, %273, %248, %280, %287, %290, %297 in 0 : vector<8x256xf32>, vector<8x256xf32>, vector<8x256xf32>, vector<8x256xf32>, vector<8x256xf32>, vector<8x256xf32>, vector<8x256xf32>, vector<8x256xf32>, vector<8x256xf32> -> vector<72x256xf32>
    %299 = arith.truncf %298 : vector<72x256xf32> to vector<72x256xbf16>
    %c1232 = arith.constant 1232 : index
    %c0_95 = arith.constant 0 : index
    %300 = vector.load %arg2[%c1232, %c0_95] : memref<2624x256xbf16, #tpu.memory_space<vmem>>, vector<8x256xbf16>
    %301 = vector.extract_strided_slice %300 {offsets = [0, 0], sizes = [8, 72], strides = [1, 1]} : vector<8x256xbf16> to vector<8x72xbf16>
    %cst_96 = arith.constant dense<0.000000e+00> : vector<8x256xf32>
    %302 = tpu.matmul %301, %299, %cst_96 {dimension_numbers = #tpu.dot_dimension_numbers<[1], [0], [0], [1], [0, 0, 1, 1], [], []>} : vector<8x72xbf16>, vector<72x256xbf16>, vector<8x256xf32> -> vector<8x256xf32>
    %303 = tpu.concatenate %302, %249 in 0 : vector<8x256xf32>, vector<32x256xf32> -> vector<40x256xf32>
    %304 = arith.truncf %303 : vector<40x256xf32> to vector<40x256xbf16>
    %c1248 = arith.constant 1248 : index
    %c0_97 = arith.constant 0 : index
    %305 = vector.load %arg2[%c1248, %c0_97] : memref<2624x256xbf16, #tpu.memory_space<vmem>>, vector<256x256xbf16>
    %306 = vector.extract_strided_slice %305 {offsets = [0, 0], sizes = [256, 64], strides = [1, 1]} : vector<256x256xbf16> to vector<256x64xbf16>
    %cst_98 = arith.constant dense<0.000000e+00> : vector<40x64xf32>
    %307 = tpu.matmul %304, %306, %cst_98 {dimension_numbers = #tpu.dot_dimension_numbers<[1], [0], [0], [1], [0, 0, 1, 1], [], []>} : vector<40x256xbf16>, vector<256x64xbf16>, vector<40x64xf32> -> vector<40x64xf32>
    %308 = vector.extract_strided_slice %307 {offsets = [0, 0], sizes = [8, 64], strides = [1, 1]} : vector<40x64xf32> to vector<8x64xf32>
    %309 = vector.extract_strided_slice %307 {offsets = [8, 0], sizes = [32, 64], strides = [1, 1]} : vector<40x64xf32> to vector<32x64xf32>
    %c0_99 = arith.constant 0 : index
    %c0_100 = arith.constant 0 : index
    %310 = vector.load %arg3[%c0_99, %c0_100] : memref<192x32xf32, #tpu.memory_space<vmem>>, vector<8x32xf32>
    %311 = vector.extract_strided_slice %310 {offsets = [0, 9], sizes = [8, 1], strides = [1, 1]} : vector<8x32xf32> to vector<8x1xf32>
    %312 = vector.broadcast %311 : vector<8x1xf32> to vector<8x64xf32>
    %313 = arith.addf %308, %312 : vector<8x64xf32>
    %314 = arith.negf %313 : vector<8x64xf32>
    %315 = math.exp %314 : vector<8x64xf32>
    %cst_101 = arith.constant 1.000000e+00 : f32
    %316 = vector.broadcast %cst_101 : f32 to vector<8x64xf32>
    %317 = arith.addf %316, %315 : vector<8x64xf32>
    %318 = arith.divf %316, %317 : vector<8x64xf32>
    %319 = arith.mulf %313, %318 : vector<8x64xf32>
    %c1504 = arith.constant 1504 : index
    %c0_102 = arith.constant 0 : index
    %320 = vector.load %arg2[%c1504, %c0_102] : memref<2624x256xbf16, #tpu.memory_space<vmem>>, vector<32x256xbf16>
    %321 = vector.extract_strided_slice %320 {offsets = [0, 0], sizes = [32, 8], strides = [1, 1]} : vector<32x256xbf16> to vector<32x8xbf16>
    %322 = arith.truncf %319 : vector<8x64xf32> to vector<8x64xbf16>
    %cst_103 = arith.constant dense<0.000000e+00> : vector<32x64xf32>
    %323 = tpu.matmul %321, %322, %cst_103 {dimension_numbers = #tpu.dot_dimension_numbers<[1], [0], [0], [1], [0, 0, 1, 1], [], []>} : vector<32x8xbf16>, vector<8x64xbf16>, vector<32x64xf32> -> vector<32x64xf32>
    %c0_104 = arith.constant 0 : index
    %c0_105 = arith.constant 0 : index
    %324 = vector.load %arg3[%c0_104, %c0_105] : memref<192x32xf32, #tpu.memory_space<vmem>>, vector<32x32xf32>
    %325 = vector.extract_strided_slice %324 {offsets = [0, 10], sizes = [32, 1], strides = [1, 1]} : vector<32x32xf32> to vector<32x1xf32>
    %326 = vector.broadcast %325 : vector<32x1xf32> to vector<32x64xf32>
    %327 = arith.addf %323, %326 : vector<32x64xf32>
    %cst_106 = arith.constant dense<0.000000e+00> : vector<32xf32>
    %328 = vector.multi_reduction <add>, %327, %cst_106 [1] : vector<32x64xf32> to vector<32xf32>
    %329 = vector.shape_cast %328 : vector<32xf32> to vector<32x1xf32>
    %cst_107 = arith.constant 6.400000e+01 : f32
    %330 = vector.broadcast %cst_107 : f32 to vector<32x1xf32>
    %331 = arith.divf %329, %330 : vector<32x1xf32>
    %c1536 = arith.constant 1536 : index
    %c0_108 = arith.constant 0 : index
    %332 = vector.load %arg2[%c1536, %c0_108] : memref<2624x256xbf16, #tpu.memory_space<vmem>>, vector<2x256xbf16>
    %333 = vector.extract_strided_slice %332 {offsets = [0, 0], sizes = [2, 32], strides = [1, 1]} : vector<2x256xbf16> to vector<2x32xbf16>
    %334 = arith.truncf %331 : vector<32x1xf32> to vector<32x1xbf16>
    %cst_109 = arith.constant dense<0.000000e+00> : vector<2x1xf32>
    %335 = tpu.matmul %333, %334, %cst_109 {dimension_numbers = #tpu.dot_dimension_numbers<[1], [0], [0], [1], [0, 0, 1, 1], [], []>} : vector<2x32xbf16>, vector<32x1xbf16>, vector<2x1xf32> -> vector<2x1xf32>
    %c0_110 = arith.constant 0 : index
    %c0_111 = arith.constant 0 : index
    %336 = vector.load %arg3[%c0_110, %c0_111] : memref<192x32xf32, #tpu.memory_space<vmem>>, vector<2x32xf32>
    %337 = vector.extract_strided_slice %336 {offsets = [0, 11], sizes = [2, 1], strides = [1, 1]} : vector<2x32xf32> to vector<2x1xf32>
    %338 = arith.addf %335, %337 : vector<2x1xf32>
    %339 = arith.negf %338 : vector<2x1xf32>
    %340 = math.exp %339 : vector<2x1xf32>
    %cst_112 = arith.constant 1.000000e+00 : f32
    %341 = vector.broadcast %cst_112 : f32 to vector<2x1xf32>
    %342 = arith.addf %341, %340 : vector<2x1xf32>
    %343 = arith.divf %341, %342 : vector<2x1xf32>
    %344 = arith.mulf %338, %343 : vector<2x1xf32>
    %c1552 = arith.constant 1552 : index
    %c0_113 = arith.constant 0 : index
    %345 = vector.load %arg2[%c1552, %c0_113] : memref<2624x256xbf16, #tpu.memory_space<vmem>>, vector<32x256xbf16>
    %346 = vector.extract_strided_slice %345 {offsets = [0, 0], sizes = [32, 2], strides = [1, 1]} : vector<32x256xbf16> to vector<32x2xbf16>
    %347 = arith.truncf %344 : vector<2x1xf32> to vector<2x1xbf16>
    %cst_114 = arith.constant dense<0.000000e+00> : vector<32x1xf32>
    %348 = tpu.matmul %346, %347, %cst_114 {dimension_numbers = #tpu.dot_dimension_numbers<[1], [0], [0], [1], [0, 0, 1, 1], [], []>} : vector<32x2xbf16>, vector<2x1xbf16>, vector<32x1xf32> -> vector<32x1xf32>
    %c0_115 = arith.constant 0 : index
    %c0_116 = arith.constant 0 : index
    %349 = vector.load %arg3[%c0_115, %c0_116] : memref<192x32xf32, #tpu.memory_space<vmem>>, vector<32x32xf32>
    %350 = vector.extract_strided_slice %349 {offsets = [0, 12], sizes = [32, 1], strides = [1, 1]} : vector<32x32xf32> to vector<32x1xf32>
    %351 = arith.addf %348, %350 : vector<32x1xf32>
    %352 = arith.negf %351 : vector<32x1xf32>
    %353 = math.exp %352 : vector<32x1xf32>
    %cst_117 = arith.constant 1.000000e+00 : f32
    %354 = vector.broadcast %cst_117 : f32 to vector<32x1xf32>
    %355 = arith.addf %354, %353 : vector<32x1xf32>
    %356 = arith.divf %354, %355 : vector<32x1xf32>
    %357 = vector.broadcast %356 : vector<32x1xf32> to vector<32x64xf32>
    %358 = arith.mulf %327, %357 : vector<32x64xf32>
    %359 = arith.addf %358, %309 : vector<32x64xf32>
    %c0_118 = arith.constant 0 : index
    %c0_119 = arith.constant 0 : index
    %360 = vector.load %arg3[%c0_118, %c0_119] : memref<192x32xf32, #tpu.memory_space<vmem>>, vector<32x32xf32>
    %361 = vector.extract_strided_slice %360 {offsets = [0, 8], sizes = [32, 1], strides = [1, 1]} : vector<32x32xf32> to vector<32x1xf32>
    %362 = vector.broadcast %361 : vector<32x1xf32> to vector<32x64xf32>
    %363 = arith.addf %359, %362 : vector<32x64xf32>
    %364 = arith.negf %363 : vector<32x64xf32>
    %365 = math.exp %364 : vector<32x64xf32>
    %cst_120 = arith.constant 1.000000e+00 : f32
    %366 = vector.broadcast %cst_120 : f32 to vector<32x64xf32>
    %367 = arith.addf %366, %365 : vector<32x64xf32>
    %368 = arith.divf %366, %367 : vector<32x64xf32>
    %369 = arith.mulf %363, %368 : vector<32x64xf32>
    %370 = arith.truncf %369 : vector<32x64xf32> to vector<32x64xbf16>
    %371 = tpu.iota {dimensions = array<i32: 1>} : vector<1x64xi32>
    %c8_i32 = arith.constant 8 : i32
    %c0_i32_121 = arith.constant 0 : i32
    %372 = arith.cmpi eq, %c8_i32, %c0_i32_121 : i32
    %c1_i32_122 = arith.constant 1 : i32
    %373 = arith.select %372, %c1_i32_122, %c8_i32 : i32
    %374 = vector.broadcast %373 : i32 to vector<1x64xi32>
    %375 = arith.remsi %371, %374 : vector<1x64xi32>
    %c0_i32_123 = arith.constant 0 : i32
    %376 = vector.broadcast %c0_i32_123 : i32 to vector<1x64xi32>
    %377 = arith.cmpi ne, %375, %376 : vector<1x64xi32>
    %c0_i32_124 = arith.constant 0 : i32
    %378 = vector.broadcast %c0_i32_124 : i32 to vector<1x64xi32>
    %379 = arith.cmpi slt, %375, %378 : vector<1x64xi32>
    %c0_i32_125 = arith.constant 0 : i32
    %380 = arith.cmpi slt, %373, %c0_i32_125 : i32
    %381 = vector.broadcast %380 : i1 to vector<1x64xi1>
    %382 = vector.broadcast %381 : vector<1x64xi1> to vector<1x64xi1>
    %383 = arith.xori %379, %382 : vector<1x64xi1>
    %384 = arith.andi %383, %377 : vector<1x64xi1>
    %385 = vector.broadcast %373 : i32 to vector<1x64xi32>
    %386 = arith.addi %375, %385 : vector<1x64xi32>
    %387 = arith.select %384, %386, %375 : vector<1x64xi1>, vector<1x64xi32>
    %c0_i32_126 = arith.constant 0 : i32
    %388 = vector.broadcast %c0_i32_126 : i32 to vector<1x64xi32>
    %389 = arith.cmpi sgt, %387, %388 : vector<1x64xi32>
    %c7_i32 = arith.constant 7 : i32
    %390 = vector.broadcast %c7_i32 : i32 to vector<1x64xi32>
    %391 = arith.cmpi slt, %387, %390 : vector<1x64xi32>
    %c1584 = arith.constant 1584 : index
    %c0_127 = arith.constant 0 : index
    %392 = vector.load %arg2[%c1584, %c0_127] : memref<2624x256xbf16, #tpu.memory_space<vmem>>, vector<80x256xbf16>
    %393 = vector.extract_strided_slice %392 {offsets = [0, 0], sizes = [80, 32], strides = [1, 1]} : vector<80x256xbf16> to vector<80x32xbf16>
    %cst_128 = arith.constant dense<0.000000e+00> : vector<80x64xf32>
    %394 = tpu.matmul %393, %370, %cst_128 {dimension_numbers = #tpu.dot_dimension_numbers<[1], [0], [0], [1], [0, 0, 1, 1], [], []>} : vector<80x32xbf16>, vector<32x64xbf16>, vector<80x64xf32> -> vector<80x64xf32>
    %395 = vector.extract_strided_slice %394 {offsets = [0, 0], sizes = [16, 64], strides = [1, 1]} : vector<80x64xf32> to vector<16x64xf32>
    %c0_129 = arith.constant 0 : index
    %c0_130 = arith.constant 0 : index
    %396 = vector.load %arg3[%c0_129, %c0_130] : memref<192x32xf32, #tpu.memory_space<vmem>>, vector<16x32xf32>
    %397 = vector.extract_strided_slice %396 {offsets = [0, 13], sizes = [16, 1], strides = [1, 1]} : vector<16x32xf32> to vector<16x1xf32>
    %398 = vector.broadcast %397 : vector<16x1xf32> to vector<16x64xf32>
    %399 = arith.addf %395, %398 : vector<16x64xf32>
    %400 = arith.negf %399 : vector<16x64xf32>
    %401 = math.exp %400 : vector<16x64xf32>
    %cst_131 = arith.constant 1.000000e+00 : f32
    %402 = vector.broadcast %cst_131 : f32 to vector<16x64xf32>
    %403 = arith.addf %402, %401 : vector<16x64xf32>
    %404 = arith.divf %402, %403 : vector<16x64xf32>
    %405 = arith.mulf %399, %404 : vector<16x64xf32>
    %406 = vector.extract_strided_slice %394 {offsets = [16, 0], sizes = [64, 64], strides = [1, 1]} : vector<80x64xf32> to vector<64x64xf32>
    %cst_132 = arith.constant 0.000000e+00 : f32
    %407 = vector.broadcast %cst_132 : f32 to vector<16x9xf32>
    %408 = vector.extract_strided_slice %405 {offsets = [0, 0], sizes = [16, 55], strides = [1, 1]} : vector<16x64xf32> to vector<16x55xf32>
    %409 = tpu.concatenate %407, %408 in 1 : vector<16x9xf32>, vector<16x55xf32> -> vector<16x64xf32>
    %cst_133 = arith.constant 0.000000e+00 : f32
    %410 = vector.shape_cast %389 : vector<1x64xi1> to vector<1x64xi1>
    %411 = vector.broadcast %410 : vector<1x64xi1> to vector<16x64xi1>
    %412 = vector.broadcast %cst_133 : f32 to vector<16x64xf32>
    %413 = arith.select %411, %409, %412 : vector<16x64xi1>, vector<16x64xf32>
    %cst_134 = arith.constant 0.000000e+00 : f32
    %414 = vector.broadcast %cst_134 : f32 to vector<16x8xf32>
    %415 = vector.extract_strided_slice %405 {offsets = [0, 0], sizes = [16, 56], strides = [1, 1]} : vector<16x64xf32> to vector<16x56xf32>
    %416 = tpu.concatenate %414, %415 in 1 : vector<16x8xf32>, vector<16x56xf32> -> vector<16x64xf32>
    %cst_135 = arith.constant 0.000000e+00 : f32
    %417 = vector.broadcast %cst_135 : f32 to vector<16x7xf32>
    %418 = vector.extract_strided_slice %405 {offsets = [0, 0], sizes = [16, 57], strides = [1, 1]} : vector<16x64xf32> to vector<16x57xf32>
    %419 = tpu.concatenate %417, %418 in 1 : vector<16x7xf32>, vector<16x57xf32> -> vector<16x64xf32>
    %cst_136 = arith.constant 0.000000e+00 : f32
    %420 = vector.shape_cast %391 : vector<1x64xi1> to vector<1x64xi1>
    %421 = vector.broadcast %420 : vector<1x64xi1> to vector<16x64xi1>
    %422 = vector.broadcast %cst_136 : f32 to vector<16x64xf32>
    %423 = arith.select %421, %419, %422 : vector<16x64xi1>, vector<16x64xf32>
    %cst_137 = arith.constant 0.000000e+00 : f32
    %424 = vector.broadcast %cst_137 : f32 to vector<16x1xf32>
    %425 = vector.extract_strided_slice %405 {offsets = [0, 0], sizes = [16, 63], strides = [1, 1]} : vector<16x64xf32> to vector<16x63xf32>
    %426 = tpu.concatenate %424, %425 in 1 : vector<16x1xf32>, vector<16x63xf32> -> vector<16x64xf32>
    %cst_138 = arith.constant 0.000000e+00 : f32
    %427 = vector.shape_cast %389 : vector<1x64xi1> to vector<1x64xi1>
    %428 = vector.broadcast %427 : vector<1x64xi1> to vector<16x64xi1>
    %429 = vector.broadcast %cst_138 : f32 to vector<16x64xf32>
    %430 = arith.select %428, %426, %429 : vector<16x64xi1>, vector<16x64xf32>
    %cst_139 = arith.constant 0.000000e+00 : f32
    %431 = vector.broadcast %cst_139 : f32 to vector<16x1xf32>
    %432 = vector.extract_strided_slice %405 {offsets = [0, 1], sizes = [16, 63], strides = [1, 1]} : vector<16x64xf32> to vector<16x63xf32>
    %433 = tpu.concatenate %432, %431 in 1 : vector<16x63xf32>, vector<16x1xf32> -> vector<16x64xf32>
    %cst_140 = arith.constant 0.000000e+00 : f32
    %434 = vector.shape_cast %391 : vector<1x64xi1> to vector<1x64xi1>
    %435 = vector.broadcast %434 : vector<1x64xi1> to vector<16x64xi1>
    %436 = vector.broadcast %cst_140 : f32 to vector<16x64xf32>
    %437 = arith.select %435, %433, %436 : vector<16x64xi1>, vector<16x64xf32>
    %cst_141 = arith.constant 0.000000e+00 : f32
    %438 = vector.broadcast %cst_141 : f32 to vector<16x7xf32>
    %439 = vector.extract_strided_slice %405 {offsets = [0, 7], sizes = [16, 57], strides = [1, 1]} : vector<16x64xf32> to vector<16x57xf32>
    %440 = tpu.concatenate %439, %438 in 1 : vector<16x57xf32>, vector<16x7xf32> -> vector<16x64xf32>
    %cst_142 = arith.constant 0.000000e+00 : f32
    %441 = vector.shape_cast %389 : vector<1x64xi1> to vector<1x64xi1>
    %442 = vector.broadcast %441 : vector<1x64xi1> to vector<16x64xi1>
    %443 = vector.broadcast %cst_142 : f32 to vector<16x64xf32>
    %444 = arith.select %442, %440, %443 : vector<16x64xi1>, vector<16x64xf32>
    %cst_143 = arith.constant 0.000000e+00 : f32
    %445 = vector.broadcast %cst_143 : f32 to vector<16x8xf32>
    %446 = vector.extract_strided_slice %405 {offsets = [0, 8], sizes = [16, 56], strides = [1, 1]} : vector<16x64xf32> to vector<16x56xf32>
    %447 = tpu.concatenate %446, %445 in 1 : vector<16x56xf32>, vector<16x8xf32> -> vector<16x64xf32>
    %cst_144 = arith.constant 0.000000e+00 : f32
    %448 = vector.broadcast %cst_144 : f32 to vector<16x9xf32>
    %449 = vector.extract_strided_slice %405 {offsets = [0, 9], sizes = [16, 55], strides = [1, 1]} : vector<16x64xf32> to vector<16x55xf32>
    %450 = tpu.concatenate %449, %448 in 1 : vector<16x55xf32>, vector<16x9xf32> -> vector<16x64xf32>
    %cst_145 = arith.constant 0.000000e+00 : f32
    %451 = vector.shape_cast %391 : vector<1x64xi1> to vector<1x64xi1>
    %452 = vector.broadcast %451 : vector<1x64xi1> to vector<16x64xi1>
    %453 = vector.broadcast %cst_145 : f32 to vector<16x64xf32>
    %454 = arith.select %452, %450, %453 : vector<16x64xi1>, vector<16x64xf32>
    %455 = tpu.concatenate %413, %416, %423, %430, %405, %437, %444, %447, %454 in 0 : vector<16x64xf32>, vector<16x64xf32>, vector<16x64xf32>, vector<16x64xf32>, vector<16x64xf32>, vector<16x64xf32>, vector<16x64xf32>, vector<16x64xf32>, vector<16x64xf32> -> vector<144x64xf32>
    %456 = arith.truncf %455 : vector<144x64xf32> to vector<144x64xbf16>
    %c1664 = arith.constant 1664 : index
    %c0_146 = arith.constant 0 : index
    %457 = vector.load %arg2[%c1664, %c0_146] : memref<2624x256xbf16, #tpu.memory_space<vmem>>, vector<16x256xbf16>
    %458 = vector.extract_strided_slice %457 {offsets = [0, 0], sizes = [16, 144], strides = [1, 1]} : vector<16x256xbf16> to vector<16x144xbf16>
    %cst_147 = arith.constant dense<0.000000e+00> : vector<16x64xf32>
    %459 = tpu.matmul %458, %456, %cst_147 {dimension_numbers = #tpu.dot_dimension_numbers<[1], [0], [0], [1], [0, 0, 1, 1], [], []>} : vector<16x144xbf16>, vector<144x64xbf16>, vector<16x64xf32> -> vector<16x64xf32>
    %460 = tpu.concatenate %459, %406 in 0 : vector<16x64xf32>, vector<64x64xf32> -> vector<80x64xf32>
    %461 = arith.truncf %460 : vector<80x64xf32> to vector<80x64xbf16>
    %c1680 = arith.constant 1680 : index
    %c0_148 = arith.constant 0 : index
    %462 = vector.load %arg2[%c1680, %c0_148] : memref<2624x256xbf16, #tpu.memory_space<vmem>>, vector<64x256xbf16>
    %463 = vector.extract_strided_slice %462 {offsets = [0, 0], sizes = [64, 16], strides = [1, 1]} : vector<64x256xbf16> to vector<64x16xbf16>
    %cst_149 = arith.constant dense<0.000000e+00> : vector<80x16xf32>
    %464 = tpu.matmul %461, %463, %cst_149 {dimension_numbers = #tpu.dot_dimension_numbers<[1], [0], [0], [1], [0, 0, 1, 1], [], []>} : vector<80x64xbf16>, vector<64x16xbf16>, vector<80x16xf32> -> vector<80x16xf32>
    %465 = vector.extract_strided_slice %464 {offsets = [0, 0], sizes = [16, 16], strides = [1, 1]} : vector<80x16xf32> to vector<16x16xf32>
    %466 = vector.extract_strided_slice %464 {offsets = [16, 0], sizes = [64, 16], strides = [1, 1]} : vector<80x16xf32> to vector<64x16xf32>
    %c0_150 = arith.constant 0 : index
    %c0_151 = arith.constant 0 : index
    %467 = vector.load %arg3[%c0_150, %c0_151] : memref<192x32xf32, #tpu.memory_space<vmem>>, vector<16x32xf32>
    %468 = vector.extract_strided_slice %467 {offsets = [0, 15], sizes = [16, 1], strides = [1, 1]} : vector<16x32xf32> to vector<16x1xf32>
    %469 = vector.broadcast %468 : vector<16x1xf32> to vector<16x16xf32>
    %470 = arith.addf %465, %469 : vector<16x16xf32>
    %471 = arith.negf %470 : vector<16x16xf32>
    %472 = math.exp %471 : vector<16x16xf32>
    %cst_152 = arith.constant 1.000000e+00 : f32
    %473 = vector.broadcast %cst_152 : f32 to vector<16x16xf32>
    %474 = arith.addf %473, %472 : vector<16x16xf32>
    %475 = arith.divf %473, %474 : vector<16x16xf32>
    %476 = arith.mulf %470, %475 : vector<16x16xf32>
    %c1744 = arith.constant 1744 : index
    %c0_153 = arith.constant 0 : index
    %477 = vector.load %arg2[%c1744, %c0_153] : memref<2624x256xbf16, #tpu.memory_space<vmem>>, vector<64x256xbf16>
    %478 = vector.extract_strided_slice %477 {offsets = [0, 0], sizes = [64, 16], strides = [1, 1]} : vector<64x256xbf16> to vector<64x16xbf16>
    %479 = arith.truncf %476 : vector<16x16xf32> to vector<16x16xbf16>
    %cst_154 = arith.constant dense<0.000000e+00> : vector<64x16xf32>
    %480 = tpu.matmul %478, %479, %cst_154 {dimension_numbers = #tpu.dot_dimension_numbers<[1], [0], [0], [1], [0, 0, 1, 1], [], []>} : vector<64x16xbf16>, vector<16x16xbf16>, vector<64x16xf32> -> vector<64x16xf32>
    %c0_155 = arith.constant 0 : index
    %c0_156 = arith.constant 0 : index
    %481 = vector.load %arg3[%c0_155, %c0_156] : memref<192x32xf32, #tpu.memory_space<vmem>>, vector<64x32xf32>
    %482 = vector.extract_strided_slice %481 {offsets = [0, 16], sizes = [64, 1], strides = [1, 1]} : vector<64x32xf32> to vector<64x1xf32>
    %483 = vector.broadcast %482 : vector<64x1xf32> to vector<64x16xf32>
    %484 = arith.addf %480, %483 : vector<64x16xf32>
    %cst_157 = arith.constant dense<0.000000e+00> : vector<64xf32>
    %485 = vector.multi_reduction <add>, %484, %cst_157 [1] : vector<64x16xf32> to vector<64xf32>
    %486 = vector.shape_cast %485 : vector<64xf32> to vector<64x1xf32>
    %cst_158 = arith.constant 1.600000e+01 : f32
    %487 = vector.broadcast %cst_158 : f32 to vector<64x1xf32>
    %488 = arith.divf %486, %487 : vector<64x1xf32>
    %c1808 = arith.constant 1808 : index
    %c0_159 = arith.constant 0 : index
    %489 = vector.load %arg2[%c1808, %c0_159] : memref<2624x256xbf16, #tpu.memory_space<vmem>>, vector<4x256xbf16>
    %490 = vector.extract_strided_slice %489 {offsets = [0, 0], sizes = [4, 64], strides = [1, 1]} : vector<4x256xbf16> to vector<4x64xbf16>
    %491 = arith.truncf %488 : vector<64x1xf32> to vector<64x1xbf16>
    %cst_160 = arith.constant dense<0.000000e+00> : vector<4x1xf32>
    %492 = tpu.matmul %490, %491, %cst_160 {dimension_numbers = #tpu.dot_dimension_numbers<[1], [0], [0], [1], [0, 0, 1, 1], [], []>} : vector<4x64xbf16>, vector<64x1xbf16>, vector<4x1xf32> -> vector<4x1xf32>
    %c0_161 = arith.constant 0 : index
    %c0_162 = arith.constant 0 : index
    %493 = vector.load %arg3[%c0_161, %c0_162] : memref<192x32xf32, #tpu.memory_space<vmem>>, vector<4x32xf32>
    %494 = vector.extract_strided_slice %493 {offsets = [0, 17], sizes = [4, 1], strides = [1, 1]} : vector<4x32xf32> to vector<4x1xf32>
    %495 = arith.addf %492, %494 : vector<4x1xf32>
    %496 = arith.negf %495 : vector<4x1xf32>
    %497 = math.exp %496 : vector<4x1xf32>
    %cst_163 = arith.constant 1.000000e+00 : f32
    %498 = vector.broadcast %cst_163 : f32 to vector<4x1xf32>
    %499 = arith.addf %498, %497 : vector<4x1xf32>
    %500 = arith.divf %498, %499 : vector<4x1xf32>
    %501 = arith.mulf %495, %500 : vector<4x1xf32>
    %c1824 = arith.constant 1824 : index
    %c0_164 = arith.constant 0 : index
    %502 = vector.load %arg2[%c1824, %c0_164] : memref<2624x256xbf16, #tpu.memory_space<vmem>>, vector<64x256xbf16>
    %503 = vector.extract_strided_slice %502 {offsets = [0, 0], sizes = [64, 4], strides = [1, 1]} : vector<64x256xbf16> to vector<64x4xbf16>
    %504 = arith.truncf %501 : vector<4x1xf32> to vector<4x1xbf16>
    %cst_165 = arith.constant dense<0.000000e+00> : vector<64x1xf32>
    %505 = tpu.matmul %503, %504, %cst_165 {dimension_numbers = #tpu.dot_dimension_numbers<[1], [0], [0], [1], [0, 0, 1, 1], [], []>} : vector<64x4xbf16>, vector<4x1xbf16>, vector<64x1xf32> -> vector<64x1xf32>
    %c0_166 = arith.constant 0 : index
    %c0_167 = arith.constant 0 : index
    %506 = vector.load %arg3[%c0_166, %c0_167] : memref<192x32xf32, #tpu.memory_space<vmem>>, vector<64x32xf32>
    %507 = vector.extract_strided_slice %506 {offsets = [0, 18], sizes = [64, 1], strides = [1, 1]} : vector<64x32xf32> to vector<64x1xf32>
    %508 = arith.addf %505, %507 : vector<64x1xf32>
    %509 = arith.negf %508 : vector<64x1xf32>
    %510 = math.exp %509 : vector<64x1xf32>
    %cst_168 = arith.constant 1.000000e+00 : f32
    %511 = vector.broadcast %cst_168 : f32 to vector<64x1xf32>
    %512 = arith.addf %511, %510 : vector<64x1xf32>
    %513 = arith.divf %511, %512 : vector<64x1xf32>
    %514 = vector.broadcast %513 : vector<64x1xf32> to vector<64x16xf32>
    %515 = arith.mulf %484, %514 : vector<64x16xf32>
    %516 = arith.addf %515, %466 : vector<64x16xf32>
    %c0_169 = arith.constant 0 : index
    %c0_170 = arith.constant 0 : index
    %517 = vector.load %arg3[%c0_169, %c0_170] : memref<192x32xf32, #tpu.memory_space<vmem>>, vector<64x32xf32>
    %518 = vector.extract_strided_slice %517 {offsets = [0, 14], sizes = [64, 1], strides = [1, 1]} : vector<64x32xf32> to vector<64x1xf32>
    %519 = vector.broadcast %518 : vector<64x1xf32> to vector<64x16xf32>
    %520 = arith.addf %516, %519 : vector<64x16xf32>
    %521 = arith.negf %520 : vector<64x16xf32>
    %522 = math.exp %521 : vector<64x16xf32>
    %cst_171 = arith.constant 1.000000e+00 : f32
    %523 = vector.broadcast %cst_171 : f32 to vector<64x16xf32>
    %524 = arith.addf %523, %522 : vector<64x16xf32>
    %525 = arith.divf %523, %524 : vector<64x16xf32>
    %526 = arith.mulf %520, %525 : vector<64x16xf32>
    %527 = arith.truncf %526 : vector<64x16xf32> to vector<64x16xbf16>
    %528 = tpu.iota {dimensions = array<i32: 1>} : vector<1x16xi32>
    %c4_i32 = arith.constant 4 : i32
    %c0_i32_172 = arith.constant 0 : i32
    %529 = arith.cmpi eq, %c4_i32, %c0_i32_172 : i32
    %c1_i32_173 = arith.constant 1 : i32
    %530 = arith.select %529, %c1_i32_173, %c4_i32 : i32
    %531 = vector.broadcast %530 : i32 to vector<1x16xi32>
    %532 = arith.remsi %528, %531 : vector<1x16xi32>
    %c0_i32_174 = arith.constant 0 : i32
    %533 = vector.broadcast %c0_i32_174 : i32 to vector<1x16xi32>
    %534 = arith.cmpi ne, %532, %533 : vector<1x16xi32>
    %c0_i32_175 = arith.constant 0 : i32
    %535 = vector.broadcast %c0_i32_175 : i32 to vector<1x16xi32>
    %536 = arith.cmpi slt, %532, %535 : vector<1x16xi32>
    %c0_i32_176 = arith.constant 0 : i32
    %537 = arith.cmpi slt, %530, %c0_i32_176 : i32
    %538 = vector.broadcast %537 : i1 to vector<1x16xi1>
    %539 = vector.broadcast %538 : vector<1x16xi1> to vector<1x16xi1>
    %540 = arith.xori %536, %539 : vector<1x16xi1>
    %541 = arith.andi %540, %534 : vector<1x16xi1>
    %542 = vector.broadcast %530 : i32 to vector<1x16xi32>
    %543 = arith.addi %532, %542 : vector<1x16xi32>
    %544 = arith.select %541, %543, %532 : vector<1x16xi1>, vector<1x16xi32>
    %c0_i32_177 = arith.constant 0 : i32
    %545 = vector.broadcast %c0_i32_177 : i32 to vector<1x16xi32>
    %546 = arith.cmpi sgt, %544, %545 : vector<1x16xi32>
    %c3_i32 = arith.constant 3 : i32
    %547 = vector.broadcast %c3_i32 : i32 to vector<1x16xi32>
    %548 = arith.cmpi slt, %544, %547 : vector<1x16xi32>
    %c1888 = arith.constant 1888 : index
    %c0_178 = arith.constant 0 : index
    %549 = vector.load %arg2[%c1888, %c0_178] : memref<2624x256xbf16, #tpu.memory_space<vmem>>, vector<80x256xbf16>
    %550 = vector.extract_strided_slice %549 {offsets = [0, 0], sizes = [80, 64], strides = [1, 1]} : vector<80x256xbf16> to vector<80x64xbf16>
    %cst_179 = arith.constant dense<0.000000e+00> : vector<80x16xf32>
    %551 = tpu.matmul %550, %527, %cst_179 {dimension_numbers = #tpu.dot_dimension_numbers<[1], [0], [0], [1], [0, 0, 1, 1], [], []>} : vector<80x64xbf16>, vector<64x16xbf16>, vector<80x16xf32> -> vector<80x16xf32>
    %552 = vector.extract_strided_slice %551 {offsets = [0, 0], sizes = [16, 16], strides = [1, 1]} : vector<80x16xf32> to vector<16x16xf32>
    %c0_180 = arith.constant 0 : index
    %c0_181 = arith.constant 0 : index
    %553 = vector.load %arg3[%c0_180, %c0_181] : memref<192x32xf32, #tpu.memory_space<vmem>>, vector<16x32xf32>
    %554 = vector.extract_strided_slice %553 {offsets = [0, 19], sizes = [16, 1], strides = [1, 1]} : vector<16x32xf32> to vector<16x1xf32>
    %555 = vector.broadcast %554 : vector<16x1xf32> to vector<16x16xf32>
    %556 = arith.addf %552, %555 : vector<16x16xf32>
    %557 = arith.negf %556 : vector<16x16xf32>
    %558 = math.exp %557 : vector<16x16xf32>
    %cst_182 = arith.constant 1.000000e+00 : f32
    %559 = vector.broadcast %cst_182 : f32 to vector<16x16xf32>
    %560 = arith.addf %559, %558 : vector<16x16xf32>
    %561 = arith.divf %559, %560 : vector<16x16xf32>
    %562 = arith.mulf %556, %561 : vector<16x16xf32>
    %563 = vector.extract_strided_slice %551 {offsets = [16, 0], sizes = [64, 16], strides = [1, 1]} : vector<80x16xf32> to vector<64x16xf32>
    %cst_183 = arith.constant 0.000000e+00 : f32
    %564 = vector.broadcast %cst_183 : f32 to vector<16x5xf32>
    %565 = vector.extract_strided_slice %562 {offsets = [0, 0], sizes = [16, 11], strides = [1, 1]} : vector<16x16xf32> to vector<16x11xf32>
    %566 = tpu.concatenate %564, %565 in 1 : vector<16x5xf32>, vector<16x11xf32> -> vector<16x16xf32>
    %cst_184 = arith.constant 0.000000e+00 : f32
    %567 = vector.shape_cast %546 : vector<1x16xi1> to vector<1x16xi1>
    %568 = vector.broadcast %567 : vector<1x16xi1> to vector<16x16xi1>
    %569 = vector.broadcast %cst_184 : f32 to vector<16x16xf32>
    %570 = arith.select %568, %566, %569 : vector<16x16xi1>, vector<16x16xf32>
    %cst_185 = arith.constant 0.000000e+00 : f32
    %571 = vector.broadcast %cst_185 : f32 to vector<16x4xf32>
    %572 = vector.extract_strided_slice %562 {offsets = [0, 0], sizes = [16, 12], strides = [1, 1]} : vector<16x16xf32> to vector<16x12xf32>
    %573 = tpu.concatenate %571, %572 in 1 : vector<16x4xf32>, vector<16x12xf32> -> vector<16x16xf32>
    %cst_186 = arith.constant 0.000000e+00 : f32
    %574 = vector.broadcast %cst_186 : f32 to vector<16x3xf32>
    %575 = vector.extract_strided_slice %562 {offsets = [0, 0], sizes = [16, 13], strides = [1, 1]} : vector<16x16xf32> to vector<16x13xf32>
    %576 = tpu.concatenate %574, %575 in 1 : vector<16x3xf32>, vector<16x13xf32> -> vector<16x16xf32>
    %cst_187 = arith.constant 0.000000e+00 : f32
    %577 = vector.shape_cast %548 : vector<1x16xi1> to vector<1x16xi1>
    %578 = vector.broadcast %577 : vector<1x16xi1> to vector<16x16xi1>
    %579 = vector.broadcast %cst_187 : f32 to vector<16x16xf32>
    %580 = arith.select %578, %576, %579 : vector<16x16xi1>, vector<16x16xf32>
    %cst_188 = arith.constant 0.000000e+00 : f32
    %581 = vector.broadcast %cst_188 : f32 to vector<16x1xf32>
    %582 = vector.extract_strided_slice %562 {offsets = [0, 0], sizes = [16, 15], strides = [1, 1]} : vector<16x16xf32> to vector<16x15xf32>
    %583 = tpu.concatenate %581, %582 in 1 : vector<16x1xf32>, vector<16x15xf32> -> vector<16x16xf32>
    %cst_189 = arith.constant 0.000000e+00 : f32
    %584 = vector.shape_cast %546 : vector<1x16xi1> to vector<1x16xi1>
    %585 = vector.broadcast %584 : vector<1x16xi1> to vector<16x16xi1>
    %586 = vector.broadcast %cst_189 : f32 to vector<16x16xf32>
    %587 = arith.select %585, %583, %586 : vector<16x16xi1>, vector<16x16xf32>
    %cst_190 = arith.constant 0.000000e+00 : f32
    %588 = vector.broadcast %cst_190 : f32 to vector<16x1xf32>
    %589 = vector.extract_strided_slice %562 {offsets = [0, 1], sizes = [16, 15], strides = [1, 1]} : vector<16x16xf32> to vector<16x15xf32>
    %590 = tpu.concatenate %589, %588 in 1 : vector<16x15xf32>, vector<16x1xf32> -> vector<16x16xf32>
    %cst_191 = arith.constant 0.000000e+00 : f32
    %591 = vector.shape_cast %548 : vector<1x16xi1> to vector<1x16xi1>
    %592 = vector.broadcast %591 : vector<1x16xi1> to vector<16x16xi1>
    %593 = vector.broadcast %cst_191 : f32 to vector<16x16xf32>
    %594 = arith.select %592, %590, %593 : vector<16x16xi1>, vector<16x16xf32>
    %cst_192 = arith.constant 0.000000e+00 : f32
    %595 = vector.broadcast %cst_192 : f32 to vector<16x3xf32>
    %596 = vector.extract_strided_slice %562 {offsets = [0, 3], sizes = [16, 13], strides = [1, 1]} : vector<16x16xf32> to vector<16x13xf32>
    %597 = tpu.concatenate %596, %595 in 1 : vector<16x13xf32>, vector<16x3xf32> -> vector<16x16xf32>
    %cst_193 = arith.constant 0.000000e+00 : f32
    %598 = vector.shape_cast %546 : vector<1x16xi1> to vector<1x16xi1>
    %599 = vector.broadcast %598 : vector<1x16xi1> to vector<16x16xi1>
    %600 = vector.broadcast %cst_193 : f32 to vector<16x16xf32>
    %601 = arith.select %599, %597, %600 : vector<16x16xi1>, vector<16x16xf32>
    %cst_194 = arith.constant 0.000000e+00 : f32
    %602 = vector.broadcast %cst_194 : f32 to vector<16x4xf32>
    %603 = vector.extract_strided_slice %562 {offsets = [0, 4], sizes = [16, 12], strides = [1, 1]} : vector<16x16xf32> to vector<16x12xf32>
    %604 = tpu.concatenate %603, %602 in 1 : vector<16x12xf32>, vector<16x4xf32> -> vector<16x16xf32>
    %cst_195 = arith.constant 0.000000e+00 : f32
    %605 = vector.broadcast %cst_195 : f32 to vector<16x5xf32>
    %606 = vector.extract_strided_slice %562 {offsets = [0, 5], sizes = [16, 11], strides = [1, 1]} : vector<16x16xf32> to vector<16x11xf32>
    %607 = tpu.concatenate %606, %605 in 1 : vector<16x11xf32>, vector<16x5xf32> -> vector<16x16xf32>
    %cst_196 = arith.constant 0.000000e+00 : f32
    %608 = vector.shape_cast %548 : vector<1x16xi1> to vector<1x16xi1>
    %609 = vector.broadcast %608 : vector<1x16xi1> to vector<16x16xi1>
    %610 = vector.broadcast %cst_196 : f32 to vector<16x16xf32>
    %611 = arith.select %609, %607, %610 : vector<16x16xi1>, vector<16x16xf32>
    %612 = tpu.concatenate %570, %573, %580, %587, %562, %594, %601, %604, %611 in 0 : vector<16x16xf32>, vector<16x16xf32>, vector<16x16xf32>, vector<16x16xf32>, vector<16x16xf32>, vector<16x16xf32>, vector<16x16xf32>, vector<16x16xf32>, vector<16x16xf32> -> vector<144x16xf32>
    %613 = arith.truncf %612 : vector<144x16xf32> to vector<144x16xbf16>
    %c1968 = arith.constant 1968 : index
    %c0_197 = arith.constant 0 : index
    %614 = vector.load %arg2[%c1968, %c0_197] : memref<2624x256xbf16, #tpu.memory_space<vmem>>, vector<16x256xbf16>
    %615 = vector.extract_strided_slice %614 {offsets = [0, 0], sizes = [16, 144], strides = [1, 1]} : vector<16x256xbf16> to vector<16x144xbf16>
    %cst_198 = arith.constant dense<0.000000e+00> : vector<16x16xf32>
    %616 = tpu.matmul %615, %613, %cst_198 {dimension_numbers = #tpu.dot_dimension_numbers<[1], [0], [0], [1], [0, 0, 1, 1], [], []>} : vector<16x144xbf16>, vector<144x16xbf16>, vector<16x16xf32> -> vector<16x16xf32>
    %617 = tpu.concatenate %616, %563 in 0 : vector<16x16xf32>, vector<64x16xf32> -> vector<80x16xf32>
    %618 = arith.truncf %617 : vector<80x16xf32> to vector<80x16xbf16>
    %c1984 = arith.constant 1984 : index
    %c0_199 = arith.constant 0 : index
    %619 = vector.load %arg2[%c1984, %c0_199] : memref<2624x256xbf16, #tpu.memory_space<vmem>>, vector<16x256xbf16>
    %620 = vector.extract_strided_slice %619 {offsets = [0, 0], sizes = [16, 4], strides = [1, 1]} : vector<16x256xbf16> to vector<16x4xbf16>
    %cst_200 = arith.constant dense<0.000000e+00> : vector<80x4xf32>
    %621 = tpu.matmul %618, %620, %cst_200 {dimension_numbers = #tpu.dot_dimension_numbers<[1], [0], [0], [1], [0, 0, 1, 1], [], []>} : vector<80x16xbf16>, vector<16x4xbf16>, vector<80x4xf32> -> vector<80x4xf32>
    %622 = vector.extract_strided_slice %621 {offsets = [0, 0], sizes = [16, 4], strides = [1, 1]} : vector<80x4xf32> to vector<16x4xf32>
    %623 = vector.extract_strided_slice %621 {offsets = [16, 0], sizes = [64, 4], strides = [1, 1]} : vector<80x4xf32> to vector<64x4xf32>
    %c0_201 = arith.constant 0 : index
    %c0_202 = arith.constant 0 : index
    %624 = vector.load %arg3[%c0_201, %c0_202] : memref<192x32xf32, #tpu.memory_space<vmem>>, vector<16x32xf32>
    %625 = vector.extract_strided_slice %624 {offsets = [0, 21], sizes = [16, 1], strides = [1, 1]} : vector<16x32xf32> to vector<16x1xf32>
    %626 = vector.broadcast %625 : vector<16x1xf32> to vector<16x4xf32>
    %627 = arith.addf %622, %626 : vector<16x4xf32>
    %628 = arith.negf %627 : vector<16x4xf32>
    %629 = math.exp %628 : vector<16x4xf32>
    %cst_203 = arith.constant 1.000000e+00 : f32
    %630 = vector.broadcast %cst_203 : f32 to vector<16x4xf32>
    %631 = arith.addf %630, %629 : vector<16x4xf32>
    %632 = arith.divf %630, %631 : vector<16x4xf32>
    %633 = arith.mulf %627, %632 : vector<16x4xf32>
    %c2000 = arith.constant 2000 : index
    %c0_204 = arith.constant 0 : index
    %634 = vector.load %arg2[%c2000, %c0_204] : memref<2624x256xbf16, #tpu.memory_space<vmem>>, vector<64x256xbf16>
    %635 = vector.extract_strided_slice %634 {offsets = [0, 0], sizes = [64, 16], strides = [1, 1]} : vector<64x256xbf16> to vector<64x16xbf16>
    %636 = arith.truncf %633 : vector<16x4xf32> to vector<16x4xbf16>
    %cst_205 = arith.constant dense<0.000000e+00> : vector<64x4xf32>
    %637 = tpu.matmul %635, %636, %cst_205 {dimension_numbers = #tpu.dot_dimension_numbers<[1], [0], [0], [1], [0, 0, 1, 1], [], []>} : vector<64x16xbf16>, vector<16x4xbf16>, vector<64x4xf32> -> vector<64x4xf32>
    %c0_206 = arith.constant 0 : index
    %c0_207 = arith.constant 0 : index
    %638 = vector.load %arg3[%c0_206, %c0_207] : memref<192x32xf32, #tpu.memory_space<vmem>>, vector<64x32xf32>
    %639 = vector.extract_strided_slice %638 {offsets = [0, 22], sizes = [64, 1], strides = [1, 1]} : vector<64x32xf32> to vector<64x1xf32>
    %640 = vector.broadcast %639 : vector<64x1xf32> to vector<64x4xf32>
    %641 = arith.addf %637, %640 : vector<64x4xf32>
    %cst_208 = arith.constant dense<0.000000e+00> : vector<64xf32>
    %642 = vector.multi_reduction <add>, %641, %cst_208 [1] : vector<64x4xf32> to vector<64xf32>
    %643 = vector.shape_cast %642 : vector<64xf32> to vector<64x1xf32>
    %cst_209 = arith.constant 4.000000e+00 : f32
    %644 = vector.broadcast %cst_209 : f32 to vector<64x1xf32>
    %645 = arith.divf %643, %644 : vector<64x1xf32>
    %c2064 = arith.constant 2064 : index
    %c0_210 = arith.constant 0 : index
    %646 = vector.load %arg2[%c2064, %c0_210] : memref<2624x256xbf16, #tpu.memory_space<vmem>>, vector<4x256xbf16>
    %647 = vector.extract_strided_slice %646 {offsets = [0, 0], sizes = [4, 64], strides = [1, 1]} : vector<4x256xbf16> to vector<4x64xbf16>
    %648 = arith.truncf %645 : vector<64x1xf32> to vector<64x1xbf16>
    %cst_211 = arith.constant dense<0.000000e+00> : vector<4x1xf32>
    %649 = tpu.matmul %647, %648, %cst_211 {dimension_numbers = #tpu.dot_dimension_numbers<[1], [0], [0], [1], [0, 0, 1, 1], [], []>} : vector<4x64xbf16>, vector<64x1xbf16>, vector<4x1xf32> -> vector<4x1xf32>
    %c0_212 = arith.constant 0 : index
    %c0_213 = arith.constant 0 : index
    %650 = vector.load %arg3[%c0_212, %c0_213] : memref<192x32xf32, #tpu.memory_space<vmem>>, vector<4x32xf32>
    %651 = vector.extract_strided_slice %650 {offsets = [0, 23], sizes = [4, 1], strides = [1, 1]} : vector<4x32xf32> to vector<4x1xf32>
    %652 = arith.addf %649, %651 : vector<4x1xf32>
    %653 = arith.negf %652 : vector<4x1xf32>
    %654 = math.exp %653 : vector<4x1xf32>
    %cst_214 = arith.constant 1.000000e+00 : f32
    %655 = vector.broadcast %cst_214 : f32 to vector<4x1xf32>
    %656 = arith.addf %655, %654 : vector<4x1xf32>
    %657 = arith.divf %655, %656 : vector<4x1xf32>
    %658 = arith.mulf %652, %657 : vector<4x1xf32>
    %c2080 = arith.constant 2080 : index
    %c0_215 = arith.constant 0 : index
    %659 = vector.load %arg2[%c2080, %c0_215] : memref<2624x256xbf16, #tpu.memory_space<vmem>>, vector<64x256xbf16>
    %660 = vector.extract_strided_slice %659 {offsets = [0, 0], sizes = [64, 4], strides = [1, 1]} : vector<64x256xbf16> to vector<64x4xbf16>
    %661 = arith.truncf %658 : vector<4x1xf32> to vector<4x1xbf16>
    %cst_216 = arith.constant dense<0.000000e+00> : vector<64x1xf32>
    %662 = tpu.matmul %660, %661, %cst_216 {dimension_numbers = #tpu.dot_dimension_numbers<[1], [0], [0], [1], [0, 0, 1, 1], [], []>} : vector<64x4xbf16>, vector<4x1xbf16>, vector<64x1xf32> -> vector<64x1xf32>
    %c0_217 = arith.constant 0 : index
    %c0_218 = arith.constant 0 : index
    %663 = vector.load %arg3[%c0_217, %c0_218] : memref<192x32xf32, #tpu.memory_space<vmem>>, vector<64x32xf32>
    %664 = vector.extract_strided_slice %663 {offsets = [0, 24], sizes = [64, 1], strides = [1, 1]} : vector<64x32xf32> to vector<64x1xf32>
    %665 = arith.addf %662, %664 : vector<64x1xf32>
    %666 = arith.negf %665 : vector<64x1xf32>
    %667 = math.exp %666 : vector<64x1xf32>
    %cst_219 = arith.constant 1.000000e+00 : f32
    %668 = vector.broadcast %cst_219 : f32 to vector<64x1xf32>
    %669 = arith.addf %668, %667 : vector<64x1xf32>
    %670 = arith.divf %668, %669 : vector<64x1xf32>
    %671 = vector.broadcast %670 : vector<64x1xf32> to vector<64x4xf32>
    %672 = arith.mulf %641, %671 : vector<64x4xf32>
    %673 = arith.addf %672, %623 : vector<64x4xf32>
    %c0_220 = arith.constant 0 : index
    %c0_221 = arith.constant 0 : index
    %674 = vector.load %arg3[%c0_220, %c0_221] : memref<192x32xf32, #tpu.memory_space<vmem>>, vector<64x32xf32>
    %675 = vector.extract_strided_slice %674 {offsets = [0, 20], sizes = [64, 1], strides = [1, 1]} : vector<64x32xf32> to vector<64x1xf32>
    %676 = vector.broadcast %675 : vector<64x1xf32> to vector<64x4xf32>
    %677 = arith.addf %673, %676 : vector<64x4xf32>
    %678 = arith.negf %677 : vector<64x4xf32>
    %679 = math.exp %678 : vector<64x4xf32>
    %cst_222 = arith.constant 1.000000e+00 : f32
    %680 = vector.broadcast %cst_222 : f32 to vector<64x4xf32>
    %681 = arith.addf %680, %679 : vector<64x4xf32>
    %682 = arith.divf %680, %681 : vector<64x4xf32>
    %683 = arith.mulf %677, %682 : vector<64x4xf32>
    %c2144 = arith.constant 2144 : index
    %c0_223 = arith.constant 0 : index
    %684 = vector.load %arg2[%c2144, %c0_223] : memref<2624x256xbf16, #tpu.memory_space<vmem>>, vector<192x256xbf16>
    %685 = vector.extract_strided_slice %684 {offsets = [0, 0], sizes = [192, 64], strides = [1, 1]} : vector<192x256xbf16> to vector<192x64xbf16>
    %686 = arith.truncf %683 : vector<64x4xf32> to vector<64x4xbf16>
    %cst_224 = arith.constant dense<0.000000e+00> : vector<192x4xf32>
    %687 = tpu.matmul %685, %686, %cst_224 {dimension_numbers = #tpu.dot_dimension_numbers<[1], [0], [0], [1], [0, 0, 1, 1], [], []>} : vector<192x64xbf16>, vector<64x4xbf16>, vector<192x4xf32> -> vector<192x4xf32>
    %c0_225 = arith.constant 0 : index
    %c0_226 = arith.constant 0 : index
    %688 = vector.load %arg3[%c0_225, %c0_226] : memref<192x32xf32, #tpu.memory_space<vmem>>, vector<192x32xf32>
    %689 = vector.extract_strided_slice %688 {offsets = [0, 25], sizes = [192, 1], strides = [1, 1]} : vector<192x32xf32> to vector<192x1xf32>
    %690 = vector.broadcast %689 : vector<192x1xf32> to vector<192x4xf32>
    %691 = arith.addf %687, %690 : vector<192x4xf32>
    %692 = vector.extract_strided_slice %691 {offsets = [0, 0], sizes = [64, 4], strides = [1, 1]} : vector<192x4xf32> to vector<64x4xf32>
    %693 = vector.extract_strided_slice %691 {offsets = [64, 0], sizes = [64, 4], strides = [1, 1]} : vector<192x4xf32> to vector<64x4xf32>
    %694 = vector.extract_strided_slice %691 {offsets = [128, 0], sizes = [64, 4], strides = [1, 1]} : vector<192x4xf32> to vector<64x4xf32>
    %695 = arith.truncf %692 : vector<64x4xf32> to vector<64x4xbf16>
    %696 = arith.truncf %693 : vector<64x4xf32> to vector<64x4xbf16>
    %cst_227 = arith.constant dense<0.000000e+00> : vector<4x4xf32>
    %697 = tpu.matmul %695, %696, %cst_227 {dimension_numbers = #tpu.dot_dimension_numbers<[0], [0], [1], [1], [0, 1, 1, 1], [], []>} : vector<64x4xbf16>, vector<64x4xbf16>, vector<4x4xf32> -> vector<4x4xf32>
    %cst_228 = arith.constant 1.250000e-01 : f32
    %698 = vector.broadcast %cst_228 : f32 to vector<4x4xf32>
    %699 = arith.mulf %697, %698 : vector<4x4xf32>
    %cst_229 = arith.constant dense<0xFF800000> : vector<4xf32>
    %700 = vector.multi_reduction <maximumf>, %699, %cst_229 [1] : vector<4x4xf32> to vector<4xf32>
    %701 = vector.shape_cast %700 : vector<4xf32> to vector<4x1xf32>
    %702 = vector.broadcast %701 : vector<4x1xf32> to vector<4x4xf32>
    %703 = arith.subf %699, %702 : vector<4x4xf32>
    %704 = math.exp %703 : vector<4x4xf32>
    %cst_230 = arith.constant dense<0.000000e+00> : vector<4xf32>
    %705 = vector.multi_reduction <add>, %704, %cst_230 [1] : vector<4x4xf32> to vector<4xf32>
    %706 = vector.shape_cast %705 : vector<4xf32> to vector<4x1xf32>
    %707 = vector.broadcast %706 : vector<4x1xf32> to vector<4x4xf32>
    %708 = arith.divf %704, %707 : vector<4x4xf32>
    %709 = arith.truncf %694 : vector<64x4xf32> to vector<64x4xbf16>
    %710 = arith.truncf %708 : vector<4x4xf32> to vector<4x4xbf16>
    %cst_231 = arith.constant dense<0.000000e+00> : vector<64x4xf32>
    %711 = tpu.matmul %709, %710, %cst_231 {dimension_numbers = #tpu.dot_dimension_numbers<[1], [1], [0], [0], [0, 0, 1, 0], [], []>} : vector<64x4xbf16>, vector<4x4xbf16>, vector<64x4xf32> -> vector<64x4xf32>
    %c2336 = arith.constant 2336 : index
    %c0_232 = arith.constant 0 : index
    %712 = vector.load %arg2[%c2336, %c0_232] : memref<2624x256xbf16, #tpu.memory_space<vmem>>, vector<64x256xbf16>
    %713 = vector.extract_strided_slice %712 {offsets = [0, 0], sizes = [64, 64], strides = [1, 1]} : vector<64x256xbf16> to vector<64x64xbf16>
    %714 = arith.truncf %711 : vector<64x4xf32> to vector<64x4xbf16>
    %cst_233 = arith.constant dense<0.000000e+00> : vector<64x4xf32>
    %715 = tpu.matmul %713, %714, %cst_233 {dimension_numbers = #tpu.dot_dimension_numbers<[1], [0], [0], [1], [0, 0, 1, 1], [], []>} : vector<64x64xbf16>, vector<64x4xbf16>, vector<64x4xf32> -> vector<64x4xf32>
    %c0_234 = arith.constant 0 : index
    %c0_235 = arith.constant 0 : index
    %716 = vector.load %arg3[%c0_234, %c0_235] : memref<192x32xf32, #tpu.memory_space<vmem>>, vector<64x32xf32>
    %717 = vector.extract_strided_slice %716 {offsets = [0, 26], sizes = [64, 1], strides = [1, 1]} : vector<64x32xf32> to vector<64x1xf32>
    %718 = vector.broadcast %717 : vector<64x1xf32> to vector<64x4xf32>
    %719 = arith.addf %715, %718 : vector<64x4xf32>
    %720 = arith.addf %683, %719 : vector<64x4xf32>
    %cst_236 = arith.constant dense<0.000000e+00> : vector<4xf32>
    %721 = vector.multi_reduction <add>, %720, %cst_236 [0] : vector<64x4xf32> to vector<4xf32>
    %722 = vector.shape_cast %721 : vector<4xf32> to vector<1x4xf32>
    %cst_237 = arith.constant 6.400000e+01 : f32
    %723 = vector.broadcast %cst_237 : f32 to vector<1x4xf32>
    %724 = arith.divf %722, %723 : vector<1x4xf32>
    %725 = vector.broadcast %724 : vector<1x4xf32> to vector<64x4xf32>
    %726 = arith.subf %720, %725 : vector<64x4xf32>
    %727 = arith.mulf %726, %726 : vector<64x4xf32>
    %cst_238 = arith.constant dense<0.000000e+00> : vector<4xf32>
    %728 = vector.multi_reduction <add>, %727, %cst_238 [0] : vector<64x4xf32> to vector<4xf32>
    %729 = vector.shape_cast %728 : vector<4xf32> to vector<1x4xf32>
    %cst_239 = arith.constant 6.400000e+01 : f32
    %730 = vector.broadcast %cst_239 : f32 to vector<1x4xf32>
    %731 = arith.divf %729, %730 : vector<1x4xf32>
    %732 = vector.broadcast %724 : vector<1x4xf32> to vector<64x4xf32>
    %733 = arith.subf %720, %732 : vector<64x4xf32>
    %cst_240 = arith.constant 9.99999974E-6 : f32
    %734 = vector.broadcast %cst_240 : f32 to vector<1x4xf32>
    %735 = arith.addf %731, %734 : vector<1x4xf32>
    %736 = math.rsqrt %735 : vector<1x4xf32>
    %737 = vector.broadcast %736 : vector<1x4xf32> to vector<64x4xf32>
    %738 = arith.mulf %733, %737 : vector<64x4xf32>
    %c0_241 = arith.constant 0 : index
    %c0_242 = arith.constant 0 : index
    %739 = vector.load %arg3[%c0_241, %c0_242] : memref<192x32xf32, #tpu.memory_space<vmem>>, vector<64x32xf32>
    %740 = vector.extract_strided_slice %739 {offsets = [0, 27], sizes = [64, 1], strides = [1, 1]} : vector<64x32xf32> to vector<64x1xf32>
    %741 = vector.broadcast %740 : vector<64x1xf32> to vector<64x4xf32>
    %742 = arith.mulf %738, %741 : vector<64x4xf32>
    %c0_243 = arith.constant 0 : index
    %c0_244 = arith.constant 0 : index
    %743 = vector.load %arg3[%c0_243, %c0_244] : memref<192x32xf32, #tpu.memory_space<vmem>>, vector<64x32xf32>
    %744 = vector.extract_strided_slice %743 {offsets = [0, 28], sizes = [64, 1], strides = [1, 1]} : vector<64x32xf32> to vector<64x1xf32>
    %745 = vector.broadcast %744 : vector<64x1xf32> to vector<64x4xf32>
    %746 = arith.addf %742, %745 : vector<64x4xf32>
    %cst_245 = arith.constant dense<0.000000e+00> : vector<64xf32>
    %747 = vector.multi_reduction <add>, %746, %cst_245 [1] : vector<64x4xf32> to vector<64xf32>
    %748 = vector.shape_cast %747 : vector<64xf32> to vector<64x1xf32>
    %cst_246 = arith.constant 4.000000e+00 : f32
    %749 = vector.broadcast %cst_246 : f32 to vector<64x1xf32>
    %750 = arith.divf %748, %749 : vector<64x1xf32>
    %c2400 = arith.constant 2400 : index
    %c0_247 = arith.constant 0 : index
    %751 = vector.load %arg2[%c2400, %c0_247] : memref<2624x256xbf16, #tpu.memory_space<vmem>>, vector<128x256xbf16>
    %752 = vector.extract_strided_slice %751 {offsets = [0, 0], sizes = [128, 64], strides = [1, 1]} : vector<128x256xbf16> to vector<128x64xbf16>
    %753 = arith.truncf %750 : vector<64x1xf32> to vector<64x1xbf16>
    %cst_248 = arith.constant dense<0.000000e+00> : vector<128x1xf32>
    %754 = tpu.matmul %752, %753, %cst_248 {dimension_numbers = #tpu.dot_dimension_numbers<[1], [0], [0], [1], [0, 0, 1, 1], [], []>} : vector<128x64xbf16>, vector<64x1xbf16>, vector<128x1xf32> -> vector<128x1xf32>
    %c0_249 = arith.constant 0 : index
    %c0_250 = arith.constant 0 : index
    %755 = vector.load %arg3[%c0_249, %c0_250] : memref<192x32xf32, #tpu.memory_space<vmem>>, vector<128x32xf32>
    %756 = vector.extract_strided_slice %755 {offsets = [0, 29], sizes = [128, 1], strides = [1, 1]} : vector<128x32xf32> to vector<128x1xf32>
    %757 = arith.addf %754, %756 : vector<128x1xf32>
    %758 = arith.negf %757 : vector<128x1xf32>
    %759 = math.exp %758 : vector<128x1xf32>
    %cst_251 = arith.constant 1.000000e+00 : f32
    %760 = vector.broadcast %cst_251 : f32 to vector<128x1xf32>
    %761 = arith.addf %760, %759 : vector<128x1xf32>
    %762 = arith.divf %760, %761 : vector<128x1xf32>
    %763 = arith.mulf %757, %762 : vector<128x1xf32>
    %c2528 = arith.constant 2528 : index
    %c0_252 = arith.constant 0 : index
    %764 = vector.load %arg2[%c2528, %c0_252] : memref<2624x256xbf16, #tpu.memory_space<vmem>>, vector<64x256xbf16>
    %765 = vector.extract_strided_slice %764 {offsets = [0, 0], sizes = [64, 128], strides = [1, 1]} : vector<64x256xbf16> to vector<64x128xbf16>
    %766 = arith.truncf %763 : vector<128x1xf32> to vector<128x1xbf16>
    %cst_253 = arith.constant dense<0.000000e+00> : vector<64x1xf32>
    %767 = tpu.matmul %765, %766, %cst_253 {dimension_numbers = #tpu.dot_dimension_numbers<[1], [0], [0], [1], [0, 0, 1, 1], [], []>} : vector<64x128xbf16>, vector<128x1xbf16>, vector<64x1xf32> -> vector<64x1xf32>
    %c0_254 = arith.constant 0 : index
    %c0_255 = arith.constant 0 : index
    %768 = vector.load %arg3[%c0_254, %c0_255] : memref<192x32xf32, #tpu.memory_space<vmem>>, vector<64x32xf32>
    %769 = vector.extract_strided_slice %768 {offsets = [0, 30], sizes = [64, 1], strides = [1, 1]} : vector<64x32xf32> to vector<64x1xf32>
    %770 = arith.addf %767, %769 : vector<64x1xf32>
    %771 = arith.negf %770 : vector<64x1xf32>
    %772 = math.exp %771 : vector<64x1xf32>
    %cst_256 = arith.constant 1.000000e+00 : f32
    %773 = vector.broadcast %cst_256 : f32 to vector<64x1xf32>
    %774 = arith.addf %773, %772 : vector<64x1xf32>
    %775 = arith.divf %773, %774 : vector<64x1xf32>
    %776 = arith.mulf %770, %775 : vector<64x1xf32>
    %c2592 = arith.constant 2592 : index
    %c0_257 = arith.constant 0 : index
    %777 = vector.load %arg2[%c2592, %c0_257] : memref<2624x256xbf16, #tpu.memory_space<vmem>>, vector<32x256xbf16>
    %778 = vector.extract_strided_slice %777 {offsets = [0, 0], sizes = [32, 64], strides = [1, 1]} : vector<32x256xbf16> to vector<32x64xbf16>
    %779 = arith.truncf %776 : vector<64x1xf32> to vector<64x1xbf16>
    %cst_258 = arith.constant dense<0.000000e+00> : vector<32x1xf32>
    %780 = tpu.matmul %778, %779, %cst_258 {dimension_numbers = #tpu.dot_dimension_numbers<[1], [0], [0], [1], [0, 0, 1, 1], [], []>} : vector<32x64xbf16>, vector<64x1xbf16>, vector<32x1xf32> -> vector<32x1xf32>
    %c0_259 = arith.constant 0 : index
    %c0_260 = arith.constant 0 : index
    %781 = vector.load %arg3[%c0_259, %c0_260] : memref<192x32xf32, #tpu.memory_space<vmem>>, vector<32x32xf32>
    %782 = vector.extract_strided_slice %781 {offsets = [0, 31], sizes = [32, 1], strides = [1, 1]} : vector<32x32xf32> to vector<32x1xf32>
    %783 = arith.addf %780, %782 : vector<32x1xf32>
    %784 = arith.negf %783 : vector<32x1xf32>
    %785 = math.exp %784 : vector<32x1xf32>
    %cst_261 = arith.constant 1.000000e+00 : f32
    %786 = vector.broadcast %cst_261 : f32 to vector<32x1xf32>
    %787 = arith.addf %786, %785 : vector<32x1xf32>
    %788 = arith.divf %786, %787 : vector<32x1xf32>
    %c0_262 = arith.constant 0 : index
    %c0_263 = arith.constant 0 : index
    %c0_264 = arith.constant 0 : index
    %789 = vector.load %arg4[%c0_262, %c0_263, %c0_264] : memref<1x32x1xf32, #tpu.memory_space<vmem>>, vector<1x32x1xf32>
    %790 = vector.shape_cast %789 : vector<1x32x1xf32> to vector<32x1xf32>
    %791 = vector.shape_cast %788 : vector<32x1xf32> to vector<1x32x1xf32>
    tpu.vector_store %arg4[%c0_262, %c0_263, %c0_264], %791 {strides = array<i32>} : memref<1x32x1xf32, #tpu.memory_space<vmem>>, vector<1x32x1xf32>,
    return
  }
  func.func @transform_0(%arg0: i32) -> (i32, i32, i32) {
    %c0_i32 = arith.constant 0 : i32
    %c0_i32_0 = arith.constant 0 : i32
    %c0_i32_1 = arith.constant 0 : i32
    return %arg0, %c0_i32, %c0_i32_0 : i32, i32, i32
  }
  func.func @transform_1(%arg0: i32) -> (i32, i32) {
    %c0_i32 = arith.constant 0 : i32
    %c0_i32_0 = arith.constant 0 : i32
    %c0_i32_1 = arith.constant 0 : i32
    return %c0_i32, %c0_i32_0 : i32, i32
  }
  func.func @transform_2(%arg0: i32) -> (i32, i32) {
    %c0_i32 = arith.constant 0 : i32
    %c0_i32_0 = arith.constant 0 : i32
    %c0_i32_1 = arith.constant 0 : i32
    return %c0_i32, %c0_i32_0 : i32, i32
  }
  func.func @transform_3(%arg0: i32) -> (i32, i32, i32) {
    %c0_i32 = arith.constant 0 : i32
    %c0_i32_0 = arith.constant 0 : i32
    %c0_i32_1 = arith.constant 0 : i32
    return %arg0, %c0_i32, %c0_i32_0 : i32, i32, i32
  }
}

</mosaic_0001>

<bundles_post_ra>
// kernel: encoder_forward.1
= control target key start
LH: loop header
LB: loop body
LE: loop exit
PB: predicated region body
PF: predicated region fallthrough
CT: control target
= control target key end

     0   :  { %s9767_s12 = smov 0   ;;  %s12498_s0 = inlined_call_operand.vmem [shape: bf16[2,49,1024], index: 0, kind: input, shape index: {}]   ;;  %s12499_s1 = inlined_call_operand.vmem [shape: bf16[2624,256], index: 1, kind: input, shape index: {}]   ;;  %s12500_s2 = inlined_call_operand.vmem [shape: f32[192,32], index: 2, kind: input, shape index: {}]   ;;  %s12501_s3 = inlined_call_operand.vmem [shape: f32[2,32,1], index: 3, kind: output, shape index: {}]  }
   0x1 LB: > { %s7352_s13 = sadd.s32 4294967295, %s9690_s12   ;;  %p7356_p0 = scmp.ge.s32.totalorder %s9690_s12, 1  ;;  %s9690_s12 = sphi %s9767_s12, %s13_s12  }
   0x2   : > { %p137_p1 = scmp.lt.s32.totalorder %s9690_s12, 3 }
   0x4   : > { %p138_p2 = pnand %p7356_p0, %p137_p1 }
   0x5   : > { %p161_p3 = scmp.lt.s32.totalorder (!%p138_p2), %s7352_s13, 1  ;;  %s9693_s24 = smov (!%p138_p2), 1  }
   0x6   : > { %141 = sbr.rel (%p138_p2) target bundleno = 10218 (0x27ea), region = 32  ;;  %s9694_s25 = smov (!%p138_p2), 127  }
   0x7   : > { %s9695_s5 = smov (!%p138_p2), 32   ;;  %s9696_s14 = smov (!%p138_p2), 96  }
   0x8   : > { %s9698_s9 = smov (!%p138_p2), 112   ;;  %s9699_s10 = smov (!%p138_p2), 111  }
   0x9   : > { %s9700_s11 = smov (!%p138_p2), 15   ;;  %s9701_s15 = smov (!%p138_p2), 113  }
   0xa   : > { %s9702_s16 = smov (!%p138_p2), 17   ;;  %s9704_s17 = smov (!%p138_p2), 16  }
   0xb   : > { %v9692_v0 = vmov 0   ;;  %v202_v1 = vld [vmem:[%s12500_s2] sm:$0xff]  ;;  %s12650_s13 = smov (!%p161_p3, %s7352_s13), 1  ;;  %v203_v2 = vld [vmem:[%s12500_s2 + $0x8] sm:$0xff]  ;;  %vm12506_vm0 = vcmask 1040384   ;;  %vm359_vm1 = vcmask 400384  }
   0xc   : > { %422 = vmatprep.mubr.bf16.mxu0 %v9692_v0  ;;  %465 = vmatprep.mubr.bf16.mxu1 %v9692_v0  ;;  %s8442_s18 = smul.u32 224, %s12650_s13  ;;  %v9795_v4 = vsel %vm12506_vm0, 65535, %v9692_v0  ;;  %v8887_v48 = vld [vmem:[%s12499_s1] ss:$8 sps:$4 sm:$0xff]   ;;  %vm12508_vm2 = vcmask 7168   ;;  %vm12504_vm5 = vcmask 1039360  }
   0xd   : > { %8506 = vset.pattern.permute.xlu0 %v9692_v0  ;;  %vm12518_vm0 = vcmask 138240   ;;  %s9709_s19 = smov 123   ;;  %s9710_s22 = smov 122  }
   0xe   : > { %206 = vperm.xlu0 %8506, %v202_v1   ;;  %s9790_s21 = scalar_lea.vmem %s12498_s0, %s8442_s18  ;;  %s9716_s8 = smov 116  }
   0xf   : > { %v198_v3 = vld [vmem:[%s9790_s21 + $0xc0] sm:$0x11]  ;;  %v199_v5 = vld [vmem:[%s9790_s21 + $0xc8] sm:$0x11]  ;;  %v200_v32 = vld [vmem:[%s9790_s21 + $0xd0] sm:$0x11] }
  0x10   : > { %v190_v6 = vld [vmem:[%s9790_s21 + $0x80] sm:$0xff]  ;;  %v7386_v7 = vcombine.high %v198_v3, %v198_v3  ;;  %v7388_v8 = vcombine.high %v199_v5, %v199_v5  ;;  %v7385_v9 = vcombine.low %v198_v3, %v198_v3  ;;  %v7387_v10 = vcombine.low %v199_v5, %v199_v5  ;;  %v191_v12 = vld [vmem:[%s9790_s21 + $0x88] sm:$0xff]  ;;  %v201_v33 = vld [vmem:[%s9790_s21 + $0xd8] sm:$0x11]  ;;  %s9719_s30 = smov 121   ;;  %s9721_s4 = smov 8  }
  0x11   : > { %v194_v11 = vld [vmem:[%s9790_s21 + $0xa0] sm:$0xff]  ;;  %v195_v13 = vld [vmem:[%s9790_s21 + $0xa8] sm:$0xff]  ;;  %v7390_v38 = vcombine.high %v200_v32, %v200_v32  ;;  %v7392_v39 = vcombine.high %v201_v33, %v201_v33  ;;  %v7389_v42 = vcombine.low %v200_v32, %v200_v32  ;;  %v7391_v43 = vcombine.low %v201_v33, %v201_v33  ;;  %v192_v44 = vld [vmem:[%s9790_s21 + $0x90] sm:$0xff]  ;;  %s9722_s6 = smov 7   ;;  %s9723_s7 = smov 119  }
  0x12   : > { %211 = vperm.xlu0 %8506, %v203_v2   ;;  %v7378_v14 = vcombine.high %v190_v6, %v194_v11  ;;  %v7380_v15 = vcombine.high %v191_v12, %v195_v13  ;;  %v370_v16 = vand.u32 %v7386_v7, %v9795_v4  ;;  %v376_v17 = vand.u32 %v7388_v8, %v9795_v4  ;;  %v182_v20 = vld [vmem:[%s9790_s21 + $0x40] sm:$0xff]  ;;  %v183_v22 = vld [vmem:[%s9790_s21 + $0x48] sm:$0xff]  ;;  %v196_v45 = vld [vmem:[%s9790_s21 + $0xb0] sm:$0xff]  ;;  %s9734_s18 = smov 5  }
  0x13   : > { %v367_v18 = vand.u32 %v7385_v9, %v9795_v4  ;;  %v373_v19 = vand.u32 %v7387_v10, %v9795_v4  ;;  %v186_v21 = vld [vmem:[%s9790_s21 + $0x60] sm:$0xff]  ;;  %v187_v23 = vld [vmem:[%s9790_s21 + $0x68] sm:$0xff]  ;;  %v7377_v24 = vcombine.low %v190_v6, %v194_v11  ;;  %v7379_v25 = vcombine.low %v191_v12, %v195_v13  ;;  %v193_v46 = vld [vmem:[%s9790_s21 + $0x98] sm:$0xff] }
  0x14   : > { %398 = vmatprep.subr.bf16.mxu0 %v370_v16  ;;  %441 = vmatprep.subr.bf16.mxu1 %v376_v17  ;;  %v7370_v26 = vcombine.high %v182_v20, %v186_v21  ;;  %v7372_v27 = vcombine.high %v183_v22, %v187_v23  ;;  %v174_v28 = vld [vmem:[%s9790_s21] sm:$0xff]  ;;  %v175_v30 = vld [vmem:[%s9790_s21 + $0x8] sm:$0xff]  ;;  %v7369_v34 = vcombine.low %v182_v20, %v186_v21  ;;  %v197_v47 = vld [vmem:[%s9790_s21 + $0xb8] sm:$0xff] }
  0x15   : > { %399 = vmatpush1.bf16.msra.mxu0 %v367_v18  ;;  %442 = vmatpush1.bf16.msra.mxu1 %v373_v19  ;;  %v178_v29 = vld [vmem:[%s9790_s21 + $0x20] sm:$0xff]  ;;  %v179_v31 = vld [vmem:[%s9790_s21 + $0x28] sm:$0xff]  ;;  %v7371_v35 = vcombine.low %v183_v22, %v187_v23  ;;  %v382_v49 = vand.u32 %v7390_v38, %v9795_v4  ;;  %v388_v50 = vand.u32 %v7392_v39, %v9795_v4  ;;  %v184_v53 = vld [vmem:[%s9790_s21 + $0x50] sm:$0xff] }
  0x16   : > { %400 = vmatprep.subr.bf16.mxu0 %v7378_v14  ;;  %443 = vmatprep.subr.bf16.mxu1 %v7380_v15  ;;  %v7362_v36 = vcombine.high %v174_v28, %v178_v29  ;;  %v7364_v37 = vcombine.high %v175_v30, %v179_v31  ;;  %v7361_v40 = vcombine.low %v174_v28, %v178_v29  ;;  %v188_v54 = vld [vmem:[%s9790_s21 + $0x70] sm:$0xff]  ;;  %v185_v55 = vld [vmem:[%s9790_s21 + $0x58] sm:$0xff] }
  0x17   : > { %v7363_v41 = vcombine.low %v175_v30, %v179_v31  ;;  %v379_v51 = vand.u32 %v7389_v42, %v9795_v4  ;;  %v385_v52 = vand.u32 %v7391_v43, %v9795_v4  ;;  %v189_v56 = vld [vmem:[%s9790_s21 + $0x78] sm:$0xff]  ;;  %v7382_v57 = vcombine.high %v192_v44, %v196_v45  ;;  %v176_v61 = vld [vmem:[%s9790_s21 + $0x10] sm:$0xff] }
  0x18   : > { %v7384_v58 = vcombine.high %v193_v46, %v197_v47  ;;  %v7381_v59 = vcombine.low %v192_v44, %v196_v45  ;;  %v7383_v60 = vcombine.low %v193_v46, %v197_v47  ;;  %v180_v62 = vld [vmem:[%s9790_s21 + $0x30] sm:$0xff]  ;;  %v177_v63 = vld [vmem:[%s9790_s21 + $0x18] sm:$0xff]  ;;  %v7374_v2 = vcombine.high %v184_v53, %v188_v54 }
  0x19   : > { %401 = vmatpush1.bf16.msra.mxu0 %v7377_v24  ;;  %444 = vmatpush1.bf16.msra.mxu1 %v7379_v25  ;;  %v181_v1 = vld [vmem:[%s9790_s21 + $0x38] sm:$0xff]  ;;  %v7376_v3 = vcombine.high %v185_v55, %v189_v56  ;;  %v7373_v4 = vcombine.low %v184_v53, %v188_v54  ;;  %v7375_v5 = vcombine.low %v185_v55, %v189_v56 }
  0x1a   : > { %402 = vmatprep.subr.bf16.mxu0 %v7370_v26  ;;  %445 = vmatprep.subr.bf16.mxu1 %v7372_v27  ;;  %v7366_v6 = vcombine.high %v176_v61, %v180_v62  ;;  %v7368_v7 = vcombine.high %v177_v63, %v181_v1  ;;  %v7365_v8 = vcombine.low %v176_v61, %v180_v62 }
  0x1b   : > { %v7367_v9 = vcombine.low %v177_v63, %v181_v1 }
  0x1d   : > { %403 = vmatpush1.bf16.msra.mxu0 %v7369_v34  ;;  %446 = vmatpush1.bf16.msra.mxu1 %v7371_v35 }
  0x1e   : > { %404 = vmatprep.subr.bf16.mxu0 %v7362_v36  ;;  %447 = vmatprep.subr.bf16.mxu1 %v7364_v37 }
  0x21   : > { %405 = vmatpush1.bf16.msra.mxu0 %v7361_v40  ;;  %448 = vmatpush1.bf16.msra.mxu1 %v7363_v41 }
  0x22   : > { %484 = vmatprep.subr.bf16.mxu0 %v382_v49  ;;  %527 = vmatprep.subr.bf16.mxu1 %v388_v50 }
  0x24   : > { %7393 = vmatmul.mubr.msk.bf16.vlgmr.msra.gmra.mxu0 %vm359_vm1, %v8887_v48  ;;  %7394 = vmatmul.mubr.msk.bf16.vlgmr.msra.gmra.mxu1 %vm359_vm1, %v8887_v48 }
  0x25   : > { %485 = vmatpush1.bf16.msra.mxu0 %v379_v51  ;;  %528 = vmatpush1.bf16.msra.mxu1 %v385_v52 }
  0x26   : > { %486 = vmatprep.subr.bf16.mxu0 %v7382_v57  ;;  %529 = vmatprep.subr.bf16.mxu1 %v7384_v58 }
  0x27   : > { %508 = vmatprep.mubr.bf16.mxu0 %v9692_v0  ;;  %551 = vmatprep.mubr.bf16.mxu1 %v9692_v0 }
  0x29   : > { %487 = vmatpush1.bf16.msra.mxu0 %v7381_v59  ;;  %530 = vmatpush1.bf16.msra.mxu1 %v7383_v60 }
  0x2a   : > { %488 = vmatprep.subr.bf16.mxu0 %v7374_v2  ;;  %531 = vmatprep.subr.bf16.mxu1 %v7376_v3 }
  0x2d   : > { %489 = vmatpush1.bf16.msra.mxu0 %v7373_v4  ;;  %532 = vmatpush1.bf16.msra.mxu1 %v7375_v5 }
  0x2e   : > { %490 = vmatprep.subr.bf16.mxu0 %v7366_v6  ;;  %533 = vmatprep.subr.bf16.mxu1 %v7368_v7 }
  0x31   : > { %491 = vmatpush1.bf16.msra.mxu0 %v7365_v8  ;;  %534 = vmatpush1.bf16.msra.mxu1 %v7367_v9 }
  0x34   : > { %7395 = vmatmul.mubr.msk.bf16.vlgmr.msra.gmra.mxu0 %vm359_vm1, %v8887_v48  ;;  %7396 = vmatmul.mubr.msk.bf16.vlgmr.msra.gmra.mxu1 %vm359_vm1, %v8887_v48 }
  0x89   : > { %v207_v10 = vpop.permute.xlu0 %206 }
  0x8d   : > { %v9847_v19 = vpop.permute.xlu0 %211 }
  0xe4   : > { %v424_v11 = vpop.f32.mrf.mxu0  ;;  %v467_v12 = vpop.f32.mrf.mxu1 }
  0xe5   : > { %v9841_v13 = vadd.f32 %v424_v11, %v207_v10  ;;  %v9843_v14 = vadd.f32 %v467_v12, %v207_v10 }
  0xe6   : > { %v426_v15 = vpop.f32.mrf.mxu0  ;;  %v469_v16 = vpop.f32.mrf.mxu1 }
  0xe7   : > { %v7397_v17 = vmul.f32 -1.442695, %v9841_v13  ;;  %v7399_v18 = vmul.f32 -1.442695, %v9843_v14  ;;  %v9849_v20 = vadd.f32 %v426_v15, %v207_v10  ;;  %v9851_v21 = vadd.f32 %v469_v16, %v207_v10 }
  0xe8   : > { %v428_v22 = vpop.f32.mrf.mxu0  ;;  %v471_v23 = vpop.f32.mrf.mxu1 }
  0xe9   : > { %9181 = vpow2.f32 %v7397_v17  ;;  %v7398_v24 = vmul.f32 -1.442695, %v9849_v20  ;;  %v7400_v25 = vmul.f32 -1.442695, %v9851_v21  ;;  %v9856_v26 = vadd.f32 %v428_v22, %v9847_v19 }
  0xea   : > { %9183 = vpow2.f32 %v7399_v18  ;;  %v9859_v27 = vadd.f32 %v471_v23, %v9847_v19  ;;  %v430_v28 = vpop.f32.mrf.mxu0  ;;  %v473_v29 = vpop.f32.mrf.mxu1 }
  0xeb   : > { %9185 = vpow2.f32 %v7398_v24  ;;  %v7405_v30 = vmul.f32 -1.442695, %v9856_v26  ;;  %v9863_v31 = vadd.f32 %v430_v28, %v9847_v19  ;;  %v9866_v32 = vadd.f32 %v473_v29, %v9847_v19 }
  0xec   : > { %9187 = vpow2.f32 %v7400_v25  ;;  %v7407_v33 = vmul.f32 -1.442695, %v9859_v27 }
  0xed   : > { %9189 = vpow2.f32 %v7405_v30  ;;  %v7406_v34 = vmul.f32 -1.442695, %v9863_v31  ;;  %v7408_v35 = vmul.f32 -1.442695, %v9866_v32 }
  0xee   : > { %9191 = vpow2.f32 %v7407_v33 }
  0xef   : > { %9193 = vpow2.f32 %v7406_v34 }
  0xf0   : > { %9195 = vpow2.f32 %v7408_v35 }
  0xf4   : > { %v510_v36 = vpop.f32.mrf.mxu0  ;;  %v553_v37 = vpop.f32.mrf.mxu1 }
  0xf5   : > { %v9871_v48 = vadd.f32 %v510_v36, %v207_v10  ;;  %v9873_v52 = vadd.f32 %v553_v37, %v207_v10 }
  0xf6   : > { %v9182_v38 = vpop.eup %9181  ;;  %v512_v39 = vpop.f32.mrf.mxu0 }
  0xf7   : > { %v555_v40 = vpop.f32.mrf.mxu1  ;;  %v9184_v41 = vpop.eup %9183  ;;  %v610_v42 = vadd.f32 1.0, %v9182_v38  ;;  %v9875_v55 = vadd.f32 %v512_v39, %v207_v10  ;;  %v7401_v62 = vmul.f32 -1.442695, %v9871_v48  ;;  %v7403_v3 = vmul.f32 -1.442695, %v9873_v52 }
  0xf8   : > { %v9186_v43 = vpop.eup %9185  ;;  %v612_v44 = vadd.f32 1.0, %v9184_v41  ;;  %v514_v45 = vpop.f32.mrf.mxu0  ;;  %v9877_v58 = vadd.f32 %v555_v40, %v207_v10 }
  0xf9   : > { %v9188_v46 = vpop.eup %9187  ;;  %9197 = vrcp.f32 %v610_v42  ;;  %v611_v47 = vadd.f32 1.0, %v9186_v43  ;;  %v557_v49 = vpop.f32.mrf.mxu1  ;;  %v9881_v63 = vadd.f32 %v514_v45, %v9847_v19  ;;  %v7402_v4 = vmul.f32 -1.442695, %v9875_v55 }
  0xfa   : > { %v9190_v50 = vpop.eup %9189  ;;  %9199 = vrcp.f32 %v612_v44  ;;  %v613_v51 = vadd.f32 1.0, %v9188_v46  ;;  %v516_v59 = vpop.f32.mrf.mxu0  ;;  %v7404_v6 = vmul.f32 -1.442695, %v9877_v58  ;;  %v9894_v9 = vadd.f32 %v557_v49, %v9847_v19 }
  0xfb   : > { %v9192_v53 = vpop.eup %9191  ;;  %9201 = vrcp.f32 %v611_v47  ;;  %v618_v54 = vadd.f32 1.0, %v9190_v50  ;;  %v559_v1 = vpop.f32.mrf.mxu1  ;;  %v9886_v5 = vadd.f32 %v516_v59, %v9847_v19  ;;  %v7409_v8 = vmul.f32 -1.442695, %v9881_v63 }
  0xfc   : > { %v9194_v56 = vpop.eup %9193  ;;  %9203 = vrcp.f32 %v613_v51  ;;  %v620_v57 = vadd.f32 1.0, %v9192_v53  ;;  %v9890_v7 = vadd.f32 %v559_v1, %v9847_v19  ;;  %v7411_v16 = vmul.f32 -1.442695, %v9894_v9 }
  0xfd   : > { %v9196_v60 = vpop.eup %9195  ;;  %9205 = vrcp.f32 %v618_v54  ;;  %v619_v61 = vadd.f32 1.0, %v9194_v56  ;;  %v7410_v10 = vmul.f32 -1.442695, %v9886_v5 }
  0xfe   : > { %9207 = vrcp.f32 %v620_v57  ;;  %v621_v2 = vadd.f32 1.0, %v9196_v60  ;;  %v7412_v11 = vmul.f32 -1.442695, %v9890_v7 }
  0xff   : > { %9209 = vrcp.f32 %v619_v61 }
 0x100   : > { %9211 = vrcp.f32 %v621_v2 }
 0x101   : > { %9213 = vpow2.f32 %v7401_v62 }
 0x102   : > { %9215 = vpow2.f32 %v7403_v3 }
 0x103   : > { %9217 = vpow2.f32 %v7402_v4 }
 0x104   : > { %9219 = vpow2.f32 %v7404_v6 }
 0x105   : > { %9221 = vpow2.f32 %v7409_v8 }
 0x106   : > { %v9198_v12 = vpop.eup %9197  ;;  %9223 = vpow2.f32 %v7410_v10 }
 0x107   : > { %v9200_v15 = vpop.eup %9199  ;;  %9225 = vpow2.f32 %v7412_v11  ;;  %v9900_v22 = vmul.f32 %v9198_v12, %v9841_v13 }
 0x108   : > { %v9202_v17 = vpop.eup %9201  ;;  %v9906_v24 = vmul.f32 %v9200_v15, %v9843_v14  ;;  %9227 = vpow2.f32 %v7411_v16  ;;  %v8892_v16 = vld [vmem:[%s12499_s1 + $0x80] ss:$8 sps:$4 sm:$0xff]  }
 0x109   : > { %v9204_v18 = vpop.eup %9203  ;;  %v9903_v19 = vmul.f32 %v9202_v17, %v9849_v20  ;;  %v8897_v17 = vld [vmem:[%s12499_s1 + $0x74] ss:$8 sps:$4 sm:$0xff]  }
 0x10a   : > { %v9206_v23 = vpop.eup %9205  ;;  %v9909_v25 = vmul.f32 %v9204_v18, %v9851_v21  ;;  %v8901_v18 = vld [vmem:[%s12499_s1 + $0x180] ss:$8 sps:$4 sm:$0xff]  }
 0x10b   : > { %v9208_v28 = vpop.eup %9207  ;;  %v8507_v29 = vpack.i.bf16 %v9903_v19, %v9900_v22  ;;  %v9924_v35 = vmul.f32 %v9206_v23, %v9856_v26  ;;  %v8903_v23 = vld [vmem:[%s12499_s1 + $0x184] ss:$8 sps:$4 sm:$0xff]  }
 0x10c   : > { %v9210_v30 = vpop.eup %9209  ;;  %v8517_v13 = vpack.i.bf16 %v9909_v25, %v9906_v24  ;;  %v9916_v20 = vmul.f32 %v9208_v28, %v9859_v27  ;;  %v8895_v28 = vld [vmem:[%s12499_s1 + $0x70] ss:$8 sps:$4 sm:$0xff]   ;;  %2034 = vmatprep.subr.bf16.mxu1 %v8903_v23 }
 0x10d   : > { %v9212_v33 = vpop.eup %9211  ;;  %v9919_v34 = vmul.f32 %v9210_v30, %v9863_v31  ;;  %8508 = vrot.lane.b32.xlu1 %v8507_v29, %s9693_s24  ;;  %v8522_v42 = vpack.i.bf16 %v9924_v35, %v9906_v24  ;;  %v8900_v30 = vld [vmem:[%s12499_s1 + $0x64] ss:$8 sps:$4 sm:$0xff]   ;;  %2035 = vmatpush1.bf16.msra.mxu1 %v8901_v18 }
 0x10e   : > { %v9214_v14 = vpop.eup %9213  ;;  %8518 = vrot.lane.b32.xlu0 %v8517_v13, %s9694_s25  ;;  %v9929_v38 = vmul.f32 %v9212_v33, %v9866_v32  ;;  %v8907_v13 = vld [vmem:[%s12499_s1 + $0x170] ss:$8 sps:$4 sm:$0xff]   ;;  %v8915_v33 = vld [vmem:[%s12499_s1 + $0x164] ss:$8 sps:$4 sm:$0xff]  }
 0x10f   : > { %v9216_v21 = vpop.eup %9215  ;;  %v614_v36 = vadd.f32 1.0, %v9214_v14  ;;  %v8527_v37 = vpack.i.bf16 %v9916_v20, %v9919_v34  ;;  %v8532_v49 = vpack.i.bf16 %v9919_v34, %v9924_v35  ;;  %v8898_v14 = vld [vmem:[%s12499_s1 + $0x60] ss:$8 sps:$4 sm:$0xff]  }
 0x110   : > { %v9218_v27 = vpop.eup %9217  ;;  %v616_v41 = vadd.f32 1.0, %v9216_v21  ;;  %v8537_v32 = vpack.i.bf16 %v9929_v38, %v9916_v20  ;;  %v8906_v21 = vld [vmem:[%s12499_s1 + $0x54] ss:$8 sps:$4 sm:$0xff]  }
 0x111   : > { %v9220_v31 = vpop.eup %9219  ;;  %9229 = vrcp.f32 %v614_v36  ;;  %v615_v39 = vadd.f32 1.0, %v9218_v27  ;;  %8513 = vrot.lane.b32.xlu1 %v8507_v29, %s9694_s25  ;;  %v8909_v29 = vld [vmem:[%s12499_s1 + $0x174] ss:$8 sps:$4 sm:$0xff]   ;;  %v8913_v36 = vld [vmem:[%s12499_s1 + $0x160] ss:$8 sps:$4 sm:$0xff]  }
 0x112   : > { %v9222_v40 = vpop.eup %9221  ;;  %8528 = vrot.lane.b32.xlu0 %v8527_v37, %s9693_s24  ;;  %v617_v44 = vadd.f32 1.0, %v9220_v31  ;;  %2036 = vmatprep.subr.bf16.mxu1 %v8909_v29  ;;  %v8921_v37 = vld [vmem:[%s12499_s1 + $0x154] ss:$8 sps:$4 sm:$0xff]   ;;  %v8904_v27 = vld [vmem:[%s12499_s1 + $0x50] ss:$8 sps:$4 sm:$0xff]  }
 0x113   : > { %9231 = vrcp.f32 %v615_v39  ;;  %v622_v26 = vadd.f32 1.0, %v9222_v40  ;;  %v9224_v43 = vpop.eup %9223  ;;  %2037 = vmatpush1.bf16.msra.mxu1 %v8907_v13  ;;  %v8912_v31 = vld [vmem:[%s12499_s1 + $0x44] ss:$8 sps:$4 sm:$0xff]   ;;  %v8919_v39 = vld [vmem:[%s12499_s1 + $0x150] ss:$8 sps:$4 sm:$0xff]  }
 0x114   : > { %v9226_v45 = vpop.eup %9225  ;;  %v623_v46 = vadd.f32 1.0, %v9224_v43  ;;  %2038 = vmatprep.subr.bf16.mxu1 %v8915_v33  ;;  %v8927_v40 = vld [vmem:[%s12499_s1 + $0x144] ss:$8 sps:$4 sm:$0xff]   ;;  %v8933_v43 = vld [vmem:[%s12499_s1 + $0x134] ss:$8 sps:$4 sm:$0xff]  }
 0x115   : > { %9233 = vrcp.f32 %v622_v26  ;;  %8523 = vrot.lane.b32.xlu1 %v8522_v42, %s9693_s24  ;;  %v625_v47 = vadd.f32 1.0, %v9226_v45  ;;  %v9228_v50 = vpop.eup %9227  ;;  %v8918_v26 = vld [vmem:[%s12499_s1 + $0x34] ss:$8 sps:$4 sm:$0xff]   ;;  %v8925_v42 = vld [vmem:[%s12499_s1 + $0x140] ss:$8 sps:$4 sm:$0xff]  }
 0x116   : > { %9235 = vrcp.f32 %v616_v41  ;;  %8538 = vrot.lane.b32.xlu0 %v8537_v32, %s9694_s25  ;;  %v624_v51 = vadd.f32 1.0, %v9228_v50  ;;  %v8910_v41 = vld [vmem:[%s12499_s1 + $0x40] ss:$8 sps:$4 sm:$0xff]   ;;  %v8924_v32 = vld [vmem:[%s12499_s1 + $0x24] ss:$8 sps:$4 sm:$0xff]  }
 0x117   : > { %9237 = vrcp.f32 %v623_v46  ;;  %2039 = vmatpush1.bf16.msra.mxu1 %v8913_v36  ;;  %v8931_v45 = vld [vmem:[%s12499_s1 + $0x130] ss:$8 sps:$4 sm:$0xff]   ;;  %v8939_v46 = vld [vmem:[%s12499_s1 + $0x124] ss:$8 sps:$4 sm:$0xff]   ;;  %v8937_v50 = vld [vmem:[%s12499_s1 + $0x120] ss:$8 sps:$4 sm:$0xff]  }
 0x118   : > { %9239 = vrcp.f32 %v617_v44  ;;  %2040 = vmatprep.subr.bf16.mxu1 %v8921_v37  ;;  %v8916_v44 = vld [vmem:[%s12499_s1 + $0x30] ss:$8 sps:$4 sm:$0xff]   ;;  %v8948_v36 = vld [vmem:[%s12499_s1 + $0xe4] ss:$8 sps:$4 sm:$0xff]  }
 0x119   : > { %9241 = vrcp.f32 %v625_v47  ;;  %8533 = vrot.lane.b32.xlu1 %v8532_v49, %s9694_s25  ;;  %v8922_v47 = vld [vmem:[%s12499_s1 + $0x20] ss:$8 sps:$4 sm:$0xff]   ;;  %v8930_v49 = vld [vmem:[%s12499_s1 + $0x14] ss:$8 sps:$4 sm:$0xff]  }
 0x11a   : > { %9243 = vrcp.f32 %v624_v51  ;;  %v8945_v51 = vld [vmem:[%s12499_s1 + $0x114] ss:$8 sps:$4 sm:$0xff]  }
 0x11b   : > { %2041 = vmatpush1.bf16.msra.mxu1 %v8919_v39  ;;  %v8949_v39 = vld [vmem:[%s12499_s1 + $0x200] ss:$8 sps:$4 sm:$0xff]  }
 0x11c   : > { %2042 = vmatprep.subr.bf16.mxu1 %v8927_v40  ;;  %v8951_v40 = vld [vmem:[%s12499_s1 + $0x204] ss:$8 sps:$4 sm:$0xff]  }
 0x11e   : > { %v9230_v53 = vpop.eup %9229 }
 0x11f   : > { %v9943_v54 = vmul.f32 %v9230_v53, %v9871_v48  ;;  %2043 = vmatpush1.bf16.msra.mxu1 %v8925_v42  ;;  %v8928_v53 = vld [vmem:[%s12499_s1 + $0x10] ss:$8 sps:$4 sm:$0xff]   ;;  %v8954_v42 = vld [vmem:[%s12499_s1 + $0xd4] ss:$8 sps:$4 sm:$0xff]  }
 0x120   : > { %v9232_v56 = vpop.eup %9231  ;;  %2044 = vmatprep.subr.bf16.mxu1 %v8933_v43  ;;  %v8957_v43 = vld [vmem:[%s12499_s1 + $0x1f4] ss:$8 sps:$4 sm:$0xff]  }
 0x121   : > { %v9946_v57 = vmul.f32 %v9232_v56, %v9875_v55  ;;  %v8542_v59 = vpack.i.bf16 %v9943_v54, %v9909_v25  ;;  %v8936_v56 = vld [vmem:[%s12499_s1 + $0x104] ss:$8 sps:$4 sm:$0xff]  }
 0x122   : > { %v9234_v60 = vpop.eup %9233 }
 0x123   : > { %v9236_v61 = vpop.eup %9235  ;;  %v9951_v62 = vmul.f32 %v9234_v60, %v9881_v63  ;;  %8543 = vrot.lane.b32.xlu1 %v8542_v59, %s9693_s24  ;;  %v8547_v55 = vpack.i.bf16 %v9946_v57, %v9943_v54  ;;  %2045 = vmatpush1.bf16.msra.mxu1 %v8931_v45  ;;  %v8943_v59 = vld [vmem:[%s12499_s1 + $0x110] ss:$8 sps:$4 sm:$0xff]   ;;  %v8934_v60 = vld [vmem:[%s12499_s1 + $0x100] ss:$8 sps:$4 sm:$0xff]  }
 0x124   : > { %v9238_v1 = vpop.eup %9237  ;;  %v9962_v6 = vmul.f32 %v9236_v61, %v9873_v52  ;;  %2046 = vmatprep.subr.bf16.mxu1 %v8939_v46  ;;  %v8942_v61 = vld [vmem:[%s12499_s1 + $0xf4] ss:$8 sps:$4 sm:$0xff]  }
 0x125   : > { %v9240_v2 = vpop.eup %9239  ;;  %v9955_v48 = vmul.f32 %v9238_v1, %v9886_v5  ;;  %v8552_v3 = vpack.i.bf16 %v9951_v62, %v9929_v38  ;;  %v8940_v1 = vld [vmem:[%s12499_s1 + $0xf0] ss:$8 sps:$4 sm:$0xff]  }
 0x126   : > { %v9242_v4 = vpop.eup %9241  ;;  %v9967_v63 = vmul.f32 %v9240_v2, %v9877_v58  ;;  %v8562_v10 = vpack.i.bf16 %v9962_v6, %v9946_v57  ;;  %v674_v2 = vlaneseq }
 0x127   : > { %8553 = vrot.lane.b32.xlu0 %v8552_v3, %s9693_s24  ;;  %8548 = vrot.lane.b32.xlu1 %v8547_v55, %s9694_s25  ;;  %v9970_v5 = vmul.f32 %v9242_v4, %v9890_v7  ;;  %v8557_v8 = vpack.i.bf16 %v9955_v48, %v9951_v62  ;;  %v9244_v52 = vpop.eup %9243 }
 0x128   : > { %v8567_v11 = vpack.i.bf16 %v9967_v63, %v9962_v6  ;;  %v9983_v7 = vmul.f32 %v9244_v52, %v9894_v9  ;;  %v8894_v9 = vld [vmem:[%s12499_s1 + $0x84] ss:$8 sps:$4 sm:$0xff]   ;;  %2047 = vmatpush1.bf16.msra.mxu1 %v8937_v50  ;;  %v10101_v3 = vand.u32 127, %v674_v2 }
 0x129   : > { %v8577_v58 = vpack.i.bf16 %v9970_v5, %v9967_v63  ;;  %1991 = vmatprep.subr.bf16.mxu0 %v8894_v9  ;;  %2048 = vmatprep.subr.bf16.mxu1 %v8945_v51  ;;  %v8969_v9 = vld [vmem:[%s12499_s1 + $0x1d4] ss:$8 sps:$4 sm:$0xff]  }
 0x12a   : > { %v8572_v12 = vpack.i.bf16 %v9983_v7, %v9955_v48  ;;  %v8582_v15 = vpack.i.bf16 %v9970_v5, %v9983_v7  ;;  %1992 = vmatpush1.bf16.msra.mxu0 %v8892_v16  ;;  %v10104_v55 = vadd.s32 128, %v10101_v3  ;;  %v687_v4 = vand.u32 31, %v10101_v3 }
 0x12b   : > { %8558 = vrot.lane.b32.xlu0 %v8557_v8, %s9694_s25  ;;  %8563 = vrot.lane.b32.xlu1 %v8562_v10, %s9693_s24  ;;  %v677_v8 = vadd.s32 256, %v10101_v3 }
 0x12c   : > { %1993 = vmatprep.subr.bf16.mxu0 %v8897_v17  ;;  %2049 = vmatpush1.bf16.msra.mxu1 %v8943_v59  ;;  %v694_v10 = vand.u32 31, %v10104_v55  ;;  %vm10111_vm3 = vcmp.gt.s32.totalorder %v687_v4, 0  ;;  %vm10139_vm7 = vcmp.lt.s32.totalorder %v687_v4, 31 }
 0x12d   : > { %v701_v16 = vand.u32 31, %v677_v8  ;;  %2050 = vmatprep.subr.bf16.mxu1 %v8951_v40 }
 0x12e   : > { %1994 = vmatpush1.bf16.msra.mxu0 %v8895_v28  ;;  %vm10115_vm4 = vcmp.gt.s32.totalorder %v694_v10, 0  ;;  %vm10127_vm6 = vcmp.lt.s32.totalorder %v694_v10, 31 }
 0x12f   : > { %8568 = vrot.lane.b32.xlu0 %v8567_v11, %s9694_s25  ;;  %8578 = vrot.lane.b32.xlu1 %v8577_v58, %s9693_s24  ;;  %vm10149_vm8 = vcmp.lt.s32.totalorder %v701_v16, 31  ;;  %vm10183_vm9 = vcmp.gt.s32.totalorder %v701_v16, 0 }
 0x130   : > { %1995 = vmatprep.subr.bf16.mxu0 %v8900_v30  ;;  %2051 = vmatpush2.bf16.msra.mxu1 %v8949_v39  ;;  %v8966_v39 = vld [vmem:[%s12499_s1 + $0xb4] ss:$8 sps:$4 sm:$0xff]  }
 0x131   : > { %2052 = vmatprep.subr.bf16.mxu1 %v8957_v43 }
 0x132   : > { %1996 = vmatpush1.bf16.msra.mxu0 %v8898_v14 }
 0x133   : > { %8573 = vrot.lane.b32.xlu0 %v8572_v12, %s9693_s24  ;;  %8583 = vrot.lane.b32.xlu1 %v8582_v15, %s9694_s25  ;;  %v8961_v15 = vld [vmem:[%s12499_s1 + $0x1e0] ss:$8 sps:$4 sm:$0xff]  }
 0x134   : > { %1997 = vmatprep.subr.bf16.mxu0 %v8906_v21  ;;  %v8946_v21 = vld [vmem:[%s12499_s1 + $0xe0] ss:$8 sps:$4 sm:$0xff]  }
 0x136   : > { %1998 = vmatpush1.bf16.msra.mxu0 %v8904_v27 }
 0x137   : > { %1999 = vmatprep.subr.bf16.mxu0 %v8912_v31 }
 0x13a   : > { %2000 = vmatpush1.bf16.msra.mxu0 %v8910_v41 }
 0x13b   : > { %2001 = vmatprep.subr.bf16.mxu0 %v8918_v26 }
 0x13e   : > { %2002 = vmatpush1.bf16.msra.mxu0 %v8916_v44 }
 0x13f   : > { %2003 = vmatprep.subr.bf16.mxu0 %v8924_v32 }
 0x142   : > { %2004 = vmatpush1.bf16.msra.mxu0 %v8922_v47 }
 0x143   : > { %2005 = vmatprep.subr.bf16.mxu0 %v8930_v49  ;;  %v8952_v49 = vld [vmem:[%s12499_s1 + $0xd0] ss:$8 sps:$4 sm:$0xff]  }
 0x146   : > { %2006 = vmatpush1.bf16.msra.mxu0 %v8928_v53 }
 0x147   : > { %2007 = vmatprep.subr.bf16.mxu0 %v8936_v56  ;;  %v8955_v56 = vld [vmem:[%s12499_s1 + $0x1f0] ss:$8 sps:$4 sm:$0xff]  }
 0x148   : > { %2053 = vmatpush2.bf16.msra.mxu1 %v8955_v56 }
 0x14a   : > { %2008 = vmatpush2.bf16.msra.mxu0 %v8934_v60 }
 0x14b   : > { %2009 = vmatprep.subr.bf16.mxu0 %v8942_v61 }
 0x14e   : > { %2010 = vmatpush2.bf16.msra.mxu0 %v8940_v1 }
 0x14f   : > { %2011 = vmatprep.subr.bf16.mxu0 %v8948_v36 }
 0x152   : > { %2012 = vmatpush2.bf16.msra.mxu0 %v8946_v21  ;;  %v8963_v21 = vld [vmem:[%s12499_s1 + $0x1e4] ss:$8 sps:$4 sm:$0xff]  }
 0x153   : > { %2013 = vmatprep.subr.bf16.mxu0 %v8954_v42  ;;  %2054 = vmatprep.subr.bf16.mxu1 %v8963_v21 }
 0x154   : > { %2055 = vmatpush2.bf16.msra.mxu1 %v8961_v15 }
 0x155   : > { %2056 = vmatprep.subr.bf16.mxu1 %v8969_v9  ;;  %v8970_v9 = vld [vmem:[%s12499_s1 + $0xa0] ss:$8 sps:$4 sm:$0xff]  }
 0x156   : > { %2014 = vmatpush2.bf16.msra.mxu0 %v8952_v49  ;;  %v679_v49 = vadd.s32 512, %v10101_v3 }
 0x17f   : > { %v8509_v52 = vpop.permute.xlu1 %8508 }
 0x180   : > { %v10109_v11 = vpop.permute.xlu0 %8518  ;;  %v8511_v58 = vunpack.i.h.bf16 %v8509_v52  ;;  %v8510_v12 = vunpack.i.l.bf16 %v8509_v52 }
 0x181   : > { %v8521_v23 = vunpack.i.h.bf16 %v10109_v11  ;;  %v8520_v28 = vunpack.i.l.bf16 %v10109_v11 }
 0x182   : > { %v844_v17 = vsel %vm12508_vm2, %v8510_v12, %v8511_v58  ;;  %v874_v18 = vsel %vm12508_vm2, -30.0, %v8510_v12 }
 0x183   : > { %v8514_v29 = vpop.permute.xlu1 %8513  ;;  %v892_v30 = vsel %vm10111_vm3, %v874_v18, -30.0  ;;  %v893_v37 = vsel %vm10115_vm4, %v844_v17, -30.0  ;;  %v959_v44 = vsel %vm12504_vm5, %v8520_v28, %v8521_v23 }
 0x184   : > { %v10125_v13 = vpop.permute.xlu0 %8528  ;;  %v8516_v14 = vunpack.i.h.bf16 %v8514_v29  ;;  %v8515_v31 = vunpack.i.l.bf16 %v8514_v29  ;;  %v908_v32 = vmax.f32 %v9900_v22, %v892_v30  ;;  %v909_v50 = vmax.f32 %v9903_v19, %v893_v37 }
 0x185   : > { %v8530_v59 = vunpack.i.l.bf16 %v10125_v13  ;;  %v1007_v8 = vsel %vm10149_vm8, %v959_v44, -30.0  ;;  %v8531_v17 = vunpack.i.h.bf16 %v10125_v13  ;;  %v678_v37 = vadd.s32 384, %v10101_v3 }
 0x186   : > { %v958_v26 = vsel %vm12504_vm5, %v8516_v14, %v8520_v28  ;;  %v957_v46 = vsel %vm12504_vm5, %v8515_v31, %v8516_v14  ;;  %v8960_v28 = vld [vmem:[%s12499_s1 + $0xc4] ss:$8 sps:$4 sm:$0xff]  }
 0x187   : > { %v1006_v45 = vsel %vm10127_vm6, %v958_v26, -30.0  ;;  %v10167_v47 = vpop.permute.xlu1 %8523  ;;  %v1005_v51 = vsel %vm10139_vm7, %v957_v46, -30.0  ;;  %2015 = vmatprep.subr.bf16.mxu0 %v8960_v28  ;;  %v8967_v46 = vld [vmem:[%s12499_s1 + $0x1d0] ss:$8 sps:$4 sm:$0xff]   ;;  %v852_v33 = vsel %vm12508_vm2, %v8530_v59, %v8531_v17 }
 0x188   : > { %v8526_v22 = vunpack.i.h.bf16 %v10167_v47  ;;  %v8525_v53 = vunpack.i.l.bf16 %v10167_v47  ;;  %v10181_v60 = vmax.f32 %v908_v32, %v1005_v51  ;;  %v10187_v61 = vpop.permute.xlu0 %8538  ;;  %v10193_v4 = vmax.f32 %v909_v50, %v1006_v45  ;;  %v8964_v45 = vld [vmem:[%s12499_s1 + $0xb0] ss:$8 sps:$4 sm:$0xff]   ;;  %2057 = vmatpush2.bf16.msra.mxu1 %v8967_v46  ;;  %v8990_v46 = vld [vmem:[%s12499_s1 + $0x194] ss:$8 sps:$4 sm:$0xff]  }
 0x189   : > { %v8540_v29 = vunpack.i.l.bf16 %v10187_v61  ;;  %v8541_v40 = vunpack.i.h.bf16 %v10187_v61 }
 0x18a   : > { %v875_v1 = vsel %vm12508_vm2, -30.0, %v8526_v22  ;;  %v845_v2 = vsel %vm12508_vm2, %v8511_v58, %v8525_v53  ;;  %v851_v10 = vsel %vm12508_vm2, %v8526_v22, %v8530_v59  ;;  %v8958_v58 = vld [vmem:[%s12499_s1 + $0xc0] ss:$8 sps:$4 sm:$0xff]   ;;  %v708_v22 = vand.u32 31, %v678_v37 }
 0x18b   : > { %v900_v52 = vsel %vm10111_vm3, %v875_v1, -30.0  ;;  %v894_v12 = vsel %vm10183_vm9, %v845_v2, -30.0  ;;  %v8534_v16 = vpop.permute.xlu1 %8533  ;;  %v901_v36 = vsel %vm10115_vm4, %v851_v10, -30.0  ;;  %2016 = vmatpush2.bf16.msra.mxu0 %v8958_v58  ;;  %v966_v51 = vsel %vm12504_vm5, %v8540_v29, %v8541_v40 }
 0x18c   : > { %v910_v18 = vmax.f32 %v9906_v24, %v894_v12  ;;  %v8536_v30 = vunpack.i.h.bf16 %v8534_v16  ;;  %v8535_v14 = vunpack.i.l.bf16 %v8534_v16  ;;  %v8587_v24 = vpack.i.bf16 %v10193_v4, %v10181_v60  ;;  %2017 = vmatprep.subr.bf16.mxu0 %v8966_v39 }
 0x18d   : > { %v916_v26 = vmax.f32 %v9924_v35, %v900_v52  ;;  %v917_v27 = vmax.f32 %v9919_v34, %v901_v36  ;;  %v902_v34 = vsel %vm10183_vm9, %v852_v33, -30.0  ;;  %v680_v1 = vadd.s32 640, %v10101_v3 }
 0x18e   : > { %v10222_v31 = vmax.f32 %v910_v18, %v1007_v8  ;;  %v965_v42 = vsel %vm12504_vm5, %v8536_v30, %v8540_v29  ;;  %v964_v43 = vsel %vm12504_vm5, %v8535_v14, %v8536_v30  ;;  %8588 = vrot.lane.b32.xlu1 %v8587_v24, %s9695_s5  ;;  %v681_v2 = vadd.s32 768, %v10101_v3  ;;  %v8976_v18 = vld [vmem:[%s12499_s1 + $0x90] ss:$8 sps:$4 sm:$0xff]  }
 0x18f   : > { %v1014_v44 = vsel %vm10127_vm6, %v965_v42, -30.0  ;;  %v1013_v32 = vsel %vm10139_vm7, %v964_v43, -30.0  ;;  %2018 = vmatpush2.bf16.msra.mxu0 %v8964_v45  ;;  %v715_v8 = vand.u32 31, %v679_v49  ;;  %v1015_v52 = vsel %vm10149_vm8, %v966_v51, -30.0 }
 0x190   : > { %v8592_v35 = vpack.i.bf16 %v10222_v31, %v10193_v4  ;;  %v10252_v50 = vmax.f32 %v916_v26, %v1013_v32  ;;  %v10260_v59 = vmax.f32 %v917_v27, %v1014_v44  ;;  %v918_v19 = vmax.f32 %v9916_v20, %v902_v34  ;;  %v8972_v44 = vld [vmem:[%s12499_s1 + $0xa4] ss:$8 sps:$4 sm:$0xff]   ;;  %v8973_v32 = vld [vmem:[%s12499_s1 + $0x1c0] ss:$8 sps:$4 sm:$0xff]  }
 0x191   : > { %vm10274_vm10 = vcmp.gt.s32.totalorder %v708_v22, 0  ;;  %v722_v15 = vand.u32 31, %v680_v1  ;;  %v729_v41 = vand.u32 31, %v681_v2  ;;  %v10284_v29 = vadd.s32 896, %v10101_v3  ;;  %v8975_v27 = vld [vmem:[%s12499_s1 + $0x1c4] ss:$8 sps:$4 sm:$0xff]   ;;  %2019 = vmatprep.subr.bf16.mxu0 %v8972_v44 }
 0x192   : > { %8593 = vrot.lane.b32.xlu1 %v8592_v35, %s9696_s14  ;;  %v8597_v56 = vpack.i.bf16 %v10252_v50, %v10181_v60  ;;  %v8602_v58 = vpack.i.bf16 %v10260_v59, %v10252_v50  ;;  %vm10286_vm11 = vcmp.gt.s32.totalorder %v715_v8, 0  ;;  %vm10292_vm12 = vcmp.lt.s32.totalorder %v708_v22, 31  ;;  %2058 = vmatprep.subr.bf16.mxu1 %v8975_v27 }
 0x193   : > { %vm10296_vm13 = vcmp.lt.s32.totalorder %v715_v8, 31  ;;  %vm10326_vm14 = vcmp.gt.s32.totalorder %v722_v15, 0  ;;  %vm10330_vm15 = vcmp.gt.s32.totalorder %v729_v41, 0  ;;  %v736_v33 = vand.u32 31, %v10284_v29  ;;  %2020 = vmatpush2.bf16.msra.mxu0 %v8970_v9  ;;  %2059 = vmatpush2.bf16.msra.mxu1 %v8973_v32 }
 0x194   : > { %8598 = vrot.lane.b32.xlu0 %v8597_v56, %s9696_s14  ;;  %vm10359_vm1 = vcmp.lt.s32.totalorder %v722_v15, 31  ;;  %vm10365_vm3 = vcmp.lt.s32.totalorder %v729_v41, 31  ;;  %vm1150_vm7 = vcmask 785408   ;;  %vm12507_vm8 = vcmask 261120  }
 0x195   : > { %v10266_v10 = vpop.permute.xlu1 %8543  ;;  %vm10405_vm4 = vcmp.gt.s32.totalorder %v736_v33, 0  ;;  %vm10425_vm6 = vcmp.lt.s32.totalorder %v736_v33, 31  ;;  %v8987_v33 = vld [vmem:[%s12499_s1 + $0x284] ss:$8 sps:$4 sm:$0xff]   ;;  %vm12516_vm9 = vcmask 130048  }
 0x196   : > { %v8546_v12 = vunpack.i.h.bf16 %v10266_v10  ;;  %v8545_v16 = vunpack.i.l.bf16 %v10266_v10 }
 0x198   : > { %v846_v28 = vsel %vm12508_vm2, %v8525_v53, %v8545_v16  ;;  %8603 = vrot.lane.b32.xlu0 %v8602_v58, %s9695_s5  ;;  %v10303_v53 = vmax.f32 %v918_v19, %v1015_v52  ;;  %v847_v21 = vsel %vm12508_vm2, %v8545_v16, %v8546_v12  ;;  %v8978_v58 = vld [vmem:[%s12499_s1 + $0x94] ss:$8 sps:$4 sm:$0xff]   ;;  %v8999_v16 = vld [vmem:[%s12499_s1 + $0x384] ss:$8 sps:$4 sm:$0xff]  }
 0x199   : > { %v10290_v20 = vpop.permute.xlu0 %8553  ;;  %v10300_v47 = vpop.permute.xlu1 %8548  ;;  %v895_v36 = vsel %vm10274_vm10, %v846_v28, -30.0  ;;  %v896_v49 = vsel %vm10286_vm11, %v847_v21, -30.0  ;;  %v8979_v28 = vld [vmem:[%s12499_s1 + $0x1b0] ss:$8 sps:$4 sm:$0xff]   ;;  %2021 = vmatprep.subr.bf16.mxu0 %v8978_v58 }
 0x19a   : > { %v8556_v37 = vunpack.i.h.bf16 %v10290_v20  ;;  %v8555_v39 = vunpack.i.l.bf16 %v10290_v20  ;;  %v8551_v26 = vunpack.i.h.bf16 %v10300_v47  ;;  %v8550_v42 = vunpack.i.l.bf16 %v10300_v47  ;;  %2022 = vmatpush2.bf16.msra.mxu0 %v8976_v18  ;;  %v8988_v20 = vld [vmem:[%s12499_s1 + $0x190] ss:$8 sps:$4 sm:$0xff]  }
 0x19b   : > { %v8607_v43 = vpack.i.bf16 %v10303_v53, %v10260_v59  ;;  %v911_v13 = vmax.f32 %v9909_v25, %v895_v36  ;;  %v912_v15 = vmax.f32 %v9943_v54, %v896_v49  ;;  %2077 = vmatprep.subr.bf16.mxu0 %v8987_v33 }
 0x19c   : > { %v853_v35 = vsel %vm12508_vm2, %v8531_v17, %v8555_v39  ;;  %v960_v17 = vsel %vm12504_vm5, %v8521_v23, %v8550_v42  ;;  %v961_v51 = vsel %vm12504_vm5, %v8550_v42, %v8551_v26  ;;  %v854_v34 = vsel %vm12508_vm2, %v8555_v39, %v8556_v37  ;;  %v8981_v42 = vld [vmem:[%s12499_s1 + $0x1b4] ss:$8 sps:$4 sm:$0xff]  }
 0x19d   : > { %v10347_v22 = vpop.permute.xlu0 %8558  ;;  %v8564_v56 = vpop.permute.xlu1 %8563  ;;  %8608 = vrot.lane.b32.xlu0 %v8607_v43, %s9696_s14  ;;  %v903_v25 = vsel %vm10274_vm10, %v853_v35, -30.0  ;;  %v1008_v11 = vsel %vm10292_vm12, %v960_v17, -30.0  ;;  %v1009_v23 = vsel %vm10296_vm13, %v961_v51, -30.0  ;;  %v904_v41 = vsel %vm10286_vm11, %v854_v34, -30.0  ;;  %2060 = vmatprep.subr.bf16.mxu1 %v8981_v42  ;;  %v8984_v34 = vld [vmem:[%s12499_s1 + $0x1a4] ss:$8 sps:$4 sm:$0xff]  }
 0x19e   : > { %v8561_v2 = vunpack.i.h.bf16 %v10347_v22  ;;  %v8560_v8 = vunpack.i.l.bf16 %v10347_v22  ;;  %v8566_v10 = vunpack.i.h.bf16 %v8564_v56  ;;  %v8565_v52 = vunpack.i.l.bf16 %v8564_v56  ;;  %2061 = vmatpush2.bf16.msra.mxu1 %v8979_v28  ;;  %v8982_v56 = vld [vmem:[%s12499_s1 + $0x1a0] ss:$8 sps:$4 sm:$0xff]  }
 0x19f   : > { %v10369_v19 = vmax.f32 %v911_v13, %v1008_v11  ;;  %v919_v43 = vmax.f32 %v9929_v38, %v903_v25  ;;  %v10403_v44 = vmax.f32 %v912_v15, %v1009_v23  ;;  %v920_v27 = vmax.f32 %v9951_v62, %v904_v41  ;;  %2062 = vmatprep.subr.bf16.mxu1 %v8984_v34 }
 0x1a0   : > { %v967_v29 = vsel %vm12504_vm5, %v8541_v40, %v8560_v8  ;;  %v848_v21 = vsel %vm12508_vm2, %v8546_v12, %v8565_v52  ;;  %v968_v54 = vsel %vm12504_vm5, %v8560_v8, %v8561_v2  ;;  %v849_v40 = vsel %vm12508_vm2, %v8565_v52, %v8566_v10 }
 0x1a1   : > { %v10387_v36 = vpop.permute.xlu0 %8568  ;;  %v8579_v39 = vpop.permute.xlu1 %8578  ;;  %v1016_v61 = vsel %vm10292_vm12, %v967_v29, -30.0  ;;  %v897_v12 = vsel %vm10326_vm14, %v848_v21, -30.0  ;;  %v8612_v32 = vpack.i.bf16 %v10369_v19, %v10222_v31  ;;  %v1017_v49 = vsel %vm10296_vm13, %v968_v54, -30.0 }
 0x1a2   : > { %v8571_v30 = vunpack.i.h.bf16 %v10387_v36  ;;  %v8570_v9 = vunpack.i.l.bf16 %v10387_v36  ;;  %v8580_v14 = vunpack.i.l.bf16 %v8579_v39  ;;  %v10411_v35 = vmax.f32 %v919_v43, %v1016_v61  ;;  %2063 = vmatpush2.bf16.msra.mxu1 %v8982_v56 }
 0x1a3   : > { %v898_v13 = vsel %vm10330_vm15, %v849_v40, -30.0  ;;  %v913_v25 = vmax.f32 %v9946_v57, %v897_v12  ;;  %v8581_v23 = vunpack.i.h.bf16 %v8579_v39  ;;  %8613 = vrot.lane.b32.xlu1 %v8612_v32, %s9695_s5  ;;  %v8617_v57 = vpack.i.bf16 %v10403_v44, %v10369_v19  ;;  %2064 = vmatprep.subr.bf16.mxu1 %v8990_v46 }
 0x1a4   : > { %v962_v24 = vsel %vm12504_vm5, %v8551_v26, %v8570_v9  ;;  %v963_v11 = vsel %vm12504_vm5, %v8570_v9, %v8571_v30  ;;  %v850_v8 = vsel %vm12508_vm2, %v8566_v10, %v8580_v14  ;;  %v8622_v26 = vpack.i.bf16 %v10411_v35, %v10303_v53 }
 0x1a5   : > { %v8574_v17 = vpop.permute.xlu0 %8573  ;;  %v8584_v51 = vpop.permute.xlu1 %8583  ;;  %v10442_v28 = vmax.f32 %v920_v27, %v1017_v49  ;;  %v914_v10 = vmax.f32 %v9962_v6, %v898_v13  ;;  %v1010_v15 = vsel %vm10359_vm1, %v962_v24, -30.0  ;;  %v1011_v21 = vsel %vm10365_vm3, %v963_v11, -30.0 }
 0x1a6   : > { %v8576_v52 = vunpack.i.h.bf16 %v8574_v17  ;;  %v8575_v18 = vunpack.i.l.bf16 %v8574_v17  ;;  %v8586_v47 = vunpack.i.h.bf16 %v8584_v51  ;;  %v8585_v58 = vunpack.i.l.bf16 %v8584_v51  ;;  %8623 = vrot.lane.b32.xlu0 %v8622_v26, %s9695_s5  ;;  %2065 = vmatpush2.bf16.msra.mxu1 %v8988_v20 }
 0x1a7   : > { %8618 = vrot.lane.b32.xlu1 %v8617_v57, %s9696_s14  ;;  %v8627_v40 = vpack.i.bf16 %v10442_v28, %v10411_v35  ;;  %v10478_v12 = vmax.f32 %v913_v25, %v1010_v15  ;;  %v10492_v32 = vmax.f32 %v914_v10, %v1011_v21  ;;  %2120 = vmatprep.subr.bf16.mxu1 %v8999_v16  ;;  %v8993_v16 = vld [vmem:[%s12499_s1 + $0x274] ss:$8 sps:$4 sm:$0xff]   ;;  %vm12505_vm10 = vcmask 908288  }
 0x1a8   : > { %v855_v41 = vsel %vm12508_vm2, %v8556_v37, %v8575_v18  ;;  %v856_v29 = vsel %vm12508_vm2, %v8575_v18, %v8576_v52  ;;  %v857_v36 = vsel %vm12508_vm2, %v8576_v52, %v8581_v23  ;;  %v899_v37 = vsel %vm10405_vm4, %v850_v8, -30.0 }
 0x1a9   : > { %v905_v39 = vsel %vm10326_vm14, %v855_v41, -30.0  ;;  %v906_v6 = vsel %vm10330_vm15, %v856_v29, -30.0  ;;  %v969_v45 = vsel %vm12504_vm5, %v8561_v2, %v8585_v58  ;;  %v970_v54 = vsel %vm12504_vm5, %v8585_v58, %v8586_v47 }
 0x1aa   : > { %v921_v42 = vmax.f32 %v9955_v48, %v905_v39  ;;  %v922_v43 = vmax.f32 %v9983_v7, %v906_v6  ;;  %v1018_v61 = vsel %vm10359_vm1, %v969_v45, -30.0  ;;  %v987_v48 = vsel %vm12504_vm5, %v8571_v30, -30.0  ;;  %8628 = vrot.lane.b32.xlu0 %v8627_v40, %s9696_s14 }
 0x1ab   : > { %v907_v7 = vsel %vm10405_vm4, %v857_v36, -30.0  ;;  %v1019_v22 = vsel %vm10365_vm3, %v970_v54, -30.0  ;;  %v915_v9 = vmax.f32 %v9967_v63, %v899_v37  ;;  %v988_v1 = vsel %vm12504_vm5, %v8586_v47, -30.0 }
 0x1ac   : > { %v10485_v2 = vmax.f32 %v921_v42, %v1018_v61  ;;  %v8632_v14 = vpack.i.bf16 %v10478_v12, %v10403_v44  ;;  %v923_v38 = vmax.f32 %v9970_v5, %v907_v7  ;;  %v10501_v63 = vmax.f32 %v922_v43, %v1019_v22 }
 0x1ad   : > { %v1012_v27 = vsel %vm10425_vm6, %v987_v48, -30.0  ;;  %v1020_v49 = vsel %vm10425_vm6, %v988_v1, -30.0  ;;  %v8637_v13 = vpack.i.bf16 %v10492_v32, %v10478_v12  ;;  %vm2414_vm13 = vcmask 1043456  }
 0x1ae   : > { %v8647_v30 = vpack.i.bf16 %v10485_v2, %v10442_v28  ;;  %8633 = vrot.lane.b32.xlu1 %v8632_v14, %s9695_s5  ;;  %v10510_v17 = vmax.f32 %v915_v9, %v1012_v27  ;;  %v10512_v51 = vmax.f32 %v923_v38, %v1020_v49  ;;  %v8652_v5 = vpack.i.bf16 %v10501_v63, %v10485_v2  ;;  %v8985_v9 = vld [vmem:[%s12499_s1 + $0x280] ss:$8 sps:$4 sm:$0xff]  }
 0x1af   : > { %vm12502_vm14 = vcmask 924672   ;;  %vm12503_vm1 = vcmask 916480   ;;  %vm9705_vm6 = vmmov 1  }
 0x1b0   : > { %8648 = vrot.lane.b32.xlu0 %v8647_v30, %s9695_s5  ;;  %v8642_v56 = vpack.i.bf16 %v10510_v17, %v10492_v32  ;;  %v8657_v34 = vpack.i.bf16 %v10512_v51, %v10501_v63  ;;  %v8662_v25 = vpack.i.bf16 %v10512_v51, %v10510_v17 }
 0x1b2   : > { %8638 = vrot.lane.b32.xlu1 %v8637_v13, %s9696_s14 }
 0x1b4   : > { %8653 = vrot.lane.b32.xlu0 %v8652_v5, %s9696_s14 }
 0x1b6   : > { %8643 = vrot.lane.b32.xlu1 %v8642_v56, %s9695_s5 }
 0x1b8   : > { %8658 = vrot.lane.b32.xlu0 %v8657_v34, %s9695_s5 }
 0x1ba   : > { %8663 = vrot.lane.b32.xlu1 %v8662_v25, %s9696_s14  ;;  %v8994_v25 = vld [vmem:[%s12499_s1 + $0x260] ss:$8 sps:$4 sm:$0xff]   ;;  %s9745_s14 = smov 98  }
 0x200   : > { %v8589_v62 = vpop.permute.xlu1 %8588 }
 0x201   : > { %v8591_v18 = vunpack.i.h.bf16 %v8589_v62  ;;  %v8590_v57 = vunpack.i.l.bf16 %v8589_v62 }
 0x203   : > { %v1086_v15 = vsel %vm12507_vm8, %v8590_v57, %v8591_v18  ;;  %v1116_v29 = vsel %vm12507_vm8, -30.0, %v8590_v57 }
 0x204   : > { %v8594_v24 = vpop.permute.xlu1 %8593 }
 0x205   : > { %v8596_v23 = vunpack.i.h.bf16 %v8594_v24  ;;  %v8595_v8 = vunpack.i.l.bf16 %v8594_v24  ;;  %v9002_v24 = vld [vmem:[%s12499_s1 + $0x254] ss:$8 sps:$4 sm:$0xff]  }
 0x206   : > { %v8599_v11 = vpop.permute.xlu0 %8598 }
 0x207   : > { %v8600_v52 = vunpack.i.l.bf16 %v8599_v11  ;;  %v1152_v47 = vsel %vm1150_vm7, %v8595_v8, %v8596_v23  ;;  %v8601_v21 = vunpack.i.h.bf16 %v8599_v11 }
 0x208   : > { %v1184_v20 = vmax.f32 %v1086_v15, %v1152_v47 }
 0x209   : > { %v1151_v58 = vsel %vm1150_vm7, %v8600_v52, %v8595_v8 }
 0x20a   : > { %v8604_v33 = vpop.permute.xlu0 %8603  ;;  %v1183_v6 = vmax.f32 %v1116_v29, %v1151_v58  ;;  %v1200_v61 = vmax.f32 %v10193_v4, %v1184_v20 }
 0x20b   : > { %v8606_v26 = vunpack.i.h.bf16 %v8604_v33  ;;  %v8605_v10 = vunpack.i.l.bf16 %v8604_v33 }
 0x20c   : > { %v1199_v48 = vmax.f32 %v10181_v60, %v1183_v6  ;;  %v8991_v60 = vld [vmem:[%s12499_s1 + $0x270] ss:$8 sps:$4 sm:$0xff]  }
 0x20d   : > { %v1093_v37 = vsel %vm12507_vm8, %v8605_v10, %v8606_v26  ;;  %v1117_v42 = vsel %vm12507_vm8, -30.0, %v8605_v10 }
 0x20f   : > { %v8609_v41 = vpop.permute.xlu0 %8608 }
 0x210   : > { %v8611_v36 = vunpack.i.h.bf16 %v8609_v41  ;;  %v8610_v39 = vunpack.i.l.bf16 %v8609_v41  ;;  %v9000_v41 = vld [vmem:[%s12499_s1 + $0x250] ss:$8 sps:$4 sm:$0xff]  }
 0x212   : > { %v1158_v43 = vsel %vm1150_vm7, %v8601_v21, %v8610_v39  ;;  %v1159_v45 = vsel %vm1150_vm7, %v8610_v39, %v8611_v36 }
 0x213   : > { %v1191_v46 = vmax.f32 %v1117_v42, %v1158_v43  ;;  %v1192_v54 = vmax.f32 %v1093_v37, %v1159_v45 }
 0x215   : > { %v1208_v40 = vmax.f32 %v10260_v59, %v1192_v54  ;;  %v1207_v7 = vmax.f32 %v10252_v50, %v1191_v46  ;;  %v10542_v14 = vpop.permute.xlu1 %8613  ;;  %v8996_v59 = vld [vmem:[%s12499_s1 + $0x264] ss:$8 sps:$4 sm:$0xff]  }
 0x216   : > { %v8616_v30 = vunpack.i.h.bf16 %v10542_v14  ;;  %v8615_v38 = vunpack.i.l.bf16 %v10542_v14 }
 0x217   : > { %v1216_v22 = vpack.c.bf16 %v1208_v40, %v1200_v61  ;;  %v1215_v1 = vpack.c.bf16 %v1207_v7, %v1199_v48  ;;  %v9006_v48 = vld [vmem:[%s12499_s1 + $0x240] ss:$8 sps:$4 sm:$0xff]   ;;  %v9014_v7 = vld [vmem:[%s12499_s1 + $0x234] ss:$8 sps:$4 sm:$0xff]  }
 0x218   : > { %v10550_v4 = vpop.permute.xlu0 %8623  ;;  %v1087_v11 = vsel %vm12507_vm8, %v8591_v18, %v8615_v38 }
 0x219   : > { %2023 = vmatprep.mubr.bf16.mxu0 %v1216_v22  ;;  %v10552_v50 = vpop.permute.xlu1 %8618  ;;  %v8626_v13 = vunpack.i.h.bf16 %v10550_v4  ;;  %v8625_v5 = vunpack.i.l.bf16 %v10550_v4  ;;  %v9074_v4 = vld [vmem:[%s12499_s1 + $0x294] ss:$8 sps:$4 sm:$0xff]  }
 0x21a   : > { %2024 = vmatmul.mubr.bf16.vlgmr.msra.gmra.mxu0 %v1215_v1  ;;  %v8621_v27 = vunpack.i.h.bf16 %v10552_v50  ;;  %v8620_v49 = vunpack.i.l.bf16 %v10552_v50 }
 0x21b   : > { %2078 = vmatpush1.bf16.msra.mxu0 %v8985_v9  ;;  %v1094_v58 = vsel %vm12507_vm8, %v8606_v26, %v8625_v5  ;;  %v1095_v10 = vsel %vm12507_vm8, %v8625_v5, %v8626_v13  ;;  %v9008_v26 = vld [vmem:[%s12499_s1 + $0x244] ss:$8 sps:$4 sm:$0xff]  }
 0x21c   : > { %2079 = vmatprep.subr.bf16.mxu0 %v8993_v16  ;;  %v1153_v56 = vsel %vm1150_vm7, %v8596_v23, %v8620_v49  ;;  %v1154_v34 = vsel %vm1150_vm7, %v8620_v49, %v8621_v27  ;;  %v10570_v62 = vpop.permute.xlu0 %8628  ;;  %v1088_v23 = vsel %vm12507_vm8, %v8615_v38, %v8616_v30 }
 0x21d   : > { %v8631_v8 = vunpack.i.h.bf16 %v10570_v62  ;;  %v8630_v52 = vunpack.i.l.bf16 %v10570_v62  ;;  %v1185_v57 = vmax.f32 %v1087_v11, %v1153_v56  ;;  %v1186_v47 = vmax.f32 %v1088_v23, %v1154_v34  ;;  %v9012_v56 = vld [vmem:[%s12499_s1 + $0x230] ss:$8 sps:$4 sm:$0xff]   ;;  %v9020_v11 = vld [vmem:[%s12499_s1 + $0x224] ss:$8 sps:$4 sm:$0xff]   ;;  %v9066_v62 = vld [vmem:[%s12499_s1 + $0x2a0] ss:$8 sps:$4 sm:$0xff]  }
 0x21f   : > { %2080 = vmatpush1.bf16.msra.mxu0 %v8991_v60  ;;  %v1160_v18 = vsel %vm1150_vm7, %v8611_v36, %v8630_v52  ;;  %v1161_v15 = vsel %vm1150_vm7, %v8630_v52, %v8631_v8  ;;  %v1202_v37 = vmax.f32 %v10369_v19, %v1186_v47  ;;  %v1201_v43 = vmax.f32 %v10222_v31, %v1185_v57  ;;  %v8997_v31 = vld [vmem:[%s12499_s1 + $0x380] ss:$8 sps:$4 sm:$0xff]   ;;  %v9005_v60 = vld [vmem:[%s12499_s1 + $0x374] ss:$8 sps:$4 sm:$0xff]  }
 0x220   : > { %2081 = vmatprep.subr.bf16.mxu0 %v8996_v59  ;;  %v10581_v33 = vpop.permute.xlu1 %8633  ;;  %v1193_v29 = vmax.f32 %v1094_v58, %v1160_v18  ;;  %v1194_v39 = vmax.f32 %v1095_v10, %v1161_v15  ;;  %v9011_v58 = vld [vmem:[%s12499_s1 + $0x364] ss:$8 sps:$4 sm:$0xff]  }
 0x221   : > { %v8636_v36 = vunpack.i.h.bf16 %v10581_v33  ;;  %v8635_v6 = vunpack.i.l.bf16 %v10581_v33 }
 0x222   : > { %v10594_v21 = vpop.permute.xlu0 %8648  ;;  %v1210_v42 = vmax.f32 %v10411_v35, %v1194_v39  ;;  %v1209_v45 = vmax.f32 %v10303_v53, %v1193_v29 }
 0x223   : > { %2082 = vmatpush1.bf16.msra.mxu0 %v8994_v25  ;;  %v8651_v46 = vunpack.i.h.bf16 %v10594_v21  ;;  %v8650_v54 = vunpack.i.l.bf16 %v10594_v21  ;;  %v1090_v22 = vsel %vm12507_vm8, %v8635_v6, %v8636_v36  ;;  %v9003_v25 = vld [vmem:[%s12499_s1 + $0x370] ss:$8 sps:$4 sm:$0xff]   ;;  %v1089_v50 = vsel %vm12507_vm8, %v8616_v30, %v8635_v6  ;;  %v9071_v30 = vld [vmem:[%s12499_s1 + $0x3c4] ss:$8 sps:$4 sm:$0xff]  }
 0x224   : > { %2083 = vmatprep.subr.bf16.mxu0 %v9002_v24  ;;  %v10601_v20 = vpop.permute.xlu1 %8638  ;;  %v1218_v35 = vpack.c.bf16 %v1210_v42, %v1202_v37  ;;  %v1217_v53 = vpack.c.bf16 %v1209_v45, %v1201_v43 }
 0x225   : > { %v8641_v61 = vunpack.i.h.bf16 %v10601_v20  ;;  %v8640_v40 = vunpack.i.l.bf16 %v10601_v20  ;;  %v1097_v49 = vsel %vm12507_vm8, %v8650_v54, %v8651_v46  ;;  %v9083_v20 = vld [vmem:[%s12499_s1 + $0x394] ss:$8 sps:$4 sm:$0xff]  }
 0x226   : > { %v10614_v19 = vpop.permute.xlu0 %8653  ;;  %2066 = vmatprep.mubr.bf16.mxu1 %v1218_v35 }
 0x227   : > { %2084 = vmatpush1.bf16.msra.mxu0 %v9000_v41  ;;  %v1156_v9 = vsel %vm1150_vm7, %v8640_v40, %v8641_v61  ;;  %v8656_v1 = vunpack.i.h.bf16 %v10614_v19  ;;  %v8655_v16 = vunpack.i.l.bf16 %v10614_v19  ;;  %2067 = vmatmul.mubr.bf16.vlgmr.msra.gmra.mxu1 %v1217_v53  ;;  %v9024_v53 = vld [vmem:[%s12499_s1 + $0x210] ss:$8 sps:$4 sm:$0xff]  }
 0x228   : > { %2085 = vmatprep.subr.bf16.mxu0 %v9008_v26  ;;  %v10637_v59 = vpop.permute.xlu1 %8643  ;;  %v1188_v38 = vmax.f32 %v1090_v22, %v1156_v9  ;;  %2121 = vmatpush1.bf16.msra.mxu1 %v8997_v31  ;;  %v9018_v26 = vld [vmem:[%s12499_s1 + $0x220] ss:$8 sps:$4 sm:$0xff]  }
 0x229   : > { %v1163_v5 = vsel %vm1150_vm7, %v8655_v16, %v8656_v1  ;;  %v8646_v23 = vunpack.i.h.bf16 %v10637_v59  ;;  %v8645_v52 = vunpack.i.l.bf16 %v10637_v59  ;;  %2122 = vmatprep.subr.bf16.mxu1 %v9005_v60  ;;  %v9023_v60 = vld [vmem:[%s12499_s1 + $0x344] ss:$8 sps:$4 sm:$0xff]  }
 0x22a   : > { %v10652_v34 = vpop.permute.xlu0 %8658  ;;  %v1196_v24 = vmax.f32 %v1097_v49, %v1163_v5  ;;  %v1204_v18 = vmax.f32 %v10478_v12, %v1188_v38  ;;  %v9009_v12 = vld [vmem:[%s12499_s1 + $0x360] ss:$8 sps:$4 sm:$0xff]   ;;  %v9032_v38 = vld [vmem:[%s12499_s1 + $0x304] ss:$8 sps:$4 sm:$0xff]  }
 0x22b   : > { %2086 = vmatpush1.bf16.msra.mxu0 %v9006_v48  ;;  %v8661_v57 = vunpack.i.h.bf16 %v10652_v34  ;;  %v8660_v47 = vunpack.i.l.bf16 %v10652_v34  ;;  %v1092_v43 = vsel %vm12507_vm8, %v8645_v52, %v8646_v23  ;;  %v9017_v48 = vld [vmem:[%s12499_s1 + $0x354] ss:$8 sps:$4 sm:$0xff]   ;;  %v9030_v5 = vld [vmem:[%s12499_s1 + $0x300] ss:$8 sps:$4 sm:$0xff]   ;;  %v9035_v23 = vld [vmem:[%s12499_s1 + $0x324] ss:$8 sps:$4 sm:$0xff]   ;;  %v1091_v21 = vsel %vm12507_vm8, %v8636_v36, %v8645_v52 }
 0x22c   : > { %2087 = vmatprep.subr.bf16.mxu0 %v9014_v7  ;;  %v10667_v10 = vpop.permute.xlu1 %8663  ;;  %v1212_v15 = vmax.f32 %v10485_v2, %v1196_v24  ;;  %2123 = vmatpush1.bf16.msra.mxu1 %v9003_v25  ;;  %v9026_v2 = vld [vmem:[%s12499_s1 + $0x214] ss:$8 sps:$4 sm:$0xff]   ;;  %v9015_v7 = vld [vmem:[%s12499_s1 + $0x350] ss:$8 sps:$4 sm:$0xff]   ;;  %v10874_v59 = vld [vmem:[%s12500_s2] sm:$0xff]  ;;  %v9697_v52 = vmov 1  }
 0x22d   : > { %v1099_v41 = vsel %vm12507_vm8, %v8660_v47, %v8661_v57  ;;  %v8666_v29 = vunpack.i.h.bf16 %v10667_v10  ;;  %v8665_v39 = vunpack.i.l.bf16 %v10667_v10  ;;  %2124 = vmatprep.subr.bf16.mxu1 %v9011_v58  ;;  %v9036_v25 = vld [vmem:[%s12499_s1 + $0x2f0] ss:$8 sps:$4 sm:$0xff]   ;;  %v9042_v57 = vld [vmem:[%s12499_s1 + $0x2e0] ss:$8 sps:$4 sm:$0xff]   ;;  %8667 = vset.pattern.permute.xlu0 %v9697_v52 }
 0x22e   : > { %v1220_v37 = vpack.c.bf16 %v1212_v15, %v1204_v18  ;;  %v9027_v24 = vld [vmem:[%s12499_s1 + $0x330] ss:$8 sps:$4 sm:$0xff]   ;;  %v9033_v58 = vld [vmem:[%s12499_s1 + $0x320] ss:$8 sps:$4 sm:$0xff]   ;;  %v9050_v18 = vld [vmem:[%s12499_s1 + $0x2d4] ss:$8 sps:$4 sm:$0xff]   ;;  %2285 = vperm.xlu0 %8667, %v10874_v59  }
 0x22f   : > { %2088 = vmatpush1.bf16.msra.mxu0 %v9012_v56  ;;  %v1182_v42 = vsel %vm1150_vm7, %v8666_v29, -30.0  ;;  %v1181_v45 = vsel %vm1150_vm7, %v8665_v39, -30.0  ;;  %v9029_v56 = vld [vmem:[%s12499_s1 + $0x334] ss:$8 sps:$4 sm:$0xff]  }
 0x230   : > { %2089 = vmatprep.subr.bf16.mxu0 %v9020_v11  ;;  %v1198_v35 = vmax.f32 %v1099_v41, %v1182_v42  ;;  %v1190_v31 = vmax.f32 %v1092_v43, %v1181_v45  ;;  %2109 = vmatprep.mubr.bf16.mxu0 %v1220_v37  ;;  %v9044_v11 = vld [vmem:[%s12499_s1 + $0x2e4] ss:$8 sps:$4 sm:$0xff]   ;;  %v9041_v15 = vld [vmem:[%s12499_s1 + $0x314] ss:$8 sps:$4 sm:$0xff]   ;;  %v9048_v41 = vld [vmem:[%s12499_s1 + $0x2d0] ss:$8 sps:$4 sm:$0xff]  }
 0x231   : > { %2125 = vmatpush1.bf16.msra.mxu1 %v9009_v12  ;;  %v9056_v37 = vld [vmem:[%s12499_s1 + $0x2c4] ss:$8 sps:$4 sm:$0xff]   ;;  %v9045_v42 = vld [vmem:[%s12499_s1 + $0x400] ss:$8 sps:$4 sm:$0xff]   ;;  %v9062_v43 = vld [vmem:[%s12499_s1 + $0x2b4] ss:$8 sps:$4 sm:$0xff]  }
 0x232   : > { %v1206_v22 = vmax.f32 %v10510_v17, %v1190_v31  ;;  %v1214_v9 = vmax.f32 %v10512_v51, %v1198_v35  ;;  %2126 = vmatprep.subr.bf16.mxu1 %v9017_v48  ;;  %v9021_v17 = vld [vmem:[%s12499_s1 + $0x340] ss:$8 sps:$4 sm:$0xff]   ;;  %v9038_v51 = vld [vmem:[%s12499_s1 + $0x2f4] ss:$8 sps:$4 sm:$0xff]   ;;  %v9047_v12 = vld [vmem:[%s12499_s1 + $0x404] ss:$8 sps:$4 sm:$0xff]  }
 0x233   : > { %2090 = vmatpush1.bf16.msra.mxu0 %v9018_v26  ;;  %v9039_v26 = vld [vmem:[%s12499_s1 + $0x310] ss:$8 sps:$4 sm:$0xff]   ;;  %v9053_v45 = vld [vmem:[%s12499_s1 + $0x3f4] ss:$8 sps:$4 sm:$0xff]   ;;  %v9068_v31 = vld [vmem:[%s12499_s1 + $0x2a4] ss:$8 sps:$4 sm:$0xff]  }
 0x234   : > { %2091 = vmatprep.subr.bf16.mxu0 %v9026_v2  ;;  %v1222_v49 = vpack.c.bf16 %v1214_v9, %v1206_v22  ;;  %v9054_v2 = vld [vmem:[%s12499_s1 + $0x2c0] ss:$8 sps:$4 sm:$0xff]   ;;  %v9060_v48 = vld [vmem:[%s12499_s1 + $0x2b0] ss:$8 sps:$4 sm:$0xff]   ;;  %v1096_v22 = vsel %vm12507_vm8, %v8626_v13, %v8650_v54  ;;  %v1155_v9 = vsel %vm1150_vm7, %v8621_v27, %v8640_v40  ;;  %v9065_v27 = vld [vmem:[%s12499_s1 + $0x3d4] ss:$8 sps:$4 sm:$0xff]  }
 0x235   : > { %2127 = vmatpush1.bf16.msra.mxu1 %v9015_v7  ;;  %v9051_v35 = vld [vmem:[%s12499_s1 + $0x3f0] ss:$8 sps:$4 sm:$0xff]   ;;  %v9059_v7 = vld [vmem:[%s12499_s1 + $0x3e4] ss:$8 sps:$4 sm:$0xff]   ;;  %v1187_v13 = vmax.f32 %v1089_v50, %v1155_v9 }
 0x236   : > { %2152 = vmatprep.mubr.bf16.mxu1 %v1222_v49  ;;  %2128 = vmatprep.subr.bf16.mxu1 %v9023_v60  ;;  %v9072_v54 = vld [vmem:[%s12499_s1 + $0x290] ss:$8 sps:$4 sm:$0xff]   ;;  %v9069_v60 = vld [vmem:[%s12499_s1 + $0x3c0] ss:$8 sps:$4 sm:$0xff]   ;;  %v9077_v49 = vld [vmem:[%s12499_s1 + $0x3b4] ss:$8 sps:$4 sm:$0xff]  }
 0x237   : > { %2092 = vmatpush1.bf16.msra.mxu0 %v9024_v53  ;;  %v1162_v53 = vsel %vm1150_vm7, %v8631_v8, %v8655_v16  ;;  %v9057_v16 = vld [vmem:[%s12499_s1 + $0x3e0] ss:$8 sps:$4 sm:$0xff]   ;;  %v9063_v40 = vld [vmem:[%s12499_s1 + $0x3d0] ss:$8 sps:$4 sm:$0xff]   ;;  %v1203_v6 = vmax.f32 %v10403_v44, %v1187_v13 }
 0x238   : > { %2093 = vmatprep.subr.bf16.mxu0 %v9032_v38  ;;  %v1195_v8 = vmax.f32 %v1096_v22, %v1162_v53  ;;  %v9075_v44 = vld [vmem:[%s12499_s1 + $0x3b0] ss:$8 sps:$4 sm:$0xff]  }
 0x239   : > { %2129 = vmatpush1.bf16.msra.mxu1 %v9021_v17  ;;  %v1164_v17 = vsel %vm1150_vm7, %v8656_v1, %v8666_v29 }
 0x23a   : > { %2130 = vmatprep.subr.bf16.mxu1 %v9029_v56  ;;  %v1211_v14 = vmax.f32 %v10442_v28, %v1195_v8  ;;  %v9080_v28 = vld [vmem:[%s12499_s1 + $0x3a4] ss:$8 sps:$4 sm:$0xff]  }
 0x23b   : > { %2094 = vmatpush2.bf16.msra.mxu0 %v9030_v5  ;;  %v1098_v5 = vsel %vm12507_vm8, %v8651_v46, %v8660_v47  ;;  %v9078_v46 = vld [vmem:[%s12499_s1 + $0x3a0] ss:$8 sps:$4 sm:$0xff]  }
 0x23c   : > { %2095 = vmatprep.subr.bf16.mxu0 %v9038_v51  ;;  %v1219_v38 = vpack.c.bf16 %v1211_v14, %v1203_v6  ;;  %v1157_v51 = vsel %vm1150_vm7, %v8641_v61, %v8665_v39  ;;  %v1197_v19 = vmax.f32 %v1098_v5, %v1164_v17  ;;  %v9081_v61 = vld [vmem:[%s12499_s1 + $0x390] ss:$8 sps:$4 sm:$0xff]   ;;  %v9703_v17 = vmov 3  }
 0x23d   : > { %2131 = vmatpush1.bf16.msra.mxu1 %v9027_v24  ;;  %v1189_v34 = vmax.f32 %v1091_v21, %v1157_v51  ;;  %8708 = vset.pattern.permute.xlu0 %v9703_v17  ;;  %v2176_v51 = vand.u32 15, %v10104_v55  ;;  %v2169_v21 = vand.u32 15, %v10101_v3 }
 0x23e   : > { %2132 = vmatprep.subr.bf16.mxu1 %v9035_v23  ;;  %v1213_v36 = vmax.f32 %v10501_v63, %v1197_v19 }
 0x23f   : > { %2096 = vmatpush2.bf16.msra.mxu0 %v9036_v25  ;;  %v1205_v33 = vmax.f32 %v10492_v32, %v1189_v34  ;;  %vm10901_vm11 = vcmp.lt.s32.totalorder %v2176_v51, 15  ;;  %vm10905_vm12 = vcmp.lt.s32.totalorder %v2169_v21, 15  ;;  %vm10915_vm15 = vcmp.gt.s32.totalorder %v2176_v51, 0 }
 0x240   : > { %2097 = vmatprep.subr.bf16.mxu0 %v9044_v11  ;;  %vm10920_vm3 = vcmp.gt.s32.totalorder %v2169_v21, 0  ;;  %vm10930_vm4 = vmpackc.low %vm12503_vm1, %vm10915_vm15 }
 0x241   : > { %2133 = vmatpush1.bf16.msra.mxu1 %v9033_v58  ;;  %v1221_v1 = vpack.c.bf16 %v1213_v36, %v1205_v33  ;;  %vm10938_vm7 = vmpackc.low %vm9705_vm6, %vm10920_vm3 }
 0x242   : > { %2134 = vmatprep.subr.bf16.mxu1 %v9041_v15  ;;  %vm12510_vm8 = vmpackc.low %vm10920_vm3, %vm10905_vm12 }
 0x243   : > { %2098 = vmatpush2.bf16.msra.mxu0 %v9042_v57 }
 0x244   : > { %2099 = vmatprep.subr.bf16.mxu0 %v9050_v18 }
 0x245   : > { %2135 = vmatpush1.bf16.msra.mxu1 %v9039_v26 }
 0x246   : > { %2136 = vmatprep.subr.bf16.mxu1 %v9047_v12 }
 0x247   : > { %2100 = vmatpush2.bf16.msra.mxu0 %v9048_v41 }
 0x248   : > { %2101 = vmatprep.subr.bf16.mxu0 %v9056_v37 }
 0x249   : > { %2137 = vmatpush2.bf16.msra.mxu1 %v9045_v42 }
 0x24a   : > { %2138 = vmatprep.subr.bf16.mxu1 %v9053_v45 }
 0x24b   : > { %2102 = vmatpush2.bf16.msra.mxu0 %v9054_v2 }
 0x24c   : > { %2103 = vmatprep.subr.bf16.mxu0 %v9062_v43 }
 0x24d   : > { %2139 = vmatpush2.bf16.msra.mxu1 %v9051_v35 }
 0x24e   : > { %2140 = vmatprep.subr.bf16.mxu1 %v9059_v7 }
 0x24f   : > { %2104 = vmatpush2.bf16.msra.mxu0 %v9060_v48 }
 0x250   : > { %2105 = vmatprep.subr.bf16.mxu0 %v9068_v31 }
 0x251   : > { %2141 = vmatpush2.bf16.msra.mxu1 %v9057_v16 }
 0x252   : > { %2142 = vmatprep.subr.bf16.mxu1 %v9065_v27 }
 0x253   : > { %2106 = vmatpush2.bf16.msra.mxu0 %v9066_v62  ;;  %v9084_v62 = vld [vmem:[%s12499_s1 + $0x410] ss:$8 sps:$4 sm:$0xff]  }
 0x254   : > { %2107 = vmatprep.subr.bf16.mxu0 %v9074_v4 }
 0x255   : > { %2143 = vmatpush2.bf16.msra.mxu1 %v9063_v40 }
 0x256   : > { %2144 = vmatprep.subr.bf16.mxu1 %v9071_v30 }
 0x257   : > { %2108 = vmatpush2.bf16.msra.mxu0 %v9072_v54 }
 0x259   : > { %2145 = vmatpush2.bf16.msra.mxu1 %v9069_v60 }
 0x25a   : > { %2110 = vmatmul.mubr.bf16.vlgmr.msra.gmra.mxu0 %v1219_v38  ;;  %2146 = vmatprep.subr.bf16.mxu1 %v9077_v49 }
 0x25b   : > { %2253 = vmatprep.mubr.bf16.mxu0 %v9692_v0 }
 0x25d   : > { %2147 = vmatpush2.bf16.msra.mxu1 %v9075_v44 }
 0x25e   : > { %2148 = vmatprep.subr.bf16.mxu1 %v9080_v28 }
 0x261   : > { %2149 = vmatpush2.bf16.msra.mxu1 %v9078_v46 }
 0x262   : > { %2150 = vmatprep.subr.bf16.mxu1 %v9083_v20 }
 0x265   : > { %2151 = vmatpush2.bf16.msra.mxu1 %v9081_v61 }
 0x268   : > { %2153 = vmatmul.mubr.bf16.vlgmr.msra.gmra.mxu1 %v1221_v1 }
 0x269   : > { %2453 = vmatprep.mubr.bf16.mxu1 %v9692_v0 }
 0x2a9   : > { %v2286_v8 = vpop.permute.xlu0 %2285 }
 0x2da   : > { %v2025_v47 = vpop.f32.mrf.mxu0 }
 0x2dc   : > { %v2027_v10 = vpop.f32.mrf.mxu0 }
 0x2de   : > { %v2029_v29 = vpop.f32.mrf.mxu0 }
 0x2e0   : > { %v2031_v39 = vpop.f32.mrf.mxu0 }
 0x2e7   : > { %v2068_v32 = vpop.f32.mrf.mxu1 }
 0x2e8   : > { %v2069_v37 = vadd.f32 %v2068_v32, %v2025_v47  ;;  %v3083_v32 = vld [vmem:[%s12499_s1 + $0x4d0] sm:$0xff] }
 0x2e9   : > { %v2070_v63 = vpop.f32.mrf.mxu1 }
 0x2ea   : > { %v2071_v41 = vadd.f32 %v2070_v63, %v2027_v10 }
 0x2eb   : > { %v2072_v25 = vpop.f32.mrf.mxu1 }
 0x2ec   : > { %v2073_v58 = vadd.f32 %v2072_v25, %v2029_v29 }
 0x2ed   : > { %v2074_v11 = vpop.f32.mrf.mxu1 }
 0x2ee   : > { %v2075_v26 = vadd.f32 %v2074_v11, %v2031_v39 }
 0x31a   : > { %v2111_v56 = vpop.f32.mrf.mxu0 }
 0x31b   : > { %v2112_v45 = vadd.f32 %v2111_v56, %v2069_v37 }
 0x31c   : > { %v2113_v24 = vpop.f32.mrf.mxu0 }
 0x31d   : > { %v2114_v42 = vadd.f32 %v2113_v24, %v2071_v41 }
 0x31e   : > { %v2115_v23 = vpop.f32.mrf.mxu0 }
 0x31f   : > { %v2116_v12 = vadd.f32 %v2115_v23, %v2073_v58 }
 0x320   : > { %v2117_v18 = vpop.f32.mrf.mxu0 }
 0x321   : > { %v2118_v43 = vadd.f32 %v2117_v18, %v2075_v26 }
 0x328   : > { %v2154_v57 = vpop.f32.mrf.mxu1 }
 0x329   : > { %v2155_v7 = vadd.f32 %v2154_v57, %v2112_v45 }
 0x32a   : > { %v2156_v15 = vpop.f32.mrf.mxu1 }
 0x32b   : > { %v2157_v31 = vadd.f32 %v2156_v15, %v2114_v42 }
 0x32c   : > { %v2158_v2 = vpop.f32.mrf.mxu1 }
 0x32d   : > { %v2159_v48 = vadd.f32 %v2158_v2, %v2116_v12 }
 0x32e   : > { %v2160_v35 = vpop.f32.mrf.mxu1 }
 0x32f   : > { %v2161_v53 = vadd.f32 %v2160_v35, %v2118_v43  ;;  %v2163_v9 = vpack.c.bf16 %v2159_v48, %v2155_v7 }
 0x331   : > { %v2164_v22 = vpack.c.bf16 %v2161_v53, %v2157_v31 }
 0x333   : > { %2235 = vmatprep.subr.bf16.mxu0 %v2164_v22 }
 0x334   : > { %2236 = vmatpush1.bf16.msra.mxu0 %v2163_v9 }
 0x337   : > { %7544 = vmatmul.mubr.msk.bf16.vlgmr.msra.gmra.mxu0 %vm12516_vm9, %v9084_v62 }
 0x338   : > { %2263 = vmatprep.mubr.bf16.mxu0 %v9692_v0 }
 0x3f7   : > { %v2255_v16 = vpop.f32.mrf.mxu0 }
 0x3f8   : > { %v2288_v4 = vadd.f32 %v2286_v8, %v2255_v16 }
 0x3f9   : > { %v2257_v50 = vpop.f32.mrf.mxu0 }
 0x3fa   : > { %v7547_v27 = vmul.f32 -1.442695, %v2288_v4  ;;  %v2289_v13 = vadd.f32 %v2286_v8, %v2257_v50 }
 0x3fc   : > { %9245 = vpow2.f32 %v7547_v27  ;;  %v7548_v54 = vmul.f32 -1.442695, %v2289_v13 }
 0x3fe   : > { %9247 = vpow2.f32 %v7548_v54 }
 0x409   : > { %v9246_v40 = vpop.eup %9245 }
 0x40a   : > { %v2296_v14 = vadd.f32 1.0, %v9246_v40 }
 0x40b   : > { %v9248_v30 = vpop.eup %9247 }
 0x40c   : > { %9249 = vrcp.f32 %v2296_v14  ;;  %v2297_v6 = vadd.f32 1.0, %v9248_v30 }
 0x40e   : > { %9251 = vrcp.f32 %v2297_v6 }
 0x419   : > { %v9250_v60 = vpop.eup %9249 }
 0x41a   : > { %v10882_v49 = vmul.f32 %v9250_v60, %v2288_v4 }
 0x41b   : > { %v9252_v38 = vpop.eup %9251 }
 0x41c   : > { %v10884_v44 = vmul.f32 %v9252_v38, %v2289_v13  ;;  %v9109_v38 = vld [vmem:[%s12499_s1 + $0x4e0] ss:$8 sps:$4 sm:$0xff]  }
 0x41e   : > { %v8678_v28 = vpack.i.bf16 %v10884_v44, %v10882_v49  ;;  %v8673_v5 = vpack.i.bf16 %v10882_v49, %v10884_v44 }
 0x420   : > { %8679 = vrot.lane.b32.xlu0 %v8678_v28, %s9698_s9  ;;  %8669 = vrot.lane.b32.xlu1 %v8678_v28, %s9699_s10 }
 0x424   : > { %8689 = vrot.lane.b32.xlu0 %v8678_v28, %s9700_s11  ;;  %8674 = vrot.lane.b32.xlu1 %v8673_v5, %s9701_s15 }
 0x428   : > { %8699 = vrot.lane.b32.xlu0 %v8678_v28, %s9702_s16  ;;  %8684 = vrot.lane.b32.xlu1 %v8673_v5, %s9694_s25 }
 0x42c   : > { %8694 = vrot.lane.b32.xlu1 %v8678_v28, %s9693_s24  ;;  %2407 = vperm.xlu0 %8708, %v10874_v59  }
 0x430   : > { %8704 = vrot.lane.b32.xlu1 %v8678_v28, %s9704_s17 }
 0x492   : > { %v8680_v46 = vpop.permute.xlu0 %8679  ;;  %v8670_v19 = vpop.permute.xlu1 %8669 }
 0x493   : > { %v8672_v20 = vunpack.i.h.bf16 %v8670_v19  ;;  %v8671_v61 = vunpack.i.l.bf16 %v8670_v19  ;;  %v8682_v39 = vunpack.i.h.bf16 %v8680_v46  ;;  %v8681_v63 = vunpack.i.l.bf16 %v8680_v46  ;;  %v2405_v46 = vld [vmem:[%s12499_s1 + $0x440] sm:$0xff]  ;;  %v11024_v19 = vld [vmem:[%s12500_s2 + $0x10] sm:$0xff] }
 0x495   : > { %v2392_v36 = vsel %vm12505_vm10, %v8672_v20, 0.0  ;;  %v2389_v1 = vsel %vm12505_vm10, %v8671_v61, %v8672_v20  ;;  %v2380_v42 = vsel %vm12503_vm1, %v8681_v63, %v8682_v39  ;;  %vm10949_vm1 = vmpackc.low %vm10901_vm11, %vm9705_vm6  ;;  %v9706_v20 = vmov 4   ;;  %v11031_v61 = vld [vmem:[%s12500_s2 + $0x18] sm:$0xff] }
 0x496   : > { %v2394_v55 = vsel %vm10901_vm11, %v2392_v36, 0.0  ;;  %v8675_v52 = vpop.permute.xlu1 %8674  ;;  %v2393_v47 = vsel %vm10905_vm12, %v2389_v1, 0.0  ;;  %v8690_v56 = vpop.permute.xlu0 %8689  ;;  %vm7562_vm10 = vmpackc.low %vm10915_vm15, %vm10901_vm11  ;;  %8709 = vset.pattern.permute.xlu1 %v9706_v20  ;;  %8710 = vset.pattern.permute.xlu0 %v9706_v20  ;;  %v11038_v36 = vld [vmem:[%s12500_s2 + $0x8] sm:$0xff]  ;;  %v9088_v20 = vld [vmem:[%s12499_s1 + $0x430] ss:$0 sps:$4 sm:$0xff]  }
 0x497   : > { %v2404_v10 = vpack.c.bf16 %v2394_v55, %v2394_v55  ;;  %v8677_v29 = vunpack.i.h.bf16 %v8675_v52  ;;  %v8676_v25 = vunpack.i.l.bf16 %v8675_v52  ;;  %v2403_v24 = vpack.c.bf16 %v2393_v47, %v2393_v47  ;;  %2498 = vperm.xlu1 %8709, %v11024_v19   ;;  %2488 = vperm.xlu0 %8710, %v10874_v59  }
 0x498   : > { %v8692_v37 = vunpack.i.h.bf16 %v8690_v56  ;;  %v8691_v12 = vunpack.i.l.bf16 %v8690_v56 }
 0x499   : > { %7549 = vmatprep.subr.msk.bf16.mxu1 %vm2414_vm13, %v2404_v10  ;;  %v2369_v23 = vsel %vm12502_vm14, %v8677_v29, %v8676_v25  ;;  %v2372_v57 = vsel %vm12502_vm14, %v8676_v25, 0.0  ;;  %v2416_v18 = vsel %vm2414_vm13, %v2403_v24, 0  ;;  %vm12509_vm14 = vcmask 121856  }
 0x49a   : > { %v8685_v58 = vpop.permute.xlu1 %8684  ;;  %v7551_v41 = vpack.c.bf16 %v8682_v39, %v2372_v57  ;;  %2428 = vmatpush1.bf16.msra.mxu1 %v2416_v18  ;;  %v7554_v45 = vpack.c.bf16 %v2380_v42, %v2369_v23  ;;  %v8700_v48 = vpop.permute.xlu0 %8699  ;;  %v2334_v8 = vsel %vm12509_vm14, %v8691_v12, %v8692_v37  ;;  %v2337_v60 = vsel %vm12509_vm14, 0.0, %v8691_v12  ;;  %vm10995_vm14 = vmneg %vm12516_vm9  ;;  %v9085_v42 = vld [vmem:[%s12499_s1 + $0x450] ss:$8 sps:$4 sm:$0xff]  }
 0x49b   : > { %v8687_v26 = vunpack.i.h.bf16 %v8685_v58  ;;  %v8686_v2 = vunpack.i.l.bf16 %v8685_v58  ;;  %v8702_v4 = vunpack.i.h.bf16 %v8700_v48  ;;  %v8701_v50 = vunpack.i.l.bf16 %v8700_v48  ;;  %2503 = vperm.xlu1 %8709, %v11031_v61   ;;  %8712 = vset.pattern.permute.xlu0 %v9692_v0  ;;  %v9087_v48 = vld [vmem:[%s12499_s1 + $0x420] ss:$8 sps:$4 sm:$0xff]  }
 0x49c   : > { %7552 = vmatprep.subr.msk.bf16.mxu1 %vm10930_vm4, %v7551_v41  ;;  %7545 = vmatmul.mubr.msk.bf16.gmra.mxu0 %vm12516_vm9, %v9087_v48 }
 0x49d   : > { %v2358_v35 = vsel %vm12504_vm5, %v8687_v26, %v8686_v2  ;;  %v2361_v31 = vsel %vm12504_vm5, %v8686_v2, 0.0  ;;  %vm10960_vm5 = vmpackc.low %vm10905_vm12, %vm9705_vm6  ;;  %v2314_v51 = vsel %vm12518_vm0, 0.0, %v8701_v50  ;;  %2273 = vmatprep.mubr.bf16.mxu0 %v9692_v0 }
 0x49e   : > { %v8695_v53 = vpop.permute.xlu1 %8694  ;;  %v7557_v22 = vpack.c.bf16 %v2361_v31, %v10884_v44  ;;  %7555 = vmatpush1.bf16.msk.msra.mxu1 %vm10938_vm7, %v7554_v45  ;;  %v7560_v27 = vpack.c.bf16 %v2358_v35, %v10882_v49  ;;  %v2311_v49 = vsel %vm12518_vm0, %v8701_v50, %v8702_v4  ;;  %v9086_v45 = vld [vmem:[%s12499_s1 + $0x460] ss:$8 sps:$4 sm:$0xff]   ;;  %vm12582_vm0 = vcmask 1039360  }
 0x49f   : > { %v8697_v9 = vunpack.i.h.bf16 %v8695_v53  ;;  %v8696_v62 = vunpack.i.l.bf16 %v8695_v53  ;;  %2493 = vperm.xlu1 %8709, %v11038_v36  }
 0x4a0   : > { %7558 = vmatprep.subr.msk.bf16.mxu1 %vm10949_vm1, %v7557_v22 }
 0x4a1   : > { %v2348_v13 = vsel %vm12508_vm2, %v8696_v62, %v8697_v9  ;;  %v2351_v54 = vsel %vm12508_vm2, 0.0, %v8696_v62  ;;  %vm10988_vm2 = vmpackc.low %vm9705_vm6, %vm10915_vm15  ;;  %vm3425_vm15 = vcmask 523264  }
 0x4a2   : > { %v8705_v40 = vpop.permute.xlu1 %8704  ;;  %v7563_v14 = vpack.c.bf16 %v2348_v13, %v2334_v8  ;;  %7561 = vmatpush1.bf16.msk.msra.mxu1 %vm10960_vm5, %v7560_v27  ;;  %v7566_v44 = vpack.c.bf16 %v2351_v54, %v2337_v60  ;;  %vm12515_vm6 = vmpackc.low %vm10995_vm14, %vm10920_vm3 }
 0x4a3   : > { %v8707_v30 = vunpack.i.h.bf16 %v8705_v40  ;;  %v8706_v6 = vunpack.i.l.bf16 %v8705_v40 }
 0x4a4   : > { %7564 = vmatprep.subr.msk.bf16.mxu1 %vm7562_vm10, %v7563_v14  ;;  %7546 = vmatmul.mubr.msk.bf16.gmra.mxu0 %vm12516_vm9, %v9088_v20 }
 0x4a5   : > { %v2325_v28 = vsel %vm12516_vm9, %v8706_v6, %v8707_v30  ;;  %v7573_v21 = vpack.c.bf16 %v8706_v6, %v2314_v51 }
 0x4a6   : > { %v7569_v17 = vpack.c.bf16 %v2325_v28, %v2311_v49  ;;  %7567 = vmatpush1.bf16.msk.msra.mxu1 %vm12510_vm8, %v7566_v44  ;;  %vm12511_vm8 = vcmask 588800  }
 0x4a7   : > { %v2408_v1 = vpop.permute.xlu0 %2407 }
 0x4a8   : > { %7570 = vmatprep.subr.msk.bf16.mxu1 %vm10988_vm2, %v7569_v17 }
 0x4aa   : > { %7574 = vmatpush1.bf16.msk.msra.mxu1 %vm12515_vm6, %v7573_v21  ;;  %vm12572_vm6 = vcmask 1040384  }
 0x4ab   : > { %vm12573_vm9 = vmmov %vm12572_vm6 }
 0x4ad   : > { %7575 = vmatmul.mubr.msk.bf16.vlgmr.msra.gmra.mxu1 %vm12511_vm8, %v2405_v46  ;;  %vm12512_vm8 = vcmask 64512  }
 0x4ae   : > { %2561 = vmatprep.mubr.bf16.mxu1 %v9692_v0 }
 0x512   : > { %v2499_v35 = vpop.permute.xlu1 %2498  ;;  %v2489_v44 = vpop.permute.xlu0 %2488 }
 0x516   : > { %v2504_v9 = vpop.permute.xlu1 %2503 }
 0x51a   : > { %v2494_v13 = vpop.permute.xlu1 %2493 }
 0x56d   : > { %v2455_v55 = vpop.f32.mrf.mxu1 }
 0x56e   : > { %v2456_v52 = vadd.f32 %v2455_v55, %v2408_v1  ;;  %v11092_v55 = vld [vmem:[%s12500_s2] sm:$0x3] }
 0x56f   : > { %v2457_v47 = vpop.f32.mrf.mxu1 }
 0x570   : > { %v7576_v10 = vmul.f32 -1.442695, %v2456_v52  ;;  %v2458_v29 = vadd.f32 %v2457_v47, %v2408_v1  ;;  %v9707_v1 = vmov 0.0  }
 0x571   : > { %v2459_v39 = vpop.f32.mrf.mxu1  ;;  %8106 = vmatprep.subr.bf16.mxu0 %v9707_v1 }
 0x572   : > { %9253 = vpow2.f32 %v7576_v10  ;;  %v7577_v63 = vmul.f32 -1.442695, %v2458_v29 }
 0x573   : > { %v2460_v56 = vpop.f32.mrf.mxu1 }
 0x574   : > { %9255 = vpow2.f32 %v7577_v63 }
 0x57f   : > { %v9254_v25 = vpop.eup %9253 }
 0x580   : > { %v2468_v24 = vadd.f32 1.0, %v9254_v25 }
 0x581   : > { %v9256_v23 = vpop.eup %9255 }
 0x582   : > { %9257 = vrcp.f32 %v2468_v24  ;;  %v2469_v57 = vadd.f32 1.0, %v9256_v23 }
 0x584   : > { %9259 = vrcp.f32 %v2469_v57  ;;  %v2599_v57 = vld [vmem:[%s12499_s1 + $0x470] sm:$0x11] }
 0x58f   : > { %v9258_v58 = vpop.eup %9257 }
 0x590   : > { %v2474_v18 = vmul.f32 %v9258_v58, %v2456_v52  ;;  %v11101_v58 = vpop.f32.mrf.mxu0 }
 0x591   : > { %v9260_v41 = vpop.eup %9259 }
 0x592   : > { %v2480_v26 = vpack.c.bf16 %v2474_v18, %v2474_v18  ;;  %v2475_v37 = vmul.f32 %v9260_v41, %v2458_v29  ;;  %v11103_v18 = vpop.f32.mrf.mxu0 }
 0x594   : > { %v2481_v12 = vpack.c.bf16 %v2475_v37, %v2475_v37  ;;  %v2524_v2 = vsel %vm2414_vm13, %v2480_v26, 0  ;;  %v11105_v41 = vpop.f32.mrf.mxu0 }
 0x596   : > { %7580 = vmatprep.subr.msk.bf16.mxu1 %vm2414_vm13, %v2481_v12  ;;  %v11107_v26 = vpop.f32.mrf.mxu0 }
 0x597   : > { %2544 = vmatpush1.bf16.msra.mxu1 %v2524_v2 }
 0x598   : > { %v11109_v37 = vpop.f32.mrf.mxu0 }
 0x59a   : > { %7581 = vmatmul.mubr.msk.bf16.vlgmr.msra.gmra.mxu1 %vm12512_vm8, %v9085_v42  ;;  %v11111_v12 = vpop.f32.mrf.mxu0 }
 0x59b   : > { %2571 = vmatprep.mubr.bf16.mxu1 %v9692_v0 }
 0x59c   : > { %v11113_v2 = vpop.f32.mrf.mxu0 }
 0x59e   : > { %v11115_v42 = vpop.f32.mrf.mxu0 }
 0x5a2   : > { %7582 = vmatmul.mubr.msk.bf16.gmra.mxu1 %vm12512_vm8, %v9086_v45  ;;  %vm12513_vm8 = vmmov 0   ;;  %v2279_v45 = vpop.f32.mrf.mxu0 }
 0x5a3   : > { %2946 = vmatprep.mubr.bf16.mxu1 %v9692_v0  ;;  %8110 = vmatprep.mubr.msk.bf16.mxu0 %vm12513_vm8, %v9707_v1  ;;  %vm12571_vm8 = vcmask 261120  }
 0x5a4   : > { %v2280_v48 = vpop.f32.mrf.mxu0 }
 0x65a   : > { %v2563_v31 = vpop.f32.mrf.mxu1 }
 0x65b   : > { %v11078_v21 = vadd.f32 %v2563_v31, %v2489_v44 }
 0x65c   : > { %v2565_v53 = vpop.f32.mrf.mxu1 }
 0x65d   : > { %v11072_v28 = vadd.f32 %v2565_v53, %v2489_v44 }
 0x65e   : > { %v2567_v22 = vpop.f32.mrf.mxu1 }
 0x65f   : > { %v11066_v6 = vadd.f32 %v2567_v22, %v2494_v13  ;;  %v2582_v46 = vadd.f32 %v11072_v28, %v11078_v21 }
 0x660   : > { %v2569_v62 = vpop.f32.mrf.mxu1 }
 0x661   : > { %v11062_v40 = vadd.f32 %v2569_v62, %v2494_v13 }
 0x662   : > { %v2573_v8 = vpop.f32.mrf.mxu1 }
 0x663   : > { %v11058_v50 = vadd.f32 %v2573_v8, %v2499_v35  ;;  %v2585_v51 = vadd.f32 %v11062_v40, %v11066_v6 }
 0x664   : > { %v2575_v4 = vpop.f32.mrf.mxu1 }
 0x665   : > { %v11060_v27 = vadd.f32 %v2575_v4, %v2499_v35  ;;  %v9089_v35 = vld [vmem:[%s12499_s1 + $0x480] ss:$8 sps:$4 sm:$0xff]  }
 0x666   : > { %v2577_v54 = vpop.f32.mrf.mxu1 }
 0x667   : > { %v2588_v14 = vadd.f32 %v11060_v27, %v11058_v50  ;;  %v11068_v60 = vadd.f32 %v2577_v54, %v2504_v9 }
 0x668   : > { %v2579_v30 = vpop.f32.mrf.mxu1 }
 0x669   : > { %v11070_v49 = vadd.f32 %v2579_v30, %v2504_v9  ;;  %2589 = vadd.xlane.f32.xlu1 %v2588_v14 }
 0x66b   : > { %v2591_v17 = vadd.f32 %v11070_v49, %v11068_v60 }
 0x66d   : > { %2592 = vadd.xlane.f32.xlu0 %v2591_v17  ;;  %2586 = vadd.xlane.f32.xlu1 %v2585_v51  ;;  %v9090_v51 = vld [vmem:[%s12499_s1 + $0x490] ss:$8 sps:$4 sm:$0xff]  }
 0x671   : > { %2583 = vadd.xlane.f32.xlu0 %v2582_v46  ;;  %v9711_v46 = vmov 2  }
 0x672   : > { %8711 = vset.pattern.permute.xlu1 %v9711_v46 }
 0x67e   : > { %2676 = vrot.lane.b32.xlu1 %v11024_v19, %s9710_s22 }
 0x682   : > { %2678 = vrot.lane.b32.xlu1 %v11031_v61, %s9710_s22 }
 0x686   : > { %2674 = vrot.lane.b32.xlu1 %v11038_v36, %s9710_s22 }
 0x687   : > { %2604 = vrot.lane.b32.xlu0 %v11092_v55, %s9709_s19 }
 0x68a   : > { %2812 = vperm.xlu1 %8711, %v11024_v19  }
 0x68b   : > { %2672 = vrot.lane.b32.xlu0 %v10874_v59, %s9710_s22 }
 0x68e   : > { %8713 = vset.pattern.permute.xlu1 %v9692_v0 }
 0x6f2   : > { %v2590_v52 = vpop.xlane.xlu1 %2589 }
 0x6f3   : > { %v2597_v10 = vmul.f32 0.00390625, %v2590_v52 }
 0x6f6   : > { %v2593_v47 = vpop.xlane.xlu0 %2592  ;;  %v2587_v39 = vpop.xlane.xlu1 %2586 }
 0x6f7   : > { %v2598_v29 = vmul.f32 0.00390625, %v2593_v47  ;;  %v2596_v25 = vmul.f32 0.00390625, %v2587_v39 }
 0x6f9   : > { %v2601_v63 = vpack.c.bf16 %v2598_v29, %v2597_v10 }
 0x6fa   : > { %v2584_v56 = vpop.xlane.xlu0 %2583  ;;  %v2677_v20 = vpop.permute.xlu1 %2676 }
 0x6fb   : > { %v2595_v24 = vmul.f32 0.00390625, %v2584_v56  ;;  %8107 = vmatpush3.bf16.msra.mxu0 %v2601_v63 }
 0x6fc   : > { %8108 = vmatprep.subr.bf16.mxu0 %v9707_v1 }
 0x6fd   : > { %v2600_v23 = vpack.c.bf16 %v2596_v25, %v2595_v24 }
 0x6fe   : > { %v2605_v31 = vpop.permute.xlu0 %2604  ;;  %v2679_v52 = vpop.permute.xlu1 %2678 }
 0x6ff   : > { %8109 = vmatpush3.bf16.msra.mxu0 %v2600_v23 }
 0x702   : > { %8111 = vmatmul.mubr.msk.bf16.vlgmr.msra.gmra.mxu0 %vm12571_vm8, %v2599_v57  ;;  %vm12517_vm8 = vcmask 15360   ;;  %v2673_v10 = vpop.permute.xlu0 %2672  ;;  %v2675_v24 = vpop.permute.xlu1 %2674 }
 0x703   : > { %8116 = vmatprep.mubr.msk.bf16.mxu0 %vm12517_vm8, %v9089_v35 }
 0x7c2   : > { %v2644_v53 = vpop.f32.mrf.mxu0 }
 0x7c3   : > { %v2645_v22 = vadd.f32 %v2644_v53, %v2605_v31 }
 0x7c4   : > { %v8112_v9 = vpop.f32.mrf.mxu0 }
 0x7c5   : > { %v7584_v62 = vmul.f32 -1.442695, %v2645_v22 }
 0x7c6   : > { %v2647_v8 = vpop.f32.mrf.mxu0 }
 0x7c7   : > { %9261 = vpow2.f32 %v7584_v62 }
 0x7c8   : > { %v8113_v4 = vpop.f32.mrf.mxu0 }
 0x7d4   : > { %v9262_v13 = vpop.eup %9261 }
 0x7d5   : > { %v2653_v54 = vadd.f32 1.0, %v9262_v13 }
 0x7d7   : > { %9263 = vrcp.f32 %v2653_v54 }
 0x7e4   : > { %v9264_v14 = vpop.eup %9263 }
 0x7e5   : > { %v2656_v30 = vmul.f32 %v9264_v14, %v2645_v22 }
 0x7e7   : > { %v2661_v44 = vpack.c.bf16 %v2656_v30, %v2656_v30 }
 0x7e9   : > { %8436 = vmatprep.subr.msk.bf16.mxu0 %vm12572_vm6, %v2661_v44  ;;  %v2692_v17 = vsel %vm12573_vm9, %v2661_v44, 0  ;;  %vm12574_vm9 = vcmask 261120  }
 0x7ea   : > { %8115 = vmatpush3.bf16.msra.mxu0 %v2692_v17  ;;  %vm12575_vm6 = vmmov %vm12574_vm9 }
 0x7ed   : > { %8117 = vmatmul.mubr.msk.bf16.vlgmr.msra.gmra.mxu0 %vm12517_vm8, %v9090_v51  ;;  %v9712_v51 = vmov 7   ;;  %vm12579_vm8 = vcmask 924672  }
 0x7ee   : > { %3125 = vmatprep.mubr.bf16.mxu0 %v9692_v0 }
 0x8ad   : > { %v8118_v47 = vpop.f32.mrf.mxu0 }
 0x8ae   : > { %v2737_v29 = vadd.f32 %v8118_v47, %v2677_v20  ;;  %v2813_v20 = vpop.permute.xlu1 %2812 }
 0x8af   : > { %v2728_v39 = vpop.f32.mrf.mxu0 }
 0x8b0   : > { %v7591_v63 = vmul.f32 -1.442695, %v2737_v29  ;;  %v2729_v56 = vadd.f32 %v2728_v39, %v2673_v10 }
 0x8b1   : > { %v8119_v25 = vpop.f32.mrf.mxu0 }
 0x8b2   : > { %9265 = vpow2.f32 %v7591_v63  ;;  %v7589_v23 = vmul.f32 -1.442695, %v2729_v56  ;;  %v2740_v57 = vadd.f32 %v8119_v25, %v2679_v52 }
 0x8b3   : > { %v2731_v45 = vpop.f32.mrf.mxu0 }
 0x8b4   : > { %9267 = vpow2.f32 %v7589_v23  ;;  %v7592_v48 = vmul.f32 -1.442695, %v2740_v57  ;;  %v2732_v35 = vadd.f32 %v2731_v45, %v2675_v24 }
 0x8b6   : > { %9269 = vpow2.f32 %v7592_v48  ;;  %v7590_v31 = vmul.f32 -1.442695, %v2732_v35 }
 0x8b8   : > { %9271 = vpow2.f32 %v7590_v31 }
 0x8bf   : > { %v9266_v53 = vpop.eup %9265 }
 0x8c0   : > { %v2757_v22 = vadd.f32 1.0, %v9266_v53 }
 0x8c1   : > { %v9268_v9 = vpop.eup %9267 }
 0x8c2   : > { %9273 = vrcp.f32 %v2757_v22  ;;  %v2755_v62 = vadd.f32 1.0, %v9268_v9 }
 0x8c3   : > { %v9270_v8 = vpop.eup %9269 }
 0x8c4   : > { %9275 = vrcp.f32 %v2755_v62  ;;  %v2758_v4 = vadd.f32 1.0, %v9270_v8 }
 0x8c5   : > { %v9272_v13 = vpop.eup %9271 }
 0x8c6   : > { %v2756_v54 = vadd.f32 1.0, %v9272_v13  ;;  %9277 = vrcp.f32 %v2758_v4 }
 0x8c8   : > { %9279 = vrcp.f32 %v2756_v54 }
 0x8cf   : > { %v9274_v14 = vpop.eup %9273 }
 0x8d0   : > { %2779 = vperm.xlu0 %8712, %v9274_v14  }
 0x8d1   : > { %v9276_v30 = vpop.eup %9275 }
 0x8d2   : > { %2769 = vperm.xlu1 %8713, %v9276_v30  }
 0x8d3   : > { %v9278_v44 = vpop.eup %9277 }
 0x8d5   : > { %v9280_v17 = vpop.eup %9279 }
 0x8d6   : > { %2774 = vperm.xlu0 %8712, %v9280_v17   ;;  %2784 = vperm.xlu1 %8713, %v9278_v44  }
 0x8da   : > { %8714 = vset.pattern.permute.xlu0 %v9711_v46  ;;  %8715 = vset.pattern.permute.xlu1 %v9711_v46 }
 0x8db   : > { %2816 = vperm.xlu0 %8714, %v11031_v61   ;;  %2804 = vperm.xlu1 %8715, %v10874_v59  }
 0x8df   : > { %2808 = vperm.xlu1 %8715, %v11038_v36   ;;  %8716 = vset.pattern.permute.xlu0 %v9712_v51 }
 0x8e0   : > { %2976 = vperm.xlu0 %8716, %v10874_v59  }
 0x94b   : > { %v2780_v52 = vpop.permute.xlu0 %2779 }
 0x94c   : > { %v2791_v47 = vmul.f32 %v2780_v52, %v11058_v50  ;;  %v2792_v10 = vmul.f32 %v2780_v52, %v11060_v27 }
 0x94d   : > { %v2770_v29 = vpop.permute.xlu1 %2769 }
 0x94e   : > { %v2799_v39 = vadd.f32 %v2791_v47, %v11109_v37  ;;  %v2800_v46 = vadd.f32 %v2792_v10, %v11111_v12  ;;  %v2787_v25 = vmul.f32 %v2770_v29, %v11078_v21  ;;  %v2788_v24 = vmul.f32 %v2770_v29, %v11072_v28 }
 0x950   : > { %v11142_v63 = vadd.f32 %v2813_v20, %v2799_v39  ;;  %v11144_v56 = vadd.f32 %v2813_v20, %v2800_v46  ;;  %v2795_v45 = vadd.f32 %v2787_v25, %v11101_v58  ;;  %v2796_v48 = vadd.f32 %v2788_v24, %v11103_v18 }
 0x951   : > { %v2775_v59 = vpop.permute.xlu0 %2774  ;;  %v2785_v23 = vpop.permute.xlu1 %2784 }
 0x952   : > { %v7597_v57 = vmul.f32 -1.442695, %v11142_v63  ;;  %v7598_v50 = vmul.f32 -1.442695, %v11144_v56  ;;  %v2793_v27 = vmul.f32 %v2785_v23, %v11068_v60  ;;  %v2794_v37 = vmul.f32 %v2785_v23, %v11070_v49 }
 0x953   : > { %v2789_v12 = vmul.f32 %v2775_v59, %v11066_v6  ;;  %v2790_v21 = vmul.f32 %v2775_v59, %v11062_v40 }
 0x954   : > { %9281 = vpow2.f32 %v7597_v57  ;;  %v2801_v28 = vadd.f32 %v2793_v27, %v11113_v2  ;;  %v2802_v35 = vadd.f32 %v2794_v37, %v11115_v42 }
 0x955   : > { %9283 = vpow2.f32 %v7598_v50  ;;  %v2797_v6 = vadd.f32 %v2789_v12, %v11105_v41  ;;  %v2798_v18 = vadd.f32 %v2790_v21, %v11107_v26 }
 0x956   : > { %v2817_v31 = vpop.permute.xlu0 %2816  ;;  %v2805_v53 = vpop.permute.xlu1 %2804 }
 0x957   : > { %v2825_v22 = vadd.f32 %v2817_v31, %v2801_v28  ;;  %v2826_v60 = vadd.f32 %v2817_v31, %v2802_v35  ;;  %v2819_v9 = vadd.f32 %v2805_v53, %v2795_v45  ;;  %v2820_v49 = vadd.f32 %v2805_v53, %v2796_v48 }
 0x959   : > { %v7599_v62 = vmul.f32 -1.442695, %v2825_v22  ;;  %v7600_v58 = vmul.f32 -1.442695, %v2826_v60  ;;  %v7593_v8 = vmul.f32 -1.442695, %v2819_v9 }
 0x95a   : > { %v7594_v4 = vmul.f32 -1.442695, %v2820_v49  ;;  %v2809_v40 = vpop.permute.xlu1 %2808 }
 0x95b   : > { %9285 = vpow2.f32 %v7599_v62  ;;  %v2821_v2 = vadd.f32 %v2809_v40, %v2797_v6  ;;  %v2822_v13 = vadd.f32 %v2809_v40, %v2798_v18 }
 0x95c   : > { %9287 = vpow2.f32 %v7600_v58 }
 0x95d   : > { %9289 = vpow2.f32 %v7593_v8  ;;  %v7595_v42 = vmul.f32 -1.442695, %v2821_v2  ;;  %v7596_v54 = vmul.f32 -1.442695, %v2822_v13 }
 0x95e   : > { %9291 = vpow2.f32 %v7594_v4 }
 0x95f   : > { %9293 = vpow2.f32 %v7595_v42 }
 0x960   : > { %9295 = vpow2.f32 %v7596_v54 }
 0x961   : > { %v9282_v14 = vpop.eup %9281 }
 0x962   : > { %v9284_v30 = vpop.eup %9283  ;;  %v2855_v41 = vadd.f32 1.0, %v9282_v14 }
 0x963   : > { %v2856_v44 = vadd.f32 1.0, %v9284_v30 }
 0x964   : > { %9297 = vrcp.f32 %v2855_v41 }
 0x965   : > { %9299 = vrcp.f32 %v2856_v44 }
 0x968   : > { %v9286_v17 = vpop.eup %9285 }
 0x969   : > { %v9288_v51 = vpop.eup %9287  ;;  %v2857_v26 = vadd.f32 1.0, %v9286_v17 }
 0x96a   : > { %v9290_v20 = vpop.eup %9289  ;;  %v2858_v52 = vadd.f32 1.0, %v9288_v51 }
 0x96b   : > { %v9292_v47 = vpop.eup %9291  ;;  %9301 = vrcp.f32 %v2857_v26  ;;  %v2851_v10 = vadd.f32 1.0, %v9290_v20  ;;  %v9092_v20 = vld [vmem:[%s12499_s1 + $0x5d0] ss:$8 sps:$4 sm:$0xff]  }
 0x96c   : > { %v9294_v29 = vpop.eup %9293  ;;  %9303 = vrcp.f32 %v2858_v52  ;;  %v2852_v39 = vadd.f32 1.0, %v9292_v47  ;;  %v9093_v52 = vld [vmem:[%s12499_s1 + $0x550] ss:$8 sps:$4 sm:$0xff]  }
 0x96d   : > { %v9296_v46 = vpop.eup %9295  ;;  %9305 = vrcp.f32 %v2851_v10  ;;  %v2853_v25 = vadd.f32 1.0, %v9294_v29  ;;  %v9094_v47 = vld [vmem:[%s12499_s1 + $0x4b0] ss:$8 sps:$4 sm:$0xff]   ;;  %v9095_v10 = vld [vmem:[%s12499_s1 + $0x5c0] ss:$8 sps:$4 sm:$0xff]  }
 0x96e   : > { %9307 = vrcp.f32 %v2852_v39  ;;  %v2854_v24 = vadd.f32 1.0, %v9296_v46  ;;  %v9096_v29 = vld [vmem:[%s12499_s1 + $0x540] ss:$8 sps:$4 sm:$0xff]   ;;  %v9097_v39 = vld [vmem:[%s12499_s1 + $0x5b0] ss:$8 sps:$4 sm:$0xff]  }
 0x96f   : > { %9309 = vrcp.f32 %v2853_v25  ;;  %v9098_v46 = vld [vmem:[%s12499_s1 + $0x530] ss:$8 sps:$4 sm:$0xff]   ;;  %v9099_v25 = vld [vmem:[%s12499_s1 + $0x5a0] ss:$8 sps:$4 sm:$0xff]  }
 0x970   : > { %9311 = vrcp.f32 %v2854_v24  ;;  %v9101_v24 = vld [vmem:[%s12499_s1 + $0x4c0] ss:$0 sps:$4 sm:$0xff]  }
 0x971   : > { %v9298_v59 = vpop.eup %9297 }
 0x972   : > { %v9300_v23 = vpop.eup %9299  ;;  %v2879_v37 = vmul.f32 %v9298_v59, %v11142_v63  ;;  %v9091_v63 = vld [vmem:[%s12499_s1 + $0x4a0] ss:$8 sps:$4 sm:$0xff]  }
 0x973   : > { %v2880_v48 = vmul.f32 %v9300_v23, %v11144_v56  ;;  %v2977_v56 = vpop.permute.xlu0 %2976  ;;  %v9100_v59 = vld [vmem:[%s12499_s1 + $0x520] ss:$8 sps:$4 sm:$0xff]   ;;  %v9102_v23 = vld [vmem:[%s12499_s1 + $0x590] ss:$8 sps:$4 sm:$0xff]  }
 0x978   : > { %v9302_v57 = vpop.eup %9301 }
 0x979   : > { %v9304_v50 = vpop.eup %9303  ;;  %v2881_v27 = vmul.f32 %v9302_v57, %v2825_v22  ;;  %v9103_v57 = vld [vmem:[%s12499_s1 + $0x510] ss:$8 sps:$4 sm:$0xff]  }
 0x97a   : > { %v9306_v12 = vpop.eup %9305  ;;  %v2882_v45 = vmul.f32 %v9304_v50, %v2826_v60  ;;  %v9104_v50 = vld [vmem:[%s12499_s1 + $0x580] ss:$8 sps:$4 sm:$0xff]  }
 0x97b   : > { %v9308_v21 = vpop.eup %9307  ;;  %v2885_v28 = vpack.c.bf16 %v2881_v27, %v2879_v37  ;;  %v2875_v6 = vmul.f32 %v9306_v12, %v2819_v9  ;;  %v9105_v27 = vld [vmem:[%s12499_s1 + $0x500] ss:$8 sps:$4 sm:$0xff]   ;;  %v9106_v37 = vld [vmem:[%s12499_s1 + $0x570] ss:$8 sps:$4 sm:$0xff]  }
 0x97c   : > { %v9310_v35 = vpop.eup %9309  ;;  %v2886_v31 = vpack.c.bf16 %v2882_v45, %v2880_v48  ;;  %v2876_v58 = vmul.f32 %v9308_v21, %v2820_v49  ;;  %v9107_v12 = vld [vmem:[%s12499_s1 + $0x4f0] ss:$8 sps:$4 sm:$0xff]  }
 0x97d   : > { %v9312_v53 = vpop.eup %9311  ;;  %v2877_v62 = vmul.f32 %v9310_v35, %v2821_v2 }
 0x97e   : > { %v2878_v8 = vmul.f32 %v9312_v53, %v2822_v13  ;;  %2926 = vmatprep.subr.bf16.mxu1 %v2886_v31 }
 0x97f   : > { %2927 = vmatpush1.bf16.msra.mxu1 %v2885_v28  ;;  %v2883_v18 = vpack.c.bf16 %v2877_v62, %v2875_v6 }
 0x980   : > { %v2884_v4 = vpack.c.bf16 %v2878_v8, %v2876_v58 }
 0x982   : > { %2928 = vmatprep.subr.bf16.mxu1 %v2884_v4 }
 0x983   : > { %2929 = vmatpush1.bf16.msra.mxu1 %v2883_v18 }
 0x984   : > { %7938 = vmatprep.subr.bf16.mxu1 %v9092_v20 }
 0x986   : > { %7604 = vmatmul.mubr.msk.bf16.vlgmr.msra.gmra.mxu1 %vm12574_vm9, %v9091_v63  ;;  %vm12576_vm9 = vmmov %vm12575_vm6 }
 0x987   : > { %2956 = vmatprep.mubr.bf16.mxu1 %v9692_v0  ;;  %7939 = vmatpush3.bf16.msra.mxu1 %v9093_v52 }
 0x988   : > { %7940 = vmatprep.subr.bf16.mxu1 %v9095_v10 }
 0x98b   : > { %7941 = vmatpush3.bf16.msra.mxu1 %v9096_v29 }
 0x98c   : > { %7942 = vmatprep.subr.bf16.mxu1 %v9097_v39 }
 0x98e   : > { %7605 = vmatmul.mubr.msk.bf16.gmra.mxu1 %vm12575_vm6, %v9094_v47  ;;  %vm12577_vm6 = vcmask 908288  }
 0x98f   : > { %2966 = vmatprep.mubr.bf16.mxu1 %v9692_v0  ;;  %7943 = vmatpush3.bf16.msra.mxu1 %v9098_v46 }
 0x990   : > { %7944 = vmatprep.subr.bf16.mxu1 %v9099_v25 }
 0x993   : > { %7945 = vmatpush3.bf16.msra.mxu1 %v9100_v59 }
 0x994   : > { %7946 = vmatprep.subr.bf16.mxu1 %v9102_v23 }
 0x996   : > { %7606 = vmatmul.mubr.msk.bf16.gmra.mxu1 %vm12576_vm9, %v9101_v24  ;;  %vm12578_vm9 = vmmov %vm12577_vm6 }
 0x997   : > { %7947 = vmatpush3.bf16.msra.mxu1 %v9103_v57 }
 0x998   : > { %7948 = vmatprep.subr.bf16.mxu1 %v9104_v50 }
 0x99b   : > { %7949 = vmatpush3.bf16.msra.mxu1 %v9105_v27 }
 0x99c   : > { %7950 = vmatprep.subr.bf16.mxu1 %v9106_v37 }
 0x99f   : > { %7951 = vmatpush3.bf16.msra.mxu1 %v9107_v12  ;;  %v9108_v12 = vld [vmem:[%s12499_s1 + $0x560] ss:$8 sps:$4 sm:$0xff]  }
 0x9a0   : > { %7952 = vmatprep.subr.bf16.mxu1 %v9108_v12 }
 0x9a3   : > { %7953 = vmatpush3.bf16.msra.mxu1 %v9109_v38 }
 0x9a4   : > { %3958 = vmatprep.subr.bf16.mxu1 %v9692_v0 }
 0xa46   : > { %v2948_v22 = vpop.f32.mrf.mxu1 }
 0xa47   : > { %v2979_v60 = vadd.f32 %v2977_v56, %v2948_v22 }
 0xa48   : > { %v2950_v9 = vpop.f32.mrf.mxu1 }
 0xa49   : > { %v7607_v49 = vmul.f32 -1.442695, %v2979_v60  ;;  %v2980_v40 = vadd.f32 %v2977_v56, %v2950_v9 }
 0xa4a   : > { %v2952_v33 = vpop.f32.mrf.mxu1 }
 0xa4b   : > { %9313 = vpow2.f32 %v7607_v49  ;;  %v7608_v2 = vmul.f32 -1.442695, %v2980_v40 }
 0xa4c   : > { %v2954_v5 = vpop.f32.mrf.mxu1 }
 0xa4d   : > { %9315 = vpow2.f32 %v7608_v2 }
 0xa4e   : > { %v2958_v11 = vpop.f32.mrf.mxu1 }
 0xa58   : > { %v9314_v13 = vpop.eup %9313 }
 0xa59   : > { %v2987_v42 = vadd.f32 1.0, %v9314_v13 }
 0xa5a   : > { %v9316_v54 = vpop.eup %9315 }
 0xa5b   : > { %9317 = vrcp.f32 %v2987_v42  ;;  %v2988_v14 = vadd.f32 1.0, %v9316_v54 }
 0xa5d   : > { %9319 = vrcp.f32 %v2988_v14 }
 0xa68   : > { %v9318_v30 = vpop.eup %9317 }
 0xa69   : > { %v11167_v44 = vmul.f32 %v9318_v30, %v2979_v60 }
 0xa6a   : > { %v9320_v41 = vpop.eup %9319 }
 0xa6b   : > { %v11169_v17 = vmul.f32 %v9320_v41, %v2980_v40 }
 0xa6d   : > { %v8727_v51 = vpack.i.bf16 %v11169_v17, %v11167_v44  ;;  %v8722_v26 = vpack.i.bf16 %v11167_v44, %v11169_v17 }
 0xa6f   : > { %8728 = vrot.lane.b32.xlu0 %v8727_v51, %s9698_s9  ;;  %8718 = vrot.lane.b32.xlu1 %v8727_v51, %s9699_s10  ;;  %s9715_s9 = smov 117  }
 0xa73   : > { %8738 = vrot.lane.b32.xlu0 %v8727_v51, %s9700_s11  ;;  %8723 = vrot.lane.b32.xlu1 %v8722_v26, %s9701_s15  ;;  %s9724_s11 = smov 9   ;;  %s9731_s15 = smov 124  }
 0xa77   : > { %8748 = vrot.lane.b32.xlu0 %v8727_v51, %s9702_s16  ;;  %8733 = vrot.lane.b32.xlu1 %v8722_v26, %s9694_s25  ;;  %s9732_s16 = smov 4  }
 0xa7b   : > { %8743 = vrot.lane.b32.xlu1 %v8727_v51, %s9693_s24 }
 0xa7f   : > { %8753 = vrot.lane.b32.xlu1 %v8727_v51, %s9704_s17  ;;  %s9727_s17 = smov 110  }
 0xae1   : > { %v8729_v45 = vpop.permute.xlu0 %8728  ;;  %v8719_v48 = vpop.permute.xlu1 %8718 }
 0xae2   : > { %v8721_v21 = vunpack.i.h.bf16 %v8719_v48  ;;  %v8720_v28 = vunpack.i.l.bf16 %v8719_v48  ;;  %v8731_v58 = vunpack.i.h.bf16 %v8729_v45  ;;  %v8730_v8 = vunpack.i.l.bf16 %v8729_v45  ;;  %v11295_v48 = vld [vmem:[%s12500_s2] sm:$0xff] }
 0xae3   : > { %v9713_v45 = vmov 9  }
 0xae4   : > { %v3070_v35 = vsel %vm12577_vm6, %v8721_v21, 0.0  ;;  %v3067_v31 = vsel %vm12578_vm9, %v8720_v28, %v8721_v21  ;;  %vm12580_vm6 = vmmov %vm12579_vm8  ;;  %vm12581_vm9 = vcmask 916480   ;;  %8757 = vset.pattern.permute.xlu0 %v9713_v45  ;;  %v2960_v21 = vpop.f32.mrf.mxu1 }
 0xae5   : > { %v3072_v53 = vsel %vm10901_vm11, %v3070_v35, 0.0  ;;  %v8724_v6 = vpop.permute.xlu1 %8723  ;;  %v3071_v62 = vsel %vm10905_vm12, %v3067_v31, 0.0  ;;  %v8739_v63 = vpop.permute.xlu0 %8738  ;;  %v3059_v2 = vsel %vm12581_vm9, %v8730_v8, %v8731_v58  ;;  %vm12588_vm9 = vcmask 138240   ;;  %3325 = vperm.xlu0 %8757, %v11295_v48  }
 0xae6   : > { %v3082_v18 = vpack.c.bf16 %v3072_v53, %v3072_v53  ;;  %v8726_v4 = vunpack.i.h.bf16 %v8724_v6  ;;  %v8725_v56 = vunpack.i.l.bf16 %v8724_v6  ;;  %v3081_v22 = vpack.c.bf16 %v3071_v62, %v3071_v62  ;;  %v2962_v28 = vpop.f32.mrf.mxu1 }
 0xae7   : > { %v8741_v42 = vunpack.i.h.bf16 %v8739_v63  ;;  %v8740_v54 = vunpack.i.l.bf16 %v8739_v63  ;;  %vm12593_vm11 = vcmask 588800   ;;  %v3136_v35 = vpack.c.bf16 %v2962_v28, %v2958_v11 }
 0xae8   : > { %7609 = vmatprep.subr.msk.bf16.mxu0 %vm2414_vm13, %v3082_v18  ;;  %v3049_v60 = vsel %vm12579_vm8, %v8726_v4, %v8725_v56  ;;  %v3052_v9 = vsel %vm12580_vm6, %v8725_v56, 0.0  ;;  %v3088_v40 = vsel %vm2414_vm13, %v3081_v22, 0  ;;  %vm12583_vm8 = vmmov %vm12582_vm0  ;;  %vm12584_vm6 = vcmask 121856   ;;  %v2964_v31 = vpop.f32.mrf.mxu1 }
 0xae9   : > { %v8734_v49 = vpop.permute.xlu1 %8733  ;;  %v7611_v13 = vpack.c.bf16 %v8731_v58, %v3052_v9  ;;  %3100 = vmatpush1.bf16.msra.mxu0 %v3088_v40  ;;  %v7614_v41 = vpack.c.bf16 %v3059_v2, %v3049_v60  ;;  %v8749_v51 = vpop.permute.xlu0 %8748  ;;  %v3019_v39 = vsel %vm12584_vm6, %v8740_v54, %v8741_v42  ;;  %v3137_v53 = vpack.c.bf16 %v2964_v31, %v2960_v21  ;;  %v9110_v40 = vld [vmem:[%s12499_s1 + $0x5e0] ss:$8 sps:$4 sm:$0xff]  }
 0xaea   : > { %v8736_v14 = vunpack.i.h.bf16 %v8734_v49  ;;  %v8735_v30 = vunpack.i.l.bf16 %v8734_v49  ;;  %v8751_v46 = vunpack.i.h.bf16 %v8749_v51  ;;  %v8750_v25 = vunpack.i.l.bf16 %v8749_v51  ;;  %v2968_v6 = vpop.f32.mrf.mxu1 }
 0xaeb   : > { %7612 = vmatprep.subr.msk.bf16.mxu0 %vm10930_vm4, %v7611_v13  ;;  %vm12585_vm4 = vcmask 7168   ;;  %v3138_v49 = vpack.c.bf16 %v2968_v6, %v2968_v6  ;;  %v9714_v2 = vmov 10  }
 0xaec   : > { %v3039_v26 = vsel %vm12582_vm0, %v8736_v14, %v8735_v30  ;;  %v3042_v20 = vsel %vm12583_vm8, %v8735_v30, 0.0  ;;  %vm12586_vm0 = vmmov %vm12585_vm4  ;;  %v3001_v7 = vsel %vm12588_vm9, %v8750_v25, %v8751_v46  ;;  %v2970_v62 = vpop.f32.mrf.mxu1  ;;  %8758 = vset.pattern.permute.xlu1 %v9714_v2  ;;  %8759 = vset.pattern.permute.xlu0 %v9714_v2 }
 0xaed   : > { %v8744_v52 = vpop.permute.xlu1 %8743  ;;  %v7617_v47 = vpack.c.bf16 %v3042_v20, %v11169_v17  ;;  %7615 = vmatpush1.bf16.msk.msra.mxu0 %vm10938_vm7, %v7614_v41  ;;  %v7620_v15 = vpack.c.bf16 %v3039_v26, %v11167_v44  ;;  %vm12587_vm7 = vmmov %vm12584_vm6  ;;  %v3139_v9 = vpack.c.bf16 %v2970_v62, %v2970_v62  ;;  %3350 = vperm.xlu1 %8758, %v11024_v19   ;;  %vm12599_vm6 = vcmask 1040384  }
 0xaee   : > { %v8746_v10 = vunpack.i.h.bf16 %v8744_v52  ;;  %v8745_v29 = vunpack.i.l.bf16 %v8744_v52  ;;  %v3022_v43 = vsel %vm12587_vm7, 0.0, %v8740_v54  ;;  %vm12590_vm8 = vmpackc.low %vm10920_vm3, %vm10905_vm12  ;;  %v2972_v58 = vpop.f32.mrf.mxu1  ;;  %3342 = vperm.xlu0 %8759, %v11295_v48  }
 0xaef   : > { %7618 = vmatprep.subr.msk.bf16.mxu0 %vm10949_vm1, %v7617_v47  ;;  %vm12589_vm1 = vcmask 130048  }
 0xaf0   : > { %v3029_v24 = vsel %vm12585_vm4, %v8745_v29, %v8746_v10  ;;  %v3032_v59 = vsel %vm12586_vm0, 0.0, %v8745_v29  ;;  %v2973_v8 = vpop.f32.mrf.mxu1  ;;  %vm12600_vm4 = vmmov %vm12599_vm6 }
 0xaf1   : > { %v8754_v23 = vpop.permute.xlu1 %8753  ;;  %v7623_v17 = vpack.c.bf16 %v3029_v24, %v3019_v39  ;;  %7621 = vmatpush1.bf16.msk.msra.mxu0 %vm10960_vm5, %v7620_v15  ;;  %v7626_v44 = vpack.c.bf16 %v3032_v59, %v3022_v43  ;;  %vm12591_vm5 = vmmov %vm12588_vm9  ;;  %3354 = vperm.xlu1 %8758, %v11031_v61   ;;  %v9111_v43 = vld [vmem:[%s12499_s1 + $0x5f0] ss:$8 sps:$4 sm:$0xff]  }
 0xaf2   : > { %v8756_v57 = vunpack.i.h.bf16 %v8754_v23  ;;  %v8755_v50 = vunpack.i.l.bf16 %v8754_v23  ;;  %v3004_v16 = vsel %vm12591_vm5, 0.0, %v8750_v25  ;;  %8761 = vset.pattern.permute.xlu0 %v9692_v0  ;;  %vm12603_vm9 = vmmov %vm12589_vm1 }
 0xaf3   : > { %7624 = vmatprep.subr.msk.bf16.mxu0 %vm7562_vm10, %v7623_v17  ;;  %vm12592_vm10 = vmpackc.low %vm10995_vm14, %vm10920_vm3  ;;  %vm12596_vm14 = vmmov 0   ;;  %vm12598_vm3 = vcmask 15360  }
 0xaf4   : > { %v3011_v27 = vsel %vm12589_vm1, %v8755_v50, %v8756_v57  ;;  %v7633_v34 = vpack.c.bf16 %v8755_v50, %v3004_v16  ;;  %vm12601_vm0 = vmmov %vm12598_vm3  ;;  %vm3921_vm1 = vcmask 457728  }
 0xaf5   : > { %v7629_v37 = vpack.c.bf16 %v3011_v27, %v3001_v7  ;;  %7627 = vmatpush1.bf16.msk.msra.mxu0 %vm12590_vm8, %v7626_v44  ;;  %3346 = vperm.xlu1 %8758, %v11038_v36   ;;  %vm3910_vm8 = vcmask 465920   ;;  %vm7685_vm5 = vmpackc.low %vm3921_vm1, %vm3921_vm1 }
 0xaf7   : > { %7630 = vmatprep.subr.msk.bf16.mxu0 %vm10988_vm2, %v7629_v37  ;;  %vm12594_vm2 = vcmask 64512  }
 0xaf8   : > { %vm12595_vm12 = vmmov %vm12594_vm2 }
 0xaf9   : > { %7634 = vmatpush1.bf16.msk.msra.mxu0 %vm12592_vm10, %v7633_v34 }
 0xafc   : > { %7635 = vmatmul.mubr.msk.bf16.vlgmr.msra.gmra.mxu0 %vm12593_vm11, %v3083_v32  ;;  %vm3899_vm11 = vcmask 515072  }
 0xafd   : > { %8122 = vmatprep.mubr.msk.bf16.mxu0 %vm12594_vm2, %v9110_v40 }
 0xb60   : > { %v3326_v54 = vpop.permute.xlu0 %3325 }
 0xb68   : > { %v3351_v7 = vpop.permute.xlu1 %3350 }
 0xb69   : > { %v3343_v32 = vpop.permute.xlu0 %3342 }
 0xb6c   : > { %v3355_v44 = vpop.permute.xlu1 %3354 }
 0xb70   : > { %v3347_v38 = vpop.permute.xlu1 %3346 }
 0xbbc   : > { %v3127_v18 = vpop.f32.mrf.mxu0 }
 0xbbd   : > { %v3134_v56 = vpack.c.bf16 %v2952_v33, %v3127_v18 }
 0xbbe   : > { %v3129_v4 = vpop.f32.mrf.mxu0 }
 0xbbf   : > { %v3135_v63 = vpack.c.bf16 %v2954_v5, %v3129_v4 }
 0xbc0   : > { %v3131_v22 = vpop.f32.mrf.mxu0 }
 0xbc1   : > { %3300 = vmatprep.mubr.bf16.mxu1 %v3135_v63  ;;  %v3443_v22 = vld [vmem:[%s12499_s1 + $0x600] sm:$0x11] }
 0xbc2   : > { %v3132_v60 = vpop.f32.mrf.mxu0  ;;  %3301 = vmatmul.mubr.bf16.vlgmr.msra.gmra.mxu1 %v3134_v56 }
 0xbc3   : > { %3308 = vmatprep.mubr.bf16.mxu1 %v3137_v53  ;;  %v9648_v60 = vld [vmem:[%s12500_s2 + $0x10] sm:$0xff] }
 0xbca   : > { %3309 = vmatmul.mubr.bf16.gmra.mxu1 %v3136_v35 }
 0xbcb   : > { %3316 = vmatprep.mubr.bf16.mxu1 %v3139_v9  ;;  %v11357_v9 = vld [vmem:[%s12500_s2 + $0x18] sm:$0xff] }
 0xbd2   : > { %3317 = vmatmul.mubr.bf16.gmra.mxu1 %v3138_v49  ;;  %v11363_v49 = vld [vmem:[%s12500_s2 + $0x8] sm:$0xff] }
 0xc82   : > { %v7954_v13 = vpop.f32.mrf.mxu1 }
 0xc84   : > { %v7955_v42 = vpop.f32.mrf.mxu1 }
 0xc85   : > { %v7956_v14 = vadd.f32 %v7955_v42, %v7954_v13 }
 0xc86   : > { %v7957_v30 = vpop.f32.mrf.mxu1 }
 0xc87   : > { %v3328_v41 = vadd.f32 %v7956_v14, %v3326_v54 }
 0xc88   : > { %v7958_v51 = vpop.f32.mrf.mxu1 }
 0xc89   : > { %v7652_v26 = vmul.f32 -1.442695, %v3328_v41  ;;  %v11307_v20 = vadd.f32 %v7958_v51, %v7957_v30 }
 0xc8a   : > { %v7960_v52 = vpop.f32.mrf.mxu1 }
 0xc8b   : > { %9321 = vpow2.f32 %v7652_v26 }
 0xc8c   : > { %v7961_v19 = vpop.f32.mrf.mxu1 }
 0xc8d   : > { %v11309_v47 = vadd.f32 %v7961_v19, %v7960_v52 }
 0xc8e   : > { %v7963_v61 = vpop.f32.mrf.mxu1 }
 0xc90   : > { %v7964_v10 = vpop.f32.mrf.mxu1 }
 0xc91   : > { %v11311_v29 = vadd.f32 %v7964_v10, %v7963_v61  ;;  %v9113_v10 = vld [vmem:[%s12499_s1 + $0x620] ss:$8 sps:$4 sm:$0xff]  }
 0xc92   : > { %v7966_v36 = vpop.f32.mrf.mxu1 }
 0xc94   : > { %v7967_v39 = vpop.f32.mrf.mxu1 }
 0xc95   : > { %v11313_v46 = vadd.f32 %v7967_v39, %v7966_v36  ;;  %v9717_v36 = vmov 8  }
 0xc96   : > { %v7969_v25 = vpop.f32.mrf.mxu1  ;;  %8760 = vset.pattern.permute.xlu1 %v9717_v36 }
 0xc98   : > { %v9322_v15 = vpop.eup %9321  ;;  %v7970_v24 = vpop.f32.mrf.mxu1 }
 0xc99   : > { %v3332_v59 = vadd.f32 1.0, %v9322_v15 }
 0xc9b   : > { %9323 = vrcp.f32 %v3332_v59 }
 0xca8   : > { %v9324_v23 = vpop.eup %9323 }
 0xca9   : > { %v3335_v17 = vmul.f32 %v9324_v23, %v3328_v41 }
 0xcab   : > { %v3340_v57 = vpack.c.bf16 %v3335_v17, %v3335_v17 }
 0xcad   : > { %8437 = vmatprep.subr.msk.bf16.mxu0 %vm2414_vm13, %v3340_v57  ;;  %v3374_v50 = vsel %vm2414_vm13, %v3340_v57, 0  ;;  %vm12597_vm13 = vcmask 261120  }
 0xcae   : > { %8121 = vmatpush3.bf16.msra.mxu0 %v3374_v50  ;;  %vm12602_vm7 = vmmov %vm12597_vm13 }
 0xcaf   : > { %8126 = vmatprep.subr.bf16.mxu0 %v9707_v1 }
 0xcb1   : > { %8123 = vmatmul.mubr.msk.bf16.vlgmr.msra.gmra.mxu0 %vm12595_vm12, %v9111_v43 }
 0xcb2   : > { %8130 = vmatprep.mubr.msk.bf16.mxu0 %vm12596_vm14, %v9707_v1 }
 0xd71   : > { %v8124_v27 = vpop.f32.mrf.mxu0 }
 0xd72   : > { %v11324_v37 = vadd.f32 %v8124_v27, %v3351_v7 }
 0xd73   : > { %v3410_v16 = vpop.f32.mrf.mxu0 }
 0xd74   : > { %v3432_v34 = vsel %vm3425_vm15, %v11324_v37, 0.0  ;;  %v11330_v11 = vadd.f32 %v3410_v16, %v3343_v32 }
 0xd75   : > { %3433 = vadd.xlane.f32.xlu1 %v3432_v34  ;;  %v8125_v33 = vpop.f32.mrf.mxu0 }
 0xd76   : > { %v11328_v12 = vadd.f32 %v8125_v33, %v3355_v44  ;;  %v3426_v35 = vsel %vm3425_vm15, %v11330_v11, 0.0 }
 0xd77   : > { %v3413_v5 = vpop.f32.mrf.mxu0 }
 0xd78   : > { %v11332_v45 = vadd.f32 %v3413_v5, %v3347_v38  ;;  %v3435_v21 = vsel %vm3425_vm15, %v11328_v12, 0.0 }
 0xd79   : > { %3436 = vadd.xlane.f32.xlu0 %v3435_v21 }
 0xd7a   : > { %v3429_v28 = vsel %vm3425_vm15, %v11332_v45, 0.0 }
 0xd7b   : > { %3430 = vadd.xlane.f32.xlu1 %v3429_v28 }
 0xd7d   : > { %3427 = vadd.xlane.f32.xlu0 %v3426_v35 }
 0xd8c   : > { %3518 = vrot.lane.b32.xlu1 %v9648_v60, %s9716_s8 }
 0xd90   : > { %3520 = vrot.lane.b32.xlu1 %v11357_v9, %s9716_s8 }
 0xd93   : > { %3446 = vrot.lane.b32.xlu0 %v11092_v55, %s9715_s9  ;;  %v9112_v55 = vld [vmem:[%s12499_s1 + $0x610] ss:$8 sps:$4 sm:$0xff]   ;;  %s9720_s9 = smov 120  }
 0xd94   : > { %3516 = vrot.lane.b32.xlu1 %v11363_v49, %s9716_s8 }
 0xd97   : > { %3514 = vrot.lane.b32.xlu0 %v11295_v48, %s9716_s8  ;;  %s9733_s8 = smov 3  }
 0xd98   : > { %3645 = vperm.xlu1 %8760, %v9648_v60  }
 0xd9c   : > { %8762 = vset.pattern.permute.xlu1 %v9692_v0 }
 0xdfe   : > { %v3434_v31 = vpop.xlane.xlu1 %3433 }
 0xdff   : > { %v3441_v6 = vmul.f32 0.015625, %v3434_v31 }
 0xe02   : > { %v3437_v53 = vpop.xlane.xlu0 %3436 }
 0xe03   : > { %v3442_v62 = vmul.f32 0.015625, %v3437_v53 }
 0xe04   : > { %v3431_v58 = vpop.xlane.xlu1 %3430 }
 0xe05   : > { %v3445_v8 = vpack.c.bf16 %v3442_v62, %v3441_v6  ;;  %v3440_v4 = vmul.f32 0.015625, %v3431_v58 }
 0xe06   : > { %v3428_v18 = vpop.xlane.xlu0 %3427 }
 0xe07   : > { %v3439_v63 = vmul.f32 0.015625, %v3428_v18  ;;  %8127 = vmatpush3.bf16.msra.mxu0 %v3445_v8  ;;  %v9718_v18 = vmov 13  }
 0xe08   : > { %8128 = vmatprep.subr.bf16.mxu0 %v9707_v1  ;;  %v3519_v39 = vpop.permute.xlu1 %3518 }
 0xe09   : > { %v3444_v56 = vpack.c.bf16 %v3440_v4, %v3439_v63  ;;  %v11382_v4 = vld [vmem:[%s12500_s2] sm:$0xff]  ;;  %v11388_v63 = vld [vmem:[%s12500_s2 + $0x8] sm:$0xff] }
 0xe0a   : > { %v3447_v40 = vpop.permute.xlu0 %3446 }
 0xe0b   : > { %8129 = vmatpush3.bf16.msra.mxu0 %v3444_v56 }
 0xe0c   : > { %v3521_v25 = vpop.permute.xlu1 %3520 }
 0xe0e   : > { %8131 = vmatmul.mubr.msk.bf16.vlgmr.msra.gmra.mxu0 %vm12597_vm13, %v3443_v22  ;;  %v3515_v24 = vpop.permute.xlu0 %3514 }
 0xe0f   : > { %8136 = vmatprep.mubr.msk.bf16.mxu0 %vm12598_vm3, %v9112_v55  ;;  %vm12608_vm3 = vcmask 7168  }
 0xe10   : > { %v3517_v43 = vpop.permute.xlu1 %3516 }
 0xece   : > { %v3486_v2 = vpop.f32.mrf.mxu0 }
 0xecf   : > { %v3487_v13 = vadd.f32 %v3486_v2, %v3447_v40 }
 0xed0   : > { %v8132_v42 = vpop.f32.mrf.mxu0 }
 0xed1   : > { %v7658_v54 = vmul.f32 -1.442695, %v3487_v13 }
 0xed2   : > { %v3489_v14 = vpop.f32.mrf.mxu0 }
 0xed3   : > { %9325 = vpow2.f32 %v7658_v54 }
 0xed4   : > { %v8133_v30 = vpop.f32.mrf.mxu0 }
 0xee0   : > { %v9326_v41 = vpop.eup %9325 }
 0xee1   : > { %v3495_v51 = vadd.f32 1.0, %v9326_v41 }
 0xee3   : > { %9327 = vrcp.f32 %v3495_v51 }
 0xef0   : > { %v9328_v26 = vpop.eup %9327 }
 0xef1   : > { %v3498_v52 = vmul.f32 %v9328_v26, %v3487_v13 }
 0xef3   : > { %v3503_v19 = vpack.c.bf16 %v3498_v52, %v3498_v52 }
 0xef5   : > { %8438 = vmatprep.subr.msk.bf16.mxu0 %vm12599_vm6, %v3503_v19  ;;  %v3533_v61 = vsel %vm12600_vm4, %v3503_v19, 0  ;;  %vm12609_vm6 = vmmov %vm12608_vm3  ;;  %vm3876_vm4 = vcmask 56320  }
 0xef6   : > { %8135 = vmatpush3.bf16.msra.mxu0 %v3533_v61 }
 0xef7   : > { %8140 = vmatprep.subr.bf16.mxu0 %v9707_v1 }
 0xef9   : > { %8137 = vmatmul.mubr.msk.bf16.vlgmr.msra.gmra.mxu0 %vm12601_vm0, %v9113_v10  ;;  %vm12610_vm0 = vcmask 64512  }
 0xefa   : > { %8144 = vmatprep.mubr.msk.bf16.mxu0 %vm12596_vm14, %v9707_v1 }
 0xfb9   : > { %v8138_v15 = vpop.f32.mrf.mxu0 }
 0xfba   : > { %v3578_v59 = vadd.f32 %v8138_v15, %v3519_v39 }
 0xfbb   : > { %v3569_v23 = vpop.f32.mrf.mxu0 }
 0xfbc   : > { %v7665_v17 = vmul.f32 -1.442695, %v3578_v59  ;;  %v3570_v57 = vadd.f32 %v3569_v23, %v3515_v24 }
 0xfbd   : > { %v8139_v50 = vpop.f32.mrf.mxu0 }
 0xfbe   : > { %9329 = vpow2.f32 %v7665_v17  ;;  %v7663_v7 = vmul.f32 -1.442695, %v3570_v57  ;;  %v3581_v44 = vadd.f32 %v8139_v50, %v3521_v25 }
 0xfbf   : > { %v3572_v27 = vpop.f32.mrf.mxu0 }
 0xfc0   : > { %9331 = vpow2.f32 %v7663_v7  ;;  %v7666_v16 = vmul.f32 -1.442695, %v3581_v44  ;;  %v3573_v34 = vadd.f32 %v3572_v27, %v3517_v43  ;;  %v9114_v27 = vld [vmem:[%s12499_s1 + $0x630] ss:$8 sps:$4 sm:$0xff]  }
 0xfc2   : > { %9333 = vpow2.f32 %v7666_v16  ;;  %v7664_v32 = vmul.f32 -1.442695, %v3573_v34 }
 0xfc4   : > { %9335 = vpow2.f32 %v7664_v32 }
 0xfcb   : > { %v9330_v33 = vpop.eup %9329 }
 0xfcc   : > { %v3598_v38 = vadd.f32 1.0, %v9330_v33 }
 0xfcd   : > { %v9332_v5 = vpop.eup %9331 }
 0xfce   : > { %9337 = vrcp.f32 %v3598_v38  ;;  %v3596_v21 = vadd.f32 1.0, %v9332_v5 }
 0xfcf   : > { %v9334_v28 = vpop.eup %9333 }
 0xfd0   : > { %9339 = vrcp.f32 %v3596_v21  ;;  %v3599_v35 = vadd.f32 1.0, %v9334_v28 }
 0xfd1   : > { %v9336_v31 = vpop.eup %9335 }
 0xfd2   : > { %v3597_v53 = vadd.f32 1.0, %v9336_v31  ;;  %9341 = vrcp.f32 %v3599_v35 }
 0xfd4   : > { %9343 = vrcp.f32 %v3597_v53 }
 0xfdb   : > { %v9338_v6 = vpop.eup %9337 }
 0xfdc   : > { %3620 = vperm.xlu0 %8761, %v9338_v6  }
 0xfdd   : > { %v9340_v62 = vpop.eup %9339 }
 0xfde   : > { %3610 = vperm.xlu1 %8762, %v9340_v62  }
 0xfdf   : > { %v9342_v58 = vpop.eup %9341 }
 0xfe1   : > { %v9344_v8 = vpop.eup %9343 }
 0xfe2   : > { %3615 = vperm.xlu0 %8761, %v9344_v8   ;;  %3625 = vperm.xlu1 %8762, %v9342_v58  }
 0xfe6   : > { %8763 = vset.pattern.permute.xlu0 %v9717_v36  ;;  %8764 = vset.pattern.permute.xlu1 %v9717_v36 }
 0xfe7   : > { %3649 = vperm.xlu0 %8763, %v11357_v9   ;;  %3637 = vperm.xlu1 %8764, %v11295_v48   ;;  %v3646_v48 = vpop.permute.xlu1 %3645 }
 0xfeb   : > { %3641 = vperm.xlu1 %8764, %v11363_v49   ;;  %8765 = vset.pattern.permute.xlu0 %v9718_v18 }
 0xfec   : > { %3824 = vperm.xlu0 %8765, %v11382_v4  }
 0xfef   : > { %8766 = vset.pattern.permute.xlu1 %v9718_v18 }
 0xff0   : > { %3828 = vperm.xlu1 %8766, %v11388_v63  }
0x1057   : > { %v3621_v56 = vpop.permute.xlu0 %3620 }
0x1058   : > { %v3630_v22 = vmul.f32 %v3621_v56, %v11324_v37 }
0x1059   : > { %v3611_v55 = vpop.permute.xlu1 %3610 }
0x105a   : > { %v3634_v60 = vadd.f32 %v11311_v29, %v3630_v22  ;;  %v3628_v49 = vmul.f32 %v3611_v55, %v11330_v11 }
0x105c   : > { %v3654_v9 = vadd.f32 %v3646_v48, %v3634_v60  ;;  %v3632_v30 = vadd.f32 %v11307_v20, %v3628_v49  ;;  %v9117_v60 = vld [vmem:[%s12499_s1 + $0x684] ss:$8 sps:$4 sm:$0xff]  }
0x105d   : > { %v3626_v40 = vpop.permute.xlu1 %3625  ;;  %v3616_v2 = vpop.permute.xlu0 %3615  ;;  %7711 = vmatprep.mubr.msk.bf16.mxu1 %vm12603_vm9, %v9117_v60  ;;  %vm3855_vm9 = vcmask 72704   ;;  %v9122_v60 = vld [vmem:[%s12499_s1 + $0x640] ss:$8 sps:$4 sm:$0xff]  }
0x105e   : > { %v7669_v13 = vmul.f32 -1.442695, %v3654_v9  ;;  %v3631_v42 = vmul.f32 %v3626_v40, %v11328_v12  ;;  %v3629_v14 = vmul.f32 %v3616_v2, %v11332_v45 }
0x1060   : > { %v3635_v54 = vadd.f32 %v11313_v46, %v3631_v42  ;;  %9345 = vpow2.f32 %v7669_v13  ;;  %v3633_v11 = vadd.f32 %v11309_v47, %v3629_v14 }
0x1062   : > { %v3638_v41 = vpop.permute.xlu1 %3637  ;;  %v3650_v37 = vpop.permute.xlu0 %3649 }
0x1063   : > { %v3652_v51 = vadd.f32 %v3638_v41, %v3632_v30  ;;  %v3655_v26 = vadd.f32 %v3650_v37, %v3635_v54 }
0x1065   : > { %v7667_v29 = vmul.f32 -1.442695, %v3652_v51  ;;  %v7670_v52 = vmul.f32 -1.442695, %v3655_v26 }
0x1066   : > { %v3642_v19 = vpop.permute.xlu1 %3641 }
0x1067   : > { %9347 = vpow2.f32 %v7667_v29  ;;  %v3653_v61 = vadd.f32 %v3642_v19, %v3633_v11  ;;  %v3825_v16 = vpop.permute.xlu0 %3824 }
0x1068   : > { %9349 = vpow2.f32 %v7670_v52 }
0x1069   : > { %v7668_v12 = vmul.f32 -1.442695, %v3653_v61 }
0x106b   : > { %9351 = vpow2.f32 %v7668_v12  ;;  %v3829_v38 = vpop.permute.xlu1 %3828 }
0x106d   : > { %v9346_v46 = vpop.eup %9345 }
0x106e   : > { %v3670_v10 = vadd.f32 1.0, %v9346_v46 }
0x1070   : > { %9353 = vrcp.f32 %v3670_v10 }
0x1074   : > { %v9348_v45 = vpop.eup %9347 }
0x1075   : > { %v9350_v36 = vpop.eup %9349  ;;  %v3668_v20 = vadd.f32 1.0, %v9348_v45 }
0x1076   : > { %v3671_v39 = vadd.f32 1.0, %v9350_v36 }
0x1078   : > { %v9352_v25 = vpop.eup %9351  ;;  %9355 = vrcp.f32 %v3671_v39 }
0x1079   : > { %9357 = vrcp.f32 %v3668_v20  ;;  %v3669_v15 = vadd.f32 1.0, %v9352_v25 }
0x107b   : > { %9359 = vrcp.f32 %v3669_v15 }
0x107d   : > { %v9354_v24 = vpop.eup %9353 }
0x107e   : > { %v3682_v23 = vmul.f32 %v9354_v24, %v3654_v9  ;;  %v3690_v9 = vand.u32 7, %v10101_v3 }
0x1080   : > { %vm3698_vm10 = vcmp.gt.s32.totalorder %v3690_v9, 0  ;;  %vm3699_vm12 = vcmp.lt.s32.totalorder %v3690_v9, 7  ;;  %v9125_v9 = vld [vmem:[%s12499_s1 + $0x670] ss:$8 sps:$4 sm:$0xff]  }
0x1081   : > { %vm11414_vm2 = vmpackc.low %vm3698_vm10, %vm3698_vm10 }
0x1082   : > { %vm11421_vm13 = vmpackc.low %vm3699_vm12, %vm3699_vm12  ;;  %vm12615_vm12 = vcmask 130048  }
0x1085   : > { %v9356_v47 = vpop.eup %9355 }
0x1086   : > { %v9358_v59 = vpop.eup %9357  ;;  %v3683_v17 = vmul.f32 %v9356_v47, %v3655_v26 }
0x1087   : > { %v3680_v43 = vmul.f32 %v9358_v59, %v3652_v51 }
0x1088   : > { %v9360_v57 = vpop.eup %9359  ;;  %v3685_v50 = vpack.c.bf16 %v3683_v17, %v3682_v23 }
0x1089   : > { %v3681_v7 = vmul.f32 %v9360_v57, %v3653_v61 }
0x108a   : > { %8141 = vmatpush3.bf16.msra.mxu0 %v3685_v50 }
0x108b   : > { %v3684_v44 = vpack.c.bf16 %v3681_v7, %v3680_v43  ;;  %8142 = vmatprep.subr.bf16.mxu0 %v9707_v1 }
0x108e   : > { %8143 = vmatpush3.bf16.msra.mxu0 %v3684_v44 }
0x1091   : > { %8145 = vmatmul.mubr.msk.bf16.vlgmr.msra.gmra.mxu0 %vm12602_vm7, %v9114_v27  ;;  %vm7700_vm7 = vmneg %vm12610_vm0 }
0x1092   : > { %8148 = vmatprep.mubr.msk.bf16.mxu0 %vm12596_vm14, %v9707_v1  ;;  %vm7702_vm1 = vmpackc.low %vm7700_vm7, %vm7700_vm7 }
0x1151   : > { %v3784_v34 = vpop.f32.mrf.mxu0 }
0x1152   : > { %v3831_v32 = vadd.f32 %v3825_v16, %v3784_v34 }
0x1153   : > { %v8146_v33 = vpop.f32.mrf.mxu0 }
0x1154   : > { %v7681_v5 = vmul.f32 -1.442695, %v3831_v32 }
0x1155   : > { %v3787_v21 = vpop.f32.mrf.mxu0 }
0x1156   : > { %9361 = vpow2.f32 %v7681_v5  ;;  %v3832_v28 = vadd.f32 %v3829_v38, %v3787_v21 }
0x1157   : > { %v8147_v35 = vpop.f32.mrf.mxu0 }
0x1158   : > { %v7682_v31 = vmul.f32 -1.442695, %v3832_v28 }
0x115a   : > { %9363 = vpow2.f32 %v7682_v31  ;;  %v9115_v31 = vld [vmem:[%s12499_s1 + $0x680] ss:$8 sps:$4 sm:$0xff]  }
0x1163   : > { %v9362_v53 = vpop.eup %9361 }
0x1164   : > { %v3839_v6 = vadd.f32 1.0, %v9362_v53  ;;  %v9118_v53 = vld [vmem:[%s12499_s1 + $0x6c0] ss:$8 sps:$4 sm:$0xff]  }
0x1166   : > { %9365 = vrcp.f32 %v3839_v6  ;;  %v9119_v6 = vld [vmem:[%s12499_s1 + $0x6b0] ss:$8 sps:$4 sm:$0xff]  }
0x1167   : > { %v9364_v62 = vpop.eup %9363 }
0x1168   : > { %v3840_v58 = vadd.f32 1.0, %v9364_v62  ;;  %v9120_v62 = vld [vmem:[%s12499_s1 + $0x6a0] ss:$8 sps:$4 sm:$0xff]  }
0x116a   : > { %9367 = vrcp.f32 %v3840_v58  ;;  %v9121_v58 = vld [vmem:[%s12499_s1 + $0x690] ss:$8 sps:$4 sm:$0xff]  }
0x1173   : > { %v9366_v8 = vpop.eup %9365 }
0x1174   : > { %v3845_v48 = vmul.f32 %v9366_v8, %v3831_v32  ;;  %v9725_v8 = vmov 15  }
0x1175   : > { %8807 = vset.pattern.permute.xlu1 %v9725_v8  ;;  %8808 = vset.pattern.permute.xlu0 %v9725_v8 }
0x1177   : > { %v9368_v18 = vpop.eup %9367 }
0x1178   : > { %v3846_v56 = vmul.f32 %v9368_v18, %v3832_v28 }
0x117a   : > { %v8772_v22 = vpack.i.bf16 %v3846_v56, %v3845_v48  ;;  %v3939_v55 = vpack.c.bf16 %v3846_v56, %v3845_v48 }
0x117c   : > { %8773 = vrot.lane.b32.xlu0 %v8772_v22, %s9719_s30  ;;  %8768 = vrot.lane.b32.xlu1 %v8772_v22, %s9720_s9  ;;  %s9737_s30 = smov 105  }
0x1180   : > { %8783 = vrot.lane.b32.xlu0 %v8772_v22, %s9693_s24  ;;  %8778 = vrot.lane.b32.xlu1 %v8772_v22, %s9694_s25 }
0x1184   : > { %8793 = vrot.lane.b32.xlu0 %v8772_v22, %s9721_s4  ;;  %8788 = vrot.lane.b32.xlu1 %v8772_v22, %s9722_s6 }
0x1188   : > { %8803 = vrot.lane.b32.xlu0 %v8772_v22, %s9723_s7  ;;  %8798 = vrot.lane.b32.xlu1 %v8772_v22, %s9724_s11  ;;  %s9730_s11 = smov 125   ;;  %s9746_s7 = smov 97  }
0x118c   : > { %4125 = vperm.xlu1 %8807, %v11382_v4   ;;  %4129 = vperm.xlu0 %8808, %v11388_v63   ;;  %v9123_v4 = vld [vmem:[%s12499_s1 + $0x650] ss:$8 sps:$4 sm:$0xff]   ;;  %v9124_v63 = vld [vmem:[%s12499_s1 + $0x660] ss:$8 sps:$4 sm:$0xff]  }
0x11ee   : > { %v8774_v49 = vpop.permute.xlu0 %8773  ;;  %v8769_v40 = vpop.permute.xlu1 %8768 }
0x11ef   : > { %v8776_v2 = vunpack.i.h.bf16 %v8774_v49  ;;  %v8775_v13 = vunpack.i.l.bf16 %v8774_v49  ;;  %v8771_v42 = vunpack.i.h.bf16 %v8769_v40  ;;  %v8770_v54 = vunpack.i.l.bf16 %v8769_v40  ;;  %v9126_v49 = vld [vmem:[%s12499_s1 + $0x6d0] ss:$8 sps:$4 sm:$0xff]  }
0x11f0   : > { %v11500_v40 = vld [vmem:[%s12500_s2 + $0x30] sm:$0xff] }
0x11f1   : > { %v7686_v14 = vpack.c.bf16 %v8771_v42, %v8770_v54  ;;  %v3912_v30 = vsel %vm3910_vm8, %v8776_v2, 0.0  ;;  %v3911_v41 = vsel %vm3910_vm8, %v8775_v13, 0.0  ;;  %vm3930_vm8 = vcmask 449536   ;;  %v11505_v13 = vld [vmem:[%s12500_s2 + $0x20] sm:$0xff]  ;;  %v11512_v42 = vld [vmem:[%s12500_s2 + $0x38] sm:$0xff] }
0x11f2   : > { %v8779_v37 = vpop.permute.xlu1 %8778  ;;  %v7689_v52 = vpack.c.bf16 %v3912_v30, %v3911_v41  ;;  %v8784_v61 = vpop.permute.xlu0 %8783  ;;  %v9726_v2 = vmov 16   ;;  %v11517_v54 = vld [vmem:[%s12500_s2 + $0x18] sm:$0xff]  ;;  %v11529_v30 = vld [vmem:[%s12500_s2 + $0x8] sm:$0xff]  ;;  %v11536_v41 = vld [vmem:[%s12500_s2 + $0x10] sm:$0xff] }
0x11f3   : > { %v8781_v51 = vunpack.i.h.bf16 %v8779_v37  ;;  %v8780_v26 = vunpack.i.l.bf16 %v8779_v37  ;;  %7687 = vmatpush1.bf16.msk.msra.mxu1 %vm7685_vm5, %v7686_v14  ;;  %v8786_v10 = vunpack.i.h.bf16 %v8784_v61  ;;  %v8785_v45 = vunpack.i.l.bf16 %v8784_v61  ;;  %8809 = vset.pattern.permute.xlu1 %v9726_v2  ;;  %v11524_v14 = vld [vmem:[%s12500_s2 + $0x28] sm:$0xff]  ;;  %v11542_v37 = vld [vmem:[%s12500_s2] sm:$0xff] }
0x11f4   : > { %3960 = vmatprep.subr.bf16.mxu1 %v9692_v0  ;;  %vm12611_vm5 = vcmask 261120   ;;  %8810 = vset.pattern.permute.xlu0 %v9726_v2 }
0x11f5   : > { %v3901_v11 = vsel %vm3899_vm11, %v8781_v51, 0.0  ;;  %v3900_v19 = vsel %vm3899_vm11, %v8780_v26, 0.0  ;;  %v3890_v20 = vsel %vm12608_vm3, 0.0, %v8786_v10  ;;  %v3889_v39 = vsel %vm12609_vm6, 0.0, %v8785_v45  ;;  %8149 = vmatmul.mubr.msk.bf16.gmra.mxu0 %vm12611_vm5, %v9122_v60  ;;  %vm12612_vm10 = vmmov %vm12611_vm5  ;;  %4197 = vperm.xlu1 %8809, %v11500_v40  }
0x11f6   : > { %v7692_v46 = vpack.c.bf16 %v3901_v11, %v3900_v19  ;;  %v8789_v36 = vpop.permute.xlu1 %8788  ;;  %v7695_v24 = vpack.c.bf16 %v3890_v20, %v3889_v39  ;;  %v8794_v47 = vpop.permute.xlu0 %8793  ;;  %8152 = vmatprep.mubr.msk.bf16.mxu0 %vm12596_vm14, %v9707_v1  ;;  %vm12613_vm11 = vmmov %vm12611_vm5  ;;  %4187 = vperm.xlu0 %8810, %v11505_v13  }
0x11f7   : > { %7690 = vmatpush1.bf16.msk.msra.mxu1 %vm11414_vm2, %v7689_v52  ;;  %v8791_v25 = vunpack.i.h.bf16 %v8789_v36  ;;  %v8790_v15 = vunpack.i.l.bf16 %v8789_v36  ;;  %v8796_v57 = vunpack.i.h.bf16 %v8794_v47  ;;  %v8795_v50 = vunpack.i.l.bf16 %v8794_v47  ;;  %vm12617_vm3 = vmmov %vm12615_vm12 }
0x11f8   : > { %3962 = vmatprep.subr.bf16.mxu1 %v9692_v0  ;;  %vm12618_vm6 = vmmov %vm12617_vm3 }
0x11f9   : > { %v3878_v59 = vsel %vm3876_vm4, 0.0, %v8791_v25  ;;  %v3877_v23 = vsel %vm3876_vm4, 0.0, %v8790_v15  ;;  %v7703_v16 = vpack.c.bf16 %v8796_v57, %v8795_v50  ;;  %4202 = vperm.xlu1 %8809, %v11512_v42   ;;  %v9129_v57 = vld [vmem:[%s12499_s1 + $0x700] ss:$8 sps:$4 sm:$0xff]   ;;  %vm12619_vm4 = vmmov %vm12617_vm3 }
0x11fa   : > { %v8799_v17 = vpop.permute.xlu1 %8798  ;;  %v7698_v43 = vpack.c.bf16 %v3878_v59, %v3877_v23  ;;  %v8804_v27 = vpop.permute.xlu0 %8803  ;;  %4182 = vperm.xlu0 %8810, %v11517_v54   ;;  %v9127_v23 = vld [vmem:[%s12499_s1 + $0x6e0] ss:$8 sps:$4 sm:$0xff]   ;;  %vm12620_vm0 = vmmov %vm12617_vm3 }
0x11fb   : > { %7693 = vmatpush1.bf16.msk.msra.mxu1 %vm11421_vm13, %v7692_v46  ;;  %v8801_v7 = vunpack.i.h.bf16 %v8799_v17  ;;  %v8800_v44 = vunpack.i.l.bf16 %v8799_v17  ;;  %v8806_v34 = vunpack.i.h.bf16 %v8804_v27  ;;  %v8805_v32 = vunpack.i.l.bf16 %v8804_v27  ;;  %v9128_v17 = vld [vmem:[%s12499_s1 + $0x6f0] ss:$8 sps:$4 sm:$0xff]   ;;  %vm12621_vm7 = vmmov %vm12620_vm0 }
0x11fc   : > { %3964 = vmatprep.subr.bf16.mxu1 %v9692_v0 }
0x11fd   : > { %v3857_v33 = vsel %vm3855_vm9, 0.0, %v8801_v7  ;;  %v3856_v38 = vsel %vm3855_vm9, 0.0, %v8800_v44  ;;  %v3932_v21 = vsel %vm3930_vm8, %v8806_v34, 0.0  ;;  %v3931_v28 = vsel %vm3930_vm8, %v8805_v32, 0.0  ;;  %8153 = vmatmul.mubr.msk.bf16.gmra.mxu0 %vm12612_vm10, %v9123_v4  ;;  %4192 = vperm.xlu1 %8809, %v11524_v14   ;;  %vm12622_vm9 = vmmov %vm12620_vm0 }
0x11fe   : > { %v7706_v5 = vpack.c.bf16 %v3857_v33, %v3856_v38  ;;  %v7709_v35 = vpack.c.bf16 %v3932_v21, %v3931_v28  ;;  %8156 = vmatprep.mubr.msk.bf16.mxu0 %vm12596_vm14, %v9707_v1  ;;  %4172 = vperm.xlu0 %8810, %v11529_v30   ;;  %vm12624_vm8 = vmmov %vm12620_vm0 }
0x11ff   : > { %3965 = vmatpush1.bf16.msra.mxu1 %v3939_v55  ;;  %vm12626_vm10 = vmmov %vm12620_vm0 }
0x1200   : > { %3966 = vmatprep.subr.bf16.mxu1 %v9692_v0 }
0x1201   : > { %4177 = vperm.xlu1 %8809, %v11536_v41  }
0x1203   : > { %7696 = vmatpush1.bf16.msk.msra.mxu1 %vm11414_vm2, %v7695_v24 }
0x1204   : > { %3968 = vmatprep.subr.bf16.mxu1 %v9692_v0 }
0x1205   : > { %8157 = vmatmul.mubr.msk.bf16.gmra.mxu0 %vm12613_vm11, %v9124_v63  ;;  %4167 = vperm.xlu1 %8809, %v11542_v37   ;;  %vm4448_vm11 = vcmask 31744  }
0x1206   : > { %8160 = vmatprep.mubr.msk.bf16.mxu0 %vm12596_vm14, %v9707_v1 }
0x1207   : > { %7699 = vmatpush1.bf16.msk.msra.mxu1 %vm11421_vm13, %v7698_v43  ;;  %v4126_v51 = vpop.permute.xlu1 %4125  ;;  %v4130_v11 = vpop.permute.xlu0 %4129 }
0x1208   : > { %3970 = vmatprep.subr.bf16.mxu1 %v9692_v0 }
0x120b   : > { %7704 = vmatpush1.bf16.msk.msra.mxu1 %vm7702_vm1, %v7703_v16  ;;  %vm12623_vm1 = vmmov %vm12620_vm0 }
0x120c   : > { %3972 = vmatprep.subr.bf16.mxu1 %v9692_v0 }
0x120f   : > { %7707 = vmatpush1.bf16.msk.msra.mxu1 %vm11414_vm2, %v7706_v5  ;;  %vm12614_vm2 = vmmov %vm12611_vm5 }
0x1210   : > { %3988 = vmatprep.subr.bf16.mxu1 %v9692_v0  ;;  %8161 = vmatmul.mubr.msk.bf16.gmra.mxu0 %vm12614_vm2, %v9125_v9  ;;  %vm12625_vm5 = vmmov %vm12620_vm0  ;;  %vm4461_vm2 = vcmask 1041408  }
0x1211   : > { %8194 = vmatprep.mubr.msk.bf16.mxu0 %vm12615_vm12, %v9126_v49 }
0x1213   : > { %7710 = vmatpush2.bf16.msk.msra.mxu1 %vm11421_vm13, %v7709_v35  ;;  %vm12616_vm13 = vmmov %vm12615_vm12 }
0x1214   : > { %8164 = vmatprep.subr.bf16.mxu1 %v9707_v1  ;;  %vm12627_vm12 = vmmov %vm12620_vm0 }
0x1216   : > { %3991 = vmatmul.mubr.bf16.vlgmr.msra.gmra.mxu1 %v9115_v31 }
0x1217   : > { %8165 = vmatpush3.bf16.msra.mxu1 %v9118_v53  ;;  %8172 = vmatprep.mubr.msk.bf16.mxu1 %vm12596_vm14, %v9707_v1 }
0x1218   : > { %8166 = vmatprep.subr.bf16.mxu1 %v9707_v1 }
0x121b   : > { %8167 = vmatpush3.bf16.msra.mxu1 %v9119_v6 }
0x121c   : > { %8168 = vmatprep.subr.bf16.mxu1 %v9707_v1 }
0x121f   : > { %8169 = vmatpush3.bf16.msra.mxu1 %v9120_v62 }
0x1220   : > { %8170 = vmatprep.subr.bf16.mxu1 %v9707_v1 }
0x1223   : > { %8171 = vmatpush3.bf16.msra.mxu1 %v9121_v58 }
0x1224   : > { %8224 = vmatprep.subr.bf16.mxu1 %v9707_v1 }
0x1271   : > { %v4188_v60 = vpop.permute.xlu0 %4187 }
0x12b5   : > { %v3792_v50 = vpop.f32.mrf.mxu0 }
0x12b7   : > { %v8150_v43 = vpop.f32.mrf.mxu0 }
0x12b9   : > { %v3795_v7 = vpop.f32.mrf.mxu0 }
0x12ba   : > { %v4000_v44 = vpack.c.bf16 %v3795_v7, %v3792_v50 }
0x12bb   : > { %v8151_v27 = vpop.f32.mrf.mxu0 }
0x12bd   : > { %v3800_v16 = vpop.f32.mrf.mxu0 }
0x12bf   : > { %v8154_v34 = vpop.f32.mrf.mxu0 }
0x12c1   : > { %v3803_v32 = vpop.f32.mrf.mxu0 }
0x12c2   : > { %v4001_v33 = vpack.c.bf16 %v3803_v32, %v3800_v16 }
0x12c3   : > { %v8155_v38 = vpop.f32.mrf.mxu0 }
0x12c5   : > { %v3808_v5 = vpop.f32.mrf.mxu0 }
0x12c7   : > { %v8158_v21 = vpop.f32.mrf.mxu0 }
0x12c9   : > { %v3811_v28 = vpop.f32.mrf.mxu0 }
0x12ca   : > { %v4002_v35 = vpack.c.bf16 %v3811_v28, %v3808_v5 }
0x12cb   : > { %v8159_v31 = vpop.f32.mrf.mxu0 }
0x12d0   : > { %v3816_v53 = vpop.f32.mrf.mxu0 }
0x12d2   : > { %v8162_v6 = vpop.f32.mrf.mxu0 }
0x12d4   : > { %v3819_v62 = vpop.f32.mrf.mxu0 }
0x12d5   : > { %v4003_v58 = vpack.c.bf16 %v3819_v62, %v3816_v53 }
0x12d6   : > { %v3992_v18 = vpop.f32.mrf.mxu1  ;;  %v8163_v8 = vpop.f32.mrf.mxu0 }
0x12d8   : > { %v3994_v48 = vpop.f32.mrf.mxu1 }
0x12da   : > { %v3995_v56 = vpop.f32.mrf.mxu1 }
0x12db   : > { %v3999_v22 = vpack.c.bf16 %v3995_v56, %v3992_v18  ;;  %v4198_v18 = vpop.permute.xlu1 %4197 }
0x12dc   : > { %v3997_v55 = vpop.f32.mrf.mxu1 }
0x12dd   : > { %8173 = vmatmul.mubr.msk.bf16.vlgmr.msra.gmra.mxu1 %vm3425_vm15, %v3999_v22 }
0x12de   : > { %8176 = vmatprep.mubr.msk.bf16.mxu1 %vm12596_vm14, %v9707_v1 }
0x12df   : > { %v4203_v56 = vpop.permute.xlu1 %4202 }
0x12e3   : > { %v4193_v63 = vpop.permute.xlu1 %4192 }
0x12e5   : > { %8177 = vmatmul.mubr.msk.bf16.gmra.mxu1 %vm3425_vm15, %v4000_v44 }
0x12e6   : > { %8180 = vmatprep.mubr.msk.bf16.mxu1 %vm12596_vm14, %v9707_v1 }
0x12ed   : > { %8181 = vmatmul.mubr.msk.bf16.gmra.mxu1 %vm3425_vm15, %v4001_v33  ;;  %v4340_v33 = vld [vmem:[%s12500_s2] sm:$0xf] }
0x12ee   : > { %8184 = vmatprep.mubr.msk.bf16.mxu1 %vm12596_vm14, %v9707_v1 }
0x12f5   : > { %8185 = vmatmul.mubr.msk.bf16.gmra.mxu1 %vm3425_vm15, %v4002_v35 }
0x12f6   : > { %8188 = vmatprep.mubr.msk.bf16.mxu1 %vm12596_vm14, %v9707_v1 }
0x12fd   : > { %8189 = vmatmul.mubr.msk.bf16.gmra.mxu1 %vm3425_vm15, %v4003_v58 }
0x12fe   : > { %8232 = vmatprep.mubr.msk.bf16.mxu1 %vm12596_vm14, %v9707_v1 }
0x139d   : > { %v4085_v26 = vpop.f32.mrf.mxu1 }
0x139e   : > { %v4132_v29 = vadd.f32 %v4126_v51, %v4085_v26  ;;  %v4183_v26 = vpop.permute.xlu0 %4182 }
0x139f   : > { %v8174_v52 = vpop.f32.mrf.mxu1 }
0x13a0   : > { %v7721_v19 = vmul.f32 -1.442695, %v4132_v29 }
0x13a1   : > { %v4088_v61 = vpop.f32.mrf.mxu1 }
0x13a2   : > { %9369 = vpow2.f32 %v7721_v19  ;;  %v4133_v12 = vadd.f32 %v4130_v11, %v4088_v61  ;;  %v4178_v11 = vpop.permute.xlu1 %4177 }
0x13a3   : > { %v8175_v46 = vpop.f32.mrf.mxu1 }
0x13a4   : > { %v7722_v10 = vmul.f32 -1.442695, %v4133_v12 }
0x13a6   : > { %9371 = vpow2.f32 %v7722_v10 }
0x13af   : > { %v9370_v45 = vpop.eup %9369 }
0x13b0   : > { %v4140_v36 = vadd.f32 1.0, %v9370_v45 }
0x13b2   : > { %9373 = vrcp.f32 %v4140_v36  ;;  %v4173_v36 = vpop.permute.xlu0 %4172 }
0x13b3   : > { %v9372_v20 = vpop.eup %9371 }
0x13b4   : > { %v4141_v39 = vadd.f32 1.0, %v9372_v20 }
0x13b6   : > { %9375 = vrcp.f32 %v4141_v39 }
0x13bf   : > { %v9374_v25 = vpop.eup %9373 }
0x13c0   : > { %v4146_v24 = vmul.f32 %v9374_v25, %v4132_v29  ;;  %v4168_v25 = vpop.permute.xlu1 %4167 }
0x13c3   : > { %v9376_v15 = vpop.eup %9375 }
0x13c4   : > { %v4147_v47 = vmul.f32 %v9376_v15, %v4133_v12 }
0x13c6   : > { %v4156_v59 = vpack.c.bf16 %v4147_v47, %v4146_v24 }
0x13c8   : > { %8192 = vmatprep.subr.bf16.mxu0 %v4156_v59 }
0x13c9   : > { %8193 = vmatpush3.bf16.msra.mxu0 %v4156_v59 }
0x13ca   : > { %8202 = vmatprep.subr.bf16.mxu0 %v9707_v1 }
0x13cc   : > { %8195 = vmatmul.mubr.msk.bf16.vlgmr.msra.gmra.mxu0 %vm12616_vm13, %v9127_v23  ;;  %vm4968_vm13 = vcmask 97280  }
0x13cd   : > { %8198 = vmatprep.mubr.msk.bf16.mxu0 %vm12617_vm3, %v9128_v17  ;;  %vm4957_vm3 = vcmask 105472  }
0x13d4   : > { %8199 = vmatmul.mubr.msk.bf16.gmra.mxu0 %vm12618_vm6, %v9129_v57  ;;  %v11604_v57 = vpop.f32.mrf.mxu1  ;;  %vm7771_vm6 = vmpackc.low %vm4968_vm13, %vm4968_vm13 }
0x13d5   : > { %8210 = vmatprep.mubr.msk.bf16.mxu0 %vm12596_vm14, %v9707_v1  ;;  %vm7786_vm13 = vmneg %vm4448_vm11 }
0x13d6   : > { %v8178_v50 = vpop.f32.mrf.mxu1 }
0x13d8   : > { %v11606_v43 = vpop.f32.mrf.mxu1 }
0x13da   : > { %v8179_v7 = vpop.f32.mrf.mxu1 }
0x13dc   : > { %v11608_v44 = vpop.f32.mrf.mxu1 }
0x13de   : > { %v8182_v27 = vpop.f32.mrf.mxu1 }
0x13e0   : > { %v11610_v16 = vpop.f32.mrf.mxu1 }
0x13e2   : > { %v8183_v34 = vpop.f32.mrf.mxu1 }
0x13e4   : > { %v11612_v32 = vpop.f32.mrf.mxu1 }
0x13e6   : > { %v8186_v38 = vpop.f32.mrf.mxu1 }
0x13e8   : > { %v11618_v5 = vpop.f32.mrf.mxu1 }
0x13ea   : > { %v8187_v21 = vpop.f32.mrf.mxu1 }
0x13ec   : > { %v11620_v28 = vpop.f32.mrf.mxu1 }
0x13ee   : > { %v8190_v35 = vpop.f32.mrf.mxu1 }
0x13ef   : > { %v9131_v35 = vld [vmem:[%s12499_s1 + $0x730] ss:$8 sps:$4 sm:$0xff]  }
0x13f0   : > { %v11622_v31 = vpop.f32.mrf.mxu1 }
0x13f2   : > { %v8191_v53 = vpop.f32.mrf.mxu1 }
0x13f3   : > { %v9132_v53 = vld [vmem:[%s12499_s1 + $0x740] ss:$8 sps:$4 sm:$0xff]  }
0x148c   : > { %v8196_v48 = vpop.f32.mrf.mxu0 }
0x148d   : > { %v11588_v20 = vadd.f32 %v8196_v48, %v4178_v11 }
0x148e   : > { %v4271_v22 = vpop.f32.mrf.mxu0 }
0x148f   : > { %v11596_v47 = vadd.f32 %v4271_v22, %v4168_v25  ;;  %v4308_v59 = vsel %vm12624_vm8, %v11588_v20, 0.0 }
0x1490   : > { %v8197_v55 = vpop.f32.mrf.mxu0 }
0x1491   : > { %v11584_v10 = vadd.f32 %v8197_v55, %v4183_v26  ;;  %v4302_v17 = vsel %vm12626_vm10, %v11596_v47, 0.0 }
0x1492   : > { %v4274_v4 = vpop.f32.mrf.mxu0 }
0x1493   : > { %v11592_v15 = vadd.f32 %v4274_v4, %v4173_v36  ;;  %v4311_v24 = vsel %vm12623_vm1, %v11584_v10, 0.0  ;;  %v9130_v36 = vld [vmem:[%s12499_s1 + $0x720] ss:$8 sps:$4 sm:$0xff]  }
0x1494   : > { %v8200_v9 = vpop.f32.mrf.mxu0 }
0x1495   : > { %v11572_v49 = vadd.f32 %v8200_v9, %v4198_v18  ;;  %v4305_v23 = vsel %vm12625_vm5, %v11592_v15, 0.0  ;;  %vm12634_vm5 = vcmask 7168  }
0x1496   : > { %v4287_v2 = vpop.f32.mrf.mxu0  ;;  %vm12635_vm10 = vmmov %vm12634_vm5 }
0x1497   : > { %v4320_v51 = vsel %vm12619_vm4, %v11572_v49, 0.0  ;;  %v11578_v61 = vadd.f32 %v4287_v2, %v4188_v60 }
0x1498   : > { %4321 = vadd.xlane.f32.xlu1 %v4320_v51  ;;  %v8201_v29 = vpop.f32.mrf.mxu0 }
0x1499   : > { %v11576_v52 = vadd.f32 %v8201_v29, %v4203_v56  ;;  %v4314_v39 = vsel %vm12622_vm9, %v11578_v61, 0.0  ;;  %vm12630_vm9 = vcmask 121856  }
0x149a   : > { %v4290_v19 = vpop.f32.mrf.mxu0  ;;  %vm12631_vm1 = vmmov %vm12630_vm9 }
0x149b   : > { %v11580_v12 = vadd.f32 %v4290_v19, %v4193_v63  ;;  %v4323_v46 = vsel %vm12620_vm0, %v11576_v52, 0.0 }
0x149c   : > { %4324 = vadd.xlane.f32.xlu0 %v4323_v46 }
0x149d   : > { %v4317_v45 = vsel %vm12621_vm7, %v11580_v12, 0.0 }
0x149e   : > { %4318 = vadd.xlane.f32.xlu1 %v4317_v45  ;;  %v4335_v45 = vld [vmem:[%s12499_s1 + $0x710] sm:$0x33] }
0x14a0   : > { %4315 = vadd.xlane.f32.xlu0 %v4314_v39 }
0x14a2   : > { %4312 = vadd.xlane.f32.xlu1 %v4311_v24 }
0x14a4   : > { %4309 = vadd.xlane.f32.xlu0 %v4308_v59 }
0x14a6   : > { %4306 = vadd.xlane.f32.xlu1 %v4305_v23 }
0x14a8   : > { %4303 = vadd.xlane.f32.xlu0 %v4302_v17 }
0x14b7   : > { %4436 = vrot.lane.b32.xlu1 %v11500_v40, %s9727_s17 }
0x14bb   : > { %4438 = vrot.lane.b32.xlu1 %v11512_v42, %s9727_s17 }
0x14be   : > { %4342 = vrot.lane.b32.xlu0 %v4340_v33, %s9699_s10  ;;  %s9744_s10 = smov 99  }
0x14bf   : > { %4434 = vrot.lane.b32.xlu1 %v11524_v14, %s9727_s17 }
0x14c2   : > { %4432 = vrot.lane.b32.xlu0 %v11505_v13, %s9727_s17 }
0x14c3   : > { %4430 = vrot.lane.b32.xlu1 %v11517_v54, %s9727_s17 }
0x14c6   : > { %4428 = vrot.lane.b32.xlu0 %v11536_v41, %s9727_s17 }
0x14c7   : > { %4426 = vrot.lane.b32.xlu1 %v11529_v30, %s9727_s17 }
0x14ca   : > { %4424 = vrot.lane.b32.xlu0 %v11542_v37, %s9727_s17 }
0x1521   : > { %v4322_v6 = vpop.xlane.xlu1 %4321 }
0x1522   : > { %v4333_v58 = vmul.f32 0.0625, %v4322_v6  ;;  %v9133_v6 = vld [vmem:[%s12499_s1 + $0x750] ss:$8 sps:$4 sm:$0xff]  }
0x1525   : > { %v4325_v62 = vpop.xlane.xlu0 %4324 }
0x1526   : > { %v4334_v8 = vmul.f32 0.0625, %v4325_v62  ;;  %v9728_v62 = vmov 14  }
0x1527   : > { %v4319_v18 = vpop.xlane.xlu1 %4318  ;;  %8811 = vset.pattern.permute.xlu1 %v9728_v62  ;;  %8812 = vset.pattern.permute.xlu0 %v9728_v62 }
0x1528   : > { %v4339_v48 = vpack.c.bf16 %v4334_v8, %v4333_v58  ;;  %v4332_v22 = vmul.f32 0.0625, %v4319_v18  ;;  %4659 = vperm.xlu1 %8811, %v11500_v40   ;;  %4663 = vperm.xlu0 %8812, %v11512_v42  }
0x1529   : > { %v4316_v56 = vpop.xlane.xlu0 %4315 }
0x152a   : > { %v4331_v55 = vmul.f32 0.0625, %v4316_v56  ;;  %8203 = vmatpush3.bf16.msra.mxu0 %v4339_v48 }
0x152b   : > { %v4313_v60 = vpop.xlane.xlu1 %4312  ;;  %8204 = vmatprep.subr.bf16.mxu0 %v9707_v1 }
0x152c   : > { %v4338_v4 = vpack.c.bf16 %v4332_v22, %v4331_v55  ;;  %v4330_v9 = vmul.f32 0.0625, %v4313_v60  ;;  %4655 = vperm.xlu1 %8811, %v11524_v14   ;;  %4651 = vperm.xlu0 %8812, %v11505_v13  }
0x152d   : > { %v4310_v63 = vpop.xlane.xlu0 %4309 }
0x152e   : > { %v4329_v2 = vmul.f32 0.0625, %v4310_v63  ;;  %8205 = vmatpush3.bf16.msra.mxu0 %v4338_v4 }
0x152f   : > { %v4307_v51 = vpop.xlane.xlu1 %4306  ;;  %8206 = vmatprep.subr.bf16.mxu0 %v9707_v1 }
0x1530   : > { %v4337_v26 = vpack.c.bf16 %v4330_v9, %v4329_v2  ;;  %v4328_v11 = vmul.f32 0.0625, %v4307_v51  ;;  %8813 = vset.pattern.permute.xlu1 %v9692_v0  ;;  %8814 = vset.pattern.permute.xlu0 %v9692_v0 }
0x1531   : > { %v4304_v29 = vpop.xlane.xlu0 %4303 }
0x1532   : > { %v4327_v19 = vmul.f32 0.0625, %v4304_v29  ;;  %8207 = vmatpush3.bf16.msra.mxu0 %v4337_v26 }
0x1533   : > { %8208 = vmatprep.subr.bf16.mxu0 %v9707_v1  ;;  %v4437_v58 = vpop.permute.xlu1 %4436 }
0x1534   : > { %v4336_v46 = vpack.c.bf16 %v4328_v11, %v4327_v19 }
0x1535   : > { %v4343_v39 = vpop.permute.xlu0 %4342 }
0x1536   : > { %8209 = vmatpush3.bf16.msra.mxu0 %v4336_v46 }
0x1537   : > { %v4439_v18 = vpop.permute.xlu1 %4438 }
0x1539   : > { %8211 = vmatmul.mubr.msk.bf16.vlgmr.msra.gmra.mxu0 %vm3425_vm15, %v4335_v45  ;;  %v4433_v8 = vpop.permute.xlu0 %4432 }
0x153a   : > { %8216 = vmatprep.mubr.msk.bf16.mxu0 %vm4448_vm11, %v9130_v36 }
0x153b   : > { %v4435_v56 = vpop.permute.xlu1 %4434 }
0x153d   : > { %v4429_v48 = vpop.permute.xlu0 %4428 }
0x153f   : > { %v4431_v4 = vpop.permute.xlu1 %4430 }
0x1541   : > { %v4425_v55 = vpop.permute.xlu0 %4424 }
0x1543   : > { %v4427_v26 = vpop.permute.xlu1 %4426 }
0x15f9   : > { %v4382_v25 = vpop.f32.mrf.mxu0 }
0x15fa   : > { %v4383_v24 = vadd.f32 %v4382_v25, %v4343_v39 }
0x15fb   : > { %v8212_v59 = vpop.f32.mrf.mxu0 }
0x15fc   : > { %v7732_v23 = vmul.f32 -1.442695, %v4383_v24 }
0x15fd   : > { %v4385_v17 = vpop.f32.mrf.mxu0 }
0x15fe   : > { %9377 = vpow2.f32 %v7732_v23 }
0x15ff   : > { %v8213_v50 = vpop.f32.mrf.mxu0 }
0x160b   : > { %v9378_v7 = vpop.eup %9377 }
0x160c   : > { %v4391_v27 = vadd.f32 1.0, %v9378_v7 }
0x160e   : > { %9379 = vrcp.f32 %v4391_v27 }
0x161b   : > { %v9380_v34 = vpop.eup %9379 }
0x161c   : > { %v4394_v33 = vmul.f32 %v9380_v34, %v4383_v24 }
0x161e   : > { %v4403_v38 = vpack.c.bf16 %v4394_v33, %v4394_v33 }
0x1620   : > { %8439 = vmatprep.subr.msk.bf16.mxu0 %vm4461_vm2, %v4403_v38  ;;  %v4463_v21 = vsel %vm4461_vm2, %v4403_v38, 0 }
0x1621   : > { %8215 = vmatpush3.bf16.msra.mxu0 %v4463_v21 }
0x1622   : > { %5005 = vmatprep.subr.bf16.mxu0 %v9692_v0 }
0x1624   : > { %8217 = vmatmul.mubr.msk.bf16.vlgmr.msra.gmra.mxu0 %vm4448_vm11, %v9131_v35 }
0x1625   : > { %8220 = vmatprep.mubr.msk.bf16.mxu0 %vm4448_vm11, %v9132_v53 }
0x162c   : > { %8221 = vmatmul.mubr.msk.bf16.gmra.mxu0 %vm4448_vm11, %v9133_v6 }
0x16e4   : > { %v8218_v22 = vpop.f32.mrf.mxu0 }
0x16e5   : > { %v4508_v60 = vadd.f32 %v8218_v22, %v4429_v48 }
0x16e6   : > { %v4499_v40 = vpop.f32.mrf.mxu0 }
0x16e7   : > { %v7743_v63 = vmul.f32 -1.442695, %v4508_v60  ;;  %v4500_v42 = vadd.f32 %v4499_v40, %v4425_v55 }
0x16e8   : > { %v8219_v9 = vpop.f32.mrf.mxu0 }
0x16e9   : > { %9381 = vpow2.f32 %v7743_v63  ;;  %v7741_v14 = vmul.f32 -1.442695, %v4500_v42  ;;  %v4511_v13 = vadd.f32 %v8219_v9, %v4431_v4 }
0x16ea   : > { %v4502_v2 = vpop.f32.mrf.mxu0 }
0x16eb   : > { %9383 = vpow2.f32 %v7741_v14  ;;  %v7744_v51 = vmul.f32 -1.442695, %v4511_v13  ;;  %v4503_v19 = vadd.f32 %v4502_v2, %v4427_v26  ;;  %v11675_v26 = vld [vmem:[%s12500_s2] sm:$0xff] }
0x16ec   : > { %v8222_v29 = vpop.f32.mrf.mxu0 }
0x16ed   : > { %9385 = vpow2.f32 %v7744_v51  ;;  %v4524_v11 = vadd.f32 %v8222_v29, %v4437_v58  ;;  %v7742_v59 = vmul.f32 -1.442695, %v4503_v19  ;;  %v9729_v51 = vmov 19  }
0x16ee   : > { %v4515_v46 = vpop.f32.mrf.mxu0 }
0x16ef   : > { %v7747_v45 = vmul.f32 -1.442695, %v4524_v11  ;;  %v4516_v36 = vadd.f32 %v4515_v46, %v4433_v8 }
0x16f0   : > { %v8223_v39 = vpop.f32.mrf.mxu0 }
0x16f1   : > { %9387 = vpow2.f32 %v7747_v45  ;;  %v7745_v25 = vmul.f32 -1.442695, %v4516_v36  ;;  %v4527_v24 = vadd.f32 %v8223_v39, %v4439_v18 }
0x16f2   : > { %v4518_v23 = vpop.f32.mrf.mxu0 }
0x16f3   : > { %9389 = vpow2.f32 %v7745_v25  ;;  %v7748_v17 = vmul.f32 -1.442695, %v4527_v24  ;;  %v4519_v50 = vadd.f32 %v4518_v23, %v4435_v56 }
0x16f5   : > { %9391 = vpow2.f32 %v7748_v17  ;;  %v7746_v7 = vmul.f32 -1.442695, %v4519_v50 }
0x16f6   : > { %v9382_v27 = vpop.eup %9381  ;;  %9393 = vpow2.f32 %v7742_v59 }
0x16f7   : > { %v4556_v34 = vadd.f32 1.0, %v9382_v27  ;;  %9395 = vpow2.f32 %v7746_v7 }
0x16f8   : > { %v9384_v33 = vpop.eup %9383 }
0x16f9   : > { %9397 = vrcp.f32 %v4556_v34  ;;  %v4554_v38 = vadd.f32 1.0, %v9384_v33 }
0x16fa   : > { %v9386_v21 = vpop.eup %9385 }
0x16fb   : > { %9399 = vrcp.f32 %v4554_v38  ;;  %v4557_v35 = vadd.f32 1.0, %v9386_v21 }
0x16fd   : > { %9401 = vrcp.f32 %v4557_v35 }
0x16fe   : > { %v9388_v53 = vpop.eup %9387 }
0x16ff   : > { %v4560_v6 = vadd.f32 1.0, %v9388_v53 }
0x1700   : > { %v9390_v58 = vpop.eup %9389 }
0x1701   : > { %9403 = vrcp.f32 %v4560_v6  ;;  %v4558_v8 = vadd.f32 1.0, %v9390_v58 }
0x1702   : > { %v9392_v18 = vpop.eup %9391 }
0x1703   : > { %v9394_v48 = vpop.eup %9393  ;;  %9405 = vrcp.f32 %v4558_v8  ;;  %v4561_v56 = vadd.f32 1.0, %v9392_v18 }
0x1704   : > { %v9396_v22 = vpop.eup %9395  ;;  %v4555_v4 = vadd.f32 1.0, %v9394_v48 }
0x1705   : > { %v4559_v55 = vadd.f32 1.0, %v9396_v22  ;;  %9407 = vrcp.f32 %v4561_v56 }
0x1706   : > { %v9398_v60 = vpop.eup %9397 }
0x1707   : > { %9409 = vrcp.f32 %v4559_v55  ;;  %4590 = vperm.xlu1 %8813, %v9398_v60  }
0x1708   : > { %v9400_v40 = vpop.eup %9399  ;;  %9411 = vrcp.f32 %v4555_v4 }
0x1709   : > { %4580 = vperm.xlu0 %8814, %v9400_v40  }
0x170a   : > { %v9402_v63 = vpop.eup %9401 }
0x170b   : > { %4595 = vperm.xlu1 %8813, %v9402_v63  }
0x170e   : > { %v9404_v42 = vpop.eup %9403 }
0x170f   : > { %4610 = vperm.xlu0 %8814, %v9404_v42  }
0x1710   : > { %v9406_v9 = vpop.eup %9405 }
0x1711   : > { %4600 = vperm.xlu1 %8813, %v9406_v9  }
0x1712   : > { %v9408_v14 = vpop.eup %9407 }
0x1714   : > { %v9410_v13 = vpop.eup %9409 }
0x1715   : > { %4615 = vperm.xlu1 %8813, %v9408_v14   ;;  %4605 = vperm.xlu0 %8814, %v9410_v13   ;;  %v9412_v2 = vpop.eup %9411 }
0x1719   : > { %4585 = vperm.xlu1 %8813, %v9412_v2   ;;  %8816 = vset.pattern.permute.xlu0 %v9728_v62 }
0x171a   : > { %4647 = vperm.xlu0 %8816, %v11517_v54   ;;  %v11681_v54 = vld [vmem:[%s12500_s2 + $0x8] sm:$0xff] }
0x171d   : > { %8815 = vset.pattern.permute.xlu1 %v9728_v62 }
0x171e   : > { %4643 = vperm.xlu1 %8815, %v11536_v41   ;;  %8817 = vset.pattern.permute.xlu0 %v9729_v51  ;;  %v4660_v41 = vpop.permute.xlu1 %4659 }
0x171f   : > { %4872 = vperm.xlu0 %8817, %v11675_v26  }
0x1722   : > { %4635 = vperm.xlu1 %8815, %v11542_v37   ;;  %v4664_v37 = vpop.permute.xlu0 %4663 }
0x1726   : > { %4639 = vperm.xlu1 %8815, %v11529_v30   ;;  %v4656_v30 = vpop.permute.xlu1 %4655  ;;  %v4652_v62 = vpop.permute.xlu0 %4651 }
0x172a   : > { %8818 = vset.pattern.permute.xlu1 %v9729_v51 }
0x172b   : > { %4876 = vperm.xlu1 %8818, %v11681_v54  }
0x1782   : > { %v4591_v29 = vpop.permute.xlu1 %4590 }
0x1784   : > { %v4581_v11 = vpop.permute.xlu0 %4580 }
0x1785   : > { %v4618_v58 = vmul.f32 %v4581_v11, %v11596_v47 }
0x1786   : > { %v4596_v19 = vpop.permute.xlu1 %4595 }
0x1787   : > { %v4621_v23 = vmul.f32 %v4596_v19, %v11584_v10  ;;  %v4626_v48 = vadd.f32 %v4618_v58, %v11604_v57 }
0x1789   : > { %v4629_v38 = vadd.f32 %v4621_v23, %v11610_v16 }
0x178a   : > { %v4611_v46 = vpop.permute.xlu0 %4610 }
0x178b   : > { %v4624_v45 = vmul.f32 %v4611_v46, %v11572_v49 }
0x178c   : > { %v4601_v36 = vpop.permute.xlu1 %4600 }
0x178d   : > { %v4632_v39 = vadd.f32 %v4624_v45, %v11620_v28  ;;  %v4622_v25 = vmul.f32 %v4601_v36, %v11578_v61 }
0x178f   : > { %v11687_v24 = vadd.f32 %v4660_v41, %v4632_v39  ;;  %v4630_v59 = vadd.f32 %v4622_v25, %v11612_v32  ;;  %v4620_v32 = vmul.f32 %v4591_v29, %v11588_v20 }
0x1790   : > { %v4616_v17 = vpop.permute.xlu1 %4615  ;;  %v4606_v50 = vpop.permute.xlu0 %4605 }
0x1791   : > { %v7755_v7 = vmul.f32 -1.442695, %v11687_v24  ;;  %v11692_v27 = vadd.f32 %v4652_v62, %v4630_v59  ;;  %v4625_v34 = vmul.f32 %v4616_v17, %v11576_v52  ;;  %v4623_v49 = vmul.f32 %v4606_v50, %v11580_v12 }
0x1793   : > { %9413 = vpow2.f32 %v7755_v7  ;;  %v7753_v28 = vmul.f32 -1.442695, %v11692_v27  ;;  %v4633_v61 = vadd.f32 %v4625_v34, %v11622_v31  ;;  %v4631_v33 = vadd.f32 %v4623_v49, %v11618_v5 }
0x1794   : > { %v4586_v10 = vpop.permute.xlu1 %4585  ;;  %v4628_v31 = vadd.f32 %v4620_v32, %v11608_v44 }
0x1795   : > { %v4673_v21 = vadd.f32 %v4664_v37, %v4633_v61  ;;  %v4671_v35 = vadd.f32 %v4656_v30, %v4631_v33  ;;  %v4648_v53 = vpop.permute.xlu0 %4647  ;;  %9415 = vpow2.f32 %v7753_v28  ;;  %v4619_v16 = vmul.f32 %v4586_v10, %v11592_v15  ;;  %v9134_v10 = vld [vmem:[%s12499_s1 + $0x760] ss:$8 sps:$4 sm:$0xff]  }
0x1796   : > { %v11701_v6 = vadd.f32 %v4648_v53, %v4629_v38 }
0x1797   : > { %v7756_v52 = vmul.f32 -1.442695, %v4673_v21  ;;  %v7754_v12 = vmul.f32 -1.442695, %v4671_v35  ;;  %v4627_v47 = vadd.f32 %v4619_v16, %v11606_v43 }
0x1798   : > { %v7752_v8 = vmul.f32 -1.442695, %v11701_v6 }
0x1799   : > { %9417 = vpow2.f32 %v7756_v52  ;;  %v4644_v5 = vpop.permute.xlu1 %4643 }
0x179a   : > { %9419 = vpow2.f32 %v7754_v12  ;;  %v4668_v20 = vadd.f32 %v4644_v5, %v4628_v31  ;;  %v4873_v38 = vpop.permute.xlu0 %4872 }
0x179b   : > { %9421 = vpow2.f32 %v7752_v8 }
0x179c   : > { %v7751_v18 = vmul.f32 -1.442695, %v4668_v20 }
0x179d   : > { %v4636_v56 = vpop.permute.xlu1 %4635 }
0x179e   : > { %9423 = vpow2.f32 %v7751_v18  ;;  %v4666_v22 = vadd.f32 %v4636_v56, %v4626_v48 }
0x17a0   : > { %v9414_v55 = vpop.eup %9413  ;;  %v7749_v60 = vmul.f32 -1.442695, %v4666_v22 }
0x17a1   : > { %v4640_v4 = vpop.permute.xlu1 %4639  ;;  %v4704_v40 = vadd.f32 1.0, %v9414_v55 }
0x17a2   : > { %9425 = vpow2.f32 %v7749_v60  ;;  %v4667_v44 = vadd.f32 %v4640_v4, %v4627_v47  ;;  %v9416_v63 = vpop.eup %9415  ;;  %v9137_v4 = vld [vmem:[%s12499_s1 + $0x7b4] ss:$8 sps:$4 sm:$0xff]  }
0x17a3   : > { %v4702_v15 = vadd.f32 1.0, %v9416_v63  ;;  %7797 = vmatprep.mubr.msk.bf16.mxu0 %vm12627_vm12, %v9137_v4  ;;  %vm4924_vm12 = vcmask 23552   ;;  %v11805_v4 = vld [vmem:[%s12500_s2 + $0x30] sm:$0xff] }
0x17a4   : > { %v7750_v42 = vmul.f32 -1.442695, %v4667_v44 }
0x17a6   : > { %v9418_v9 = vpop.eup %9417  ;;  %9427 = vpow2.f32 %v7750_v42 }
0x17a7   : > { %v9420_v14 = vpop.eup %9419  ;;  %9429 = vrcp.f32 %v4704_v40  ;;  %v4705_v13 = vadd.f32 1.0, %v9418_v9 }
0x17a8   : > { %v9422_v57 = vpop.eup %9421  ;;  %v4703_v2 = vadd.f32 1.0, %v9420_v14 }
0x17a9   : > { %9431 = vrcp.f32 %v4705_v13  ;;  %v4701_v41 = vadd.f32 1.0, %v9422_v57 }
0x17aa   : > { %9433 = vrcp.f32 %v4703_v2 }
0x17ab   : > { %v9424_v51 = vpop.eup %9423  ;;  %9435 = vrcp.f32 %v4702_v15 }
0x17ac   : > { %v4700_v43 = vadd.f32 1.0, %v9424_v51 }
0x17ae   : > { %9437 = vrcp.f32 %v4700_v43 }
0x17af   : > { %v9426_v37 = vpop.eup %9425  ;;  %9439 = vrcp.f32 %v4701_v41 }
0x17b0   : > { %v4698_v30 = vadd.f32 1.0, %v9426_v37 }
0x17b2   : > { %9441 = vrcp.f32 %v4698_v30 }
0x17b3   : > { %v9428_v62 = vpop.eup %9427 }
0x17b4   : > { %v9430_v29 = vpop.eup %9429  ;;  %v4699_v11 = vadd.f32 1.0, %v9428_v62 }
0x17b5   : > { %v4728_v45 = vmul.f32 %v9430_v29, %v11687_v24 }
0x17b6   : > { %v9432_v19 = vpop.eup %9431  ;;  %9443 = vrcp.f32 %v4699_v11 }
0x17b7   : > { %v9434_v46 = vpop.eup %9433  ;;  %v4729_v36 = vmul.f32 %v9432_v19, %v4673_v21 }
0x17b8   : > { %v9436_v39 = vpop.eup %9435  ;;  %v4727_v25 = vmul.f32 %v9434_v46, %v4671_v35 }
0x17b9   : > { %v4733_v59 = vpack.c.bf16 %v4729_v36, %v4728_v45  ;;  %v4726_v17 = vmul.f32 %v9436_v39, %v11692_v27 }
0x17bb   : > { %v9438_v23 = vpop.eup %9437  ;;  %8225 = vmatpush3.bf16.msra.mxu1 %v4733_v59  ;;  %v4732_v34 = vpack.c.bf16 %v4727_v25, %v4726_v17 }
0x17bc   : > { %v9440_v50 = vpop.eup %9439  ;;  %8226 = vmatprep.subr.bf16.mxu1 %v9707_v1  ;;  %v4724_v7 = vmul.f32 %v9438_v23, %v4668_v20 }
0x17bd   : > { %v4725_v49 = vmul.f32 %v9440_v50, %v11701_v6  ;;  %v4877_v6 = vpop.permute.xlu1 %4876 }
0x17bf   : > { %8227 = vmatpush3.bf16.msra.mxu1 %v4732_v34  ;;  %v9442_v28 = vpop.eup %9441  ;;  %v4731_v24 = vpack.c.bf16 %v4725_v49, %v4724_v7 }
0x17c0   : > { %8228 = vmatprep.subr.bf16.mxu1 %v9707_v1  ;;  %v4722_v33 = vmul.f32 %v9442_v28, %v4666_v22 }
0x17c3   : > { %v9444_v61 = vpop.eup %9443  ;;  %8229 = vmatpush3.bf16.msra.mxu1 %v4731_v24 }
0x17c4   : > { %v4723_v32 = vmul.f32 %v9444_v61, %v4667_v44  ;;  %8230 = vmatprep.subr.bf16.mxu1 %v9707_v1  ;;  %v4738_v44 = vand.u32 3, %v10101_v3 }
0x17c6   : > { %v4730_v27 = vpack.c.bf16 %v4723_v32, %v4722_v33  ;;  %vm4746_vm4 = vcmp.gt.s32.totalorder %v4738_v44, 0  ;;  %vm4747_vm7 = vcmp.lt.s32.totalorder %v4738_v44, 3  ;;  %v11811_v44 = vld [vmem:[%s12500_s2 + $0x20] sm:$0xff] }
0x17c7   : > { %vm11730_vm0 = vmpackc.low %vm4746_vm4, %vm4746_vm4  ;;  %vm4977_vm4 = vcmask 89088  }
0x17c8   : > { %8231 = vmatpush3.bf16.msra.mxu1 %v4730_v27  ;;  %vm11739_vm8 = vmpackc.low %vm4747_vm7, %vm4747_vm7 }
0x17cb   : > { %8233 = vmatmul.mubr.msk.bf16.vlgmr.msra.gmra.mxu1 %vm3425_vm15, %v9134_v10 }
0x17cc   : > { %8236 = vmatprep.mubr.msk.bf16.mxu1 %vm12596_vm14, %v9707_v1 }
0x188b   : > { %v4832_v21 = vpop.f32.mrf.mxu1 }
0x188c   : > { %v4879_v35 = vadd.f32 %v4873_v38, %v4832_v21 }
0x188d   : > { %v8234_v53 = vpop.f32.mrf.mxu1 }
0x188e   : > { %v7767_v52 = vmul.f32 -1.442695, %v4879_v35 }
0x188f   : > { %v4835_v12 = vpop.f32.mrf.mxu1 }
0x1890   : > { %9445 = vpow2.f32 %v7767_v52  ;;  %v4880_v58 = vadd.f32 %v4877_v6, %v4835_v12 }
0x1891   : > { %v8235_v8 = vpop.f32.mrf.mxu1 }
0x1892   : > { %v7768_v31 = vmul.f32 -1.442695, %v4880_v58  ;;  %v9135_v8 = vld [vmem:[%s12499_s1 + $0x7b0] ss:$8 sps:$4 sm:$0xff]  }
0x1894   : > { %9447 = vpow2.f32 %v7768_v31  ;;  %v9138_v31 = vld [vmem:[%s12499_s1 + $0x7c0] ss:$8 sps:$4 sm:$0xff]  }
0x189d   : > { %v9446_v5 = vpop.eup %9445 }
0x189e   : > { %v4887_v20 = vadd.f32 1.0, %v9446_v5  ;;  %v9735_v5 = vmov 21  }
0x189f   : > { %8859 = vset.pattern.permute.xlu1 %v9735_v5  ;;  %8860 = vset.pattern.permute.xlu0 %v9735_v5 }
0x18a0   : > { %9449 = vrcp.f32 %v4887_v20 }
0x18a1   : > { %v9448_v16 = vpop.eup %9447 }
0x18a2   : > { %v4888_v18 = vadd.f32 1.0, %v9448_v16 }
0x18a4   : > { %9451 = vrcp.f32 %v4888_v18 }
0x18ad   : > { %v9450_v48 = vpop.eup %9449 }
0x18ae   : > { %v4893_v22 = vmul.f32 %v9450_v48, %v4879_v35 }
0x18b1   : > { %v9452_v56 = vpop.eup %9451 }
0x18b2   : > { %v4894_v55 = vmul.f32 %v9452_v56, %v4880_v58 }
0x18b4   : > { %v8824_v60 = vpack.i.bf16 %v4894_v55, %v4893_v22  ;;  %v4986_v47 = vpack.c.bf16 %v4894_v55, %v4893_v22  ;;  %v9139_v22 = vld [vmem:[%s12499_s1 + $0x770] ss:$8 sps:$4 sm:$0xff]   ;;  %v9142_v55 = vld [vmem:[%s12499_s1 + $0x7a0] ss:$8 sps:$4 sm:$0xff]  }
0x18b5   : > { %8237 = vmatmul.mubr.msk.bf16.gmra.mxu1 %vm3425_vm15, %v9139_v22 }
0x18b6   : > { %8825 = vrot.lane.b32.xlu0 %v8824_v60, %s9730_s11  ;;  %8820 = vrot.lane.b32.xlu1 %v8824_v60, %s9731_s15  ;;  %s9738_s11 = smov 104  }
0x18b7   : > { %8240 = vmatprep.mubr.msk.bf16.mxu1 %vm12596_vm14, %v9707_v1 }
0x18ba   : > { %8835 = vrot.lane.b32.xlu0 %v8824_v60, %s9693_s24  ;;  %8830 = vrot.lane.b32.xlu1 %v8824_v60, %s9694_s25  ;;  %s7931_s25 = sshll.u32 %s12650_s13, 5 }
0x18bb   : > { %s170_s5 = scalar_lea.vmem %s12501_s3, %s7931_s25 }
0x18be   : > { %8845 = vrot.lane.b32.xlu0 %v8824_v60, %s9732_s16  ;;  %8840 = vrot.lane.b32.xlu1 %v8824_v60, %s9733_s8 }
0x18c2   : > { %8855 = vrot.lane.b32.xlu0 %v8824_v60, %s9709_s19  ;;  %8850 = vrot.lane.b32.xlu1 %v8824_v60, %s9734_s18  ;;  %v9143_v60 = vld [vmem:[%s12499_s1 + $0x7d0] ss:$8 sps:$4 sm:$0xff]  }
0x18c6   : > { %5148 = vperm.xlu1 %8859, %v11675_v26   ;;  %5152 = vperm.xlu0 %8860, %v11681_v54   ;;  %v9140_v26 = vld [vmem:[%s12499_s1 + $0x780] ss:$8 sps:$4 sm:$0xff]   ;;  %v9141_v54 = vld [vmem:[%s12499_s1 + $0x790] ss:$8 sps:$4 sm:$0xff]  }
0x18c7   : > { %8241 = vmatmul.mubr.msk.bf16.gmra.mxu1 %vm3425_vm15, %v9140_v26 }
0x18c8   : > { %8244 = vmatprep.mubr.msk.bf16.mxu1 %vm12596_vm14, %v9707_v1 }
0x18cf   : > { %8245 = vmatmul.mubr.msk.bf16.gmra.mxu1 %vm3425_vm15, %v9141_v54 }
0x18d0   : > { %8248 = vmatprep.mubr.msk.bf16.mxu1 %vm12596_vm14, %v9707_v1 }
0x18d7   : > { %8249 = vmatmul.mubr.msk.bf16.gmra.mxu1 %vm3425_vm15, %v9142_v55 }
0x1928   : > { %v8826_v40 = vpop.permute.xlu0 %8825  ;;  %v8821_v63 = vpop.permute.xlu1 %8820 }
0x1929   : > { %v8828_v42 = vunpack.i.h.bf16 %v8826_v40  ;;  %v8827_v9 = vunpack.i.l.bf16 %v8826_v40  ;;  %v8823_v14 = vunpack.i.h.bf16 %v8821_v63  ;;  %v8822_v15 = vunpack.i.l.bf16 %v8821_v63  ;;  %v11817_v40 = vld [vmem:[%s12500_s2 + $0x38] sm:$0xff] }
0x192a   : > { %v11823_v63 = vld [vmem:[%s12500_s2 + $0x18] sm:$0xff] }
0x192b   : > { %v7772_v13 = vpack.c.bf16 %v8823_v14, %v8822_v15  ;;  %v4959_v57 = vsel %vm4957_vm3, %v8828_v42, 0.0  ;;  %v4958_v2 = vsel %vm4957_vm3, %v8827_v9, 0.0  ;;  %vm4903_vm3 = vcmask 39936   ;;  %v11829_v42 = vld [vmem:[%s12500_s2 + $0x28] sm:$0xff]  ;;  %v11841_v14 = vld [vmem:[%s12500_s2 + $0x10] sm:$0xff]  ;;  %v11847_v15 = vld [vmem:[%s12500_s2] sm:$0xff] }
0x192c   : > { %v8831_v51 = vpop.permute.xlu1 %8830  ;;  %v7775_v37 = vpack.c.bf16 %v4959_v57, %v4958_v2  ;;  %v8836_v29 = vpop.permute.xlu0 %8835  ;;  %v11835_v9 = vld [vmem:[%s12500_s2 + $0x8] sm:$0xff] }
0x192d   : > { %v8833_v41 = vunpack.i.h.bf16 %v8831_v51  ;;  %v8832_v43 = vunpack.i.l.bf16 %v8831_v51  ;;  %7773 = vmatpush1.bf16.msk.msra.mxu0 %vm7771_vm6, %v7772_v13  ;;  %v8838_v46 = vunpack.i.h.bf16 %v8836_v29  ;;  %v8837_v45 = vunpack.i.l.bf16 %v8836_v29  ;;  %vm7788_vm6 = vmpackc.low %vm7786_vm13, %vm7786_vm13 }
0x192e   : > { %5007 = vmatprep.subr.bf16.mxu0 %v9692_v0 }
0x192f   : > { %v4948_v30 = vsel %vm12630_vm9, %v8833_v41, 0.0  ;;  %v4947_v62 = vsel %vm12631_vm1, %v8832_v43, 0.0  ;;  %v4938_v39 = vsel %vm12634_vm5, 0.0, %v8838_v46  ;;  %v4937_v25 = vsel %vm12635_vm10, 0.0, %v8837_v45 }
0x1930   : > { %v7778_v19 = vpack.c.bf16 %v4948_v30, %v4947_v62  ;;  %v8841_v36 = vpop.permute.xlu1 %8840  ;;  %v7781_v17 = vpack.c.bf16 %v4938_v39, %v4937_v25  ;;  %v8846_v50 = vpop.permute.xlu0 %8845 }
0x1931   : > { %7776 = vmatpush1.bf16.msk.msra.mxu0 %vm11730_vm0, %v7775_v37  ;;  %v8843_v59 = vunpack.i.h.bf16 %v8841_v36  ;;  %v8842_v23 = vunpack.i.l.bf16 %v8841_v36  ;;  %v8848_v28 = vunpack.i.h.bf16 %v8846_v50  ;;  %v8847_v24 = vunpack.i.l.bf16 %v8846_v50  ;;  %v9146_v50 = vld [vmem:[%s12499_s1 + $0x800] ss:$8 sps:$4 sm:$0xff]  }
0x1932   : > { %5009 = vmatprep.subr.bf16.mxu0 %v9692_v0 }
0x1933   : > { %v4926_v7 = vsel %vm4924_vm12, 0.0, %v8843_v59  ;;  %v4925_v34 = vsel %vm4924_vm12, 0.0, %v8842_v23  ;;  %v7789_v10 = vpack.c.bf16 %v8848_v28, %v8847_v24  ;;  %v9144_v23 = vld [vmem:[%s12499_s1 + $0x7e0] ss:$8 sps:$4 sm:$0xff]  }
0x1934   : > { %v8851_v49 = vpop.permute.xlu1 %8850  ;;  %v7784_v61 = vpack.c.bf16 %v4926_v7, %v4925_v34  ;;  %v8856_v27 = vpop.permute.xlu0 %8855 }
0x1935   : > { %7779 = vmatpush1.bf16.msk.msra.mxu0 %vm11739_vm8, %v7778_v19  ;;  %v8853_v33 = vunpack.i.h.bf16 %v8851_v49  ;;  %v8852_v32 = vunpack.i.l.bf16 %v8851_v49  ;;  %v8858_v38 = vunpack.i.h.bf16 %v8856_v27  ;;  %v8857_v21 = vunpack.i.l.bf16 %v8856_v27 }
0x1936   : > { %5011 = vmatprep.subr.bf16.mxu0 %v9692_v0 }
0x1937   : > { %v4905_v35 = vsel %vm4903_vm3, 0.0, %v8853_v33  ;;  %v4904_v53 = vsel %vm4903_vm3, 0.0, %v8852_v32  ;;  %v4979_v52 = vsel %vm4977_vm4, %v8858_v38, 0.0  ;;  %v4978_v12 = vsel %vm4977_vm4, %v8857_v21, 0.0 }
0x1938   : > { %v7792_v6 = vpack.c.bf16 %v4905_v35, %v4904_v53  ;;  %v7795_v58 = vpack.c.bf16 %v4979_v52, %v4978_v12 }
0x1939   : > { %5012 = vmatpush1.bf16.msra.mxu0 %v4986_v47  ;;  %v9736_v47 = vmov 22  }
0x193a   : > { %5013 = vmatprep.subr.bf16.mxu0 %v9692_v0  ;;  %8861 = vset.pattern.permute.xlu1 %v9736_v47 }
0x193b   : > { %8862 = vset.pattern.permute.xlu0 %v9736_v47  ;;  %5205 = vperm.xlu1 %8861, %v11805_v4  }
0x193c   : > { %5197 = vperm.xlu0 %8862, %v11811_v44  }
0x193d   : > { %7782 = vmatpush1.bf16.msk.msra.mxu0 %vm11730_vm0, %v7781_v17  ;;  %v9145_v17 = vld [vmem:[%s12499_s1 + $0x7f0] ss:$8 sps:$4 sm:$0xff]  }
0x193e   : > { %5015 = vmatprep.subr.bf16.mxu0 %v9692_v0 }
0x193f   : > { %5209 = vperm.xlu1 %8861, %v11817_v40  }
0x1940   : > { %5193 = vperm.xlu0 %8862, %v11823_v63  }
0x1941   : > { %7785 = vmatpush1.bf16.msk.msra.mxu0 %vm11739_vm8, %v7784_v61  ;;  %v5149_v13 = vpop.permute.xlu1 %5148  ;;  %v5153_v41 = vpop.permute.xlu0 %5152 }
0x1942   : > { %5017 = vmatprep.subr.bf16.mxu0 %v9692_v0 }
0x1943   : > { %5201 = vperm.xlu1 %8861, %v11829_v42  }
0x1944   : > { %5185 = vperm.xlu0 %8862, %v11835_v9  }
0x1945   : > { %7790 = vmatpush1.bf16.msk.msra.mxu0 %vm7788_vm6, %v7789_v10 }
0x1946   : > { %5019 = vmatprep.subr.bf16.mxu0 %v9692_v0 }
0x1947   : > { %5189 = vperm.xlu1 %8861, %v11841_v14  }
0x1949   : > { %7793 = vmatpush1.bf16.msk.msra.mxu0 %vm11730_vm0, %v7792_v6  ;;  %vm12636_vm0 = vcmask 130048  }
0x194a   : > { %5035 = vmatprep.subr.bf16.mxu0 %v9692_v0  ;;  %vm12637_vm7 = vmmov %vm12636_vm0 }
0x194b   : > { %8276 = vmatprep.mubr.msk.bf16.mxu1 %vm12637_vm7, %v9143_v60  ;;  %5181 = vperm.xlu1 %8861, %v11847_v15   ;;  %vm12638_vm9 = vmmov %vm12636_vm0 }
0x194c   : > { %vm12639_vm1 = vmmov %vm12636_vm0 }
0x194d   : > { %7796 = vmatpush2.bf16.msk.msra.mxu0 %vm11739_vm8, %v7795_v58  ;;  %vm12640_vm8 = vmmov %vm12636_vm0 }
0x194e   : > { %8252 = vmatprep.subr.bf16.mxu0 %v9707_v1  ;;  %vm12641_vm5 = vmmov %vm12636_vm0 }
0x194f   : > { %vm12642_vm10 = vmmov %vm12636_vm0 }
0x1950   : > { %5038 = vmatmul.mubr.bf16.vlgmr.msra.gmra.mxu0 %v9135_v8  ;;  %vm12643_vm12 = vmmov %vm12636_vm0 }
0x1951   : > { %8254 = vmatprep.mubr.msk.bf16.mxu0 %vm12596_vm14, %v9707_v1  ;;  %8253 = vmatpush3.bf16.msra.mxu0 %v9138_v31  ;;  %vm12644_vm13 = vmmov %vm12636_vm0 }
0x1975   : > { %v4840_v7 = vpop.f32.mrf.mxu1 }
0x1977   : > { %v8238_v34 = vpop.f32.mrf.mxu1 }
0x1979   : > { %v4843_v49 = vpop.f32.mrf.mxu1 }
0x197a   : > { %v5047_v28 = vpack.c.bf16 %v4843_v49, %v4840_v7 }
0x197b   : > { %v8239_v24 = vpop.f32.mrf.mxu1 }
0x1987   : > { %v4848_v61 = vpop.f32.mrf.mxu1 }
0x1989   : > { %v8242_v33 = vpop.f32.mrf.mxu1 }
0x198b   : > { %v4851_v32 = vpop.f32.mrf.mxu1 }
0x198c   : > { %v5048_v27 = vpack.c.bf16 %v4851_v32, %v4848_v61 }
0x198d   : > { %v8243_v10 = vpop.f32.mrf.mxu1 }
0x198f   : > { %v4856_v38 = vpop.f32.mrf.mxu1 }
0x1991   : > { %v8246_v21 = vpop.f32.mrf.mxu1 }
0x1993   : > { %v4859_v35 = vpop.f32.mrf.mxu1 }
0x1994   : > { %v5049_v53 = vpack.c.bf16 %v4859_v35, %v4856_v38 }
0x1995   : > { %v8247_v6 = vpop.f32.mrf.mxu1 }
0x1997   : > { %v4864_v52 = vpop.f32.mrf.mxu1 }
0x1999   : > { %v8250_v12 = vpop.f32.mrf.mxu1 }
0x199b   : > { %v4867_v58 = vpop.f32.mrf.mxu1 }
0x199c   : > { %v5050_v8 = vpack.c.bf16 %v4867_v58, %v4864_v52 }
0x199d   : > { %v8251_v31 = vpop.f32.mrf.mxu1 }
0x19b6   : > { %v5206_v5 = vpop.permute.xlu1 %5205 }
0x1a10   : > { %v5039_v20 = vpop.f32.mrf.mxu0 }
0x1a12   : > { %v5041_v16 = vpop.f32.mrf.mxu0 }
0x1a13   : > { %v5210_v16 = vpop.permute.xlu1 %5209 }
0x1a14   : > { %v5042_v18 = vpop.f32.mrf.mxu0 }
0x1a15   : > { %v5046_v48 = vpack.c.bf16 %v5042_v18, %v5039_v20 }
0x1a16   : > { %v5044_v56 = vpop.f32.mrf.mxu0 }
0x1a17   : > { %8255 = vmatmul.mubr.msk.bf16.vlgmr.msra.gmra.mxu0 %vm12636_vm0, %v5046_v48  ;;  %v5198_v56 = vpop.permute.xlu0 %5197  ;;  %v5202_v26 = vpop.permute.xlu1 %5201 }
0x1a18   : > { %8258 = vmatprep.mubr.msk.bf16.mxu0 %vm12596_vm14, %v9707_v1 }
0x1a1f   : > { %8259 = vmatmul.mubr.msk.bf16.gmra.mxu0 %vm12641_vm5, %v5047_v28 }
0x1a20   : > { %8262 = vmatprep.mubr.msk.bf16.mxu0 %vm12596_vm14, %v9707_v1 }
0x1a27   : > { %8263 = vmatmul.mubr.msk.bf16.gmra.mxu0 %vm12642_vm10, %v5048_v27  ;;  %v9663_v27 = vld [vmem:[%s12500_s2] sm:$0xf] }
0x1a28   : > { %8266 = vmatprep.mubr.msk.bf16.mxu0 %vm12596_vm14, %v9707_v1 }
0x1a2f   : > { %8267 = vmatmul.mubr.msk.bf16.gmra.mxu0 %vm12643_vm12, %v5049_v53 }
0x1a30   : > { %8270 = vmatprep.mubr.msk.bf16.mxu0 %vm12596_vm14, %v9707_v1 }
0x1a37   : > { %8271 = vmatmul.mubr.msk.bf16.gmra.mxu0 %vm12644_vm13, %v5050_v8 }
0x1ad7   : > { %v5108_v57 = vpop.f32.mrf.mxu0 }
0x1ad8   : > { %v5155_v2 = vadd.f32 %v5149_v13, %v5108_v57  ;;  %v5194_v13 = vpop.permute.xlu0 %5193 }
0x1ad9   : > { %v8256_v51 = vpop.f32.mrf.mxu0 }
0x1ada   : > { %v7804_v43 = vmul.f32 -1.442695, %v5155_v2  ;;  %v5190_v51 = vpop.permute.xlu1 %5189 }
0x1adb   : > { %v5111_v3 = vpop.f32.mrf.mxu0 }
0x1adc   : > { %9453 = vpow2.f32 %v7804_v43  ;;  %v5156_v37 = vadd.f32 %v5153_v41, %v5111_v3 }
0x1add   : > { %v8257_v30 = vpop.f32.mrf.mxu0 }
0x1ade   : > { %v7805_v62 = vmul.f32 -1.442695, %v5156_v37 }
0x1ae0   : > { %9455 = vpow2.f32 %v7805_v62 }
0x1ae9   : > { %v9454_v29 = vpop.eup %9453 }
0x1aea   : > { %v5163_v11 = vadd.f32 1.0, %v9454_v29  ;;  %v5186_v29 = vpop.permute.xlu0 %5185 }
0x1aec   : > { %9457 = vrcp.f32 %v5163_v11 }
0x1aed   : > { %v9456_v19 = vpop.eup %9455 }
0x1aee   : > { %v5164_v46 = vadd.f32 1.0, %v9456_v19 }
0x1af0   : > { %9459 = vrcp.f32 %v5164_v46  ;;  %v5182_v46 = vpop.permute.xlu1 %5181 }
0x1af9   : > { %v9458_v45 = vpop.eup %9457 }
0x1afa   : > { %v5169_v39 = vmul.f32 %v9458_v45, %v5155_v2 }
0x1afd   : > { %v9460_v36 = vpop.eup %9459 }
0x1afe   : > { %v5170_v25 = vmul.f32 %v9460_v36, %v5156_v37 }
0x1b00   : > { %v5179_v59 = vpack.c.bf16 %v5170_v25, %v5169_v39 }
0x1b02   : > { %8274 = vmatprep.subr.bf16.mxu1 %v5179_v59 }
0x1b03   : > { %8275 = vmatpush3.bf16.msra.mxu1 %v5179_v59 }
0x1b04   : > { %8284 = vmatprep.subr.bf16.mxu1 %v9707_v1 }
0x1b06   : > { %8277 = vmatmul.mubr.msk.bf16.vlgmr.msra.gmra.mxu1 %vm12638_vm9, %v9144_v23 }
0x1b07   : > { %8280 = vmatprep.mubr.msk.bf16.mxu1 %vm12639_vm1, %v9145_v17  ;;  %v11907_v17 = vpop.f32.mrf.mxu0 }
0x1b0e   : > { %8281 = vmatmul.mubr.msk.bf16.gmra.mxu1 %vm12640_vm8, %v9146_v50  ;;  %v8260_v50 = vpop.f32.mrf.mxu0 }
0x1b0f   : > { %8292 = vmatprep.mubr.msk.bf16.mxu1 %vm12596_vm14, %v9707_v1 }
0x1b10   : > { %v11909_v7 = vpop.f32.mrf.mxu0 }
0x1b12   : > { %v8261_v34 = vpop.f32.mrf.mxu0 }
0x1b14   : > { %v11911_v49 = vpop.f32.mrf.mxu0 }
0x1b16   : > { %v8264_v28 = vpop.f32.mrf.mxu0 }
0x1b18   : > { %v11913_v24 = vpop.f32.mrf.mxu0 }
0x1b1a   : > { %v8265_v61 = vpop.f32.mrf.mxu0 }
0x1b1c   : > { %v11915_v33 = vpop.f32.mrf.mxu0 }
0x1b1e   : > { %v8268_v32 = vpop.f32.mrf.mxu0 }
0x1b20   : > { %v11920_v10 = vpop.f32.mrf.mxu0 }
0x1b22   : > { %v8269_v38 = vpop.f32.mrf.mxu0 }
0x1b23   : > { %v9148_v38 = vld [vmem:[%s12499_s1 + $0x830] ss:$8 sps:$4 sm:$0xff]  }
0x1b24   : > { %v11922_v21 = vpop.f32.mrf.mxu0 }
0x1b26   : > { %v8272_v35 = vpop.f32.mrf.mxu0 }
0x1b27   : > { %v9149_v35 = vld [vmem:[%s12499_s1 + $0x840] ss:$8 sps:$4 sm:$0xff]  }
0x1b28   : > { %v11924_v53 = vpop.f32.mrf.mxu0 }
0x1b2a   : > { %v8273_v6 = vpop.f32.mrf.mxu0 }
0x1b2b   : > { %v9150_v6 = vld [vmem:[%s12499_s1 + $0x850] ss:$8 sps:$4 sm:$0xff]  }
0x1bc6   : > { %v8278_v20 = vpop.f32.mrf.mxu1 }
0x1bc7   : > { %v11891_v11 = vadd.f32 %v8278_v20, %v5190_v51 }
0x1bc8   : > { %v5278_v18 = vpop.f32.mrf.mxu1 }
0x1bc9   : > { %v11899_v39 = vadd.f32 %v5278_v18, %v5182_v46  ;;  %v5315_v25 = vsel %vm4448_vm11, %v11891_v11, 0.0 }
0x1bca   : > { %v8279_v48 = vpop.f32.mrf.mxu1 }
0x1bcb   : > { %v11887_v30 = vadd.f32 %v8279_v48, %v5194_v13  ;;  %v5309_v23 = vsel %vm4448_vm11, %v11899_v39, 0.0 }
0x1bcc   : > { %v5281_v22 = vpop.f32.mrf.mxu1 }
0x1bcd   : > { %v11895_v45 = vadd.f32 %v5281_v22, %v5186_v29  ;;  %v5318_v36 = vsel %vm4448_vm11, %v11887_v30, 0.0 }
0x1bce   : > { %v8282_v54 = vpop.f32.mrf.mxu1 }
0x1bcf   : > { %v11875_v55 = vadd.f32 %v8282_v54, %v5206_v5  ;;  %v5312_v59 = vsel %vm4448_vm11, %v11895_v45, 0.0 }
0x1bd0   : > { %v5294_v60 = vpop.f32.mrf.mxu1 }
0x1bd1   : > { %v5327_v47 = vsel %vm4448_vm11, %v11875_v55, 0.0  ;;  %v11881_v43 = vadd.f32 %v5294_v60, %v5198_v56 }
0x1bd2   : > { %v8283_v57 = vpop.f32.mrf.mxu1  ;;  %5328 = vadd.xlane.f32.xlu1 %v5327_v47 }
0x1bd3   : > { %v11879_v2 = vadd.f32 %v8283_v57, %v5210_v16  ;;  %v5321_v19 = vsel %vm4448_vm11, %v11881_v43, 0.0 }
0x1bd4   : > { %v5297_v41 = vpop.f32.mrf.mxu1 }
0x1bd5   : > { %v11883_v3 = vadd.f32 %v5297_v41, %v5202_v26  ;;  %v5330_v37 = vsel %vm4448_vm11, %v11879_v2, 0.0 }
0x1bd6   : > { %5331 = vadd.xlane.f32.xlu0 %v5330_v37  ;;  %v5342_v37 = vld [vmem:[%s12499_s1 + $0x810] sm:$0x33] }
0x1bd7   : > { %v5324_v62 = vsel %vm4448_vm11, %v11883_v3, 0.0 }
0x1bd8   : > { %5325 = vadd.xlane.f32.xlu1 %v5324_v62  ;;  %v9147_v62 = vld [vmem:[%s12499_s1 + $0x820] ss:$8 sps:$4 sm:$0xff]  }
0x1bda   : > { %5322 = vadd.xlane.f32.xlu0 %v5321_v19 }
0x1bdc   : > { %5319 = vadd.xlane.f32.xlu1 %v5318_v36 }
0x1bde   : > { %5316 = vadd.xlane.f32.xlu0 %v5315_v25 }
0x1be0   : > { %5313 = vadd.xlane.f32.xlu1 %v5312_v59 }
0x1be2   : > { %5310 = vadd.xlane.f32.xlu0 %v5309_v23 }
0x1bf1   : > { %5441 = vrot.lane.b32.xlu1 %v11805_v4, %s9738_s11 }
0x1bf5   : > { %5443 = vrot.lane.b32.xlu1 %v11817_v40, %s9738_s11 }
0x1bf8   : > { %5347 = vrot.lane.b32.xlu0 %v9663_v27, %s9737_s30 }
0x1bf9   : > { %5439 = vrot.lane.b32.xlu1 %v11829_v42, %s9738_s11 }
0x1bfc   : > { %5437 = vrot.lane.b32.xlu0 %v11811_v44, %s9738_s11 }
0x1bfd   : > { %5435 = vrot.lane.b32.xlu1 %v11823_v63, %s9738_s11 }
0x1c00   : > { %5433 = vrot.lane.b32.xlu0 %v11841_v14, %s9738_s11 }
0x1c01   : > { %5431 = vrot.lane.b32.xlu1 %v11835_v9, %s9738_s11 }
0x1c04   : > { %5429 = vrot.lane.b32.xlu0 %v11847_v15, %s9738_s11 }
0x1c5b   : > { %v5329_v52 = vpop.xlane.xlu1 %5328 }
0x1c5c   : > { %v5340_v58 = vmul.f32 0.25, %v5329_v52  ;;  %v9739_v52 = vmov 20  }
0x1c5d   : > { %8863 = vset.pattern.permute.xlu1 %v9739_v52  ;;  %8864 = vset.pattern.permute.xlu0 %v9739_v52 }
0x1c5e   : > { %5662 = vperm.xlu1 %8863, %v11805_v4   ;;  %5666 = vperm.xlu0 %8864, %v11817_v40  }
0x1c5f   : > { %v5332_v12 = vpop.xlane.xlu0 %5331 }
0x1c60   : > { %v5341_v8 = vmul.f32 0.25, %v5332_v12 }
0x1c61   : > { %v5326_v31 = vpop.xlane.xlu1 %5325 }
0x1c62   : > { %v5346_v5 = vpack.c.bf16 %v5341_v8, %v5340_v58  ;;  %v5339_v16 = vmul.f32 0.25, %v5326_v31  ;;  %5658 = vperm.xlu1 %8863, %v11829_v42   ;;  %5654 = vperm.xlu0 %8864, %v11811_v44  }
0x1c63   : > { %v5323_v20 = vpop.xlane.xlu0 %5322 }
0x1c64   : > { %v5338_v18 = vmul.f32 0.25, %v5323_v20  ;;  %8285 = vmatpush3.bf16.msra.mxu1 %v5346_v5 }
0x1c65   : > { %v5320_v48 = vpop.xlane.xlu1 %5319  ;;  %8286 = vmatprep.subr.bf16.mxu1 %v9707_v1 }
0x1c66   : > { %v5345_v56 = vpack.c.bf16 %v5339_v16, %v5338_v18  ;;  %v5337_v26 = vmul.f32 0.25, %v5320_v48  ;;  %8865 = vset.pattern.permute.xlu1 %v9692_v0  ;;  %8866 = vset.pattern.permute.xlu0 %v9692_v0 }
0x1c67   : > { %v5317_v22 = vpop.xlane.xlu0 %5316 }
0x1c68   : > { %v5336_v54 = vmul.f32 0.25, %v5317_v22  ;;  %8287 = vmatpush3.bf16.msra.mxu1 %v5345_v56 }
0x1c69   : > { %v5314_v60 = vpop.xlane.xlu1 %5313  ;;  %8288 = vmatprep.subr.bf16.mxu1 %v9707_v1 }
0x1c6a   : > { %v5344_v47 = vpack.c.bf16 %v5337_v26, %v5336_v54  ;;  %v5335_v57 = vmul.f32 0.25, %v5314_v60 }
0x1c6b   : > { %v5311_v13 = vpop.xlane.xlu0 %5310 }
0x1c6c   : > { %v5334_v51 = vmul.f32 0.25, %v5311_v13  ;;  %8289 = vmatpush3.bf16.msra.mxu1 %v5344_v47 }
0x1c6d   : > { %8290 = vmatprep.subr.bf16.mxu1 %v9707_v1  ;;  %v5442_v12 = vpop.permute.xlu1 %5441 }
0x1c6e   : > { %v5343_v41 = vpack.c.bf16 %v5335_v57, %v5334_v51 }
0x1c6f   : > { %v5348_v29 = vpop.permute.xlu0 %5347 }
0x1c70   : > { %8291 = vmatpush3.bf16.msra.mxu1 %v5343_v41 }
0x1c71   : > { %v5444_v8 = vpop.permute.xlu1 %5443 }
0x1c73   : > { %8293 = vmatmul.mubr.msk.bf16.vlgmr.msra.gmra.mxu1 %vm3425_vm15, %v5342_v37  ;;  %v5438_v58 = vpop.permute.xlu0 %5437 }
0x1c74   : > { %8298 = vmatprep.mubr.msk.bf16.mxu1 %vm4448_vm11, %v9147_v62 }
0x1c75   : > { %v5440_v5 = vpop.permute.xlu1 %5439 }
0x1c77   : > { %v5434_v31 = vpop.permute.xlu0 %5433 }
0x1c79   : > { %v5436_v48 = vpop.permute.xlu1 %5435 }
0x1c7b   : > { %v5430_v16 = vpop.permute.xlu0 %5429 }
0x1c7d   : > { %v5432_v0 = vpop.permute.xlu1 %5431 }
0x1d33   : > { %v5387_v19 = vpop.f32.mrf.mxu1 }
0x1d34   : > { %v5388_v46 = vadd.f32 %v5387_v19, %v5348_v29 }
0x1d35   : > { %v8294_v36 = vpop.f32.mrf.mxu1 }
0x1d36   : > { %v7815_v25 = vmul.f32 -1.442695, %v5388_v46 }
0x1d37   : > { %v5390_v59 = vpop.f32.mrf.mxu1 }
0x1d38   : > { %9461 = vpow2.f32 %v7815_v25 }
0x1d39   : > { %v8295_v23 = vpop.f32.mrf.mxu1 }
0x1d45   : > { %v9462_v50 = vpop.eup %9461 }
0x1d46   : > { %v5396_v34 = vadd.f32 1.0, %v9462_v50 }
0x1d48   : > { %9463 = vrcp.f32 %v5396_v34 }
0x1d55   : > { %v9464_v28 = vpop.eup %9463 }
0x1d56   : > { %v5399_v61 = vmul.f32 %v9464_v28, %v5388_v46 }
0x1d58   : > { %v5408_v32 = vpack.c.bf16 %v5399_v61, %v5399_v61 }
0x1d5a   : > { %8440 = vmatprep.subr.msk.bf16.mxu1 %vm4461_vm2, %v5408_v32  ;;  %v5466_v27 = vsel %vm4461_vm2, %v5408_v32, 0 }
0x1d5b   : > { %8297 = vmatpush3.bf16.msra.mxu1 %v5466_v27 }
0x1d5c   : > { %8338 = vmatprep.subr.bf16.mxu1 %v9707_v1 }
0x1d5e   : > { %8299 = vmatmul.mubr.msk.bf16.vlgmr.msra.gmra.mxu1 %vm4448_vm11, %v9148_v38 }
0x1d5f   : > { %8302 = vmatprep.mubr.msk.bf16.mxu1 %vm4448_vm11, %v9149_v35 }
0x1d66   : > { %8303 = vmatmul.mubr.msk.bf16.gmra.mxu1 %vm4448_vm11, %v9150_v6 }
0x1d67   : > { %8346 = vmatprep.mubr.msk.bf16.mxu1 %vm12596_vm14, %v9707_v1  ;;  %vm6198_vm14 = vcmask 27648  }
0x1e1e   : > { %v8300_v20 = vpop.f32.mrf.mxu1 }
0x1e1f   : > { %v5511_v18 = vadd.f32 %v8300_v20, %v5434_v31 }
0x1e20   : > { %v5502_v4 = vpop.f32.mrf.mxu1 }
0x1e21   : > { %v7826_v56 = vmul.f32 -1.442695, %v5511_v18  ;;  %v5503_v40 = vadd.f32 %v5502_v4, %v5430_v16 }
0x1e22   : > { %v8301_v22 = vpop.f32.mrf.mxu1 }
0x1e23   : > { %9465 = vpow2.f32 %v7826_v56  ;;  %v7824_v42 = vmul.f32 -1.442695, %v5503_v40  ;;  %v5514_v44 = vadd.f32 %v8301_v22, %v5436_v48 }
0x1e24   : > { %v5505_v26 = vpop.f32.mrf.mxu1 }
0x1e25   : > { %9467 = vpow2.f32 %v7824_v42  ;;  %v7827_v54 = vmul.f32 -1.442695, %v5514_v44  ;;  %v5506_v13 = vadd.f32 %v5505_v26, %v5432_v0  ;;  %v9151_v44 = vld [vmem:[%s12499_s1 + $0x860] ss:$8 sps:$4 sm:$0xff]   ;;  %v5767_v0 = vld [vmem:[%s12500_s2 + $0x30] sm:$0xff] }
0x1e26   : > { %v8304_v60 = vpop.f32.mrf.mxu1  ;;  %8314 = vmatprep.mubr.msk.bf16.mxu0 %vm3425_vm15, %v9151_v44  ;;  %v5762_v26 = vld [vmem:[%s12500_s2 + $0x8] sm:$0xff] }
0x1e27   : > { %9469 = vpow2.f32 %v7827_v54  ;;  %v5527_v47 = vadd.f32 %v8304_v60, %v5442_v12  ;;  %v7825_v19 = vmul.f32 -1.442695, %v5506_v13  ;;  %v5766_v54 = vld [vmem:[%s12500_s2 + $0x28] sm:$0xff]  ;;  %v5768_v60 = vld [vmem:[%s12500_s2 + $0x38] sm:$0xff] }
0x1e28   : > { %v5518_v57 = vpop.f32.mrf.mxu1  ;;  %v12012_v13 = vld [vmem:[%s12500_s2 + $0x78] sm:$0xff] }
0x1e29   : > { %v7830_v51 = vmul.f32 -1.442695, %v5527_v47  ;;  %v5519_v41 = vadd.f32 %v5518_v57, %v5438_v58  ;;  %v12007_v47 = vld [vmem:[%s12500_s2 + $0x70] sm:$0xff]  ;;  %v12019_v57 = vld [vmem:[%s12500_s2 + $0x60] sm:$0xff] }
0x1e2a   : > { %v8305_v37 = vpop.f32.mrf.mxu1 }
0x1e2b   : > { %9471 = vpow2.f32 %v7830_v51  ;;  %v7828_v62 = vmul.f32 -1.442695, %v5519_v41  ;;  %v5530_v29 = vadd.f32 %v8305_v37, %v5444_v8  ;;  %v12024_v51 = vld [vmem:[%s12500_s2 + $0x68] sm:$0xff]  ;;  %v5663_v41 = vpop.permute.xlu1 %5662  ;;  %v5667_v37 = vpop.permute.xlu0 %5666 }
0x1e2c   : > { %v5521_v46 = vpop.f32.mrf.mxu1 }
0x1e2d   : > { %9473 = vpow2.f32 %v7828_v62  ;;  %v7831_v36 = vmul.f32 -1.442695, %v5530_v29  ;;  %v5522_v25 = vadd.f32 %v5521_v46, %v5440_v5  ;;  %v12031_v62 = vld [vmem:[%s12500_s2 + $0x50] sm:$0xff]  ;;  %v12036_v29 = vld [vmem:[%s12500_s2 + $0x58] sm:$0xff]  ;;  %v12043_v46 = vld [vmem:[%s12500_s2 + $0x40] sm:$0xff] }
0x1e2f   : > { %9475 = vpow2.f32 %v7831_v36  ;;  %v7829_v59 = vmul.f32 -1.442695, %v5522_v25  ;;  %v12048_v36 = vld [vmem:[%s12500_s2 + $0x48] sm:$0xff]  ;;  %v5655_v25 = vpop.permute.xlu0 %5654 }
0x1e30   : > { %v9466_v23 = vpop.eup %9465  ;;  %9477 = vpow2.f32 %v7825_v19  ;;  %v5659_v19 = vpop.permute.xlu1 %5658 }
0x1e31   : > { %v5559_v50 = vadd.f32 1.0, %v9466_v23  ;;  %9479 = vpow2.f32 %v7829_v59 }
0x1e32   : > { %v9468_v34 = vpop.eup %9467 }
0x1e33   : > { %9481 = vrcp.f32 %v5559_v50  ;;  %v5557_v28 = vadd.f32 1.0, %v9468_v34 }
0x1e34   : > { %v9470_v61 = vpop.eup %9469 }
0x1e35   : > { %9483 = vrcp.f32 %v5557_v28  ;;  %v5560_v32 = vadd.f32 1.0, %v9470_v61 }
0x1e37   : > { %9485 = vrcp.f32 %v5560_v32 }
0x1e38   : > { %v9472_v27 = vpop.eup %9471 }
0x1e39   : > { %v5563_v38 = vadd.f32 1.0, %v9472_v27 }
0x1e3a   : > { %v9474_v35 = vpop.eup %9473 }
0x1e3b   : > { %9487 = vrcp.f32 %v5563_v38  ;;  %v5561_v6 = vadd.f32 1.0, %v9474_v35 }
0x1e3c   : > { %v9476_v12 = vpop.eup %9475 }
0x1e3d   : > { %v9478_v58 = vpop.eup %9477  ;;  %9489 = vrcp.f32 %v5561_v6  ;;  %v5564_v8 = vadd.f32 1.0, %v9476_v12 }
0x1e3e   : > { %v9480_v31 = vpop.eup %9479  ;;  %v5558_v16 = vadd.f32 1.0, %v9478_v58 }
0x1e3f   : > { %v5562_v5 = vadd.f32 1.0, %v9480_v31  ;;  %9491 = vrcp.f32 %v5564_v8 }
0x1e40   : > { %v9482_v20 = vpop.eup %9481 }
0x1e41   : > { %9493 = vrcp.f32 %v5562_v5  ;;  %5593 = vperm.xlu1 %8865, %v9482_v20  }
0x1e42   : > { %v9484_v18 = vpop.eup %9483  ;;  %9495 = vrcp.f32 %v5558_v16 }
0x1e43   : > { %5583 = vperm.xlu0 %8866, %v9484_v18  }
0x1e44   : > { %v9486_v48 = vpop.eup %9485 }
0x1e45   : > { %5598 = vperm.xlu1 %8865, %v9486_v48  }
0x1e48   : > { %v9488_v4 = vpop.eup %9487 }
0x1e49   : > { %5613 = vperm.xlu0 %8866, %v9488_v4  }
0x1e4a   : > { %v9490_v56 = vpop.eup %9489 }
0x1e4b   : > { %5603 = vperm.xlu1 %8865, %v9490_v56  }
0x1e4c   : > { %v9492_v40 = vpop.eup %9491 }
0x1e4e   : > { %v9494_v22 = vpop.eup %9493 }
0x1e4f   : > { %5618 = vperm.xlu1 %8865, %v9492_v40   ;;  %5608 = vperm.xlu0 %8866, %v9494_v22   ;;  %v9496_v42 = vpop.eup %9495 }
0x1e53   : > { %5588 = vperm.xlu1 %8865, %v9496_v42   ;;  %8868 = vset.pattern.permute.xlu0 %v9739_v52 }
0x1e54   : > { %5650 = vperm.xlu0 %8868, %v11823_v63   ;;  %v5761_v63 = vld [vmem:[%s12500_s2] sm:$0xff] }
0x1e57   : > { %8867 = vset.pattern.permute.xlu1 %v9739_v52  ;;  %v9740_v52 = vmov 25  }
0x1e58   : > { %5646 = vperm.xlu1 %8867, %v11841_v14   ;;  %8869 = vset.pattern.permute.xlu0 %v9740_v52  ;;  %v5764_v14 = vld [vmem:[%s12500_s2 + $0x18] sm:$0xff] }
0x1e59   : > { %5787 = vperm.xlu0 %8869, %v5761_v63  }
0x1e5c   : > { %5638 = vperm.xlu1 %8867, %v11847_v15   ;;  %v5765_v15 = vld [vmem:[%s12500_s2 + $0x20] sm:$0xff] }
0x1e5d   : > { %5802 = vperm.xlu0 %8869, %v5764_v14  }
0x1e60   : > { %5642 = vperm.xlu1 %8867, %v11835_v9   ;;  %v5763_v9 = vld [vmem:[%s12500_s2 + $0x10] sm:$0xff] }
0x1e61   : > { %5812 = vperm.xlu0 %8869, %v5766_v54  }
0x1e64   : > { %8870 = vset.pattern.permute.xlu1 %v9740_v52 }
0x1e65   : > { %5792 = vperm.xlu1 %8870, %v5762_v26   ;;  %5822 = vperm.xlu0 %8869, %v5768_v60  }
0x1e69   : > { %5797 = vperm.xlu1 %8870, %v5763_v9   ;;  %5862 = vperm.xlu0 %8869, %v12012_v13  }
0x1e6d   : > { %5807 = vperm.xlu1 %8870, %v5765_v15   ;;  %5852 = vperm.xlu0 %8869, %v12024_v51  }
0x1e71   : > { %5817 = vperm.xlu1 %8870, %v5767_v0   ;;  %5842 = vperm.xlu0 %8869, %v12036_v29  }
0x1e75   : > { %5857 = vperm.xlu1 %8870, %v12007_v47   ;;  %5832 = vperm.xlu0 %8869, %v12048_v36  }
0x1e79   : > { %5847 = vperm.xlu1 %8870, %v12019_v57  }
0x1e7d   : > { %5837 = vperm.xlu1 %8870, %v12031_v62  }
0x1e81   : > { %5827 = vperm.xlu1 %8870, %v12043_v46  }
0x1ebc   : > { %v5594_v59 = vpop.permute.xlu1 %5593 }
0x1ebe   : > { %v5584_v23 = vpop.permute.xlu0 %5583 }
0x1ec0   : > { %v5599_v50 = vpop.permute.xlu1 %5598 }
0x1ec1   : > { %v5624_v6 = vmul.f32 %v5599_v50, %v11887_v30 }
0x1ec3   : > { %v5632_v16 = vadd.f32 %v5624_v6, %v11913_v24 }
0x1ec4   : > { %v5614_v34 = vpop.permute.xlu0 %5613 }
0x1ec5   : > { %v5627_v28 = vmul.f32 %v5614_v34, %v11875_v55 }
0x1ec6   : > { %v5604_v61 = vpop.permute.xlu1 %5603 }
0x1ec7   : > { %v5635_v32 = vadd.f32 %v5627_v28, %v11922_v21  ;;  %v5625_v27 = vmul.f32 %v5604_v61, %v11881_v43 }
0x1ec9   : > { %v12055_v38 = vadd.f32 %v5663_v41, %v5635_v32  ;;  %v5633_v35 = vadd.f32 %v5625_v27, %v11915_v33  ;;  %v5623_v33 = vmul.f32 %v5594_v59, %v11891_v11 }
0x1eca   : > { %v5619_v12 = vpop.permute.xlu1 %5618  ;;  %v5609_v58 = vpop.permute.xlu0 %5608 }
0x1ecb   : > { %v7838_v8 = vmul.f32 -1.442695, %v12055_v38  ;;  %v12060_v31 = vadd.f32 %v5655_v25, %v5633_v35  ;;  %v5628_v5 = vmul.f32 %v5619_v12, %v11879_v2  ;;  %v5626_v55 = vmul.f32 %v5609_v58, %v11883_v3 }
0x1ecc   : > { %v5621_v3 = vmul.f32 %v5584_v23, %v11899_v39  ;;  %v5631_v42 = vadd.f32 %v5623_v33, %v11911_v49 }
0x1ecd   : > { %9497 = vpow2.f32 %v7838_v8  ;;  %v7836_v21 = vmul.f32 -1.442695, %v12060_v31  ;;  %v5636_v43 = vadd.f32 %v5628_v5, %v11924_v53  ;;  %v5634_v20 = vadd.f32 %v5626_v55, %v11920_v10 }
0x1ece   : > { %v5589_v30 = vpop.permute.xlu1 %5588  ;;  %v5629_v44 = vadd.f32 %v5621_v3, %v11907_v17  ;;  %v9156_v3 = vld [vmem:[%s12499_s1 + $0x8b0] ss:$8 sps:$4 sm:$0xff]  }
0x1ecf   : > { %9499 = vpow2.f32 %v7836_v21  ;;  %v5676_v18 = vadd.f32 %v5667_v37, %v5636_v43  ;;  %v5674_v48 = vadd.f32 %v5659_v19, %v5634_v20  ;;  %v5651_v4 = vpop.permute.xlu0 %5650  ;;  %v5622_v11 = vmul.f32 %v5589_v30, %v11895_v45 }
0x1ed0   : > { %v5672_v56 = vadd.f32 %v5651_v4, %v5632_v16  ;;  %v9152_v4 = vld [vmem:[%s12499_s1 + $0x870] ss:$8 sps:$4 sm:$0xff]  }
0x1ed1   : > { %v7839_v2 = vmul.f32 -1.442695, %v5676_v18  ;;  %v7837_v40 = vmul.f32 -1.442695, %v5674_v48  ;;  %v5630_v39 = vadd.f32 %v5622_v11, %v11909_v7  ;;  %v9161_v11 = vld [vmem:[%s12499_s1 + $0x900] ss:$8 sps:$4 sm:$0xff]  }
0x1ed2   : > { %v7835_v22 = vmul.f32 -1.442695, %v5672_v56 }
0x1ed3   : > { %9501 = vpow2.f32 %v7839_v2  ;;  %v5647_v53 = vpop.permute.xlu1 %5646  ;;  %v9154_v2 = vld [vmem:[%s12499_s1 + $0x890] ss:$8 sps:$4 sm:$0xff]  }
0x1ed4   : > { %9503 = vpow2.f32 %v7837_v40  ;;  %v5671_v10 = vadd.f32 %v5647_v53, %v5631_v42  ;;  %v9155_v40 = vld [vmem:[%s12499_s1 + $0x8a0] ss:$8 sps:$4 sm:$0xff]   ;;  %v9158_v42 = vld [vmem:[%s12499_s1 + $0x8d0] ss:$8 sps:$4 sm:$0xff]  }
0x1ed5   : > { %9505 = vpow2.f32 %v7835_v22  ;;  %v9157_v22 = vld [vmem:[%s12499_s1 + $0x8c0] ss:$8 sps:$4 sm:$0xff]  }
0x1ed6   : > { %v7834_v24 = vmul.f32 -1.442695, %v5671_v10  ;;  %v9159_v53 = vld [vmem:[%s12499_s1 + $0x8e0] ss:$8 sps:$4 sm:$0xff]  }
0x1ed7   : > { %v5639_v26 = vpop.permute.xlu1 %5638 }
0x1ed8   : > { %9507 = vpow2.f32 %v7834_v24  ;;  %v5669_v63 = vadd.f32 %v5639_v26, %v5629_v44  ;;  %v9162_v24 = vld [vmem:[%s12499_s1 + $0x910] ss:$8 sps:$4 sm:$0xff]   ;;  %v5788_v44 = vpop.permute.xlu0 %5787 }
0x1eda   : > { %v9498_v52 = vpop.eup %9497  ;;  %v7832_v9 = vmul.f32 -1.442695, %v5669_v63 }
0x1edb   : > { %v5643_v14 = vpop.permute.xlu1 %5642  ;;  %v5707_v54 = vadd.f32 1.0, %v9498_v52 }
0x1edc   : > { %v9500_v15 = vpop.eup %9499  ;;  %9509 = vpow2.f32 %v7832_v9  ;;  %v5670_v49 = vadd.f32 %v5643_v14, %v5630_v39  ;;  %v5803_v52 = vpop.permute.xlu0 %5802 }
0x1edd   : > { %v5705_v0 = vadd.f32 1.0, %v9500_v15 }
0x1ede   : > { %v7833_v60 = vmul.f32 -1.442695, %v5670_v49 }
0x1ee0   : > { %v9502_v41 = vpop.eup %9501  ;;  %9511 = vpow2.f32 %v7833_v60  ;;  %v5793_v26 = vpop.permute.xlu1 %5792 }
0x1ee1   : > { %v9504_v45 = vpop.eup %9503  ;;  %9513 = vrcp.f32 %v5707_v54  ;;  %v5708_v37 = vadd.f32 1.0, %v9502_v41 }
0x1ee2   : > { %v9506_v17 = vpop.eup %9505  ;;  %9515 = vrcp.f32 %v5705_v0  ;;  %v5706_v19 = vadd.f32 1.0, %v9504_v45  ;;  %v5813_v0 = vpop.permute.xlu0 %5812 }
0x1ee3   : > { %9517 = vrcp.f32 %v5708_v37  ;;  %v5704_v25 = vadd.f32 1.0, %v9506_v17 }
0x1ee4   : > { %9519 = vrcp.f32 %v5706_v19  ;;  %v5798_v39 = vpop.permute.xlu1 %5797 }
0x1ee5   : > { %v9508_v59 = vpop.eup %9507  ;;  %9521 = vrcp.f32 %v5704_v25 }
0x1ee6   : > { %v5703_v7 = vadd.f32 1.0, %v9508_v59 }
0x1ee8   : > { %9523 = vrcp.f32 %v5703_v7  ;;  %v5808_v37 = vpop.permute.xlu1 %5807  ;;  %v5823_v7 = vpop.permute.xlu0 %5822 }
0x1ee9   : > { %v9510_v23 = vpop.eup %9509 }
0x1eea   : > { %v5701_v50 = vadd.f32 1.0, %v9510_v23 }
0x1eec   : > { %9525 = vrcp.f32 %v5701_v50 }
0x1eed   : > { %v9512_v34 = vpop.eup %9511 }
0x1eee   : > { %v9514_v28 = vpop.eup %9513  ;;  %v5702_v61 = vadd.f32 1.0, %v9512_v34 }
0x1eef   : > { %v9516_v32 = vpop.eup %9515  ;;  %v12075_v6 = vmul.f32 %v9514_v28, %v12055_v38  ;;  %v5818_v28 = vpop.permute.xlu1 %5817 }
0x1ef0   : > { %v9518_v27 = vpop.eup %9517  ;;  %9527 = vrcp.f32 %v5702_v61  ;;  %v12084_v55 = vmul.f32 %v9516_v32, %v12060_v31 }
0x1ef1   : > { %v9520_v35 = vpop.eup %9519  ;;  %v12077_v12 = vmul.f32 %v9518_v27, %v5676_v18 }
0x1ef2   : > { %v12079_v58 = vmul.f32 %v9520_v35, %v5674_v48  ;;  %v9522_v8 = vpop.eup %9521 }
0x1ef3   : > { %v5760_v5 = vpack.c.bf16 %v12077_v12, %v12075_v6  ;;  %v12088_v20 = vmul.f32 %v9522_v8, %v5672_v56  ;;  %v9153_v56 = vld [vmem:[%s12499_s1 + $0x880] ss:$8 sps:$4 sm:$0xff]  }
0x1ef4   : > { %v5759_v43 = vpack.c.bf16 %v12079_v58, %v12084_v55 }
0x1ef5   : > { %v9524_v21 = vpop.eup %9523  ;;  %8306 = vmatprep.subr.bf16.mxu0 %v5760_v5 }
0x1ef6   : > { %v12090_v38 = vmul.f32 %v9524_v21, %v5671_v10  ;;  %8307 = vmatpush3.bf16.msra.mxu0 %v5760_v5  ;;  %v9160_v10 = vld [vmem:[%s12499_s1 + $0x8f0] ss:$8 sps:$4 sm:$0xff]   ;;  %v5863_v5 = vpop.permute.xlu0 %5862 }
0x1ef7   : > { %8308 = vmatprep.subr.bf16.mxu0 %v5759_v43 }
0x1ef8   : > { %v5758_v33 = vpack.c.bf16 %v12088_v20, %v12090_v38 }
0x1ef9   : > { %v9526_v30 = vpop.eup %9525 }
0x1efa   : > { %8309 = vmatpush3.bf16.msra.mxu0 %v5759_v43  ;;  %v12094_v31 = vmul.f32 %v9526_v30, %v5669_v63 }
0x1efb   : > { %8310 = vmatprep.subr.bf16.mxu0 %v5758_v33 }
0x1efd   : > { %v9528_v16 = vpop.eup %9527 }
0x1efe   : > { %v12096_v18 = vmul.f32 %v9528_v16, %v5670_v49  ;;  %8311 = vmatpush3.bf16.msra.mxu0 %v5758_v33  ;;  %v5858_v33 = vpop.permute.xlu1 %5857 }
0x1f00   : > { %v5757_v48 = vpack.c.bf16 %v12096_v18, %v12094_v31 }
0x1f02   : > { %8312 = vmatprep.subr.bf16.mxu0 %v5757_v48 }
0x1f03   : > { %8313 = vmatpush3.bf16.msra.mxu0 %v5757_v48  ;;  %v5778_v48 = vld [vmem:[%s12500_s2 + $0x88] sm:$0xff] }
0x1f06   : > { %8315 = vmatmul.mubr.msk.bf16.vlgmr.msra.gmra.mxu0 %vm3425_vm15, %v9152_v4  ;;  %v5853_v4 = vpop.permute.xlu0 %5852 }
0x1f07   : > { %8318 = vmatprep.mubr.msk.bf16.mxu0 %vm3425_vm15, %v9153_v56 }
0x1f0e   : > { %8319 = vmatmul.mubr.msk.bf16.gmra.mxu0 %vm3425_vm15, %v9154_v2  ;;  %v5848_v2 = vpop.permute.xlu1 %5847 }
0x1f0f   : > { %8322 = vmatprep.mubr.msk.bf16.mxu0 %vm3425_vm15, %v9155_v40 }
0x1f16   : > { %8323 = vmatmul.mubr.msk.bf16.gmra.mxu0 %vm3425_vm15, %v9156_v3  ;;  %v5779_v3 = vld [vmem:[%s12500_s2 + $0x90] sm:$0xff] }
0x1f17   : > { %8326 = vmatprep.mubr.msk.bf16.mxu0 %vm3425_vm15, %v9157_v22 }
0x1f1e   : > { %8327 = vmatmul.mubr.msk.bf16.gmra.mxu0 %vm3425_vm15, %v9158_v42 }
0x1f1f   : > { %8330 = vmatprep.mubr.msk.bf16.mxu0 %vm3425_vm15, %v9159_v53 }
0x1f26   : > { %8331 = vmatmul.mubr.msk.bf16.gmra.mxu0 %vm3425_vm15, %v9160_v10 }
0x1f27   : > { %8334 = vmatprep.mubr.msk.bf16.mxu0 %vm3425_vm15, %v9161_v11 }
0x1f2e   : > { %8335 = vmatmul.mubr.msk.bf16.gmra.mxu0 %vm3425_vm15, %v9162_v24  ;;  %v5843_v24 = vpop.permute.xlu0 %5842 }
0x1fc6   : > { %v8316_v63 = vpop.f32.mrf.mxu0 }
0x1fc7   : > { %v6044_v19 = vadd.f32 %v8316_v63, %v5798_v39  ;;  %v5838_v63 = vpop.permute.xlu1 %5837  ;;  %v5781_v39 = vld [vmem:[%s12500_s2 + $0xa0] sm:$0xff] }
0x1fc8   : > { %v6035_v9 = vpop.f32.mrf.mxu0 }
0x1fc9   : > { %v6036_v49 = vadd.f32 %v6035_v9, %v5788_v44  ;;  %v5780_v44 = vld [vmem:[%s12500_s2 + $0x98] sm:$0xff] }
0x1fca   : > { %v8317_v14 = vpop.f32.mrf.mxu0 }
0x1fcb   : > { %v6047_v41 = vadd.f32 %v8317_v14, %v5803_v52 }
0x1fcc   : > { %v6038_v15 = vpop.f32.mrf.mxu0 }
0x1fcd   : > { %v6039_v54 = vadd.f32 %v6038_v15, %v5793_v26  ;;  %v6131_v59 = vpack.c.bf16 %v6047_v41, %v6044_v19  ;;  %v5833_v15 = vpop.permute.xlu0 %5832 }
0x1fce   : > { %v8320_v60 = vpop.f32.mrf.mxu0 }
0x1fcf   : > { %v6130_v45 = vpack.c.bf16 %v6039_v54, %v6036_v49  ;;  %v6060_v8 = vadd.f32 %v8320_v60, %v5818_v28  ;;  %v5783_v60 = vld [vmem:[%s12500_s2 + $0xb0] sm:$0xff] }
0x1fd0   : > { %v6051_v17 = vpop.f32.mrf.mxu0 }
0x1fd1   : > { %6138 = vxpose.xlu1.c.b16.start [1/4] (short) (narrow) %v6130_v45, 16  ;;  %v6052_v50 = vadd.f32 %v6051_v17, %v5808_v37 }
0x1fd2   : > { %v8321_v25 = vpop.f32.mrf.mxu0 }
0x1fd3   : > { %v6063_v32 = vadd.f32 %v8321_v25, %v5823_v7 }
0x1fd4   : > { %v6054_v23 = vpop.f32.mrf.mxu0 }
0x1fd5   : > { %v6055_v34 = vadd.f32 %v6054_v23, %v5813_v0  ;;  %6139 = vxpose.xlu1.c.b16.cont [2/4] (short) (narrow) %v6131_v59, 16  ;;  %v6133_v43 = vpack.c.bf16 %v6063_v32, %v6060_v8  ;;  %v5828_v0 = vpop.permute.xlu1 %5827  ;;  %v5777_v32 = vld [vmem:[%s12500_s2 + $0x80] sm:$0xff] }
0x1fd6   : > { %v8324_v61 = vpop.f32.mrf.mxu0 }
0x1fd7   : > { %v6132_v27 = vpack.c.bf16 %v6055_v34, %v6052_v50  ;;  %v6076_v14 = vadd.f32 %v8324_v61, %v5838_v63 }
0x1fd8   : > { %v6067_v35 = vpop.f32.mrf.mxu0 }
0x1fd9   : > { %6140 = vxpose.xlu1.c.b16.cont [3/4] (short) (narrow) %v6132_v27, 16  ;;  %v6068_v41 = vadd.f32 %v6067_v35, %v5828_v0  ;;  %v5782_v27 = vld [vmem:[%s12500_s2 + $0xa8] sm:$0xff]  ;;  %v5784_v35 = vld [vmem:[%s12500_s2 + $0xb8] sm:$0xff] }
0x1fda   : > { %v8325_v21 = vpop.f32.mrf.mxu0 }
0x1fdb   : > { %v6079_v52 = vadd.f32 %v8325_v21, %v5843_v24 }
0x1fdc   : > { %v6070_v30 = vpop.f32.mrf.mxu0 }
0x1fdd   : > { %6141 = vxpose.xlu1.c.b16.end [4/4] (short) (narrow) %v6133_v43, 16  ;;  %v6135_v49 = vpack.c.bf16 %v6079_v52, %v6076_v14  ;;  %v6071_v54 = vadd.f32 %v6070_v30, %v5833_v15 }
0x1fde   : > { %v8328_v16 = vpop.f32.mrf.mxu0 }
0x1fdf   : > { %v6092_v22 = vadd.f32 %v8328_v16, %v5858_v33  ;;  %v6134_v45 = vpack.c.bf16 %v6071_v54, %v6068_v41 }
0x1fe0   : > { %v6083_v56 = vpop.f32.mrf.mxu0 }
0x1fe1   : > { %5872 = vperm.xlu1 %8870, %v5778_v48   ;;  %v6084_v26 = vadd.f32 %v6083_v56, %v5848_v2 }
0x1fe2   : > { %v8329_v40 = vpop.f32.mrf.mxu0 }
0x1fe3   : > { %v6095_v42 = vadd.f32 %v8329_v40, %v5863_v5 }
0x1fe4   : > { %v6086_v53 = vpop.f32.mrf.mxu0 }
0x1fe5   : > { %v6137_v10 = vpack.c.bf16 %v6095_v42, %v6092_v22  ;;  %v6087_v11 = vadd.f32 %v6086_v53, %v5853_v4  ;;  %5877 = vperm.xlu1 %8870, %v5779_v3  }
0x1fe6   : > { %v8332_v8 = vpop.f32.mrf.mxu0 }
0x1fe7   : > { %8339 = vmatpush3.bf16.msra.mxu1 %v6137_v10  ;;  %v6136_v9 = vpack.c.bf16 %v6087_v11, %v6084_v26 }
0x1fe8   : > { %8340 = vmatprep.subr.bf16.mxu1 %v9707_v1  ;;  %v6099_v5 = vpop.f32.mrf.mxu0 }
0x1fe9   : > { %5882 = vperm.xlu1 %8870, %v5780_v44  }
0x1fea   : > { %v8333_v43 = vpop.f32.mrf.mxu0 }
0x1feb   : > { %8341 = vmatpush3.bf16.msra.mxu1 %v6136_v9 }
0x1fec   : > { %8342 = vmatprep.subr.bf16.mxu1 %v9707_v1  ;;  %v6102_v30 = vpop.f32.mrf.mxu0 }
0x1fed   : > { %5887 = vperm.xlu1 %8870, %v5781_v39  }
0x1fee   : > { %v8336_v56 = vpop.f32.mrf.mxu0 }
0x1fef   : > { %8343 = vmatpush3.bf16.msra.mxu1 %v6135_v49 }
0x1ff0   : > { %8344 = vmatprep.subr.bf16.mxu1 %v9707_v1  ;;  %v6115_v3 = vpop.f32.mrf.mxu0 }
0x1ff1   : > { %5897 = vperm.xlu1 %8870, %v5783_v60  }
0x1ff2   : > { %v8337_v53 = vpop.f32.mrf.mxu0 }
0x1ff3   : > { %8345 = vmatpush3.bf16.msra.mxu1 %v6134_v45 }
0x1ff4   : > { %v6118_v24 = vpop.f32.mrf.mxu0 }
0x2033   : > { %v6146_v37 = vpop.trf.xlu1 }
0x2034   : > { %8347 = vmatmul.mubr.msk.bf16.vlgmr.msra.gmra.mxu1 %vm3425_vm15, %v6146_v37  ;;  %v9163_v37 = vld [vmem:[%s12499_s1 + $0x920] ss:$8 sps:$4 sm:$0xff]  }
0x205c   : > { %v5873_v33 = vpop.permute.xlu1 %5872 }
0x205d   : > { %v6103_v48 = vadd.f32 %v6102_v30, %v5873_v33 }
0x2060   : > { %v5878_v4 = vpop.permute.xlu1 %5877 }
0x2061   : > { %v6108_v39 = vadd.f32 %v8332_v8, %v5878_v4 }
0x2064   : > { %v5883_v42 = vpop.permute.xlu1 %5882 }
0x2065   : > { %v6111_v63 = vadd.f32 %v8333_v43, %v5883_v42 }
0x2067   : > { %v6211_v15 = vpack.c.bf16 %v6111_v63, %v6108_v39 }
0x2068   : > { %v5888_v52 = vpop.permute.xlu1 %5887 }
0x2069   : > { %v6116_v14 = vadd.f32 %v6115_v3, %v5888_v52 }
0x206c   : > { %v5898_v0 = vpop.permute.xlu1 %5897 }
0x206d   : > { %v6124_v41 = vadd.f32 %v8336_v56, %v5898_v0  ;;  %v9164_v56 = vld [vmem:[%s12499_s1 + $0x930] ss:$8 sps:$4 sm:$0xff]  }
0x20f4   : > { %v6191_v17 = vpop.f32.mrf.mxu1 }
0x20f5   : > { %v6197_v19 = vmul.f32 0.125, %v6191_v17  ;;  %v9741_v17 = vmov 26  }
0x20f6   : > { %v8348_v25 = vpop.f32.mrf.mxu1  ;;  %8871 = vset.pattern.permute.xlu1 %v9741_v17 }
0x20f7   : > { %v6199_v59 = vsel %vm6198_vm14, %v6197_v19, -inf  ;;  %v12191_v25 = vld [vmem:[%s12500_s2 + $0x8] sm:$0xff] }
0x20f8   : > { %6200 = vmax.xlane.f32.xlu0 %v6199_v59  ;;  %v6194_v7 = vpop.f32.mrf.mxu1  ;;  %v12197_v59 = vld [vmem:[%s12500_s2 + $0x10] sm:$0xff] }
0x20f9   : > { %v12203_v7 = vld [vmem:[%s12500_s2 + $0x20] sm:$0xff] }
0x20fa   : > { %v8349_v23 = vpop.f32.mrf.mxu1 }
0x20fb   : > { %v12209_v23 = vld [vmem:[%s12500_s2 + $0x18] sm:$0xff] }
0x2181   : > { %v6201_v50 = vpop.xlane.xlu0 %6200 }
0x2182   : > { %v6202_v34 = vsub.f32 %v6197_v19, %v6201_v50  ;;  %v12185_v19 = vld [vmem:[%s12500_s2] sm:$0xff]  ;;  %v12215_v50 = vld [vmem:[%s12500_s2 + $0x30] sm:$0xff] }
0x2183   : > { %6308 = vperm.xlu1 %8871, %v12185_v19  }
0x2184   : > { %v6203_v28 = vmul.f32 1.442695, %v6202_v34  ;;  %v12221_v34 = vld [vmem:[%s12500_s2 + $0x28] sm:$0xff] }
0x2186   : > { %9529 = vpow2.f32 %v6203_v28  ;;  %v9742_v28 = vmov 27  }
0x2187   : > { %6316 = vperm.xlu1 %8871, %v12197_v59  }
0x218b   : > { %6320 = vperm.xlu1 %8871, %v12209_v23  }
0x218f   : > { %6328 = vperm.xlu1 %8871, %v12221_v34  }
0x2193   : > { %v9530_v61 = vpop.eup %9529 }
0x2194   : > { %v6205_v1 = vsel %vm6198_vm14, %v9530_v61, 0.0 }
0x2195   : > { %6206 = vadd.xlane.f32.xlu0 %v6205_v1  ;;  %v9743_v1 = vmov 28  }
0x21ab   : > { %5867 = vperm.xlu0 %8869, %v5777_v32  }
0x21af   : > { %5892 = vperm.xlu0 %8869, %v5782_v27  }
0x21b3   : > { %5902 = vperm.xlu0 %8869, %v5784_v35  }
0x21b7   : > { %8872 = vset.pattern.permute.xlu0 %v9741_v17 }
0x21b8   : > { %6312 = vperm.xlu0 %8872, %v12191_v25  }
0x21bc   : > { %6324 = vperm.xlu0 %8872, %v12203_v7  }
0x21c0   : > { %6332 = vperm.xlu0 %8872, %v12215_v50  }
0x21c4   : > { %8873 = vset.pattern.permute.xlu0 %v9742_v28 }
0x21c5   : > { %6539 = vperm.xlu0 %8873, %v12215_v50  }
0x21c9   : > { %6523 = vperm.xlu0 %8873, %v12197_v59  }
0x21cd   : > { %8878 = vset.pattern.permute.xlu0 %v9743_v1 }
0x21fe   : > { %v6309_v3 = vpop.permute.xlu1 %6308 }
0x221e   : > { %v6207_v21 = vpop.xlane.xlu0 %6206 }
0x221f   : > { %9531 = vrcp.f32 %v6207_v21 }
0x2226   : > { %v5868_v16 = vpop.permute.xlu0 %5867 }
0x2227   : > { %v6100_v2 = vadd.f32 %v6099_v5, %v5868_v16 }
0x2229   : > { %v6210_v40 = vpack.c.bf16 %v6103_v48, %v6100_v2  ;;  %v9165_v2 = vld [vmem:[%s12499_s1 + $0x940] ss:$8 sps:$4 sm:$0xff]  }
0x222a   : > { %v5893_v44 = vpop.permute.xlu0 %5892 }
0x222b   : > { %8352 = vmatprep.mubr.msk.bf16.mxu1 %vm4448_vm11, %v6210_v40  ;;  %v6119_v9 = vadd.f32 %v6118_v24, %v5893_v44  ;;  %v9166_v40 = vld [vmem:[%s12499_s1 + $0x950] ss:$8 sps:$4 sm:$0xff]  }
0x222c   : > { %v9532_v22 = vpop.eup %9531 }
0x222d   : > { %v6209_v10 = vmul.f32 %v9532_v22, %v9530_v61  ;;  %v6212_v49 = vpack.c.bf16 %v6119_v9, %v6116_v14  ;;  %v12228_v61 = vld [vmem:[%s12500_s2 + $0x38] sm:$0xff]  ;;  %v6317_v22 = vpop.permute.xlu1 %6316 }
0x222e   : > { %v5903_v54 = vpop.permute.xlu0 %5902  ;;  %6336 = vperm.xlu1 %8871, %v12228_v61   ;;  %6583 = vperm.xlu0 %8878, %v12228_v61  }
0x222f   : > { %v6214_v11 = vpack.c.bf16 %v6209_v10, %v6209_v10  ;;  %v6127_v60 = vadd.f32 %v8337_v53, %v5903_v54 }
0x2231   : > { %8441 = vmatprep.subr.msk.bf16.mxu1 %vm4448_vm11, %v6214_v11  ;;  %v6228_v26 = vsel %vm4448_vm11, %v6214_v11, 0  ;;  %v6213_v45 = vpack.c.bf16 %v6127_v60, %v6124_v41  ;;  %v6321_v10 = vpop.permute.xlu1 %6320 }
0x2232   : > { %8351 = vmatpush3.bf16.xpose.msra.mxu1 %v6228_v26  ;;  %8874 = vset.pattern.permute.xlu1 %v9742_v28 }
0x2233   : > { %6543 = vperm.xlu1 %8874, %v12228_v61   ;;  %6571 = vperm.xlu0 %8878, %v12203_v7   ;;  %v6313_v42 = vpop.permute.xlu0 %6312 }
0x2237   : > { %8875 = vset.pattern.permute.xlu1 %v9743_v1  ;;  %6567 = vperm.xlu0 %8878, %v12209_v23   ;;  %v6325_v63 = vpop.permute.xlu0 %6324 }
0x2238   : > { %6579 = vperm.xlu1 %8875, %v12215_v50  }
0x2239   : > { %8353 = vmatmul.mubr.msk.bf16.vlgmr.msra.gmra.mxu1 %vm4448_vm11, %v6211_v15  ;;  %v6329_v15 = vpop.permute.xlu1 %6328 }
0x223a   : > { %8356 = vmatprep.mubr.msk.bf16.mxu1 %vm4448_vm11, %v6212_v49 }
0x223b   : > { %6555 = vperm.xlu0 %8878, %v12185_v19  }
0x223c   : > { %8876 = vset.pattern.permute.xlu1 %v9742_v28 }
0x223d   : > { %6531 = vperm.xlu1 %8876, %v12203_v7  }
0x2241   : > { %8357 = vmatmul.mubr.msk.bf16.gmra.mxu1 %vm4448_vm11, %v6213_v45  ;;  %6535 = vperm.xlu1 %8876, %v12221_v34  }
0x2242   : > { %8368 = vmatprep.mubr.msk.bf16.mxu1 %vm3425_vm15, %v9163_v37 }
0x2245   : > { %8877 = vset.pattern.permute.xlu1 %v9743_v1 }
0x2246   : > { %6575 = vperm.xlu1 %8877, %v12221_v34  }
0x224a   : > { %8879 = vset.pattern.permute.xlu1 %v9742_v28 }
0x224b   : > { %6527 = vperm.xlu1 %8879, %v12209_v23  }
0x224f   : > { %8880 = vset.pattern.permute.xlu1 %v9743_v1 }
0x2250   : > { %6563 = vperm.xlu1 %8880, %v12197_v59  }
0x2254   : > { %8881 = vset.pattern.permute.xlu1 %v9742_v28 }
0x2255   : > { %6515 = vperm.xlu1 %8881, %v12185_v19  }
0x2259   : > { %6519 = vperm.xlu1 %8881, %v12191_v25  }
0x225d   : > { %8882 = vset.pattern.permute.xlu1 %v9743_v1  ;;  %v6333_v1 = vpop.permute.xlu0 %6332 }
0x225e   : > { %6559 = vperm.xlu1 %8882, %v12191_v25  }
0x22f9   : > { %v8354_v32 = vpop.f32.mrf.mxu1 }
0x22fb   : > { %v6264_v27 = vpop.f32.mrf.mxu1 }
0x22fd   : > { %v8355_v35 = vpop.f32.mrf.mxu1 }
0x22fe   : > { %v6304_v48 = vpack.c.bf16 %v8355_v35, %v8354_v32 }
0x22ff   : > { %v6267_v8 = vpop.f32.mrf.mxu1 }
0x2300   : > { %v6303_v4 = vpack.c.bf16 %v6267_v8, %v6264_v27 }
0x2301   : > { %v8358_v5 = vpop.f32.mrf.mxu1 }
0x2303   : > { %v6280_v21 = vpop.f32.mrf.mxu1 }
0x2305   : > { %v8359_v43 = vpop.f32.mrf.mxu1 }
0x2306   : > { %v6306_v33 = vpack.c.bf16 %v8359_v43, %v8358_v5 }
0x2307   : > { %v6283_v30 = vpop.f32.mrf.mxu1 }
0x2308   : > { %v6305_v16 = vpack.c.bf16 %v6283_v30, %v6280_v21  ;;  %8360 = vmatprep.subr.bf16.mxu1 %v6306_v33 }
0x2309   : > { %8361 = vmatpush3.bf16.msra.mxu1 %v6306_v33 }
0x230a   : > { %8362 = vmatprep.subr.bf16.mxu1 %v6305_v16 }
0x230d   : > { %8363 = vmatpush3.bf16.msra.mxu1 %v6305_v16 }
0x230e   : > { %8364 = vmatprep.subr.bf16.mxu1 %v6304_v48 }
0x2311   : > { %8365 = vmatpush3.bf16.msra.mxu1 %v6304_v48 }
0x2312   : > { %8366 = vmatprep.subr.bf16.mxu1 %v6303_v4 }
0x2315   : > { %8367 = vmatpush3.bf16.msra.mxu1 %v6303_v4 }
0x2318   : > { %8369 = vmatmul.mubr.msk.bf16.vlgmr.msra.gmra.mxu1 %vm3425_vm15, %v9164_v56 }
0x2319   : > { %8372 = vmatprep.mubr.msk.bf16.mxu1 %vm3425_vm15, %v9165_v2 }
0x2320   : > { %8373 = vmatmul.mubr.msk.bf16.gmra.mxu1 %vm3425_vm15, %v9166_v40 }
0x23d8   : > { %v8370_v53 = vpop.f32.mrf.mxu1 }
0x23d9   : > { %v6414_v26 = vadd.f32 %v8370_v53, %v6317_v22 }
0x23da   : > { %v6405_v11 = vpop.f32.mrf.mxu1 }
0x23db   : > { %v6406_v24 = vadd.f32 %v6405_v11, %v6309_v3  ;;  %v6438_v54 = vadd.f32 %v6414_v26, %v12090_v38  ;;  %v6337_v38 = vpop.permute.xlu1 %6336 }
0x23dc   : > { %v8371_v44 = vpop.f32.mrf.mxu1 }
0x23dd   : > { %v6436_v9 = vadd.f32 %v6406_v24, %v12094_v31  ;;  %v6417_v39 = vadd.f32 %v8371_v44, %v6321_v10  ;;  %v6447_v31 = vsel %vm4448_vm11, %v6438_v54, 0.0 }
0x23de   : > { %v6408_v52 = vpop.f32.mrf.mxu1 }
0x23df   : > { %v6409_v14 = vadd.f32 %v6408_v52, %v6313_v42  ;;  %v6444_v41 = vsel %vm4448_vm11, %v6436_v9, 0.0  ;;  %v6439_v45 = vadd.f32 %v6417_v39, %v12088_v20 }
0x23e0   : > { %v8374_v49 = vpop.f32.mrf.mxu1 }
0x23e1   : > { %v6437_v0 = vadd.f32 %v6409_v14, %v12096_v18  ;;  %v6430_v27 = vadd.f32 %v8374_v49, %v6333_v1  ;;  %v6449_v18 = vsel %vm4448_vm11, %v6439_v45, 0.0 }
0x23e2   : > { %v6421_v60 = vpop.f32.mrf.mxu1 }
0x23e3   : > { %v6445_v37 = vsel %vm4448_vm11, %v6437_v0, 0.0  ;;  %v6422_v17 = vadd.f32 %v6421_v60, %v6325_v63  ;;  %v6442_v20 = vadd.f32 %v6430_v27, %v12075_v6 }
0x23e4   : > { %v6446_v28 = vadd.f32 %v6445_v37, %v6444_v41  ;;  %v8375_v32 = vpop.f32.mrf.mxu1 }
0x23e5   : > { %v6440_v35 = vadd.f32 %v6422_v17, %v12084_v55  ;;  %v6433_v21 = vadd.f32 %v8375_v32, %v6337_v38  ;;  %v6455_v2 = vsel %vm4448_vm11, %v6442_v20, 0.0 }
0x23e6   : > { %v6448_v8 = vadd.f32 %v6447_v31, %v6446_v28  ;;  %v6424_v5 = vpop.f32.mrf.mxu1 }
0x23e7   : > { %v6425_v43 = vadd.f32 %v6424_v5, %v6329_v15  ;;  %v6451_v30 = vsel %vm4448_vm11, %v6440_v35, 0.0  ;;  %v6443_v4 = vadd.f32 %v6433_v21, %v12077_v12 }
0x23e8   : > { %v6450_v33 = vadd.f32 %v6449_v18, %v6448_v8 }
0x23e9   : > { %v6441_v16 = vadd.f32 %v6425_v43, %v12079_v58  ;;  %v6457_v3 = vsel %vm4448_vm11, %v6443_v4, 0.0 }
0x23ea   : > { %v6452_v48 = vadd.f32 %v6451_v30, %v6450_v33 }
0x23eb   : > { %v6453_v56 = vsel %vm4448_vm11, %v6441_v16, 0.0 }
0x23ec   : > { %v6454_v55 = vadd.f32 %v6453_v56, %v6452_v48 }
0x23ee   : > { %v6456_v40 = vadd.f32 %v6455_v2, %v6454_v55 }
0x23f0   : > { %v6458_v22 = vadd.f32 %v6457_v3, %v6456_v40  ;;  %v6540_v40 = vpop.permute.xlu0 %6539 }
0x23f2   : > { %v6459_v42 = vrot.slane %v6458_v22, 4 }
0x23f4   : > { %v6460_v53 = vadd.f32 %v6459_v42, %v6458_v22 }
0x23f6   : > { %v6461_v10 = vrot.slane %v6460_v53, 2 }
0x23f8   : > { %v6462_v6 = vadd.f32 %v6461_v10, %v6460_v53  ;;  %v6524_v10 = vpop.permute.xlu0 %6523 }
0x23fa   : > { %v6463_v11 = vrot.slane %v6462_v6, 1 }
0x23fc   : > { %v6464_v24 = vadd.f32 %v6463_v11, %v6462_v6 }
0x23fe   : > { %v6465_v44 = vmul.f32 0.015625, %v6464_v24  ;;  %v6584_v24 = vpop.permute.xlu0 %6583 }
0x2400   : > { %v6466_v58 = vsub.f32 %v6436_v9, %v6465_v44  ;;  %v12274_v26 = vsub.f32 %v6437_v0, %v6465_v44  ;;  %v6468_v12 = vsub.f32 %v6438_v54, %v6465_v44  ;;  %v12276_v63 = vsub.f32 %v6439_v45, %v6465_v44 }
0x2401   : > { %v6470_v52 = vsub.f32 %v6440_v35, %v6465_v44  ;;  %v6471_v49 = vsub.f32 %v6441_v16, %v6465_v44  ;;  %v6472_v45 = vsub.f32 %v6442_v20, %v6465_v44  ;;  %v6473_v32 = vsub.f32 %v6443_v4, %v6465_v44  ;;  %v6544_v35 = vpop.permute.xlu1 %6543 }
0x2402   : > { %v6474_v39 = vmul.f32 %v6466_v58, %v6466_v58  ;;  %v6475_v14 = vmul.f32 %v12274_v26, %v12274_v26  ;;  %v6476_v15 = vmul.f32 %v6468_v12, %v6468_v12  ;;  %v6477_v60 = vmul.f32 %v12276_v63, %v12276_v63 }
0x2403   : > { %v6478_v0 = vmul.f32 %v6470_v52, %v6470_v52  ;;  %v6479_v28 = vmul.f32 %v6471_v49, %v6471_v49  ;;  %v6480_v8 = vmul.f32 %v6472_v45, %v6472_v45  ;;  %v6481_v18 = vmul.f32 %v6473_v32, %v6473_v32 }
0x2404   : > { %v6482_v41 = vsel %vm4448_vm11, %v6474_v39, 0.0  ;;  %v6483_v37 = vsel %vm4448_vm11, %v6475_v14, 0.0  ;;  %v6485_v54 = vsel %vm4448_vm11, %v6476_v15, 0.0  ;;  %v6487_v1 = vsel %vm4448_vm11, %v6477_v60, 0.0  ;;  %v6572_v39 = vpop.permute.xlu0 %6571 }
0x2405   : > { %v6484_v9 = vadd.f32 %v6483_v37, %v6482_v41  ;;  %v6489_v27 = vsel %vm4448_vm11, %v6478_v0, 0.0  ;;  %v6491_v5 = vsel %vm4448_vm11, %v6479_v28, 0.0  ;;  %v6493_v43 = vsel %vm4448_vm11, %v6480_v8, 0.0  ;;  %v6580_v30 = vpop.permute.xlu1 %6579 }
0x2406   : > { %v6495_v20 = vsel %vm4448_vm11, %v6481_v18, 0.0 }
0x2407   : > { %v6486_v17 = vadd.f32 %v6485_v54, %v6484_v9 }
0x2409   : > { %v6488_v31 = vadd.f32 %v6487_v1, %v6486_v17  ;;  %v6532_v4 = vpop.permute.xlu1 %6531  ;;  %v6568_v17 = vpop.permute.xlu0 %6567 }
0x240b   : > { %v6490_v38 = vadd.f32 %v6489_v27, %v6488_v31 }
0x240d   : > { %v6492_v21 = vadd.f32 %v6491_v5, %v6490_v38  ;;  %v6536_v22 = vpop.permute.xlu1 %6535 }
0x240f   : > { %v6494_v33 = vadd.f32 %v6493_v43, %v6492_v21 }
0x2411   : > { %v6496_v16 = vadd.f32 %v6495_v20, %v6494_v33  ;;  %v6576_v11 = vpop.permute.xlu1 %6575 }
0x2413   : > { %v6497_v48 = vrot.slane %v6496_v16, 4 }
0x2415   : > { %v6498_v56 = vadd.f32 %v6497_v48, %v6496_v16  ;;  %v6528_v44 = vpop.permute.xlu1 %6527 }
0x2417   : > { %v6499_v55 = vrot.slane %v6498_v56, 2 }
0x2419   : > { %v6500_v2 = vadd.f32 %v6499_v55, %v6498_v56  ;;  %v6564_v14 = vpop.permute.xlu1 %6563 }
0x241b   : > { %v6501_v3 = vrot.slane %v6500_v2, 1 }
0x241d   : > { %v6502_v42 = vadd.f32 %v6501_v3, %v6500_v2  ;;  %v6516_v8 = vpop.permute.xlu1 %6515 }
0x241f   : > { %v6503_v53 = vmul.f32 0.015625, %v6502_v42  ;;  %v9672_v42 = vld [vmem:[%s12500_s2 + $0x30] sm:$0xff] }
0x2421   : > { %v6504_v6 = vadd.f32 1e-05, %v6503_v53 }
0x2423   : > { %9533 = vrsqrt.f32 %v6504_v6 }
0x2430   : > { %v9534_v15 = vpop.eup %9533 }
0x2431   : > { %v6513_v60 = vmul.f32 %v9534_v15, %v6473_v32  ;;  %v6510_v41 = vmul.f32 %v9534_v15, %v6470_v52  ;;  %v6512_v37 = vmul.f32 %v9534_v15, %v6472_v45  ;;  %v6511_v9 = vmul.f32 %v9534_v15, %v6471_v49  ;;  %v6520_v45 = vpop.permute.xlu1 %6519 }
0x2432   : > { %v6508_v0 = vmul.f32 %v9534_v15, %v6468_v12  ;;  %v6506_v54 = vmul.f32 %v9534_v15, %v6466_v58  ;;  %v6509_v21 = vmul.f32 %v9534_v15, %v12276_v63  ;;  %v6556_v12 = vpop.permute.xlu0 %6555  ;;  %v6507_v32 = vmul.f32 %v9534_v15, %v12274_v26 }
0x2433   : > { %v6553_v28 = vmul.f32 %v6544_v35, %v6513_v60  ;;  %v6550_v1 = vmul.f32 %v6532_v4, %v6510_v41  ;;  %v6552_v31 = vmul.f32 %v6540_v40, %v6512_v37  ;;  %v6551_v18 = vmul.f32 %v6536_v22, %v6511_v9  ;;  %v9167_v22 = vld [vmem:[%s12499_s1 + $0x960] ss:$8 sps:$4 sm:$0xff]  }
0x2434   : > { %v6548_v27 = vmul.f32 %v6524_v10, %v6508_v0  ;;  %v6546_v43 = vmul.f32 %v6516_v8, %v6506_v54  ;;  %v6549_v58 = vmul.f32 %v6528_v44, %v6509_v21  ;;  %v6547_v48 = vmul.f32 %v6520_v45, %v6507_v32  ;;  %8384 = vmatprep.mubr.msk.bf16.mxu0 %vm3425_vm15, %v9167_v22  ;;  %v9169_v8 = vld [vmem:[%s12499_s1 + $0x980] ss:$8 sps:$4 sm:$0xff]  }
0x2435   : > { %v6592_v38 = vadd.f32 %v6580_v30, %v6552_v31  ;;  %v6593_v5 = vadd.f32 %v6584_v24, %v6553_v28  ;;  %v6590_v20 = vadd.f32 %v6572_v39, %v6550_v1  ;;  %v6591_v35 = vadd.f32 %v6576_v11, %v6551_v18  ;;  %v6560_v2 = vpop.permute.xlu1 %6559  ;;  %v9172_v18 = vld [vmem:[%s12499_s1 + $0x9b0] ss:$8 sps:$4 sm:$0xff]   ;;  %v9173_v21 = vld [vmem:[%s12499_s1 + $0x9c0] ss:$8 sps:$4 sm:$0xff]  }
0x2436   : > { %v6588_v33 = vadd.f32 %v6564_v14, %v6548_v27  ;;  %v6586_v30 = vadd.f32 %v6556_v12, %v6546_v43  ;;  %v6589_v56 = vadd.f32 %v6568_v17, %v6549_v58  ;;  %v6587_v40 = vadd.f32 %v6560_v2, %v6547_v48  ;;  %v9168_v27 = vld [vmem:[%s12499_s1 + $0x970] ss:$8 sps:$4 sm:$0xff]  }
0x2437   : > { %v6615_v52 = vsel %vm4448_vm11, %v6593_v5, 0.0  ;;  %v6612_v49 = vsel %vm4448_vm11, %v6592_v38, 0.0  ;;  %v6606_v16 = vsel %vm4448_vm11, %v6590_v20, 0.0  ;;  %v6609_v4 = vsel %vm4448_vm11, %v6591_v35, 0.0  ;;  %v9170_v38 = vld [vmem:[%s12499_s1 + $0x990] ss:$8 sps:$4 sm:$0xff]  }
0x2438   : > { %6616 = vadd.xlane.f32.xlu1 %v6615_v52  ;;  %6613 = vadd.xlane.f32.xlu0 %v6612_v49  ;;  %v6600_v63 = vsel %vm4448_vm11, %v6588_v33, 0.0  ;;  %v6594_v55 = vsel %vm4448_vm11, %v6586_v30, 0.0  ;;  %v6603_v26 = vsel %vm4448_vm11, %v6589_v56, 0.0  ;;  %v6597_v3 = vsel %vm4448_vm11, %v6587_v40, 0.0  ;;  %v9171_v5 = vld [vmem:[%s12499_s1 + $0x9a0] ss:$8 sps:$4 sm:$0xff]  }
0x2439   : > { %v9174_v43 = vld [vmem:[%s12499_s1 + $0x9d0] ss:$8 sps:$4 sm:$0xff]   ;;  %v9175_v33 = vld [vmem:[%s12499_s1 + $0x9e0] ss:$8 sps:$4 sm:$0xff]  }
0x243a   : > { %8416 = vmatprep.mubr.bf16.mxu1 %v9175_v33 }
0x243c   : > { %6607 = vadd.xlane.f32.xlu0 %v6606_v16  ;;  %6601 = vadd.xlane.f32.xlu1 %v6600_v63 }
0x2440   : > { %6610 = vadd.xlane.f32.xlu0 %v6609_v4  ;;  %6595 = vadd.xlane.f32.xlu1 %v6594_v55 }
0x2444   : > { %6604 = vadd.xlane.f32.xlu0 %v6603_v26 }
0x2448   : > { %6598 = vadd.xlane.f32.xlu0 %v6597_v3 }
0x2451   : > { %6746 = vrot.lane.b32.xlu1 %v12007_v47, %s9744_s10  ;;  %v9673_v47 = vld [vmem:[%s12500_s2 + $0x20] sm:$0xff] }
0x2455   : > { %6742 = vrot.lane.b32.xlu1 %v12019_v57, %s9744_s10  ;;  %v9675_v57 = vld [vmem:[%s12500_s2 + $0x10] sm:$0xff] }
0x2459   : > { %6744 = vrot.lane.b32.xlu1 %v12024_v51, %s9744_s10  ;;  %v9676_v51 = vld [vmem:[%s12500_s2 + $0x28] sm:$0xff] }
0x245d   : > { %6740 = vrot.lane.b32.xlu1 %v12036_v29, %s9744_s10  ;;  %v9678_v29 = vld [vmem:[%s12500_s2 + $0x18] sm:$0xff] }
0x245e   : > { %6748 = vrot.lane.b32.xlu0 %v12012_v13, %s9744_s10  ;;  %v9674_v13 = vld [vmem:[%s12500_s2 + $0x38] sm:$0xff] }
0x2461   : > { %6736 = vrot.lane.b32.xlu1 %v12048_v36, %s9744_s10 }
0x2462   : > { %6738 = vrot.lane.b32.xlu0 %v12031_v62, %s9744_s10  ;;  %v9677_v62 = vld [vmem:[%s12500_s2] sm:$0xff] }
0x2465   : > { %6732 = vrot.lane.b32.xlu1 %v9674_v13, %s9744_s10 }
0x2466   : > { %6734 = vrot.lane.b32.xlu0 %v12043_v46, %s9744_s10  ;;  %v9679_v46 = vld [vmem:[%s12500_s2 + $0x8] sm:$0xff] }
0x2469   : > { %6728 = vrot.lane.b32.xlu1 %v9676_v51, %s9744_s10 }
0x246a   : > { %6730 = vrot.lane.b32.xlu0 %v9672_v42, %s9744_s10 }
0x246d   : > { %6724 = vrot.lane.b32.xlu1 %v9678_v29, %s9744_s10 }
0x246e   : > { %6726 = vrot.lane.b32.xlu0 %v9673_v47, %s9744_s10 }
0x2471   : > { %6720 = vrot.lane.b32.xlu1 %v9679_v46, %s9744_s10 }
0x2472   : > { %6722 = vrot.lane.b32.xlu0 %v9675_v57, %s9744_s10 }
0x2475   : > { %7053 = vrot.lane.b32.xlu1 %v12228_v61, %s9745_s14 }
0x2476   : > { %6718 = vrot.lane.b32.xlu0 %v9677_v62, %s9744_s10 }
0x2479   : > { %7049 = vrot.lane.b32.xlu1 %v12221_v34, %s9745_s14 }
0x247a   : > { %7051 = vrot.lane.b32.xlu0 %v12215_v50, %s9745_s14 }
0x247d   : > { %7045 = vrot.lane.b32.xlu1 %v12209_v23, %s9745_s14 }
0x247e   : > { %7047 = vrot.lane.b32.xlu0 %v12203_v7, %s9745_s14 }
0x2481   : > { %7041 = vrot.lane.b32.xlu1 %v12191_v25, %s9745_s14 }
0x2482   : > { %7043 = vrot.lane.b32.xlu0 %v12197_v59, %s9745_s14 }
0x2486   : > { %7039 = vrot.lane.b32.xlu0 %v12185_v19, %s9745_s14 }
0x24c1   : > { %v6617_v36 = vpop.xlane.xlu1 %6616  ;;  %v6614_v53 = vpop.xlane.xlu0 %6613 }
0x24c2   : > { %v6625_v10 = vmul.f32 0.25, %v6617_v36  ;;  %v6624_v6 = vmul.f32 0.25, %v6614_v53 }
0x24c4   : > { %v6645_v11 = vpack.c.bf16 %v6625_v10, %v6624_v6 }
0x24c5   : > { %v6608_v24 = vpop.xlane.xlu0 %6607  ;;  %v6602_v44 = vpop.xlane.xlu1 %6601 }
0x24c6   : > { %8376 = vmatprep.subr.bf16.mxu0 %v6645_v11  ;;  %v6622_v14 = vmul.f32 0.25, %v6608_v24  ;;  %v6620_v37 = vmul.f32 0.25, %v6602_v44 }
0x24c7   : > { %8377 = vmatpush3.bf16.msra.mxu0 %v6645_v11 }
0x24c9   : > { %v6611_v39 = vpop.xlane.xlu0 %6610  ;;  %v6596_v0 = vpop.xlane.xlu1 %6595 }
0x24ca   : > { %v6623_v15 = vmul.f32 0.25, %v6611_v39  ;;  %v6618_v28 = vmul.f32 0.25, %v6596_v0 }
0x24cc   : > { %v6644_v60 = vpack.c.bf16 %v6623_v15, %v6622_v14 }
0x24cd   : > { %v6605_v41 = vpop.xlane.xlu0 %6604  ;;  %v6747_v20 = vpop.permute.xlu1 %6746 }
0x24ce   : > { %v6621_v9 = vmul.f32 0.25, %v6605_v41  ;;  %8378 = vmatprep.subr.bf16.mxu0 %v6644_v60 }
0x24cf   : > { %8379 = vmatpush3.bf16.msra.mxu0 %v6644_v60 }
0x24d0   : > { %v6643_v54 = vpack.c.bf16 %v6621_v9, %v6620_v37 }
0x24d1   : > { %v6599_v17 = vpop.xlane.xlu0 %6598  ;;  %v6743_v52 = vpop.permute.xlu1 %6742 }
0x24d2   : > { %v6619_v1 = vmul.f32 0.25, %v6599_v17  ;;  %8380 = vmatprep.subr.bf16.mxu0 %v6643_v54 }
0x24d3   : > { %8381 = vmatpush3.bf16.msra.mxu0 %v6643_v54 }
0x24d4   : > { %v6642_v31 = vpack.c.bf16 %v6619_v1, %v6618_v28 }
0x24d5   : > { %v6745_v49 = vpop.permute.xlu1 %6744  ;;  %v6749_v50 = vpop.permute.xlu0 %6748 }
0x24d6   : > { %8382 = vmatprep.subr.bf16.mxu0 %v6642_v31 }
0x24d7   : > { %8383 = vmatpush3.bf16.msra.mxu0 %v6642_v31 }
0x24d9   : > { %v6741_v45 = vpop.permute.xlu1 %6740  ;;  %v6739_v34 = vpop.permute.xlu0 %6738 }
0x24da   : > { %8385 = vmatmul.mubr.msk.bf16.vlgmr.msra.gmra.mxu0 %vm3425_vm15, %v9168_v27 }
0x24db   : > { %8388 = vmatprep.mubr.msk.bf16.mxu0 %vm3425_vm15, %v9169_v8 }
0x24dd   : > { %v6737_v30 = vpop.permute.xlu1 %6736  ;;  %v6735_v23 = vpop.permute.xlu0 %6734 }
0x24e1   : > { %v6733_v19 = vpop.permute.xlu1 %6732  ;;  %v6731_v56 = vpop.permute.xlu0 %6730 }
0x24e2   : > { %8389 = vmatmul.mubr.msk.bf16.gmra.mxu0 %vm3425_vm15, %v9170_v38 }
0x24e3   : > { %8392 = vmatprep.mubr.msk.bf16.mxu0 %vm3425_vm15, %v9171_v5 }
0x24e5   : > { %v6729_v2 = vpop.permute.xlu1 %6728  ;;  %v6727_v51 = vpop.permute.xlu0 %6726 }
0x24e9   : > { %v6725_v53 = vpop.permute.xlu1 %6724  ;;  %v6723_v15 = vpop.permute.xlu0 %6722 }
0x24ea   : > { %8393 = vmatmul.mubr.msk.bf16.gmra.mxu0 %vm3425_vm15, %v9172_v18 }
0x24eb   : > { %8396 = vmatprep.mubr.msk.bf16.mxu0 %vm3425_vm15, %v9173_v21 }
0x24ed   : > { %v6721_v9 = vpop.permute.xlu1 %6720  ;;  %v6719_v5 = vpop.permute.xlu0 %6718 }
0x24f2   : > { %8397 = vmatmul.mubr.msk.bf16.gmra.mxu0 %vm3425_vm15, %v9174_v43 }
0x259a   : > { %v8386_v12 = vpop.f32.mrf.mxu0 }
0x259b   : > { %v12405_v37 = vadd.f32 %v8386_v12, %v6723_v15 }
0x259c   : > { %v12375_v58 = vpop.f32.mrf.mxu0 }
0x259d   : > { %v7895_v31 = vmul.f32 -1.442695, %v12405_v37 }
0x259e   : > { %v8387_v61 = vpop.f32.mrf.mxu0 }
0x259f   : > { %v12410_v17 = vadd.f32 %v8387_v61, %v6725_v53 }
0x25a0   : > { %v6827_v7 = vpop.f32.mrf.mxu0 }
0x25a1   : > { %v12416_v27 = vadd.f32 %v6827_v7, %v6721_v9  ;;  %v7896_v38 = vmul.f32 -1.442695, %v12410_v17 }
0x25a2   : > { %v8390_v32 = vpop.f32.mrf.mxu0 }
0x25a3   : > { %v12402_v60 = vadd.f32 %v8390_v32, %v6731_v56  ;;  %v7894_v43 = vmul.f32 -1.442695, %v12416_v27 }
0x25a4   : > { %v6840_v35 = vpop.f32.mrf.mxu0 }
0x25a5   : > { %v7899_v28 = vmul.f32 -1.442695, %v12402_v60  ;;  %v12413_v1 = vadd.f32 %v6840_v35, %v6727_v51 }
0x25a6   : > { %v8391_v59 = vpop.f32.mrf.mxu0 }
0x25a7   : > { %v12399_v39 = vadd.f32 %v8391_v59, %v6733_v19  ;;  %v7897_v18 = vmul.f32 -1.442695, %v12413_v1 }
0x25a8   : > { %v6843_v16 = vpop.f32.mrf.mxu0 }
0x25a9   : > { %v7900_v0 = vmul.f32 -1.442695, %v12399_v39  ;;  %v12408_v54 = vadd.f32 %v6843_v16, %v6729_v2 }
0x25aa   : > { %v8394_v63 = vpop.f32.mrf.mxu0 }
0x25ab   : > { %v12379_v26 = vadd.f32 %v8394_v63, %v6739_v34  ;;  %v7898_v8 = vmul.f32 -1.442695, %v12408_v54 }
0x25ac   : > { %v6856_v48 = vpop.f32.mrf.mxu0 }
0x25ad   : > { %v7903_v29 = vmul.f32 -1.442695, %v12379_v26  ;;  %v12393_v10 = vadd.f32 %v6856_v48, %v6735_v23 }
0x25ae   : > { %v8395_v25 = vpop.f32.mrf.mxu0 }
0x25af   : > { %v12377_v55 = vadd.f32 %v8395_v25, %v6741_v45  ;;  %v7901_v41 = vmul.f32 -1.442695, %v12393_v10 }
0x25b0   : > { %v6859_v4 = vpop.f32.mrf.mxu0 }
0x25b1   : > { %v7904_v42 = vmul.f32 -1.442695, %v12377_v55  ;;  %v12384_v47 = vadd.f32 %v6859_v4, %v6737_v30 }
0x25b2   : > { %v8398_v40 = vpop.f32.mrf.mxu0 }
0x25b3   : > { %v12381_v3 = vadd.f32 %v8398_v40, %v6747_v20  ;;  %v7902_v11 = vmul.f32 -1.442695, %v12384_v47 }
0x25b4   : > { %v6872_v22 = vpop.f32.mrf.mxu0 }
0x25b5   : > { %v7907_v13 = vmul.f32 -1.442695, %v12381_v3  ;;  %v12387_v57 = vadd.f32 %v6872_v22, %v6743_v52 }
0x25b6   : > { %v8399_v62 = vpop.f32.mrf.mxu0 }
0x25b7   : > { %v7905_v46 = vmul.f32 -1.442695, %v12387_v57  ;;  %v12391_v36 = vadd.f32 %v8399_v62, %v6749_v50  ;;  %9535 = vpow2.f32 %v7907_v13 }
0x25b8   : > { %v6875_v6 = vpop.f32.mrf.mxu0  ;;  %9537 = vpow2.f32 %v7904_v42 }
0x25b9   : > { %v7908_v24 = vmul.f32 -1.442695, %v12391_v36  ;;  %v12397_v44 = vadd.f32 %v6875_v6, %v6745_v49  ;;  %9539 = vpow2.f32 %v7905_v46  ;;  %v12423_v49 = vadd.f32 %v12375_v58, %v6719_v5 }
0x25ba   : > { %9541 = vpow2.f32 %v7903_v29 }
0x25bb   : > { %v7906_v14 = vmul.f32 -1.442695, %v12397_v44  ;;  %9543 = vpow2.f32 %v7908_v24  ;;  %v7893_v35 = vmul.f32 -1.442695, %v12423_v49 }
0x25bc   : > { %9545 = vpow2.f32 %v7902_v11 }
0x25bd   : > { %9547 = vpow2.f32 %v7906_v14 }
0x25be   : > { %9549 = vpow2.f32 %v7901_v41 }
0x25bf   : > { %9551 = vpow2.f32 %v7900_v0 }
0x25c0   : > { %9553 = vpow2.f32 %v7899_v28 }
0x25c1   : > { %9555 = vpow2.f32 %v7895_v31 }
0x25c2   : > { %9557 = vpow2.f32 %v7898_v8 }
0x25c3   : > { %9559 = vpow2.f32 %v7896_v38 }
0x25c4   : > { %v9536_v21 = vpop.eup %9535  ;;  %9561 = vpow2.f32 %v7897_v18 }
0x25c5   : > { %v9538_v33 = vpop.eup %9537  ;;  %v6949_v20 = vadd.f32 1.0, %v9536_v21  ;;  %9563 = vpow2.f32 %v7894_v43 }
0x25c6   : > { %v9540_v52 = vpop.eup %9539  ;;  %v6946_v45 = vadd.f32 1.0, %v9538_v33 }
0x25c7   : > { %v9542_v12 = vpop.eup %9541  ;;  %v6947_v50 = vadd.f32 1.0, %v9540_v52  ;;  %9565 = vrcp.f32 %v6949_v20 }
0x25c8   : > { %v9544_v61 = vpop.eup %9543  ;;  %v6945_v30 = vadd.f32 1.0, %v9542_v12 }
0x25c9   : > { %v9546_v7 = vpop.eup %9545  ;;  %v6950_v32 = vadd.f32 1.0, %v9544_v61  ;;  %9567 = vrcp.f32 %v6947_v50 }
0x25ca   : > { %v9548_v34 = vpop.eup %9547  ;;  %v6944_v58 = vadd.f32 1.0, %v9546_v7 }
0x25cb   : > { %9569 = vrcp.f32 %v6950_v32  ;;  %v6948_v59 = vadd.f32 1.0, %v9548_v34  ;;  %v9550_v16 = vpop.eup %9549 }
0x25cc   : > { %9571 = vrcp.f32 %v6946_v45  ;;  %v9552_v23 = vpop.eup %9551  ;;  %v6943_v63 = vadd.f32 1.0, %v9550_v16  ;;  %v9681_v16 = vld [vmem:[%s12500_s2 + $0x8] sm:$0xff] }
0x25cd   : > { %9573 = vrcp.f32 %v6948_v59  ;;  %v9554_v19 = vpop.eup %9553  ;;  %v6942_v25 = vadd.f32 1.0, %v9552_v23  ;;  %7204 = vrot.lane.b32.xlu1 %v9681_v16, %s9746_s7  ;;  %v9683_v23 = vld [vmem:[%s12500_s2 + $0x18] sm:$0xff] }
0x25ce   : > { %9575 = vpow2.f32 %v7893_v35  ;;  %v9556_v48 = vpop.eup %9555  ;;  %v6941_v2 = vadd.f32 1.0, %v9554_v19  ;;  %v7052_v19 = vpop.permute.xlu0 %7051 }
0x25cf   : > { %9577 = vrcp.f32 %v6945_v30  ;;  %v9558_v56 = vpop.eup %9557  ;;  %v6937_v14 = vadd.f32 1.0, %v9556_v48 }
0x25d0   : > { %9579 = vrcp.f32 %v6944_v58  ;;  %v9560_v4 = vpop.eup %9559  ;;  %v6940_v42 = vadd.f32 1.0, %v9558_v56  ;;  %v9682_v58 = vld [vmem:[%s12500_s2 + $0x10] sm:$0xff] }
0x25d1   : > { %9581 = vrcp.f32 %v6943_v63  ;;  %v9562_v40 = vpop.eup %9561  ;;  %v6938_v53 = vadd.f32 1.0, %v9560_v4  ;;  %7208 = vrot.lane.b32.xlu1 %v9683_v23, %s9746_s7  ;;  %v7054_v63 = vpop.permute.xlu1 %7053 }
0x25d2   : > { %v9564_v22 = vpop.eup %9563  ;;  %9583 = vrcp.f32 %v6942_v25  ;;  %v6939_v62 = vadd.f32 1.0, %v9562_v40  ;;  %v7048_v25 = vpop.permute.xlu0 %7047 }
0x25d3   : > { %9585 = vrcp.f32 %v6941_v2  ;;  %v6936_v31 = vadd.f32 1.0, %v9564_v22 }
0x25d4   : > { %v9566_v13 = vpop.eup %9565  ;;  %9587 = vrcp.f32 %v6940_v42 }
0x25d5   : > { %v6997_v6 = vmul.f32 %v9566_v13, %v12381_v3  ;;  %9589 = vrcp.f32 %v6939_v62  ;;  %v7050_v48 = vpop.permute.xlu1 %7049 }
0x25d6   : > { %v9568_v51 = vpop.eup %9567  ;;  %9591 = vrcp.f32 %v6938_v53  ;;  %v7044_v40 = vpop.permute.xlu0 %7043 }
0x25d7   : > { %v6995_v41 = vmul.f32 %v9568_v51, %v12387_v57  ;;  %9593 = vrcp.f32 %v6937_v14 }
0x25d8   : > { %v9570_v29 = vpop.eup %9569  ;;  %9595 = vrcp.f32 %v6936_v31 }
0x25d9   : > { %v9572_v46 = vpop.eup %9571  ;;  %v6998_v11 = vmul.f32 %v9570_v29, %v12391_v36  ;;  %v7046_v4 = vpop.permute.xlu1 %7045 }
0x25da   : > { %v9574_v24 = vpop.eup %9573  ;;  %v6994_v8 = vmul.f32 %v9572_v46, %v12377_v55  ;;  %v7040_v53 = vpop.permute.xlu0 %7039 }
0x25db   : > { %v9576_v15 = vpop.eup %9575  ;;  %v6996_v9 = vmul.f32 %v9574_v24, %v12397_v44  ;;  %v7014_v0 = vpack.c.bf16 %v6998_v11, %v6997_v6 }
0x25dc   : > { %v9578_v28 = vpop.eup %9577  ;;  %v6935_v3 = vadd.f32 1.0, %v9576_v15 }
0x25dd   : > { %8400 = vmatprep.subr.bf16.mxu1 %v7014_v0  ;;  %v7013_v38 = vpack.c.bf16 %v6996_v9, %v6995_v41  ;;  %v9580_v5 = vpop.eup %9579  ;;  %v6993_v36 = vmul.f32 %v9578_v28, %v12379_v26  ;;  %v7042_v51 = vpop.permute.xlu1 %7041 }
0x25de   : > { %8401 = vmatpush3.bf16.msra.mxu1 %v7014_v0  ;;  %v9582_v18 = vpop.eup %9581  ;;  %v6992_v57 = vmul.f32 %v9580_v5, %v12384_v47  ;;  %9597 = vrcp.f32 %v6935_v3 }
0x25df   : > { %8402 = vmatprep.subr.bf16.mxu1 %v7013_v38  ;;  %v7012_v44 = vpack.c.bf16 %v6994_v8, %v6993_v36  ;;  %v9584_v21 = vpop.eup %9583  ;;  %v6991_v43 = vmul.f32 %v9582_v18, %v12393_v10 }
0x25e0   : > { %v9586_v55 = vpop.eup %9585  ;;  %v6990_v33 = vmul.f32 %v9584_v21, %v12399_v39 }
0x25e1   : > { %v7011_v20 = vpack.c.bf16 %v6992_v57, %v6991_v43  ;;  %v9588_v52 = vpop.eup %9587  ;;  %v6989_v26 = vmul.f32 %v9586_v55, %v12402_v60 }
0x25e2   : > { %8403 = vmatpush3.bf16.msra.mxu1 %v7013_v38  ;;  %v9590_v12 = vpop.eup %9589  ;;  %v6988_v50 = vmul.f32 %v9588_v52, %v12408_v54 }
0x25e3   : > { %8404 = vmatprep.subr.bf16.mxu1 %v7012_v44  ;;  %v7010_v47 = vpack.c.bf16 %v6990_v33, %v6989_v26  ;;  %v9592_v61 = vpop.eup %9591  ;;  %v6987_v45 = vmul.f32 %v9590_v12, %v12413_v1  ;;  %v9178_v1 = vld [vmem:[%s12499_s1 + $0xa10] ss:$8 sps:$4 sm:$0xff]  }
0x25e4   : > { %v9594_v10 = vpop.eup %9593  ;;  %v6986_v7 = vmul.f32 %v9592_v61, %v12410_v17  ;;  %v9176_v17 = vld [vmem:[%s12499_s1 + $0x9f0] ss:$8 sps:$4 sm:$0xff]  }
0x25e5   : > { %v7009_v32 = vpack.c.bf16 %v6988_v50, %v6987_v45  ;;  %v9596_v39 = vpop.eup %9595  ;;  %v6985_v34 = vmul.f32 %v9594_v10, %v12405_v37  ;;  %v9177_v37 = vld [vmem:[%s12499_s1 + $0xa00] ss:$8 sps:$4 sm:$0xff]  }
0x25e6   : > { %8405 = vmatpush3.bf16.msra.mxu1 %v7012_v44  ;;  %v6984_v35 = vmul.f32 %v9596_v39, %v12416_v27  ;;  %v9179_v27 = vld [vmem:[%s12499_s1 + $0xa20] ss:$8 sps:$4 sm:$0xff]  }
0x25e7   : > { %8406 = vmatprep.subr.bf16.mxu1 %v7011_v20  ;;  %v7008_v30 = vpack.c.bf16 %v6986_v7, %v6985_v34  ;;  %8432 = vmatprep.mubr.msk.bf16.mxu0 %vm3425_vm15, %v9179_v27 }
0x25ea   : > { %8407 = vmatpush3.bf16.msra.mxu1 %v7011_v20 }
0x25eb   : > { %8408 = vmatprep.subr.bf16.mxu1 %v7010_v47  ;;  %v9598_v60 = vpop.eup %9597 }
0x25ec   : > { %v6983_v54 = vmul.f32 %v9598_v60, %v12423_v49  ;;  %v9680_v49 = vld [vmem:[%s12500_s2] sm:$0xff] }
0x25ed   : > { %7202 = vrot.lane.b32.xlu0 %v9680_v49, %s9746_s7 }
0x25ee   : > { %8409 = vmatpush3.bf16.msra.mxu1 %v7010_v47  ;;  %v7007_v59 = vpack.c.bf16 %v6984_v35, %v6983_v54 }
0x25ef   : > { %8410 = vmatprep.subr.bf16.mxu1 %v7009_v32 }
0x25f1   : > { %7206 = vrot.lane.b32.xlu0 %v9682_v58, %s9746_s7 }
0x25f2   : > { %8411 = vmatpush3.bf16.msra.mxu1 %v7009_v32 }
0x25f3   : > { %8412 = vmatprep.subr.bf16.mxu1 %v7008_v30 }
0x25f6   : > { %8413 = vmatpush3.bf16.msra.mxu1 %v7008_v30 }
0x25f7   : > { %8414 = vmatprep.subr.bf16.mxu1 %v7007_v59 }
0x25fa   : > { %8415 = vmatpush3.bf16.msra.mxu1 %v7007_v59 }
0x25fd   : > { %8417 = vmatmul.mubr.bf16.vlgmr.msra.gmra.mxu1 %v9176_v17 }
0x25fe   : > { %8420 = vmatprep.mubr.bf16.mxu1 %v9177_v37 }
0x2605   : > { %8421 = vmatmul.mubr.bf16.gmra.mxu1 %v9178_v1 }
0x26bd   : > { %v8418_v56 = vpop.f32.mrf.mxu1 }
0x26be   : > { %v12469_v62 = vadd.f32 %v8418_v56, %v7044_v40  ;;  %v9180_v56 = vld [vmem:[%s12499_s1 + $0xa30] ss:$8 sps:$4 sm:$0xff]  }
0x26bf   : > { %v7097_v2 = vpop.f32.mrf.mxu1 }
0x26c0   : > { %v7915_v41 = vmul.f32 -1.442695, %v12469_v62  ;;  %v12475_v0 = vadd.f32 %v7097_v2, %v7040_v53  ;;  %v7205_v2 = vpop.permute.xlu1 %7204 }
0x26c1   : > { %v8419_v22 = vpop.f32.mrf.mxu1 }
0x26c2   : > { %v12467_v42 = vadd.f32 %v8419_v22, %v7046_v4  ;;  %v7913_v36 = vmul.f32 -1.442695, %v12475_v0  ;;  %v7203_v4 = vpop.permute.xlu0 %7202 }
0x26c3   : > { %v7100_v13 = vpop.f32.mrf.mxu1 }
0x26c4   : > { %v7916_v6 = vmul.f32 -1.442695, %v12467_v42  ;;  %v12472_v11 = vadd.f32 %v7100_v13, %v7042_v51  ;;  %v7209_v51 = vpop.permute.xlu1 %7208 }
0x26c5   : > { %v8422_v29 = vpop.f32.mrf.mxu1 }
0x26c6   : > { %v7122_v46 = vadd.f32 %v8422_v29, %v7052_v19  ;;  %v7914_v8 = vmul.f32 -1.442695, %v12472_v11  ;;  %v7207_v40 = vpop.permute.xlu0 %7206 }
0x26c7   : > { %v7113_v24 = vpop.f32.mrf.mxu1 }
0x26c8   : > { %v7919_v14 = vmul.f32 -1.442695, %v7122_v46  ;;  %v7114_v15 = vadd.f32 %v7113_v24, %v7048_v25 }
0x26c9   : > { %v8423_v9 = vpop.f32.mrf.mxu1 }
0x26ca   : > { %9599 = vpow2.f32 %v7919_v14  ;;  %v7917_v28 = vmul.f32 -1.442695, %v7114_v15  ;;  %v7125_v31 = vadd.f32 %v8423_v9, %v7054_v63 }
0x26cb   : > { %9601 = vpow2.f32 %v7916_v6  ;;  %v7116_v38 = vpop.f32.mrf.mxu1 }
0x26cc   : > { %9603 = vpow2.f32 %v7917_v28  ;;  %v7920_v5 = vmul.f32 -1.442695, %v7125_v31  ;;  %v7117_v3 = vadd.f32 %v7116_v38, %v7050_v48 }
0x26cd   : > { %9605 = vpow2.f32 %v7915_v41 }
0x26ce   : > { %9607 = vpow2.f32 %v7920_v5  ;;  %v7918_v18 = vmul.f32 -1.442695, %v7117_v3 }
0x26cf   : > { %9609 = vpow2.f32 %v7914_v8 }
0x26d0   : > { %9611 = vpow2.f32 %v7918_v18 }
0x26d1   : > { %9613 = vpow2.f32 %v7913_v36 }
0x26d7   : > { %v9600_v57 = vpop.eup %9599 }
0x26d8   : > { %v9602_v44 = vpop.eup %9601  ;;  %v7158_v21 = vadd.f32 1.0, %v9600_v57 }
0x26d9   : > { %v9604_v43 = vpop.eup %9603  ;;  %v7155_v52 = vadd.f32 1.0, %v9602_v44 }
0x26da   : > { %v9606_v55 = vpop.eup %9605  ;;  %v7156_v33 = vadd.f32 1.0, %v9604_v43  ;;  %9615 = vrcp.f32 %v7158_v21 }
0x26db   : > { %v9608_v20 = vpop.eup %9607  ;;  %v7154_v47 = vadd.f32 1.0, %v9606_v55 }
0x26dc   : > { %v9610_v26 = vpop.eup %9609  ;;  %v7159_v12 = vadd.f32 1.0, %v9608_v20  ;;  %9617 = vrcp.f32 %v7156_v33 }
0x26dd   : > { %v9612_v50 = vpop.eup %9611  ;;  %v7153_v10 = vadd.f32 1.0, %v9610_v26 }
0x26de   : > { %9619 = vrcp.f32 %v7159_v12  ;;  %v7157_v61 = vadd.f32 1.0, %v9612_v50  ;;  %v9614_v45 = vpop.eup %9613 }
0x26df   : > { %9621 = vrcp.f32 %v7155_v52  ;;  %v7152_v7 = vadd.f32 1.0, %v9614_v45 }
0x26e0   : > { %9623 = vrcp.f32 %v7157_v61 }
0x26e1   : > { %9625 = vrcp.f32 %v7154_v47 }
0x26e2   : > { %9627 = vrcp.f32 %v7153_v10 }
0x26e3   : > { %9629 = vrcp.f32 %v7152_v7 }
0x26e7   : > { %v9616_v32 = vpop.eup %9615 }
0x26e8   : > { %v7182_v35 = vmul.f32 %v9616_v32, %v7122_v46 }
0x26e9   : > { %v9618_v39 = vpop.eup %9617 }
0x26ea   : > { %v7180_v59 = vmul.f32 %v9618_v39, %v7114_v15 }
0x26eb   : > { %v9620_v34 = vpop.eup %9619 }
0x26ec   : > { %v9622_v60 = vpop.eup %9621  ;;  %v7183_v30 = vmul.f32 %v9620_v34, %v7125_v31 }
0x26ed   : > { %v9624_v54 = vpop.eup %9623  ;;  %v7179_v27 = vmul.f32 %v9622_v60, %v12467_v42 }
0x26ee   : > { %v7181_v17 = vmul.f32 %v9624_v54, %v7117_v3  ;;  %v7191_v37 = vpack.c.bf16 %v7183_v30, %v7182_v35  ;;  %v9626_v1 = vpop.eup %9625 }
0x26ef   : > { %v9628_v16 = vpop.eup %9627  ;;  %v7178_v58 = vmul.f32 %v9626_v1, %v12469_v62 }
0x26f0   : > { %8424 = vmatprep.subr.bf16.mxu0 %v7191_v37  ;;  %v7190_v49 = vpack.c.bf16 %v7181_v17, %v7180_v59  ;;  %v9630_v23 = vpop.eup %9629  ;;  %v7177_v63 = vmul.f32 %v9628_v16, %v12472_v11 }
0x26f1   : > { %8425 = vmatpush3.bf16.msra.mxu0 %v7191_v37  ;;  %v7189_v19 = vpack.c.bf16 %v7179_v27, %v7178_v58  ;;  %v7176_v48 = vmul.f32 %v9630_v23, %v12475_v0 }
0x26f2   : > { %8426 = vmatprep.subr.bf16.mxu0 %v7190_v49 }
0x26f3   : > { %v7188_v25 = vpack.c.bf16 %v7177_v63, %v7176_v48 }
0x26f5   : > { %8427 = vmatpush3.bf16.msra.mxu0 %v7190_v49 }
0x26f6   : > { %8428 = vmatprep.subr.bf16.mxu0 %v7189_v19 }
0x26f9   : > { %8429 = vmatpush3.bf16.msra.mxu0 %v7189_v19 }
0x26fa   : > { %8430 = vmatprep.subr.bf16.mxu0 %v7188_v25 }
0x26fd   : > { %8431 = vmatpush3.bf16.msra.mxu0 %v7188_v25 }
0x2700   : > { %8433 = vmatmul.mubr.msk.bf16.vlgmr.msra.gmra.mxu0 %vm3425_vm15, %v9180_v56  ;;  %vm12645_vm15 = vcmask 7168  }
0x2701   : > { %vm12646_vm11 = vmmov %vm12645_vm15 }
0x2702   : > { %vm12647_vm2 = vmmov %vm12646_vm11 }
0x2703   : > { %vm12648_vm3 = vmmov %vm12647_vm2 }
0x27c0   : > { %v8434_v22 = vpop.f32.mrf.mxu0 }
0x27c1   : > { %v7263_v42 = vadd.f32 %v8434_v22, %v7207_v40 }
0x27c2   : > { %v7254_v13 = vpop.f32.mrf.mxu0 }
0x27c3   : > { %v7255_v62 = vadd.f32 %v7254_v13, %v7203_v4  ;;  %v7927_v29 = vmul.f32 -1.442695, %v7263_v42 }
0x27c4   : > { %v8435_v46 = vpop.f32.mrf.mxu0 }
0x27c5   : > { %v7925_v53 = vmul.f32 -1.442695, %v7255_v62  ;;  %9631 = vpow2.f32 %v7927_v29  ;;  %v7266_v6 = vadd.f32 %v8435_v46, %v7209_v51 }
0x27c6   : > { %v7257_v11 = vpop.f32.mrf.mxu0 }
0x27c7   : > { %9633 = vpow2.f32 %v7925_v53  ;;  %v7258_v24 = vadd.f32 %v7257_v11, %v7205_v2  ;;  %v7928_v14 = vmul.f32 -1.442695, %v7266_v6 }
0x27c9   : > { %v7926_v15 = vmul.f32 -1.442695, %v7258_v24  ;;  %9635 = vpow2.f32 %v7928_v14 }
0x27cb   : > { %9637 = vpow2.f32 %v7926_v15 }
0x27d2   : > { %v9632_v41 = vpop.eup %9631 }
0x27d3   : > { %v7283_v9 = vadd.f32 1.0, %v9632_v41 }
0x27d4   : > { %v9634_v0 = vpop.eup %9633 }
0x27d5   : > { %v7281_v28 = vadd.f32 1.0, %v9634_v0  ;;  %9639 = vrcp.f32 %v7283_v9 }
0x27d6   : > { %v9636_v31 = vpop.eup %9635 }
0x27d7   : > { %9641 = vrcp.f32 %v7281_v28  ;;  %v7284_v8 = vadd.f32 1.0, %v9636_v31 }
0x27d8   : > { %v9638_v38 = vpop.eup %9637 }
0x27d9   : > { %v7282_v5 = vadd.f32 1.0, %v9638_v38  ;;  %9643 = vrcp.f32 %v7284_v8 }
0x27db   : > { %9645 = vrcp.f32 %v7282_v5 }
0x27e2   : > { %v9640_v3 = vpop.eup %9639 }
0x27e3   : > { %7295 = vst.msk [vmem:[%s170_s5 + $0x10] sm:$0xff] %vm12645_vm15, %v9640_v3 }
0x27e4   : > { %v9642_v36 = vpop.eup %9641 }
0x27e5   : > { %7293 = vst.msk [vmem:[%s170_s5] sm:$0xff] %vm12646_vm11, %v9642_v36 }
0x27e6   : > { %v9644_v18 = vpop.eup %9643 }
0x27e7   : > { %7296 = vst.msk [vmem:[%s170_s5 + $0x18] sm:$0xff] %vm12647_vm2, %v9644_v18 }
0x27e8   : > { %v9646_v57 = vpop.eup %9645 }
0x27e9   : > { %7294 = vst.msk [vmem:[%s170_s5 + $0x8] sm:$0xff] %vm12648_vm3, %v9646_v57 }
0x27ea PF: > { %s13_s12 = sadd.s32 1, %s9690_s12  }
0x27eb   : > { %p10_p4 = scmp.ge.s32.totalorder %s13_s12, 4  }
0x27ed   :  { %12 = sbr.rel (!%p10_p4) target bundleno = 1 (0x1), region = 62 }

</bundles_post_ra>
